<compile_context>
chip_gen: v7x
topology: tpu7x:2x2x1
jax: 0.10.0
libtpu: 0.0.40
codegen_flags: <defaults>
</compile_context>

<pallas_src>
import jax
import jax.numpy as jnp
from jax.experimental import pallas as pl
from jax.experimental.pallas import tpu as pltpu

IMAGE_SIZE = 64
IN_FEATURES = IMAGE_SIZE * IMAGE_SIZE * 3   # 12288
H1 = 3 * 64                                 # 192
H2 = 256
OUT = 15


def mlp_kernel(x_ref, w1_ref, b1_ref, w2_ref, b2_ref, w3_ref, b3_ref, o_ref):
    # Cast x to bf16 in-kernel (cheap VPU work, hidden under DMA); W1 arrives bf16.
    x_bf16 = x_ref[...].astype(jnp.bfloat16)
    h1 = jnp.dot(x_bf16, w1_ref[...], preferred_element_type=jnp.float32)
    h1 = jnp.maximum(h1 + b1_ref[...], 0.0)                          # ReLU
    h2 = jnp.dot(h1, w2_ref[...], preferred_element_type=jnp.float32)
    h2 = jnp.maximum(h2 + b2_ref[...], 0.0)                          # ReLU
    logits = jnp.dot(h2, w3_ref[...],
                     preferred_element_type=jnp.float32) + b3_ref[...]
    o_ref[...] = logits.astype(o_ref.dtype)


def prepare_params(params):
    """One-time prep: cast W1 to bf16 so the per-call path never re-casts it."""
    w1, b1, w2, b2, w3, b3 = params
    return (w1.astype(jnp.bfloat16), b1, w2, b2, w3, b3)


def neural_network_forward(x_nchw, params, *, bm_max=128):
    """x_nchw: (B, 3, 64, 64) float32. params: output of prepare_params (W1 bf16).
    Returns logits (B, 15) float32."""
    w1, b1, w2, b2, w3, b3 = params
    if w1.dtype != jnp.bfloat16:
        # Callers should pre-cast once via prepare_params; this is a safety net.
        w1 = w1.astype(jnp.bfloat16)

    B = x_nchw.shape[0]
    # nn.Flatten on NCHW == row-major reshape over (C, H, W).
    x = x_nchw.reshape(B, -1)                                        # (B, 12288) f32
    assert x.shape[1] == IN_FEATURES

    # Batch tiling: single block at small B; otherwise tile by bm_max, padding
    # the batch so arbitrary B is supported (padded rows are sliced off below).
    if B <= bm_max:
        bm, n_b, B_pad = B, 1, B
    else:
        bm = bm_max
        n_b = pl.cdiv(B, bm)
        B_pad = n_b * bm
        if B_pad != B:
            x = jnp.pad(x, ((0, B_pad - B), (0, 0)))

    flops = 2 * B_pad * (IN_FEATURES * H1 + H1 * H2 + H2 * OUT)
    bytes_accessed = (B_pad * IN_FEATURES * 4                      # x (f32, read once)
                      + IN_FEATURES * H1 * 2                       # W1 (bf16, read once)
                      + (b1.size + w2.size + b2.size + w3.size + b3.size) * 4
                      + B_pad * OUT * 4)                           # output

    out = pl.pallas_call(
        mlp_kernel,
        out_shape=jax.ShapeDtypeStruct((B_pad, OUT), jnp.float32),
        grid_spec=pltpu.PrefetchScalarGridSpec(
            num_scalar_prefetch=0,
            grid=(n_b,),
            in_specs=[
                pl.BlockSpec((bm, IN_FEATURES), lambda b: (b, 0)),   # x tile (f32)
                pl.BlockSpec((IN_FEATURES, H1), lambda b: (0, 0)),   # W1 resident (bf16)
                pl.BlockSpec((1, H1), lambda b: (0, 0)),             # b1 resident
                pl.BlockSpec((H1, H2), lambda b: (0, 0)),            # W2 resident
                pl.BlockSpec((1, H2), lambda b: (0, 0)),             # b2 resident
                pl.BlockSpec((H2, OUT), lambda b: (0, 0)),           # W3 resident
                pl.BlockSpec((1, OUT), lambda b: (0, 0)),            # b3 resident
            ],
            out_specs=pl.BlockSpec((bm, OUT), lambda b: (b, 0)),
        ),
        compiler_params=pltpu.CompilerParams(
            dimension_semantics=("parallel",),
            vmem_limit_bytes=32 * 1024 * 1024),
        cost_estimate=pl.CostEstimate(flops=flops, transcendentals=0,
                                      bytes_accessed=bytes_accessed),
    )(x, w1, b1, w2, b2, w3, b3)

    return out[:B] if B_pad != B else out


def init_params(key):
    """Deterministic parameter init (PyTorch-style uniform +/- 1/sqrt(fan_in))."""
    ks = jax.random.split(key, 6)

    def lin(kw, kb, fan_in, fan_out):
        bound = 1.0 / jnp.sqrt(fan_in)
        w = jax.random.uniform(kw, (fan_in, fan_out), jnp.float32, -bound, bound)
        b = jax.random.uniform(kb, (1, fan_out), jnp.float32, -bound, bound)
        return w, b

    w1, b1 = lin(ks[0], ks[1], IN_FEATURES, H1)
    w2, b2 = lin(ks[2], ks[3], H1, H2)
    w3, b3 = lin(ks[4], ks[5], H2, OUT)
    return (w1, b1, w2, b2, w3, b3)


def reference_forward(x_nchw, params):
    w1, b1, w2, b2, w3, b3 = params
    x = x_nchw.reshape(x_nchw.shape[0], -1)
    h1 = jnp.maximum(x @ w1 + b1, 0.0)
    h2 = jnp.maximum(h1 @ w2 + b2, 0.0)
    return h2 @ w3 + b3


if __name__ == "__main__":
    key = jax.random.PRNGKey(0)
    k_x, k_p = jax.random.split(key)

    B = 2
    x = jax.random.normal(k_x, (B, 3, IMAGE_SIZE, IMAGE_SIZE), jnp.float32)
    params_f32 = init_params(k_p)
    params = prepare_params(params_f32)       # one-time bf16 cast of W1

    out = neural_network_forward(x, params)
    out = jax.block_until_ready(out)

    # f32 reference; tolerance loosened because the first-layer operands are bf16
    # on the MXU (accumulation is f32, so error stays ~1e-2 relative).
    ref = reference_forward(x, params_f32)
    assert out.shape == (B, OUT)
    assert jnp.allclose(out, ref, atol=5e-2, rtol=5e-2), "mismatch vs reference"

    print("KERNEL_OK")
</pallas_src>

<mosaic_0001>
module attributes {stable_mosaic.version = 11 : i64} {
  func.func @mlp_kernel(%arg0: i32, %arg1: memref<2x12288xf32, #tpu.memory_space<vmem>>, %arg2: memref<12288x192xbf16, #tpu.memory_space<vmem>>, %arg3: memref<1x192xf32, #tpu.memory_space<vmem>>, %arg4: memref<192x256xf32, #tpu.memory_space<vmem>>, %arg5: memref<1x256xf32, #tpu.memory_space<vmem>>, %arg6: memref<256x15xf32, #tpu.memory_space<vmem>>, %arg7: memref<1x15xf32, #tpu.memory_space<vmem>>, %arg8: memref<2x15xf32, #tpu.memory_space<vmem>>) attributes {dimension_semantics = [#tpu.dimension_semantics<parallel>], iteration_bounds = array<i64: 1>, scalar_prefetch = 0 : i64, scratch_operands = 0 : i64, tpu.core_type = #tpu.core_type<tc>, window_params = [{transform_indices = @transform_0, window_bounds = array<i64: 2, 12288>}, {pipeline_mode = #tpu.pipeline_mode<synchronous>, transform_indices = @transform_1, window_bounds = array<i64: 12288, 192>}, {pipeline_mode = #tpu.pipeline_mode<synchronous>, transform_indices = @transform_2, window_bounds = array<i64: 1, 192>}, {pipeline_mode = #tpu.pipeline_mode<synchronous>, transform_indices = @transform_3, window_bounds = array<i64: 192, 256>}, {pipeline_mode = #tpu.pipeline_mode<synchronous>, transform_indices = @transform_4, window_bounds = array<i64: 1, 256>}, {pipeline_mode = #tpu.pipeline_mode<synchronous>, transform_indices = @transform_5, window_bounds = array<i64: 256, 15>}, {pipeline_mode = #tpu.pipeline_mode<synchronous>, transform_indices = @transform_6, window_bounds = array<i64: 1, 15>}, {transform_indices = @transform_7, window_bounds = array<i64: 2, 15>}]} {
    %c0 = arith.constant 0 : index
    %c0_0 = arith.constant 0 : index
    %0 = vector.load %arg1[%c0, %c0_0] : memref<2x12288xf32, #tpu.memory_space<vmem>>, vector<2x12288xf32>
    %1 = arith.truncf %0 : vector<2x12288xf32> to vector<2x12288xbf16>
    %c0_1 = arith.constant 0 : index
    %c0_2 = arith.constant 0 : index
    %2 = vector.load %arg2[%c0_1, %c0_2] : memref<12288x192xbf16, #tpu.memory_space<vmem>>, vector<12288x192xbf16>
    %cst = arith.constant dense<0.000000e+00> : vector<2x192xf32>
    %3 = tpu.matmul %1, %2, %cst {dimension_numbers = #tpu.dot_dimension_numbers<[1], [0], [0], [1], [0, 0, 1, 1], [], []>} : vector<2x12288xbf16>, vector<12288x192xbf16>, vector<2x192xf32> -> vector<2x192xf32>
    %c0_3 = arith.constant 0 : index
    %c0_4 = arith.constant 0 : index
    %4 = vector.load %arg3[%c0_3, %c0_4] : memref<1x192xf32, #tpu.memory_space<vmem>>, vector<1x192xf32>
    %5 = vector.broadcast %4 : vector<1x192xf32> to vector<2x192xf32>
    %6 = arith.addf %3, %5 : vector<2x192xf32>
    %cst_5 = arith.constant 0.000000e+00 : f32
    %7 = vector.broadcast %cst_5 : f32 to vector<2x192xf32>
    %8 = arith.maximumf %6, %7 : vector<2x192xf32>
    %c0_6 = arith.constant 0 : index
    %c0_7 = arith.constant 0 : index
    %9 = vector.load %arg4[%c0_6, %c0_7] : memref<192x256xf32, #tpu.memory_space<vmem>>, vector<192x256xf32>
    %cst_8 = arith.constant dense<0.000000e+00> : vector<2x256xf32>
    %10 = tpu.matmul %8, %9, %cst_8 {dimension_numbers = #tpu.dot_dimension_numbers<[1], [0], [0], [1], [0, 0, 1, 1], [], []>} : vector<2x192xf32>, vector<192x256xf32>, vector<2x256xf32> -> vector<2x256xf32>
    %c0_9 = arith.constant 0 : index
    %c0_10 = arith.constant 0 : index
    %11 = vector.load %arg5[%c0_9, %c0_10] : memref<1x256xf32, #tpu.memory_space<vmem>>, vector<1x256xf32>
    %12 = vector.broadcast %11 : vector<1x256xf32> to vector<2x256xf32>
    %13 = arith.addf %10, %12 : vector<2x256xf32>
    %cst_11 = arith.constant 0.000000e+00 : f32
    %14 = vector.broadcast %cst_11 : f32 to vector<2x256xf32>
    %15 = arith.maximumf %13, %14 : vector<2x256xf32>
    %c0_12 = arith.constant 0 : index
    %c0_13 = arith.constant 0 : index
    %16 = vector.load %arg6[%c0_12, %c0_13] : memref<256x15xf32, #tpu.memory_space<vmem>>, vector<256x15xf32>
    %cst_14 = arith.constant dense<0.000000e+00> : vector<2x15xf32>
    %17 = tpu.matmul %15, %16, %cst_14 {dimension_numbers = #tpu.dot_dimension_numbers<[1], [0], [0], [1], [0, 0, 1, 1], [], []>} : vector<2x256xf32>, vector<256x15xf32>, vector<2x15xf32> -> vector<2x15xf32>
    %c0_15 = arith.constant 0 : index
    %c0_16 = arith.constant 0 : index
    %18 = vector.load %arg7[%c0_15, %c0_16] : memref<1x15xf32, #tpu.memory_space<vmem>>, vector<1x15xf32>
    %19 = vector.broadcast %18 : vector<1x15xf32> to vector<2x15xf32>
    %20 = arith.addf %17, %19 : vector<2x15xf32>
    %c0_17 = arith.constant 0 : index
    %c0_18 = arith.constant 0 : index
    %21 = vector.load %arg8[%c0_17, %c0_18] : memref<2x15xf32, #tpu.memory_space<vmem>>, vector<2x15xf32>
    tpu.vector_store %arg8[%c0_17, %c0_18], %20 {strides = array<i32>} : memref<2x15xf32, #tpu.memory_space<vmem>>, vector<2x15xf32>,
    return
  }
  func.func @transform_0(%arg0: i32) -> (i32, i32) {
    %c0_i32 = arith.constant 0 : i32
    %c0_i32_0 = arith.constant 0 : i32
    return %arg0, %c0_i32 : i32, i32
  }
  func.func @transform_1(%arg0: i32) -> (i32, i32) {
    %c0_i32 = arith.constant 0 : i32
    %c0_i32_0 = arith.constant 0 : i32
    %c0_i32_1 = arith.constant 0 : i32
    return %c0_i32, %c0_i32_0 : i32, i32
  }
  func.func @transform_2(%arg0: i32) -> (i32, i32) {
    %c0_i32 = arith.constant 0 : i32
    %c0_i32_0 = arith.constant 0 : i32
    %c0_i32_1 = arith.constant 0 : i32
    return %c0_i32, %c0_i32_0 : i32, i32
  }
  func.func @transform_3(%arg0: i32) -> (i32, i32) {
    %c0_i32 = arith.constant 0 : i32
    %c0_i32_0 = arith.constant 0 : i32
    %c0_i32_1 = arith.constant 0 : i32
    return %c0_i32, %c0_i32_0 : i32, i32
  }
  func.func @transform_4(%arg0: i32) -> (i32, i32) {
    %c0_i32 = arith.constant 0 : i32
    %c0_i32_0 = arith.constant 0 : i32
    %c0_i32_1 = arith.constant 0 : i32
    return %c0_i32, %c0_i32_0 : i32, i32
  }
  func.func @transform_5(%arg0: i32) -> (i32, i32) {
    %c0_i32 = arith.constant 0 : i32
    %c0_i32_0 = arith.constant 0 : i32
    %c0_i32_1 = arith.constant 0 : i32
    return %c0_i32, %c0_i32_0 : i32, i32
  }
  func.func @transform_6(%arg0: i32) -> (i32, i32) {
    %c0_i32 = arith.constant 0 : i32
    %c0_i32_0 = arith.constant 0 : i32
    %c0_i32_1 = arith.constant 0 : i32
    return %c0_i32, %c0_i32_0 : i32, i32
  }
  func.func @transform_7(%arg0: i32) -> (i32, i32) {
    %c0_i32 = arith.constant 0 : i32
    %c0_i32_0 = arith.constant 0 : i32
    return %arg0, %c0_i32 : i32, i32
  }
}

</mosaic_0001>

<bundles_post_ra>
// kernel: tpu_custom_call.1
= control target key start
LH: loop header
LB: loop body
LE: loop exit
PB: predicated region body
PF: predicated region fallthrough
CT: control target
= control target key end

     0   :  { %v16332_v36 = vmov 1983009808   ;;  %v79_v38 = vlaneseq  ;;  %s21772_s0 = inlined_call_operand.vmem [shape: f32[2,12288], index: 0, kind: input, shape index: {}]   ;;  %s21773_s1 = inlined_call_operand.vmem [shape: bf16[12288,192], index: 1, kind: input, shape index: {}]   ;;  %s21774_s2 = inlined_call_operand.vmem [shape: f32[1,192], index: 2, kind: input, shape index: {}]   ;;  %s21775_s3 = inlined_call_operand.vmem [shape: f32[192,256], index: 3, kind: input, shape index: {}]   ;;  %s21776_s4 = inlined_call_operand.vmem [shape: f32[1,256], index: 4, kind: input, shape index: {}]   ;;  %s21777_s5 = inlined_call_operand.vmem [shape: f32[256,15], index: 5, kind: input, shape index: {}]   ;;  %s21778_s6 = inlined_call_operand.vmem [shape: f32[1,15], index: 6, kind: input, shape index: {}]   ;;  %s21779_s7 = inlined_call_operand.hbm [shape: f32[2,15], index: 7, kind: output, shape index: {}]  }
   0x1   :  { %v13978_v0 = vld [vmem:[%s21773_s1 + $0x4] ss:$8 sps:$4 sm:$0xff]   ;;  %v13982_v2 = vld [vmem:[%s21773_s1] ss:$8 sps:$4 sm:$0xff]   ;;  %v13984_v4 = vld [vmem:[%s21773_s1 + $0x14] ss:$8 sps:$4 sm:$0xff]   ;;  %v77_v37 = vunpack.c.l.s4 %v16332_v36 }
   0x2   :  { %v13980_v1 = vld [vmem:[%s21773_s1 + $0x1704] ss:$8 sps:$4 sm:$0xff]   ;;  %9903 = vmatprep.subr.bf16.mxu1 %v13978_v0  ;;  %v13983_v3 = vld [vmem:[%s21773_s1 + $0x1700] ss:$8 sps:$4 sm:$0xff]   ;;  %v13986_v5 = vld [vmem:[%s21773_s1 + $0x1714] ss:$8 sps:$4 sm:$0xff]  }
   0x3   :  { %10846 = vmatprep.subr.bf16.mxu0 %v13980_v1  ;;  %9904 = vmatpush1.bf16.msra.mxu1 %v13982_v2  ;;  %v13988_v6 = vld [vmem:[%s21773_s1 + $0x10] ss:$8 sps:$4 sm:$0xff]   ;;  %v13990_v8 = vld [vmem:[%s21773_s1 + $0x24] ss:$8 sps:$4 sm:$0xff]   ;;  %v13994_v10 = vld [vmem:[%s21773_s1 + $0x20] ss:$8 sps:$4 sm:$0xff]   ;;  %v78_v42 = vunpack.c.0.s8 %v77_v37 }
   0x4   :  { %10847 = vmatpush1.bf16.msra.mxu0 %v13983_v3  ;;  %9905 = vmatprep.subr.bf16.mxu1 %v13984_v4  ;;  %v13989_v7 = vld [vmem:[%s21773_s1 + $0x1710] ss:$8 sps:$4 sm:$0xff]   ;;  %v13992_v9 = vld [vmem:[%s21773_s1 + $0x1724] ss:$8 sps:$4 sm:$0xff]   ;;  %v13995_v11 = vld [vmem:[%s21773_s1 + $0x1720] ss:$8 sps:$4 sm:$0xff]  }
   0x5   :  { %10848 = vmatprep.subr.bf16.mxu0 %v13986_v5  ;;  %v13996_v12 = vld [vmem:[%s21773_s1 + $0x34] ss:$8 sps:$4 sm:$0xff]   ;;  %v14000_v14 = vld [vmem:[%s21773_s1 + $0x30] ss:$8 sps:$4 sm:$0xff]   ;;  %v14002_v16 = vld [vmem:[%s21773_s1 + $0x44] ss:$8 sps:$4 sm:$0xff]  }
   0x6   :  { %v13998_v13 = vld [vmem:[%s21773_s1 + $0x1734] ss:$8 sps:$4 sm:$0xff]   ;;  %v14001_v15 = vld [vmem:[%s21773_s1 + $0x1730] ss:$8 sps:$4 sm:$0xff]   ;;  %v14004_v17 = vld [vmem:[%s21773_s1 + $0x1744] ss:$8 sps:$4 sm:$0xff]  }
   0x7   :  { %9906 = vmatpush1.bf16.msra.mxu1 %v13988_v6  ;;  %v14006_v18 = vld [vmem:[%s21773_s1 + $0x40] ss:$8 sps:$4 sm:$0xff]   ;;  %v14008_v20 = vld [vmem:[%s21773_s1 + $0x54] ss:$8 sps:$4 sm:$0xff]   ;;  %v14012_v22 = vld [vmem:[%s21773_s1 + $0x50] ss:$8 sps:$4 sm:$0xff]  }
   0x8   :  { %10849 = vmatpush1.bf16.msra.mxu0 %v13989_v7  ;;  %9907 = vmatprep.subr.bf16.mxu1 %v13990_v8  ;;  %v14007_v19 = vld [vmem:[%s21773_s1 + $0x1740] ss:$8 sps:$4 sm:$0xff]   ;;  %v14010_v21 = vld [vmem:[%s21773_s1 + $0x1754] ss:$8 sps:$4 sm:$0xff]   ;;  %v14013_v23 = vld [vmem:[%s21773_s1 + $0x1750] ss:$8 sps:$4 sm:$0xff]  }
   0x9   :  { %10850 = vmatprep.subr.bf16.mxu0 %v13992_v9  ;;  %v14014_v24 = vld [vmem:[%s21773_s1 + $0x64] ss:$8 sps:$4 sm:$0xff]   ;;  %v14018_v26 = vld [vmem:[%s21773_s1 + $0x60] ss:$8 sps:$4 sm:$0xff]   ;;  %v14020_v28 = vld [vmem:[%s21773_s1 + $0x74] ss:$8 sps:$4 sm:$0xff]  }
   0xa   :  { %v14016_v25 = vld [vmem:[%s21773_s1 + $0x1764] ss:$8 sps:$4 sm:$0xff]   ;;  %v14019_v27 = vld [vmem:[%s21773_s1 + $0x1760] ss:$8 sps:$4 sm:$0xff]   ;;  %v14022_v29 = vld [vmem:[%s21773_s1 + $0x1774] ss:$8 sps:$4 sm:$0xff]  }
   0xb   :  { %9908 = vmatpush1.bf16.msra.mxu1 %v13994_v10  ;;  %v14024_v30 = vld [vmem:[%s21773_s1 + $0x70] ss:$8 sps:$4 sm:$0xff]   ;;  %v14026_v32 = vld [vmem:[%s21773_s1 + $0x84] ss:$8 sps:$4 sm:$0xff]   ;;  %v14030_v34 = vld [vmem:[%s21773_s1 + $0x80] ss:$8 sps:$4 sm:$0xff]  }
   0xc   :  { %10851 = vmatpush1.bf16.msra.mxu0 %v13995_v11  ;;  %9909 = vmatprep.subr.bf16.mxu1 %v13996_v12  ;;  %v14025_v31 = vld [vmem:[%s21773_s1 + $0x1770] ss:$8 sps:$4 sm:$0xff]   ;;  %v14028_v33 = vld [vmem:[%s21773_s1 + $0x1784] ss:$8 sps:$4 sm:$0xff]   ;;  %v14031_v35 = vld [vmem:[%s21773_s1 + $0x1780] ss:$8 sps:$4 sm:$0xff]  }
   0xd   :  { %10852 = vmatprep.subr.bf16.mxu0 %v13998_v13  ;;  %v14032_v39 = vld [vmem:[%s21773_s1 + $0x94] ss:$8 sps:$4 sm:$0xff]   ;;  %v14036_v41 = vld [vmem:[%s21773_s1 + $0x90] ss:$8 sps:$4 sm:$0xff]   ;;  %v16491_v43 = vshrl.u32 %v79_v38, 7  ;;  %v27_v52 = vld [vmem:[%s21772_s0] sm:$0xff] }
   0xe   :  { %v14034_v40 = vld [vmem:[%s21773_s1 + $0x1794] ss:$8 sps:$4 sm:$0xff]   ;;  %v14037_v44 = vld [vmem:[%s21773_s1 + $0x1790] ss:$8 sps:$4 sm:$0xff]   ;;  %v14038_v45 = vld [vmem:[%s21773_s1 + $0xa4] ss:$8 sps:$4 sm:$0xff]   ;;  %v75_v9 = vcombine.high %v27_v52, %v27_v52 }
   0xf   :  { %9910 = vmatpush1.bf16.msra.mxu1 %v14000_v14  ;;  %v14040_v46 = vld [vmem:[%s21773_s1 + $0x17a4] ss:$8 sps:$4 sm:$0xff]   ;;  %v14042_v47 = vld [vmem:[%s21773_s1 + $0xa0] ss:$8 sps:$4 sm:$0xff]   ;;  %v16509_v49 = vsub.s32 %v78_v42, %v16491_v43  ;;  %v14044_v50 = vld [vmem:[%s21773_s1 + $0xb4] ss:$8 sps:$4 sm:$0xff]  }
  0x10   :  { %10853 = vmatpush1.bf16.msra.mxu0 %v14001_v15  ;;  %9911 = vmatprep.subr.bf16.mxu1 %v14002_v16  ;;  %v14043_v48 = vld [vmem:[%s21773_s1 + $0x17a0] ss:$8 sps:$4 sm:$0xff]   ;;  %v14046_v51 = vld [vmem:[%s21773_s1 + $0x17b4] ss:$8 sps:$4 sm:$0xff]   ;;  %v14048_v53 = vld [vmem:[%s21773_s1 + $0xb0] ss:$8 sps:$4 sm:$0xff]  }
  0x11   :  { %10854 = vmatprep.subr.bf16.mxu0 %v14004_v17  ;;  %v16524_v54 = vrot.slane %v27_v52, %v16509_v49  ;;  %v14049_v55 = vld [vmem:[%s21773_s1 + $0x17b0] ss:$8 sps:$4 sm:$0xff]   ;;  %v14050_v57 = vld [vmem:[%s21773_s1 + $0xc4] ss:$8 sps:$4 sm:$0xff]   ;;  %v14054_v63 = vld [vmem:[%s21773_s1 + $0xc0] ss:$8 sps:$4 sm:$0xff]   ;;  %v16578_v14 = vrot.slane %v75_v9, %v16509_v49 }
  0x12   :  { %v38_v56 = vld [vmem:[%s21772_s0 + $0x58] sm:$0xff]  ;;  %v14052_v58 = vld [vmem:[%s21773_s1 + $0x17c4] ss:$8 sps:$4 sm:$0xff]   ;;  %v14055_v0 = vld [vmem:[%s21773_s1 + $0x17c0] ss:$8 sps:$4 sm:$0xff]  }
  0x13   :  { %9912 = vmatpush1.bf16.msra.mxu1 %v14006_v18  ;;  %v90_v59 = vcombine.high %v16524_v54, %v16524_v54  ;;  %v262_v60 = vcombine.high %v38_v56, %v38_v56  ;;  %v14056_v1 = vld [vmem:[%s21773_s1 + $0xd4] ss:$8 sps:$4 sm:$0xff]   ;;  %v14060_v5 = vld [vmem:[%s21773_s1 + $0xd0] ss:$8 sps:$4 sm:$0xff]   ;;  %v14062_v7 = vld [vmem:[%s21773_s1 + $0xe4] ss:$8 sps:$4 sm:$0xff]  }
  0x14   :  { %10855 = vmatpush1.bf16.msra.mxu0 %v14007_v19  ;;  %9913 = vmatprep.subr.bf16.mxu1 %v14008_v20  ;;  %v14058_v2 = vld [vmem:[%s21773_s1 + $0x17d4] ss:$8 sps:$4 sm:$0xff]   ;;  %v14061_v6 = vld [vmem:[%s21773_s1 + $0x17d0] ss:$8 sps:$4 sm:$0xff]   ;;  %v14064_v8 = vld [vmem:[%s21773_s1 + $0x17e4] ss:$8 sps:$4 sm:$0xff]   ;;  %v91_v19 = vcombine.high %v16578_v14, %v16578_v14  ;;  %v579_v20 = vpack.c.bf16 %v16524_v54, %v16524_v54 }
  0x15   :  { %10856 = vmatprep.subr.bf16.mxu0 %v14010_v21  ;;  %v580_v61 = vpack.c.bf16 %v90_v59, %v90_v59  ;;  %v276_v62 = vrot.slane %v262_v60, %v16509_v49  ;;  %v14066_v10 = vld [vmem:[%s21773_s1 + $0xe0] ss:$8 sps:$4 sm:$0xff]   ;;  %v14068_v12 = vld [vmem:[%s21773_s1 + $0xf4] ss:$8 sps:$4 sm:$0xff]   ;;  %v14072_v15 = vld [vmem:[%s21773_s1 + $0xf0] ss:$8 sps:$4 sm:$0xff]  }
  0x16   :  { %v14067_v11 = vld [vmem:[%s21773_s1 + $0x17e0] ss:$8 sps:$4 sm:$0xff]   ;;  %v14070_v13 = vld [vmem:[%s21773_s1 + $0x17f4] ss:$8 sps:$4 sm:$0xff]   ;;  %v14073_v16 = vld [vmem:[%s21773_s1 + $0x17f0] ss:$8 sps:$4 sm:$0xff]  }
  0x17   :  { %9914 = vmatpush1.bf16.msra.mxu1 %v14012_v22  ;;  %v278_v3 = vcombine.high %v276_v62, %v276_v62  ;;  %9935 = vmatprep.mubr.bf16.mxu1 %v580_v61  ;;  %v14077_v17 = vld [vmem:[%s21773_s1 + $0x104] ss:$8 sps:$4 sm:$0xff]   ;;  %v625_v21 = vpack.c.bf16 %v276_v62, %v276_v62  ;;  %v14075_v22 = vld [vmem:[%s21773_s1 + $0x100] ss:$8 sps:$4 sm:$0xff]   ;;  %v14097_v36 = vld [vmem:[%s21773_s1 + $0x1830] ss:$8 sps:$4 sm:$0xff]  }
  0x18   :  { %10857 = vmatpush1.bf16.msra.mxu0 %v14013_v23  ;;  %9915 = vmatprep.subr.bf16.mxu1 %v14014_v24  ;;  %v14081_v18 = vld [vmem:[%s21773_s1 + $0x1804] ss:$8 sps:$4 sm:$0xff]   ;;  %v14079_v23 = vld [vmem:[%s21773_s1 + $0x1800] ss:$8 sps:$4 sm:$0xff]   ;;  %v14084_v24 = vld [vmem:[%s21773_s1 + $0x114] ss:$8 sps:$4 sm:$0xff]  }
  0x19   :  { %10858 = vmatprep.subr.bf16.mxu0 %v14016_v25  ;;  %v626_v4 = vpack.c.bf16 %v278_v3, %v278_v3  ;;  %v14087_v25 = vld [vmem:[%s21773_s1 + $0x1814] ss:$8 sps:$4 sm:$0xff]   ;;  %v14102_v37 = vld [vmem:[%s21773_s1 + $0x144] ss:$8 sps:$4 sm:$0xff]   ;;  %v14118_v56 = vld [vmem:[%s21773_s1 + $0x170] ss:$8 sps:$4 sm:$0xff]  }
  0x1a   :  { %v14105_v38 = vld [vmem:[%s21773_s1 + $0x1844] ss:$8 sps:$4 sm:$0xff]   ;;  %v14111_v42 = vld [vmem:[%s21773_s1 + $0x1854] ss:$8 sps:$4 sm:$0xff]   ;;  %v14124_v61 = vld [vmem:[%s21773_s1 + $0x180] ss:$8 sps:$4 sm:$0xff]  }
  0x1b   :  { %9916 = vmatpush1.bf16.msra.mxu1 %v14018_v26  ;;  %10878 = vmatprep.mubr.bf16.mxu0 %v626_v4  ;;  %v582_v26 = vpack.c.bf16 %v91_v19, %v91_v19  ;;  %v14120_v52 = vld [vmem:[%s21773_s1 + $0x174] ss:$8 sps:$4 sm:$0xff]   ;;  %v14129_v60 = vld [vmem:[%s21773_s1 + $0x1884] ss:$8 sps:$4 sm:$0xff]   ;;  %v14127_v62 = vld [vmem:[%s21773_s1 + $0x1880] ss:$8 sps:$4 sm:$0xff]  }
  0x1c   :  { %10859 = vmatpush1.bf16.msra.mxu0 %v14019_v27  ;;  %9917 = vmatprep.subr.bf16.mxu1 %v14020_v28  ;;  %v14082_v27 = vld [vmem:[%s21773_s1 + $0x110] ss:$8 sps:$4 sm:$0xff]   ;;  %v14123_v54 = vld [vmem:[%s21773_s1 + $0x1874] ss:$8 sps:$4 sm:$0xff]   ;;  %v14138_v3 = vld [vmem:[%s21773_s1 + $0x1a4] ss:$8 sps:$4 sm:$0xff]  }
  0x1d   :  { %10860 = vmatprep.subr.bf16.mxu0 %v14022_v29  ;;  %v14085_v28 = vld [vmem:[%s21773_s1 + $0x1810] ss:$8 sps:$4 sm:$0xff]   ;;  %v14090_v29 = vld [vmem:[%s21773_s1 + $0x124] ss:$8 sps:$4 sm:$0xff]  }
  0x1e   :  { %v14141_v4 = vld [vmem:[%s21773_s1 + $0x18a4] ss:$8 sps:$4 sm:$0xff]   ;;  %v14142_v9 = vld [vmem:[%s21773_s1 + $0x1b0] ss:$8 sps:$4 sm:$0xff]  }
  0x1f   :  { %9918 = vmatpush1.bf16.msra.mxu1 %v14024_v30  ;;  %v14093_v30 = vld [vmem:[%s21773_s1 + $0x1824] ss:$8 sps:$4 sm:$0xff]   ;;  %v14157_v19 = vld [vmem:[%s21773_s1 + $0x18d0] ss:$8 sps:$4 sm:$0xff]  }
  0x20   :  { %10861 = vmatpush1.bf16.msra.mxu0 %v14025_v31  ;;  %9919 = vmatprep.subr.bf16.mxu1 %v14026_v32  ;;  %v14088_v31 = vld [vmem:[%s21773_s1 + $0x120] ss:$8 sps:$4 sm:$0xff]  }
  0x21   :  { %10862 = vmatprep.subr.bf16.mxu0 %v14028_v33  ;;  %v14091_v32 = vld [vmem:[%s21773_s1 + $0x1820] ss:$8 sps:$4 sm:$0xff]   ;;  %v14096_v33 = vld [vmem:[%s21773_s1 + $0x134] ss:$8 sps:$4 sm:$0xff]  }
  0x23   :  { %9920 = vmatpush1.bf16.msra.mxu1 %v14030_v34  ;;  %v14099_v34 = vld [vmem:[%s21773_s1 + $0x1834] ss:$8 sps:$4 sm:$0xff]  }
  0x24   :  { %10863 = vmatpush1.bf16.msra.mxu0 %v14031_v35  ;;  %9921 = vmatprep.subr.bf16.mxu1 %v14032_v39  ;;  %v14094_v35 = vld [vmem:[%s21773_s1 + $0x130] ss:$8 sps:$4 sm:$0xff]   ;;  %v14100_v39 = vld [vmem:[%s21773_s1 + $0x140] ss:$8 sps:$4 sm:$0xff]  }
  0x25   :  { %10864 = vmatprep.subr.bf16.mxu0 %v14034_v40  ;;  %v14103_v40 = vld [vmem:[%s21773_s1 + $0x1840] ss:$8 sps:$4 sm:$0xff]  }
  0x27   :  { %9922 = vmatpush1.bf16.msra.mxu1 %v14036_v41  ;;  %v14108_v41 = vld [vmem:[%s21773_s1 + $0x154] ss:$8 sps:$4 sm:$0xff]  }
  0x28   :  { %10865 = vmatpush1.bf16.msra.mxu0 %v14037_v44  ;;  %9923 = vmatprep.subr.bf16.mxu1 %v14038_v45  ;;  %v14106_v44 = vld [vmem:[%s21773_s1 + $0x150] ss:$8 sps:$4 sm:$0xff]  }
  0x29   :  { %10866 = vmatprep.subr.bf16.mxu0 %v14040_v46  ;;  %v14109_v45 = vld [vmem:[%s21773_s1 + $0x1850] ss:$8 sps:$4 sm:$0xff]   ;;  %v14114_v46 = vld [vmem:[%s21773_s1 + $0x164] ss:$8 sps:$4 sm:$0xff]  }
  0x2b   :  { %9924 = vmatpush1.bf16.msra.mxu1 %v14042_v47  ;;  %v14117_v47 = vld [vmem:[%s21773_s1 + $0x1864] ss:$8 sps:$4 sm:$0xff]  }
  0x2c   :  { %10867 = vmatpush1.bf16.msra.mxu0 %v14043_v48  ;;  %9925 = vmatprep.subr.bf16.mxu1 %v14044_v50  ;;  %v14112_v48 = vld [vmem:[%s21773_s1 + $0x160] ss:$8 sps:$4 sm:$0xff]  }
  0x2d   :  { %10868 = vmatprep.subr.bf16.mxu0 %v14046_v51  ;;  %v16674_v50 = vld [vmem:[%s21772_s0 + $0x60] sm:$0xff] }
  0x2e   :  { %v14115_v51 = vld [vmem:[%s21773_s1 + $0x1860] ss:$8 sps:$4 sm:$0xff]  }
  0x2f   :  { %9926 = vmatpush1.bf16.msra.mxu1 %v14048_v53  ;;  %v16684_v53 = vrot.slane %v16674_v50, %v16509_v49 }
  0x30   :  { %10869 = vmatpush1.bf16.msra.mxu0 %v14049_v55  ;;  %9927 = vmatprep.subr.bf16.mxu1 %v14050_v57  ;;  %v14121_v57 = vld [vmem:[%s21773_s1 + $0x1870] ss:$8 sps:$4 sm:$0xff]  }
  0x31   :  { %10870 = vmatprep.subr.bf16.mxu0 %v14052_v58  ;;  %v294_v55 = vcombine.high %v16684_v53, %v16684_v53  ;;  %v14126_v58 = vld [vmem:[%s21773_s1 + $0x184] ss:$8 sps:$4 sm:$0xff]  }
  0x33   :  { %9928 = vmatpush1.bf16.msra.mxu1 %v14054_v63  ;;  %v628_v59 = vpack.c.bf16 %v294_v55, %v294_v55  ;;  %v14132_v63 = vld [vmem:[%s21773_s1 + $0x194] ss:$8 sps:$4 sm:$0xff]   ;;  %v14198_v55 = vld [vmem:[%s21773_s1 + $0x244] ss:$8 sps:$4 sm:$0xff]  }
  0x34   :  { %10871 = vmatpush1.bf16.msra.mxu0 %v14055_v0  ;;  %9929 = vmatprep.subr.bf16.mxu1 %v14056_v1  ;;  %v14135_v0 = vld [vmem:[%s21773_s1 + $0x1894] ss:$8 sps:$4 sm:$0xff]   ;;  %v14130_v1 = vld [vmem:[%s21773_s1 + $0x190] ss:$8 sps:$4 sm:$0xff]  }
  0x35   :  { %10872 = vmatprep.subr.bf16.mxu0 %v14058_v2  ;;  %v14133_v2 = vld [vmem:[%s21773_s1 + $0x1890] ss:$8 sps:$4 sm:$0xff]  }
  0x37   :  { %9930 = vmatpush1.bf16.msra.mxu1 %v14060_v5  ;;  %v14136_v5 = vld [vmem:[%s21773_s1 + $0x1a0] ss:$8 sps:$4 sm:$0xff]  }
  0x38   :  { %10873 = vmatpush1.bf16.msra.mxu0 %v14061_v6  ;;  %9931 = vmatprep.subr.bf16.mxu1 %v14062_v7  ;;  %v14139_v6 = vld [vmem:[%s21773_s1 + $0x18a0] ss:$8 sps:$4 sm:$0xff]   ;;  %v14144_v7 = vld [vmem:[%s21773_s1 + $0x1b4] ss:$8 sps:$4 sm:$0xff]  }
  0x39   :  { %10874 = vmatprep.subr.bf16.mxu0 %v14064_v8  ;;  %v14147_v8 = vld [vmem:[%s21773_s1 + $0x18b4] ss:$8 sps:$4 sm:$0xff]  }
  0x3b   :  { %9932 = vmatpush1.bf16.msra.mxu1 %v14066_v10  ;;  %v14145_v10 = vld [vmem:[%s21773_s1 + $0x18b0] ss:$8 sps:$4 sm:$0xff]  }
  0x3c   :  { %10875 = vmatpush1.bf16.msra.mxu0 %v14067_v11  ;;  %9933 = vmatprep.subr.bf16.mxu1 %v14068_v12  ;;  %v14150_v11 = vld [vmem:[%s21773_s1 + $0x1c4] ss:$8 sps:$4 sm:$0xff]  }
  0x3d   :  { %10876 = vmatprep.subr.bf16.mxu0 %v14070_v13  ;;  %v14153_v12 = vld [vmem:[%s21773_s1 + $0x18c4] ss:$8 sps:$4 sm:$0xff]   ;;  %v14148_v13 = vld [vmem:[%s21773_s1 + $0x1c0] ss:$8 sps:$4 sm:$0xff]  }
  0x3f   :  { %9934 = vmatpush1.bf16.msra.mxu1 %v14072_v15  ;;  %v14151_v15 = vld [vmem:[%s21773_s1 + $0x18c0] ss:$8 sps:$4 sm:$0xff]  }
  0x40   :  { %10877 = vmatpush1.bf16.msra.mxu0 %v14073_v16  ;;  %9944 = vmatprep.subr.bf16.mxu1 %v14077_v17  ;;  %v14156_v16 = vld [vmem:[%s21773_s1 + $0x1d4] ss:$8 sps:$4 sm:$0xff]  }
  0x41   :  { %10887 = vmatprep.subr.bf16.mxu0 %v14081_v18  ;;  %v14159_v17 = vld [vmem:[%s21773_s1 + $0x18d4] ss:$8 sps:$4 sm:$0xff]   ;;  %v14154_v18 = vld [vmem:[%s21773_s1 + $0x1d0] ss:$8 sps:$4 sm:$0xff]  }
  0x42   :  { %9936 = vmatmul.mubr.bf16.vlgmr.msra.gmra.mrb[0].mxu1 %v579_v20  ;;  %v14162_v20 = vld [vmem:[%s21773_s1 + $0x1e4] ss:$8 sps:$4 sm:$0xff]  }
  0x43   :  { %10879 = vmatmul.mubr.bf16.vlgmr.msra.gmra.mrb[0].mxu0 %v625_v21  ;;  %9945 = vmatpush1.bf16.msra.mxu1 %v14075_v22  ;;  %v14165_v21 = vld [vmem:[%s21773_s1 + $0x18e4] ss:$8 sps:$4 sm:$0xff]   ;;  %v279_v22 = vcombine.high %v16674_v50, %v16674_v50  ;;  %v14187_v50 = vld [vmem:[%s21773_s1 + $0x1920] ss:$8 sps:$4 sm:$0xff]  }
  0x44   :  { %10888 = vmatpush1.bf16.msra.mxu0 %v14079_v23  ;;  %9946 = vmatprep.subr.bf16.mxu1 %v14084_v24  ;;  %v14160_v23 = vld [vmem:[%s21773_s1 + $0x1e0] ss:$8 sps:$4 sm:$0xff]  }
  0x45   :  { %10889 = vmatprep.subr.bf16.mxu0 %v14087_v25  ;;  %9976 = vmatprep.mubr.bf16.mxu1 %v582_v26  ;;  %v14163_v24 = vld [vmem:[%s21773_s1 + $0x18e0] ss:$8 sps:$4 sm:$0xff]   ;;  %v14168_v25 = vld [vmem:[%s21773_s1 + $0x1f4] ss:$8 sps:$4 sm:$0xff]  }
  0x46   :  { %10919 = vmatprep.mubr.bf16.mxu0 %v628_v59  ;;  %v14171_v26 = vld [vmem:[%s21773_s1 + $0x18f4] ss:$8 sps:$4 sm:$0xff]  }
  0x47   :  { %9947 = vmatpush1.bf16.msra.mxu1 %v14082_v27  ;;  %v16790_v27 = vrot.slane %v279_v22, %v16509_v49  ;;  %v14204_v59 = vld [vmem:[%s21773_s1 + $0x254] ss:$8 sps:$4 sm:$0xff]   ;;  %v14238_v22 = vld [vmem:[%s21773_s1 + $0x2b0] ss:$8 sps:$4 sm:$0xff]  }
  0x48   :  { %10890 = vmatpush1.bf16.msra.mxu0 %v14085_v28  ;;  %9948 = vmatprep.subr.bf16.mxu1 %v14090_v29  ;;  %v14166_v28 = vld [vmem:[%s21773_s1 + $0x1f0] ss:$8 sps:$4 sm:$0xff]  }
  0x49   :  { %10891 = vmatprep.subr.bf16.mxu0 %v14093_v30  ;;  %v14169_v29 = vld [vmem:[%s21773_s1 + $0x18f0] ss:$8 sps:$4 sm:$0xff]   ;;  %v14174_v30 = vld [vmem:[%s21773_s1 + $0x204] ss:$8 sps:$4 sm:$0xff]  }
  0x4b   :  { %9949 = vmatpush1.bf16.msra.mxu1 %v14088_v31  ;;  %v14177_v31 = vld [vmem:[%s21773_s1 + $0x1904] ss:$8 sps:$4 sm:$0xff]  }
  0x4c   :  { %10892 = vmatpush1.bf16.msra.mxu0 %v14091_v32  ;;  %9950 = vmatprep.subr.bf16.mxu1 %v14096_v33  ;;  %v295_v32 = vcombine.high %v16790_v27, %v16790_v27  ;;  %v14172_v33 = vld [vmem:[%s21773_s1 + $0x200] ss:$8 sps:$4 sm:$0xff]  }
  0x4d   :  { %10893 = vmatprep.subr.bf16.mxu0 %v14099_v34  ;;  %v14175_v34 = vld [vmem:[%s21773_s1 + $0x1900] ss:$8 sps:$4 sm:$0xff]  }
  0x4f   :  { %9951 = vmatpush1.bf16.msra.mxu1 %v14094_v35  ;;  %v581_v35 = vpack.c.bf16 %v16578_v14, %v16578_v14 }
  0x50   :  { %10894 = vmatpush1.bf16.msra.mxu0 %v14097_v36  ;;  %9952 = vmatprep.subr.bf16.mxu1 %v14102_v37  ;;  %v627_v36 = vpack.c.bf16 %v16684_v53, %v16684_v53  ;;  %v14180_v37 = vld [vmem:[%s21773_s1 + $0x214] ss:$8 sps:$4 sm:$0xff]   ;;  %v14190_v53 = vld [vmem:[%s21773_s1 + $0x230] ss:$8 sps:$4 sm:$0xff]  }
  0x51   :  { %10895 = vmatprep.subr.bf16.mxu0 %v14105_v38  ;;  %v14183_v38 = vld [vmem:[%s21773_s1 + $0x1914] ss:$8 sps:$4 sm:$0xff]  }
  0x53   :  { %9953 = vmatpush1.bf16.msra.mxu1 %v14100_v39  ;;  %v16825_v39 = vld [vmem:[%s21772_s0 + $0x8] sm:$0xff] }
  0x54   :  { %10896 = vmatpush1.bf16.msra.mxu0 %v14103_v40  ;;  %9954 = vmatprep.subr.bf16.mxu1 %v14108_v41  ;;  %v16829_v14 = vrot.slane %v16825_v39, %v16509_v49  ;;  %v630_v40 = vpack.c.bf16 %v295_v32, %v295_v32  ;;  %v14178_v41 = vld [vmem:[%s21773_s1 + $0x210] ss:$8 sps:$4 sm:$0xff]  }
  0x55   :  { %10897 = vmatprep.subr.bf16.mxu0 %v14111_v42  ;;  %v14181_v42 = vld [vmem:[%s21773_s1 + $0x1910] ss:$8 sps:$4 sm:$0xff]  }
  0x56   :  { %v14253_v32 = vld [vmem:[%s21773_s1 + $0x19d0] ss:$8 sps:$4 sm:$0xff]  }
  0x57   :  { %9955 = vmatpush1.bf16.msra.mxu1 %v14106_v44  ;;  %v14186_v44 = vld [vmem:[%s21773_s1 + $0x224] ss:$8 sps:$4 sm:$0xff]  }
  0x58   :  { %10898 = vmatpush1.bf16.msra.mxu0 %v14109_v45  ;;  %9956 = vmatprep.subr.bf16.mxu1 %v14114_v46  ;;  %v107_v45 = vcombine.high %v16829_v14, %v16829_v14  ;;  %v14189_v46 = vld [vmem:[%s21773_s1 + $0x1924] ss:$8 sps:$4 sm:$0xff]  }
  0x59   :  { %10899 = vmatprep.subr.bf16.mxu0 %v14117_v47 }
  0x5a   :  { %v584_v47 = vpack.c.bf16 %v107_v45, %v107_v45  ;;  %v14265_v45 = vld [vmem:[%s21773_s1 + $0x19f0] ss:$8 sps:$4 sm:$0xff]  }
  0x5b   :  { %9957 = vmatpush1.bf16.msra.mxu1 %v14112_v48  ;;  %v14184_v48 = vld [vmem:[%s21773_s1 + $0x220] ss:$8 sps:$4 sm:$0xff]  }
  0x5c   :  { %10900 = vmatpush1.bf16.msra.mxu0 %v14115_v51  ;;  %9958 = vmatprep.subr.bf16.mxu1 %v14120_v52  ;;  %v14192_v51 = vld [vmem:[%s21773_s1 + $0x234] ss:$8 sps:$4 sm:$0xff]  }
  0x5d   :  { %10901 = vmatprep.subr.bf16.mxu0 %v14123_v54  ;;  %v14195_v52 = vld [vmem:[%s21773_s1 + $0x1934] ss:$8 sps:$4 sm:$0xff]   ;;  %v14193_v54 = vld [vmem:[%s21773_s1 + $0x1930] ss:$8 sps:$4 sm:$0xff]  }
  0x5f   :  { %9959 = vmatpush1.bf16.msra.mxu1 %v14118_v56  ;;  %v14201_v56 = vld [vmem:[%s21773_s1 + $0x1944] ss:$8 sps:$4 sm:$0xff]  }
  0x60   :  { %10902 = vmatpush1.bf16.msra.mxu0 %v14121_v57  ;;  %9960 = vmatprep.subr.bf16.mxu1 %v14126_v58  ;;  %v14196_v57 = vld [vmem:[%s21773_s1 + $0x240] ss:$8 sps:$4 sm:$0xff]  }
  0x61   :  { %10903 = vmatprep.subr.bf16.mxu0 %v14129_v60  ;;  %v14199_v58 = vld [vmem:[%s21773_s1 + $0x1940] ss:$8 sps:$4 sm:$0xff]   ;;  %v14207_v60 = vld [vmem:[%s21773_s1 + $0x1954] ss:$8 sps:$4 sm:$0xff]  }
  0x63   :  { %9961 = vmatpush1.bf16.msra.mxu1 %v14124_v61  ;;  %v14202_v61 = vld [vmem:[%s21773_s1 + $0x250] ss:$8 sps:$4 sm:$0xff]  }
  0x64   :  { %10904 = vmatpush1.bf16.msra.mxu0 %v14127_v62  ;;  %9962 = vmatprep.subr.bf16.mxu1 %v14132_v63  ;;  %v14205_v62 = vld [vmem:[%s21773_s1 + $0x1950] ss:$8 sps:$4 sm:$0xff]   ;;  %v14210_v63 = vld [vmem:[%s21773_s1 + $0x264] ss:$8 sps:$4 sm:$0xff]  }
  0x65   :  { %10905 = vmatprep.subr.bf16.mxu0 %v14135_v0  ;;  %v14213_v0 = vld [vmem:[%s21773_s1 + $0x1964] ss:$8 sps:$4 sm:$0xff]  }
  0x67   :  { %9963 = vmatpush1.bf16.msra.mxu1 %v14130_v1  ;;  %v14208_v1 = vld [vmem:[%s21773_s1 + $0x260] ss:$8 sps:$4 sm:$0xff]  }
  0x68   :  { %10906 = vmatpush1.bf16.msra.mxu0 %v14133_v2  ;;  %9964 = vmatprep.subr.bf16.mxu1 %v14138_v3  ;;  %v14211_v2 = vld [vmem:[%s21773_s1 + $0x1960] ss:$8 sps:$4 sm:$0xff]   ;;  %v14216_v3 = vld [vmem:[%s21773_s1 + $0x274] ss:$8 sps:$4 sm:$0xff]  }
  0x69   :  { %10907 = vmatprep.subr.bf16.mxu0 %v14141_v4  ;;  %v14219_v4 = vld [vmem:[%s21773_s1 + $0x1974] ss:$8 sps:$4 sm:$0xff]  }
  0x6b   :  { %9965 = vmatpush1.bf16.msra.mxu1 %v14136_v5  ;;  %v14214_v5 = vld [vmem:[%s21773_s1 + $0x270] ss:$8 sps:$4 sm:$0xff]  }
  0x6c   :  { %10908 = vmatpush1.bf16.msra.mxu0 %v14139_v6  ;;  %9966 = vmatprep.subr.bf16.mxu1 %v14144_v7  ;;  %v14217_v6 = vld [vmem:[%s21773_s1 + $0x1970] ss:$8 sps:$4 sm:$0xff]   ;;  %v14222_v7 = vld [vmem:[%s21773_s1 + $0x284] ss:$8 sps:$4 sm:$0xff]  }
  0x6d   :  { %10909 = vmatprep.subr.bf16.mxu0 %v14147_v8  ;;  %v14225_v8 = vld [vmem:[%s21773_s1 + $0x1984] ss:$8 sps:$4 sm:$0xff]  }
  0x6f   :  { %9967 = vmatpush1.bf16.msra.mxu1 %v14142_v9  ;;  %v14220_v9 = vld [vmem:[%s21773_s1 + $0x280] ss:$8 sps:$4 sm:$0xff]  }
  0x70   :  { %10910 = vmatpush1.bf16.msra.mxu0 %v14145_v10  ;;  %9968 = vmatprep.subr.bf16.mxu1 %v14150_v11  ;;  %v14223_v10 = vld [vmem:[%s21773_s1 + $0x1980] ss:$8 sps:$4 sm:$0xff]   ;;  %v14228_v11 = vld [vmem:[%s21773_s1 + $0x294] ss:$8 sps:$4 sm:$0xff]  }
  0x71   :  { %10911 = vmatprep.subr.bf16.mxu0 %v14153_v12  ;;  %v14231_v12 = vld [vmem:[%s21773_s1 + $0x1994] ss:$8 sps:$4 sm:$0xff]  }
  0x73   :  { %9969 = vmatpush1.bf16.msra.mxu1 %v14148_v13  ;;  %v14226_v13 = vld [vmem:[%s21773_s1 + $0x290] ss:$8 sps:$4 sm:$0xff]  }
  0x74   :  { %10912 = vmatpush1.bf16.msra.mxu0 %v14151_v15  ;;  %9970 = vmatprep.subr.bf16.mxu1 %v14156_v16  ;;  %v14229_v15 = vld [vmem:[%s21773_s1 + $0x1990] ss:$8 sps:$4 sm:$0xff]   ;;  %v14234_v16 = vld [vmem:[%s21773_s1 + $0x2a4] ss:$8 sps:$4 sm:$0xff]  }
  0x75   :  { %10913 = vmatprep.subr.bf16.mxu0 %v14159_v17  ;;  %v14237_v17 = vld [vmem:[%s21773_s1 + $0x19a4] ss:$8 sps:$4 sm:$0xff]  }
  0x77   :  { %9971 = vmatpush1.bf16.msra.mxu1 %v14154_v18  ;;  %v14232_v18 = vld [vmem:[%s21773_s1 + $0x2a0] ss:$8 sps:$4 sm:$0xff]  }
  0x78   :  { %10914 = vmatpush1.bf16.msra.mxu0 %v14157_v19  ;;  %9972 = vmatprep.subr.bf16.mxu1 %v14162_v20  ;;  %v14235_v19 = vld [vmem:[%s21773_s1 + $0x19a0] ss:$8 sps:$4 sm:$0xff]   ;;  %v14240_v20 = vld [vmem:[%s21773_s1 + $0x2b4] ss:$8 sps:$4 sm:$0xff]  }
  0x79   :  { %10915 = vmatprep.subr.bf16.mxu0 %v14165_v21  ;;  %v14243_v21 = vld [vmem:[%s21773_s1 + $0x19b4] ss:$8 sps:$4 sm:$0xff]  }
  0x7b   :  { %9973 = vmatpush1.bf16.msra.mxu1 %v14160_v23  ;;  %v14241_v23 = vld [vmem:[%s21773_s1 + $0x19b0] ss:$8 sps:$4 sm:$0xff]  }
  0x7c   :  { %10916 = vmatpush1.bf16.msra.mxu0 %v14163_v24  ;;  %9974 = vmatprep.subr.bf16.mxu1 %v14168_v25  ;;  %v14246_v24 = vld [vmem:[%s21773_s1 + $0x2c4] ss:$8 sps:$4 sm:$0xff]  }
  0x7d   :  { %10917 = vmatprep.subr.bf16.mxu0 %v14171_v26  ;;  %v14249_v25 = vld [vmem:[%s21773_s1 + $0x19c4] ss:$8 sps:$4 sm:$0xff]   ;;  %v14244_v26 = vld [vmem:[%s21773_s1 + $0x2c0] ss:$8 sps:$4 sm:$0xff]  }
  0x7f   :  { %9975 = vmatpush1.bf16.msra.mxu1 %v14166_v28  ;;  %v14247_v28 = vld [vmem:[%s21773_s1 + $0x19c0] ss:$8 sps:$4 sm:$0xff]  }
  0x80   :  { %10918 = vmatpush1.bf16.msra.mxu0 %v14169_v29  ;;  %9985 = vmatprep.subr.bf16.mxu1 %v14174_v30  ;;  %v14252_v29 = vld [vmem:[%s21773_s1 + $0x2d4] ss:$8 sps:$4 sm:$0xff]  }
  0x81   :  { %10928 = vmatprep.subr.bf16.mxu0 %v14177_v31  ;;  %v14255_v30 = vld [vmem:[%s21773_s1 + $0x19d4] ss:$8 sps:$4 sm:$0xff]   ;;  %v14250_v31 = vld [vmem:[%s21773_s1 + $0x2d0] ss:$8 sps:$4 sm:$0xff]  }
  0x82   :  { %9977 = vmatmul.mubr.bf16.vlgmr.msra.gmra.mrb[0].mxu1 %v581_v35  ;;  %v14256_v35 = vld [vmem:[%s21773_s1 + $0x2e0] ss:$8 sps:$4 sm:$0xff]  }
  0x83   :  { %10920 = vmatmul.mubr.bf16.vlgmr.msra.gmra.mrb[0].mxu0 %v627_v36  ;;  %9986 = vmatpush1.bf16.msra.mxu1 %v14172_v33  ;;  %v14258_v33 = vld [vmem:[%s21773_s1 + $0x2e4] ss:$8 sps:$4 sm:$0xff]   ;;  %v92_v36 = vcombine.high %v16825_v39, %v16825_v39  ;;  %v14267_v39 = vld [vmem:[%s21773_s1 + $0x19f4] ss:$8 sps:$4 sm:$0xff]  }
  0x84   :  { %10929 = vmatpush1.bf16.msra.mxu0 %v14175_v34  ;;  %9987 = vmatprep.subr.bf16.mxu1 %v14180_v37  ;;  %v14261_v34 = vld [vmem:[%s21773_s1 + $0x19e4] ss:$8 sps:$4 sm:$0xff]  }
  0x85   :  { %10930 = vmatprep.subr.bf16.mxu0 %v14183_v38  ;;  %10960 = vmatprep.mubr.bf16.mxu0 %v630_v40  ;;  %v16997_v37 = vld [vmem:[%s21772_s0 + $0x68] sm:$0xff]  ;;  %v14264_v40 = vld [vmem:[%s21773_s1 + $0x2f4] ss:$8 sps:$4 sm:$0xff]  }
  0x86   :  { %10017 = vmatprep.mubr.bf16.mxu1 %v584_v47  ;;  %v14259_v38 = vld [vmem:[%s21773_s1 + $0x19e0] ss:$8 sps:$4 sm:$0xff]   ;;  %v14274_v47 = vld [vmem:[%s21773_s1 + $0x1a04] ss:$8 sps:$4 sm:$0xff]  }
  0x87   :  { %9988 = vmatpush1.bf16.msra.mxu1 %v14178_v41  ;;  %v17009_v41 = vrot.slane %v92_v36, %v16509_v49  ;;  %v14338_v36 = vld [vmem:[%s21773_s1 + $0x1ab0] ss:$8 sps:$4 sm:$0xff]  }
  0x88   :  { %10931 = vmatpush1.bf16.msra.mxu0 %v14181_v42  ;;  %9989 = vmatprep.subr.bf16.mxu1 %v14186_v44  ;;  %v17013_v42 = vrot.slane %v16997_v37, %v16509_v49  ;;  %v14262_v44 = vld [vmem:[%s21773_s1 + $0x2f0] ss:$8 sps:$4 sm:$0xff]  }
  0x89   :  { %10932 = vmatprep.subr.bf16.mxu0 %v14189_v46  ;;  %v14270_v46 = vld [vmem:[%s21773_s1 + $0x304] ss:$8 sps:$4 sm:$0xff]  }
  0x8b   :  { %9990 = vmatpush1.bf16.msra.mxu1 %v14184_v48  ;;  %v108_v48 = vcombine.high %v17009_v41, %v17009_v41 }
  0x8c   :  { %10933 = vmatpush1.bf16.msra.mxu0 %v14187_v50  ;;  %9991 = vmatprep.subr.bf16.mxu1 %v14192_v51  ;;  %v311_v50 = vcombine.high %v17013_v42, %v17013_v42  ;;  %v14268_v51 = vld [vmem:[%s21773_s1 + $0x300] ss:$8 sps:$4 sm:$0xff]  }
  0x8d   :  { %10934 = vmatprep.subr.bf16.mxu0 %v14195_v52  ;;  %v583_v52 = vpack.c.bf16 %v16829_v14, %v16829_v14  ;;  %v586_v14 = vpack.c.bf16 %v108_v48, %v108_v48  ;;  %v14350_v48 = vld [vmem:[%s21773_s1 + $0x1ad0] ss:$8 sps:$4 sm:$0xff]  }
  0x8f   :  { %9992 = vmatpush1.bf16.msra.mxu1 %v14190_v53  ;;  %v629_v53 = vpack.c.bf16 %v16790_v27, %v16790_v27  ;;  %v14275_v27 = vld [vmem:[%s21773_s1 + $0x310] ss:$8 sps:$4 sm:$0xff]  }
  0x90   :  { %10935 = vmatpush1.bf16.msra.mxu0 %v14193_v54  ;;  %9993 = vmatprep.subr.bf16.mxu1 %v14198_v55  ;;  %v14272_v54 = vld [vmem:[%s21773_s1 + $0x1a00] ss:$8 sps:$4 sm:$0xff]   ;;  %v14277_v55 = vld [vmem:[%s21773_s1 + $0x314] ss:$8 sps:$4 sm:$0xff]  }
  0x91   :  { %10936 = vmatprep.subr.bf16.mxu0 %v14201_v56  ;;  %v14280_v56 = vld [vmem:[%s21773_s1 + $0x1a14] ss:$8 sps:$4 sm:$0xff]  }
  0x93   :  { %9994 = vmatpush1.bf16.msra.mxu1 %v14196_v57  ;;  %v632_v57 = vpack.c.bf16 %v311_v50, %v311_v50  ;;  %v14355_v50 = vld [vmem:[%s21773_s1 + $0x3e4] ss:$8 sps:$4 sm:$0xff]  }
  0x94   :  { %10937 = vmatpush1.bf16.msra.mxu0 %v14199_v58  ;;  %9995 = vmatprep.subr.bf16.mxu1 %v14204_v59  ;;  %v14278_v58 = vld [vmem:[%s21773_s1 + $0x1a10] ss:$8 sps:$4 sm:$0xff]   ;;  %v14283_v59 = vld [vmem:[%s21773_s1 + $0x324] ss:$8 sps:$4 sm:$0xff]  }
  0x95   :  { %10938 = vmatprep.subr.bf16.mxu0 %v14207_v60  ;;  %v14286_v60 = vld [vmem:[%s21773_s1 + $0x1a24] ss:$8 sps:$4 sm:$0xff]  }
  0x97   :  { %9996 = vmatpush1.bf16.msra.mxu1 %v14202_v61  ;;  %v14281_v61 = vld [vmem:[%s21773_s1 + $0x320] ss:$8 sps:$4 sm:$0xff]  }
  0x98   :  { %10939 = vmatpush1.bf16.msra.mxu0 %v14205_v62  ;;  %9997 = vmatprep.subr.bf16.mxu1 %v14210_v63  ;;  %v14284_v62 = vld [vmem:[%s21773_s1 + $0x1a20] ss:$8 sps:$4 sm:$0xff]   ;;  %v14289_v63 = vld [vmem:[%s21773_s1 + $0x334] ss:$8 sps:$4 sm:$0xff]  }
  0x99   :  { %10940 = vmatprep.subr.bf16.mxu0 %v14213_v0  ;;  %v14292_v0 = vld [vmem:[%s21773_s1 + $0x1a34] ss:$8 sps:$4 sm:$0xff]  }
  0x9b   :  { %9998 = vmatpush1.bf16.msra.mxu1 %v14208_v1  ;;  %v14287_v1 = vld [vmem:[%s21773_s1 + $0x330] ss:$8 sps:$4 sm:$0xff]  }
  0x9c   :  { %10941 = vmatpush1.bf16.msra.mxu0 %v14211_v2  ;;  %9999 = vmatprep.subr.bf16.mxu1 %v14216_v3  ;;  %v14290_v2 = vld [vmem:[%s21773_s1 + $0x1a30] ss:$8 sps:$4 sm:$0xff]   ;;  %v14295_v3 = vld [vmem:[%s21773_s1 + $0x344] ss:$8 sps:$4 sm:$0xff]  }
  0x9d   :  { %10942 = vmatprep.subr.bf16.mxu0 %v14219_v4  ;;  %v14298_v4 = vld [vmem:[%s21773_s1 + $0x1a44] ss:$8 sps:$4 sm:$0xff]  }
  0x9f   :  { %10000 = vmatpush1.bf16.msra.mxu1 %v14214_v5  ;;  %v14293_v5 = vld [vmem:[%s21773_s1 + $0x340] ss:$8 sps:$4 sm:$0xff]  }
  0xa0   :  { %10943 = vmatpush1.bf16.msra.mxu0 %v14217_v6  ;;  %10001 = vmatprep.subr.bf16.mxu1 %v14222_v7  ;;  %v14296_v6 = vld [vmem:[%s21773_s1 + $0x1a40] ss:$8 sps:$4 sm:$0xff]   ;;  %v14301_v7 = vld [vmem:[%s21773_s1 + $0x354] ss:$8 sps:$4 sm:$0xff]  }
  0xa1   :  { %10944 = vmatprep.subr.bf16.mxu0 %v14225_v8  ;;  %v14304_v8 = vld [vmem:[%s21773_s1 + $0x1a54] ss:$8 sps:$4 sm:$0xff]  }
  0xa3   :  { %10002 = vmatpush1.bf16.msra.mxu1 %v14220_v9  ;;  %v14299_v9 = vld [vmem:[%s21773_s1 + $0x350] ss:$8 sps:$4 sm:$0xff]  }
  0xa4   :  { %10945 = vmatpush1.bf16.msra.mxu0 %v14223_v10  ;;  %10003 = vmatprep.subr.bf16.mxu1 %v14228_v11  ;;  %v14302_v10 = vld [vmem:[%s21773_s1 + $0x1a50] ss:$8 sps:$4 sm:$0xff]   ;;  %v14307_v11 = vld [vmem:[%s21773_s1 + $0x364] ss:$8 sps:$4 sm:$0xff]  }
  0xa5   :  { %10946 = vmatprep.subr.bf16.mxu0 %v14231_v12  ;;  %v14310_v12 = vld [vmem:[%s21773_s1 + $0x1a64] ss:$8 sps:$4 sm:$0xff]  }
  0xa7   :  { %10004 = vmatpush1.bf16.msra.mxu1 %v14226_v13  ;;  %v14305_v13 = vld [vmem:[%s21773_s1 + $0x360] ss:$8 sps:$4 sm:$0xff]  }
  0xa8   :  { %10947 = vmatpush1.bf16.msra.mxu0 %v14229_v15  ;;  %10005 = vmatprep.subr.bf16.mxu1 %v14234_v16  ;;  %v14308_v15 = vld [vmem:[%s21773_s1 + $0x1a60] ss:$8 sps:$4 sm:$0xff]   ;;  %v14313_v16 = vld [vmem:[%s21773_s1 + $0x374] ss:$8 sps:$4 sm:$0xff]  }
  0xa9   :  { %10948 = vmatprep.subr.bf16.mxu0 %v14237_v17  ;;  %v14316_v17 = vld [vmem:[%s21773_s1 + $0x1a74] ss:$8 sps:$4 sm:$0xff]  }
  0xab   :  { %10006 = vmatpush1.bf16.msra.mxu1 %v14232_v18  ;;  %v14311_v18 = vld [vmem:[%s21773_s1 + $0x370] ss:$8 sps:$4 sm:$0xff]  }
  0xac   :  { %10949 = vmatpush1.bf16.msra.mxu0 %v14235_v19  ;;  %10007 = vmatprep.subr.bf16.mxu1 %v14240_v20  ;;  %v14314_v19 = vld [vmem:[%s21773_s1 + $0x1a70] ss:$8 sps:$4 sm:$0xff]   ;;  %v14319_v20 = vld [vmem:[%s21773_s1 + $0x384] ss:$8 sps:$4 sm:$0xff]  }
  0xad   :  { %10950 = vmatprep.subr.bf16.mxu0 %v14243_v21  ;;  %v14322_v21 = vld [vmem:[%s21773_s1 + $0x1a84] ss:$8 sps:$4 sm:$0xff]  }
  0xaf   :  { %10008 = vmatpush1.bf16.msra.mxu1 %v14238_v22  ;;  %v14317_v22 = vld [vmem:[%s21773_s1 + $0x380] ss:$8 sps:$4 sm:$0xff]  }
  0xb0   :  { %10951 = vmatpush1.bf16.msra.mxu0 %v14241_v23  ;;  %10009 = vmatprep.subr.bf16.mxu1 %v14246_v24  ;;  %v14320_v23 = vld [vmem:[%s21773_s1 + $0x1a80] ss:$8 sps:$4 sm:$0xff]   ;;  %v14325_v24 = vld [vmem:[%s21773_s1 + $0x394] ss:$8 sps:$4 sm:$0xff]  }
  0xb1   :  { %10952 = vmatprep.subr.bf16.mxu0 %v14249_v25  ;;  %v14328_v25 = vld [vmem:[%s21773_s1 + $0x1a94] ss:$8 sps:$4 sm:$0xff]  }
  0xb3   :  { %10010 = vmatpush1.bf16.msra.mxu1 %v14244_v26  ;;  %v14323_v26 = vld [vmem:[%s21773_s1 + $0x390] ss:$8 sps:$4 sm:$0xff]  }
  0xb4   :  { %10953 = vmatpush1.bf16.msra.mxu0 %v14247_v28  ;;  %10011 = vmatprep.subr.bf16.mxu1 %v14252_v29  ;;  %v14326_v28 = vld [vmem:[%s21773_s1 + $0x1a90] ss:$8 sps:$4 sm:$0xff]   ;;  %v14331_v29 = vld [vmem:[%s21773_s1 + $0x3a4] ss:$8 sps:$4 sm:$0xff]  }
  0xb5   :  { %10954 = vmatprep.subr.bf16.mxu0 %v14255_v30  ;;  %v14334_v30 = vld [vmem:[%s21773_s1 + $0x1aa4] ss:$8 sps:$4 sm:$0xff]  }
  0xb7   :  { %10012 = vmatpush1.bf16.msra.mxu1 %v14250_v31  ;;  %v14329_v31 = vld [vmem:[%s21773_s1 + $0x3a0] ss:$8 sps:$4 sm:$0xff]  }
  0xb8   :  { %10955 = vmatpush1.bf16.msra.mxu0 %v14253_v32  ;;  %10013 = vmatprep.subr.bf16.mxu1 %v14258_v33  ;;  %v14332_v32 = vld [vmem:[%s21773_s1 + $0x1aa0] ss:$8 sps:$4 sm:$0xff]   ;;  %v14337_v33 = vld [vmem:[%s21773_s1 + $0x3b4] ss:$8 sps:$4 sm:$0xff]  }
  0xb9   :  { %10956 = vmatprep.subr.bf16.mxu0 %v14261_v34  ;;  %v14340_v34 = vld [vmem:[%s21773_s1 + $0x1ab4] ss:$8 sps:$4 sm:$0xff]  }
  0xbb   :  { %10014 = vmatpush1.bf16.msra.mxu1 %v14256_v35  ;;  %v14335_v35 = vld [vmem:[%s21773_s1 + $0x3b0] ss:$8 sps:$4 sm:$0xff]  }
  0xbc   :  { %10957 = vmatpush1.bf16.msra.mxu0 %v14259_v38  ;;  %10015 = vmatprep.subr.bf16.mxu1 %v14264_v40  ;;  %v14343_v38 = vld [vmem:[%s21773_s1 + $0x3c4] ss:$8 sps:$4 sm:$0xff]  }
  0xbd   :  { %10958 = vmatprep.subr.bf16.mxu0 %v14267_v39  ;;  %v14346_v40 = vld [vmem:[%s21773_s1 + $0x1ac4] ss:$8 sps:$4 sm:$0xff]   ;;  %v14341_v39 = vld [vmem:[%s21773_s1 + $0x3c0] ss:$8 sps:$4 sm:$0xff]  }
  0xbf   :  { %10016 = vmatpush1.bf16.msra.mxu1 %v14262_v44  ;;  %v14344_v44 = vld [vmem:[%s21773_s1 + $0x1ac0] ss:$8 sps:$4 sm:$0xff]  }
  0xc0   :  { %10959 = vmatpush1.bf16.msra.mxu0 %v14265_v45  ;;  %10026 = vmatprep.subr.bf16.mxu1 %v14270_v46  ;;  %v14349_v45 = vld [vmem:[%s21773_s1 + $0x3d4] ss:$8 sps:$4 sm:$0xff]  }
  0xc1   :  { %10969 = vmatprep.subr.bf16.mxu0 %v14274_v47  ;;  %v14352_v46 = vld [vmem:[%s21773_s1 + $0x1ad4] ss:$8 sps:$4 sm:$0xff]   ;;  %v14347_v47 = vld [vmem:[%s21773_s1 + $0x3d0] ss:$8 sps:$4 sm:$0xff]  }
  0xc2   :  { %10018 = vmatmul.mubr.bf16.vlgmr.msra.gmra.mrb[0].mxu1 %v583_v52  ;;  %v296_v52 = vcombine.high %v16997_v37, %v16997_v37  ;;  %v14361_v37 = vld [vmem:[%s21773_s1 + $0x3f4] ss:$8 sps:$4 sm:$0xff]  }
  0xc3   :  { %10961 = vmatmul.mubr.bf16.vlgmr.msra.gmra.mrb[0].mxu0 %v629_v53  ;;  %10027 = vmatpush1.bf16.msra.mxu1 %v14268_v51  ;;  %v14358_v51 = vld [vmem:[%s21773_s1 + $0x1ae4] ss:$8 sps:$4 sm:$0xff]   ;;  %v17208_v53 = vld [vmem:[%s21772_s0 + $0x10] sm:$0xff] }
  0xc4   :  { %10970 = vmatpush1.bf16.msra.mxu0 %v14272_v54  ;;  %10028 = vmatprep.subr.bf16.mxu1 %v14277_v55  ;;  %v14353_v54 = vld [vmem:[%s21773_s1 + $0x3e0] ss:$8 sps:$4 sm:$0xff]  }
  0xc5   :  { %10971 = vmatprep.subr.bf16.mxu0 %v14280_v56  ;;  %10058 = vmatprep.mubr.bf16.mxu1 %v586_v14  ;;  %v14356_v55 = vld [vmem:[%s21773_s1 + $0x1ae0] ss:$8 sps:$4 sm:$0xff]   ;;  %v14364_v56 = vld [vmem:[%s21773_s1 + $0x1af4] ss:$8 sps:$4 sm:$0xff]   ;;  %v17224_v14 = vrot.slane %v17208_v53, %v16509_v49 }
  0xc6   :  { %11001 = vmatprep.mubr.bf16.mxu0 %v632_v57  ;;  %v17227_v57 = vrot.slane %v296_v52, %v16509_v49  ;;  %v14432_v52 = vld [vmem:[%s21773_s1 + $0x4b0] ss:$8 sps:$4 sm:$0xff]  }
  0xc7   :  { %10029 = vmatpush1.bf16.msra.mxu1 %v14275_v27  ;;  %v14359_v27 = vld [vmem:[%s21773_s1 + $0x3f0] ss:$8 sps:$4 sm:$0xff]  }
  0xc8   :  { %10972 = vmatpush1.bf16.msra.mxu0 %v14278_v58  ;;  %10030 = vmatprep.subr.bf16.mxu1 %v14283_v59  ;;  %v14362_v58 = vld [vmem:[%s21773_s1 + $0x1af0] ss:$8 sps:$4 sm:$0xff]   ;;  %v14368_v59 = vld [vmem:[%s21773_s1 + $0x404] ss:$8 sps:$4 sm:$0xff]  }
  0xc9   :  { %10973 = vmatprep.subr.bf16.mxu0 %v14286_v60  ;;  %v14371_v60 = vld [vmem:[%s21773_s1 + $0x1b04] ss:$8 sps:$4 sm:$0xff]  }
  0xcb   :  { %10031 = vmatpush1.bf16.msra.mxu1 %v14281_v61  ;;  %v124_v61 = vcombine.high %v17224_v14, %v17224_v14 }
  0xcc   :  { %10974 = vmatpush1.bf16.msra.mxu0 %v14284_v62  ;;  %10032 = vmatprep.subr.bf16.mxu1 %v14289_v63  ;;  %v312_v62 = vcombine.high %v17227_v57, %v17227_v57  ;;  %v585_v63 = vpack.c.bf16 %v17009_v41, %v17009_v41  ;;  %v14377_v41 = vld [vmem:[%s21773_s1 + $0x1b14] ss:$8 sps:$4 sm:$0xff]  }
  0xcd   :  { %10975 = vmatprep.subr.bf16.mxu0 %v14292_v0  ;;  %v631_v0 = vpack.c.bf16 %v17013_v42, %v17013_v42  ;;  %v588_v42 = vpack.c.bf16 %v124_v61, %v124_v61  ;;  %v14447_v61 = vld [vmem:[%s21773_s1 + $0x1bd0] ss:$8 sps:$4 sm:$0xff]  }
  0xcf   :  { %10033 = vmatpush1.bf16.msra.mxu1 %v14287_v1  ;;  %v14366_v1 = vld [vmem:[%s21773_s1 + $0x400] ss:$8 sps:$4 sm:$0xff]  }
  0xd0   :  { %10976 = vmatpush1.bf16.msra.mxu0 %v14290_v2  ;;  %10034 = vmatprep.subr.bf16.mxu1 %v14295_v3  ;;  %v14369_v2 = vld [vmem:[%s21773_s1 + $0x1b00] ss:$8 sps:$4 sm:$0xff]   ;;  %v14374_v3 = vld [vmem:[%s21773_s1 + $0x414] ss:$8 sps:$4 sm:$0xff]  }
  0xd1   :  { %10977 = vmatprep.subr.bf16.mxu0 %v14298_v4  ;;  %v634_v4 = vpack.c.bf16 %v312_v62, %v312_v62  ;;  %v14452_v62 = vld [vmem:[%s21773_s1 + $0x4e4] ss:$8 sps:$4 sm:$0xff]  }
  0xd3   :  { %10035 = vmatpush1.bf16.msra.mxu1 %v14293_v5  ;;  %v14372_v5 = vld [vmem:[%s21773_s1 + $0x410] ss:$8 sps:$4 sm:$0xff]  }
  0xd4   :  { %10978 = vmatpush1.bf16.msra.mxu0 %v14296_v6  ;;  %10036 = vmatprep.subr.bf16.mxu1 %v14301_v7  ;;  %v14375_v6 = vld [vmem:[%s21773_s1 + $0x1b10] ss:$8 sps:$4 sm:$0xff]   ;;  %v14380_v7 = vld [vmem:[%s21773_s1 + $0x424] ss:$8 sps:$4 sm:$0xff]  }
  0xd5   :  { %10979 = vmatprep.subr.bf16.mxu0 %v14304_v8  ;;  %v14383_v8 = vld [vmem:[%s21773_s1 + $0x1b24] ss:$8 sps:$4 sm:$0xff]  }
  0xd7   :  { %10037 = vmatpush1.bf16.msra.mxu1 %v14299_v9  ;;  %v14378_v9 = vld [vmem:[%s21773_s1 + $0x420] ss:$8 sps:$4 sm:$0xff]  }
  0xd8   :  { %10980 = vmatpush1.bf16.msra.mxu0 %v14302_v10  ;;  %10038 = vmatprep.subr.bf16.mxu1 %v14307_v11  ;;  %v14381_v10 = vld [vmem:[%s21773_s1 + $0x1b20] ss:$8 sps:$4 sm:$0xff]   ;;  %v14386_v11 = vld [vmem:[%s21773_s1 + $0x434] ss:$8 sps:$4 sm:$0xff]  }
  0xd9   :  { %10981 = vmatprep.subr.bf16.mxu0 %v14310_v12  ;;  %v14389_v12 = vld [vmem:[%s21773_s1 + $0x1b34] ss:$8 sps:$4 sm:$0xff]  }
  0xdb   :  { %10039 = vmatpush1.bf16.msra.mxu1 %v14305_v13  ;;  %v14384_v13 = vld [vmem:[%s21773_s1 + $0x430] ss:$8 sps:$4 sm:$0xff]  }
  0xdc   :  { %10982 = vmatpush1.bf16.msra.mxu0 %v14308_v15  ;;  %10040 = vmatprep.subr.bf16.mxu1 %v14313_v16  ;;  %v14387_v15 = vld [vmem:[%s21773_s1 + $0x1b30] ss:$8 sps:$4 sm:$0xff]   ;;  %v14392_v16 = vld [vmem:[%s21773_s1 + $0x444] ss:$8 sps:$4 sm:$0xff]  }
  0xdd   :  { %10983 = vmatprep.subr.bf16.mxu0 %v14316_v17  ;;  %v14395_v17 = vld [vmem:[%s21773_s1 + $0x1b44] ss:$8 sps:$4 sm:$0xff]  }
  0xdf   :  { %10041 = vmatpush1.bf16.msra.mxu1 %v14311_v18  ;;  %v14390_v18 = vld [vmem:[%s21773_s1 + $0x440] ss:$8 sps:$4 sm:$0xff]  }
  0xe0   :  { %10984 = vmatpush1.bf16.msra.mxu0 %v14314_v19  ;;  %10042 = vmatprep.subr.bf16.mxu1 %v14319_v20  ;;  %v14393_v19 = vld [vmem:[%s21773_s1 + $0x1b40] ss:$8 sps:$4 sm:$0xff]   ;;  %v14398_v20 = vld [vmem:[%s21773_s1 + $0x454] ss:$8 sps:$4 sm:$0xff]  }
  0xe1   :  { %10985 = vmatprep.subr.bf16.mxu0 %v14322_v21  ;;  %v14401_v21 = vld [vmem:[%s21773_s1 + $0x1b54] ss:$8 sps:$4 sm:$0xff]  }
  0xe3   :  { %10043 = vmatpush1.bf16.msra.mxu1 %v14317_v22  ;;  %v14396_v22 = vld [vmem:[%s21773_s1 + $0x450] ss:$8 sps:$4 sm:$0xff]  }
  0xe4   :  { %10986 = vmatpush1.bf16.msra.mxu0 %v14320_v23  ;;  %10044 = vmatprep.subr.bf16.mxu1 %v14325_v24  ;;  %v14399_v23 = vld [vmem:[%s21773_s1 + $0x1b50] ss:$8 sps:$4 sm:$0xff]   ;;  %v14404_v24 = vld [vmem:[%s21773_s1 + $0x464] ss:$8 sps:$4 sm:$0xff]  }
  0xe5   :  { %10987 = vmatprep.subr.bf16.mxu0 %v14328_v25  ;;  %v14407_v25 = vld [vmem:[%s21773_s1 + $0x1b64] ss:$8 sps:$4 sm:$0xff]  }
  0xe7   :  { %10045 = vmatpush1.bf16.msra.mxu1 %v14323_v26  ;;  %v14402_v26 = vld [vmem:[%s21773_s1 + $0x460] ss:$8 sps:$4 sm:$0xff]  }
  0xe8   :  { %10988 = vmatpush1.bf16.msra.mxu0 %v14326_v28  ;;  %10046 = vmatprep.subr.bf16.mxu1 %v14331_v29  ;;  %v14405_v28 = vld [vmem:[%s21773_s1 + $0x1b60] ss:$8 sps:$4 sm:$0xff]   ;;  %v14410_v29 = vld [vmem:[%s21773_s1 + $0x474] ss:$8 sps:$4 sm:$0xff]  }
  0xe9   :  { %10989 = vmatprep.subr.bf16.mxu0 %v14334_v30  ;;  %v14413_v30 = vld [vmem:[%s21773_s1 + $0x1b74] ss:$8 sps:$4 sm:$0xff]  }
  0xeb   :  { %10047 = vmatpush1.bf16.msra.mxu1 %v14329_v31  ;;  %v14408_v31 = vld [vmem:[%s21773_s1 + $0x470] ss:$8 sps:$4 sm:$0xff]  }
  0xec   :  { %10990 = vmatpush1.bf16.msra.mxu0 %v14332_v32  ;;  %10048 = vmatprep.subr.bf16.mxu1 %v14337_v33  ;;  %v14411_v32 = vld [vmem:[%s21773_s1 + $0x1b70] ss:$8 sps:$4 sm:$0xff]   ;;  %v14416_v33 = vld [vmem:[%s21773_s1 + $0x484] ss:$8 sps:$4 sm:$0xff]  }
  0xed   :  { %10991 = vmatprep.subr.bf16.mxu0 %v14340_v34  ;;  %v14419_v34 = vld [vmem:[%s21773_s1 + $0x1b84] ss:$8 sps:$4 sm:$0xff]  }
  0xef   :  { %10049 = vmatpush1.bf16.msra.mxu1 %v14335_v35  ;;  %v14414_v35 = vld [vmem:[%s21773_s1 + $0x480] ss:$8 sps:$4 sm:$0xff]  }
  0xf0   :  { %10992 = vmatpush1.bf16.msra.mxu0 %v14338_v36  ;;  %10050 = vmatprep.subr.bf16.mxu1 %v14343_v38  ;;  %v14417_v36 = vld [vmem:[%s21773_s1 + $0x1b80] ss:$8 sps:$4 sm:$0xff]   ;;  %v14422_v38 = vld [vmem:[%s21773_s1 + $0x494] ss:$8 sps:$4 sm:$0xff]  }
  0xf1   :  { %10993 = vmatprep.subr.bf16.mxu0 %v14346_v40  ;;  %v14425_v40 = vld [vmem:[%s21773_s1 + $0x1b94] ss:$8 sps:$4 sm:$0xff]  }
  0xf3   :  { %10051 = vmatpush1.bf16.msra.mxu1 %v14341_v39  ;;  %v14420_v39 = vld [vmem:[%s21773_s1 + $0x490] ss:$8 sps:$4 sm:$0xff]  }
  0xf4   :  { %10994 = vmatpush1.bf16.msra.mxu0 %v14344_v44  ;;  %10052 = vmatprep.subr.bf16.mxu1 %v14349_v45  ;;  %v14423_v44 = vld [vmem:[%s21773_s1 + $0x1b90] ss:$8 sps:$4 sm:$0xff]   ;;  %v14428_v45 = vld [vmem:[%s21773_s1 + $0x4a4] ss:$8 sps:$4 sm:$0xff]  }
  0xf5   :  { %10995 = vmatprep.subr.bf16.mxu0 %v14352_v46  ;;  %v14431_v46 = vld [vmem:[%s21773_s1 + $0x1ba4] ss:$8 sps:$4 sm:$0xff]  }
  0xf7   :  { %10053 = vmatpush1.bf16.msra.mxu1 %v14347_v47  ;;  %v14426_v47 = vld [vmem:[%s21773_s1 + $0x4a0] ss:$8 sps:$4 sm:$0xff]  }
  0xf8   :  { %10996 = vmatpush1.bf16.msra.mxu0 %v14350_v48  ;;  %10054 = vmatprep.subr.bf16.mxu1 %v14355_v50  ;;  %v14429_v48 = vld [vmem:[%s21773_s1 + $0x1ba0] ss:$8 sps:$4 sm:$0xff]   ;;  %v14434_v50 = vld [vmem:[%s21773_s1 + $0x4b4] ss:$8 sps:$4 sm:$0xff]  }
  0xf9   :  { %10997 = vmatprep.subr.bf16.mxu0 %v14358_v51  ;;  %v14437_v51 = vld [vmem:[%s21773_s1 + $0x1bb4] ss:$8 sps:$4 sm:$0xff]  }
  0xfb   :  { %10055 = vmatpush1.bf16.msra.mxu1 %v14353_v54  ;;  %v14435_v54 = vld [vmem:[%s21773_s1 + $0x1bb0] ss:$8 sps:$4 sm:$0xff]  }
  0xfc   :  { %10998 = vmatpush1.bf16.msra.mxu0 %v14356_v55  ;;  %10056 = vmatprep.subr.bf16.mxu1 %v14361_v37  ;;  %v14440_v55 = vld [vmem:[%s21773_s1 + $0x4c4] ss:$8 sps:$4 sm:$0xff]  }
  0xfd   :  { %10999 = vmatprep.subr.bf16.mxu0 %v14364_v56  ;;  %v14443_v37 = vld [vmem:[%s21773_s1 + $0x1bc4] ss:$8 sps:$4 sm:$0xff]   ;;  %v14438_v56 = vld [vmem:[%s21773_s1 + $0x4c0] ss:$8 sps:$4 sm:$0xff]  }
  0xff   :  { %10057 = vmatpush1.bf16.msra.mxu1 %v14359_v27  ;;  %v14441_v27 = vld [vmem:[%s21773_s1 + $0x1bc0] ss:$8 sps:$4 sm:$0xff]  }
 0x100   :  { %11000 = vmatpush1.bf16.msra.mxu0 %v14362_v58  ;;  %10067 = vmatprep.subr.bf16.mxu1 %v14368_v59  ;;  %v14446_v58 = vld [vmem:[%s21773_s1 + $0x4d4] ss:$8 sps:$4 sm:$0xff]  }
 0x101   :  { %11010 = vmatprep.subr.bf16.mxu0 %v14371_v60  ;;  %v14449_v59 = vld [vmem:[%s21773_s1 + $0x1bd4] ss:$8 sps:$4 sm:$0xff]   ;;  %v14444_v60 = vld [vmem:[%s21773_s1 + $0x4d0] ss:$8 sps:$4 sm:$0xff]  }
 0x102   :  { %10059 = vmatmul.mubr.bf16.vlgmr.msra.gmra.mrb[0].mxu1 %v585_v63  ;;  %v14455_v63 = vld [vmem:[%s21773_s1 + $0x1be4] ss:$8 sps:$4 sm:$0xff]  }
 0x103   :  { %11002 = vmatmul.mubr.bf16.vlgmr.msra.gmra.mrb[0].mxu0 %v631_v0  ;;  %10068 = vmatpush1.bf16.msra.mxu1 %v14366_v1  ;;  %v17420_v0 = vld [vmem:[%s21772_s0 + $0x70] sm:$0xff]  ;;  %v109_v1 = vcombine.high %v17208_v53, %v17208_v53 }
 0x104   :  { %11011 = vmatpush1.bf16.msra.mxu0 %v14369_v2  ;;  %10069 = vmatprep.subr.bf16.mxu1 %v14374_v3  ;;  %v14450_v2 = vld [vmem:[%s21773_s1 + $0x4e0] ss:$8 sps:$4 sm:$0xff]   ;;  %v14461_v53 = vld [vmem:[%s21773_s1 + $0x1bf4] ss:$8 sps:$4 sm:$0xff]  }
 0x105   :  { %11012 = vmatprep.subr.bf16.mxu0 %v14377_v41  ;;  %10099 = vmatprep.mubr.bf16.mxu1 %v588_v42  ;;  %v14453_v3 = vld [vmem:[%s21773_s1 + $0x1be0] ss:$8 sps:$4 sm:$0xff]   ;;  %v14458_v41 = vld [vmem:[%s21773_s1 + $0x4f4] ss:$8 sps:$4 sm:$0xff]   ;;  %v17437_v42 = vrot.slane %v109_v1, %v16509_v49  ;;  %v14529_v1 = vld [vmem:[%s21773_s1 + $0x5b0] ss:$8 sps:$4 sm:$0xff]  }
 0x106   :  { %11042 = vmatprep.mubr.bf16.mxu0 %v634_v4  ;;  %v17441_v4 = vrot.slane %v17420_v0, %v16509_v49 }
 0x107   :  { %10070 = vmatpush1.bf16.msra.mxu1 %v14372_v5  ;;  %v14456_v5 = vld [vmem:[%s21773_s1 + $0x4f0] ss:$8 sps:$4 sm:$0xff]  }
 0x108   :  { %11013 = vmatpush1.bf16.msra.mxu0 %v14375_v6  ;;  %10071 = vmatprep.subr.bf16.mxu1 %v14380_v7  ;;  %v14459_v6 = vld [vmem:[%s21773_s1 + $0x1bf0] ss:$8 sps:$4 sm:$0xff]   ;;  %v14464_v7 = vld [vmem:[%s21773_s1 + $0x504] ss:$8 sps:$4 sm:$0xff]  }
 0x109   :  { %11014 = vmatprep.subr.bf16.mxu0 %v14383_v8  ;;  %v14468_v8 = vld [vmem:[%s21773_s1 + $0x1c04] ss:$8 sps:$4 sm:$0xff]  }
 0x10b   :  { %10072 = vmatpush1.bf16.msra.mxu1 %v14378_v9  ;;  %v125_v9 = vcombine.high %v17437_v42, %v17437_v42 }
 0x10c   :  { %11015 = vmatpush1.bf16.msra.mxu0 %v14381_v10  ;;  %10073 = vmatprep.subr.bf16.mxu1 %v14386_v11  ;;  %v328_v10 = vcombine.high %v17441_v4, %v17441_v4  ;;  %v587_v11 = vpack.c.bf16 %v17224_v14, %v17224_v14  ;;  %v14474_v14 = vld [vmem:[%s21773_s1 + $0x1c14] ss:$8 sps:$4 sm:$0xff]  }
 0x10d   :  { %11016 = vmatprep.subr.bf16.mxu0 %v14389_v12  ;;  %v633_v12 = vpack.c.bf16 %v17227_v57, %v17227_v57  ;;  %v590_v57 = vpack.c.bf16 %v125_v9, %v125_v9  ;;  %v14544_v9 = vld [vmem:[%s21773_s1 + $0x1cd0] ss:$8 sps:$4 sm:$0xff]  }
 0x10f   :  { %10074 = vmatpush1.bf16.msra.mxu1 %v14384_v13  ;;  %v14462_v13 = vld [vmem:[%s21773_s1 + $0x500] ss:$8 sps:$4 sm:$0xff]  }
 0x110   :  { %11017 = vmatpush1.bf16.msra.mxu0 %v14387_v15  ;;  %10075 = vmatprep.subr.bf16.mxu1 %v14392_v16  ;;  %v14466_v15 = vld [vmem:[%s21773_s1 + $0x1c00] ss:$8 sps:$4 sm:$0xff]   ;;  %v14471_v16 = vld [vmem:[%s21773_s1 + $0x514] ss:$8 sps:$4 sm:$0xff]  }
 0x111   :  { %11018 = vmatprep.subr.bf16.mxu0 %v14395_v17  ;;  %v636_v17 = vpack.c.bf16 %v328_v10, %v328_v10  ;;  %v14549_v10 = vld [vmem:[%s21773_s1 + $0x5e4] ss:$8 sps:$4 sm:$0xff]  }
 0x113   :  { %10076 = vmatpush1.bf16.msra.mxu1 %v14390_v18  ;;  %v14469_v18 = vld [vmem:[%s21773_s1 + $0x510] ss:$8 sps:$4 sm:$0xff]  }
 0x114   :  { %11019 = vmatpush1.bf16.msra.mxu0 %v14393_v19  ;;  %10077 = vmatprep.subr.bf16.mxu1 %v14398_v20  ;;  %v14472_v19 = vld [vmem:[%s21773_s1 + $0x1c10] ss:$8 sps:$4 sm:$0xff]   ;;  %v14477_v20 = vld [vmem:[%s21773_s1 + $0x524] ss:$8 sps:$4 sm:$0xff]  }
 0x115   :  { %11020 = vmatprep.subr.bf16.mxu0 %v14401_v21  ;;  %v14480_v21 = vld [vmem:[%s21773_s1 + $0x1c24] ss:$8 sps:$4 sm:$0xff]  }
 0x117   :  { %10078 = vmatpush1.bf16.msra.mxu1 %v14396_v22  ;;  %v14475_v22 = vld [vmem:[%s21773_s1 + $0x520] ss:$8 sps:$4 sm:$0xff]  }
 0x118   :  { %11021 = vmatpush1.bf16.msra.mxu0 %v14399_v23  ;;  %10079 = vmatprep.subr.bf16.mxu1 %v14404_v24  ;;  %v14478_v23 = vld [vmem:[%s21773_s1 + $0x1c20] ss:$8 sps:$4 sm:$0xff]   ;;  %v14483_v24 = vld [vmem:[%s21773_s1 + $0x534] ss:$8 sps:$4 sm:$0xff]  }
 0x119   :  { %11022 = vmatprep.subr.bf16.mxu0 %v14407_v25  ;;  %v14486_v25 = vld [vmem:[%s21773_s1 + $0x1c34] ss:$8 sps:$4 sm:$0xff]  }
 0x11b   :  { %10080 = vmatpush1.bf16.msra.mxu1 %v14402_v26  ;;  %v14481_v26 = vld [vmem:[%s21773_s1 + $0x530] ss:$8 sps:$4 sm:$0xff]  }
 0x11c   :  { %11023 = vmatpush1.bf16.msra.mxu0 %v14405_v28  ;;  %10081 = vmatprep.subr.bf16.mxu1 %v14410_v29  ;;  %v14484_v28 = vld [vmem:[%s21773_s1 + $0x1c30] ss:$8 sps:$4 sm:$0xff]   ;;  %v14489_v29 = vld [vmem:[%s21773_s1 + $0x544] ss:$8 sps:$4 sm:$0xff]  }
 0x11d   :  { %11024 = vmatprep.subr.bf16.mxu0 %v14413_v30  ;;  %v14492_v30 = vld [vmem:[%s21773_s1 + $0x1c44] ss:$8 sps:$4 sm:$0xff]  }
 0x11f   :  { %10082 = vmatpush1.bf16.msra.mxu1 %v14408_v31  ;;  %v14487_v31 = vld [vmem:[%s21773_s1 + $0x540] ss:$8 sps:$4 sm:$0xff]  }
 0x120   :  { %11025 = vmatpush1.bf16.msra.mxu0 %v14411_v32  ;;  %10083 = vmatprep.subr.bf16.mxu1 %v14416_v33  ;;  %v14490_v32 = vld [vmem:[%s21773_s1 + $0x1c40] ss:$8 sps:$4 sm:$0xff]   ;;  %v14495_v33 = vld [vmem:[%s21773_s1 + $0x554] ss:$8 sps:$4 sm:$0xff]  }
 0x121   :  { %11026 = vmatprep.subr.bf16.mxu0 %v14419_v34  ;;  %v14498_v34 = vld [vmem:[%s21773_s1 + $0x1c54] ss:$8 sps:$4 sm:$0xff]  }
 0x123   :  { %10084 = vmatpush1.bf16.msra.mxu1 %v14414_v35  ;;  %v14493_v35 = vld [vmem:[%s21773_s1 + $0x550] ss:$8 sps:$4 sm:$0xff]  }
 0x124   :  { %11027 = vmatpush1.bf16.msra.mxu0 %v14417_v36  ;;  %10085 = vmatprep.subr.bf16.mxu1 %v14422_v38  ;;  %v14496_v36 = vld [vmem:[%s21773_s1 + $0x1c50] ss:$8 sps:$4 sm:$0xff]   ;;  %v14501_v38 = vld [vmem:[%s21773_s1 + $0x564] ss:$8 sps:$4 sm:$0xff]  }
 0x125   :  { %11028 = vmatprep.subr.bf16.mxu0 %v14425_v40  ;;  %v14504_v40 = vld [vmem:[%s21773_s1 + $0x1c64] ss:$8 sps:$4 sm:$0xff]  }
 0x127   :  { %10086 = vmatpush1.bf16.msra.mxu1 %v14420_v39  ;;  %v14499_v39 = vld [vmem:[%s21773_s1 + $0x560] ss:$8 sps:$4 sm:$0xff]  }
 0x128   :  { %11029 = vmatpush1.bf16.msra.mxu0 %v14423_v44  ;;  %10087 = vmatprep.subr.bf16.mxu1 %v14428_v45  ;;  %v14502_v44 = vld [vmem:[%s21773_s1 + $0x1c60] ss:$8 sps:$4 sm:$0xff]   ;;  %v14507_v45 = vld [vmem:[%s21773_s1 + $0x574] ss:$8 sps:$4 sm:$0xff]  }
 0x129   :  { %11030 = vmatprep.subr.bf16.mxu0 %v14431_v46  ;;  %v14510_v46 = vld [vmem:[%s21773_s1 + $0x1c74] ss:$8 sps:$4 sm:$0xff]  }
 0x12b   :  { %10088 = vmatpush1.bf16.msra.mxu1 %v14426_v47  ;;  %v14505_v47 = vld [vmem:[%s21773_s1 + $0x570] ss:$8 sps:$4 sm:$0xff]  }
 0x12c   :  { %11031 = vmatpush1.bf16.msra.mxu0 %v14429_v48  ;;  %10089 = vmatprep.subr.bf16.mxu1 %v14434_v50  ;;  %v14508_v48 = vld [vmem:[%s21773_s1 + $0x1c70] ss:$8 sps:$4 sm:$0xff]   ;;  %v14513_v50 = vld [vmem:[%s21773_s1 + $0x584] ss:$8 sps:$4 sm:$0xff]  }
 0x12d   :  { %11032 = vmatprep.subr.bf16.mxu0 %v14437_v51  ;;  %v14516_v51 = vld [vmem:[%s21773_s1 + $0x1c84] ss:$8 sps:$4 sm:$0xff]  }
 0x12f   :  { %10090 = vmatpush1.bf16.msra.mxu1 %v14432_v52  ;;  %v14511_v52 = vld [vmem:[%s21773_s1 + $0x580] ss:$8 sps:$4 sm:$0xff]  }
 0x130   :  { %11033 = vmatpush1.bf16.msra.mxu0 %v14435_v54  ;;  %10091 = vmatprep.subr.bf16.mxu1 %v14440_v55  ;;  %v14514_v54 = vld [vmem:[%s21773_s1 + $0x1c80] ss:$8 sps:$4 sm:$0xff]   ;;  %v14519_v55 = vld [vmem:[%s21773_s1 + $0x594] ss:$8 sps:$4 sm:$0xff]  }
 0x131   :  { %11034 = vmatprep.subr.bf16.mxu0 %v14443_v37  ;;  %v14522_v37 = vld [vmem:[%s21773_s1 + $0x1c94] ss:$8 sps:$4 sm:$0xff]  }
 0x133   :  { %10092 = vmatpush1.bf16.msra.mxu1 %v14438_v56  ;;  %v14517_v56 = vld [vmem:[%s21773_s1 + $0x590] ss:$8 sps:$4 sm:$0xff]  }
 0x134   :  { %11035 = vmatpush1.bf16.msra.mxu0 %v14441_v27  ;;  %10093 = vmatprep.subr.bf16.mxu1 %v14446_v58  ;;  %v14520_v27 = vld [vmem:[%s21773_s1 + $0x1c90] ss:$8 sps:$4 sm:$0xff]   ;;  %v14525_v58 = vld [vmem:[%s21773_s1 + $0x5a4] ss:$8 sps:$4 sm:$0xff]  }
 0x135   :  { %11036 = vmatprep.subr.bf16.mxu0 %v14449_v59  ;;  %v14528_v59 = vld [vmem:[%s21773_s1 + $0x1ca4] ss:$8 sps:$4 sm:$0xff]  }
 0x137   :  { %10094 = vmatpush1.bf16.msra.mxu1 %v14444_v60  ;;  %v14523_v60 = vld [vmem:[%s21773_s1 + $0x5a0] ss:$8 sps:$4 sm:$0xff]  }
 0x138   :  { %11037 = vmatpush1.bf16.msra.mxu0 %v14447_v61  ;;  %10095 = vmatprep.subr.bf16.mxu1 %v14452_v62  ;;  %v14526_v61 = vld [vmem:[%s21773_s1 + $0x1ca0] ss:$8 sps:$4 sm:$0xff]   ;;  %v14531_v62 = vld [vmem:[%s21773_s1 + $0x5b4] ss:$8 sps:$4 sm:$0xff]  }
 0x139   :  { %11038 = vmatprep.subr.bf16.mxu0 %v14455_v63  ;;  %v14534_v63 = vld [vmem:[%s21773_s1 + $0x1cb4] ss:$8 sps:$4 sm:$0xff]  }
 0x13b   :  { %10096 = vmatpush1.bf16.msra.mxu1 %v14450_v2  ;;  %v14532_v2 = vld [vmem:[%s21773_s1 + $0x1cb0] ss:$8 sps:$4 sm:$0xff]  }
 0x13c   :  { %11039 = vmatpush1.bf16.msra.mxu0 %v14453_v3  ;;  %10097 = vmatprep.subr.bf16.mxu1 %v14458_v41  ;;  %v14537_v3 = vld [vmem:[%s21773_s1 + $0x5c4] ss:$8 sps:$4 sm:$0xff]  }
 0x13d   :  { %11040 = vmatprep.subr.bf16.mxu0 %v14461_v53  ;;  %v14540_v41 = vld [vmem:[%s21773_s1 + $0x1cc4] ss:$8 sps:$4 sm:$0xff]   ;;  %v14535_v53 = vld [vmem:[%s21773_s1 + $0x5c0] ss:$8 sps:$4 sm:$0xff]  }
 0x13f   :  { %10098 = vmatpush1.bf16.msra.mxu1 %v14456_v5  ;;  %v14538_v5 = vld [vmem:[%s21773_s1 + $0x1cc0] ss:$8 sps:$4 sm:$0xff]  }
 0x140   :  { %11041 = vmatpush1.bf16.msra.mxu0 %v14459_v6  ;;  %10108 = vmatprep.subr.bf16.mxu1 %v14464_v7  ;;  %v14543_v6 = vld [vmem:[%s21773_s1 + $0x5d4] ss:$8 sps:$4 sm:$0xff]  }
 0x141   :  { %11051 = vmatprep.subr.bf16.mxu0 %v14468_v8  ;;  %v14546_v7 = vld [vmem:[%s21773_s1 + $0x1cd4] ss:$8 sps:$4 sm:$0xff]   ;;  %v14541_v8 = vld [vmem:[%s21773_s1 + $0x5d0] ss:$8 sps:$4 sm:$0xff]  }
 0x142   :  { %10100 = vmatmul.mubr.bf16.vlgmr.msra.gmra.mrb[0].mxu1 %v587_v11  ;;  %v14552_v11 = vld [vmem:[%s21773_s1 + $0x1ce4] ss:$8 sps:$4 sm:$0xff]  }
 0x143   :  { %11043 = vmatmul.mubr.bf16.vlgmr.msra.gmra.mrb[0].mxu0 %v633_v12  ;;  %10109 = vmatpush1.bf16.msra.mxu1 %v14462_v13  ;;  %v17634_v12 = vld [vmem:[%s21772_s0 + $0x18] sm:$0xff]  ;;  %v313_v13 = vcombine.high %v17420_v0, %v17420_v0 }
 0x144   :  { %11052 = vmatpush1.bf16.msra.mxu0 %v14466_v15  ;;  %10110 = vmatprep.subr.bf16.mxu1 %v14471_v16  ;;  %v14547_v15 = vld [vmem:[%s21773_s1 + $0x5e0] ss:$8 sps:$4 sm:$0xff]   ;;  %v14558_v0 = vld [vmem:[%s21773_s1 + $0x1cf4] ss:$8 sps:$4 sm:$0xff]  }
 0x145   :  { %11053 = vmatprep.subr.bf16.mxu0 %v14474_v14  ;;  %10140 = vmatprep.mubr.bf16.mxu1 %v590_v57  ;;  %v14550_v16 = vld [vmem:[%s21773_s1 + $0x1ce0] ss:$8 sps:$4 sm:$0xff]   ;;  %v14555_v14 = vld [vmem:[%s21773_s1 + $0x5f4] ss:$8 sps:$4 sm:$0xff]   ;;  %v17652_v57 = vrot.slane %v17634_v12, %v16509_v49 }
 0x146   :  { %11083 = vmatprep.mubr.bf16.mxu0 %v636_v17  ;;  %v17655_v17 = vrot.slane %v313_v13, %v16509_v49  ;;  %v14626_v13 = vld [vmem:[%s21773_s1 + $0x6b0] ss:$8 sps:$4 sm:$0xff]  }
 0x147   :  { %10111 = vmatpush1.bf16.msra.mxu1 %v14469_v18  ;;  %v14553_v18 = vld [vmem:[%s21773_s1 + $0x5f0] ss:$8 sps:$4 sm:$0xff]  }
 0x148   :  { %11054 = vmatpush1.bf16.msra.mxu0 %v14472_v19  ;;  %10112 = vmatprep.subr.bf16.mxu1 %v14477_v20  ;;  %v14556_v19 = vld [vmem:[%s21773_s1 + $0x1cf0] ss:$8 sps:$4 sm:$0xff]   ;;  %v14562_v20 = vld [vmem:[%s21773_s1 + $0x604] ss:$8 sps:$4 sm:$0xff]  }
 0x149   :  { %11055 = vmatprep.subr.bf16.mxu0 %v14480_v21  ;;  %v14565_v21 = vld [vmem:[%s21773_s1 + $0x1d04] ss:$8 sps:$4 sm:$0xff]  }
 0x14b   :  { %10113 = vmatpush1.bf16.msra.mxu1 %v14475_v22  ;;  %v141_v22 = vcombine.high %v17652_v57, %v17652_v57 }
 0x14c   :  { %11056 = vmatpush1.bf16.msra.mxu0 %v14478_v23  ;;  %10114 = vmatprep.subr.bf16.mxu1 %v14483_v24  ;;  %v329_v23 = vcombine.high %v17655_v17, %v17655_v17  ;;  %v589_v24 = vpack.c.bf16 %v17437_v42, %v17437_v42  ;;  %v14571_v42 = vld [vmem:[%s21773_s1 + $0x1d14] ss:$8 sps:$4 sm:$0xff]  }
 0x14d   :  { %11057 = vmatprep.subr.bf16.mxu0 %v14486_v25  ;;  %v635_v25 = vpack.c.bf16 %v17441_v4, %v17441_v4  ;;  %v592_v4 = vpack.c.bf16 %v141_v22, %v141_v22  ;;  %v14641_v22 = vld [vmem:[%s21773_s1 + $0x1dd0] ss:$8 sps:$4 sm:$0xff]  }
 0x14f   :  { %10115 = vmatpush1.bf16.msra.mxu1 %v14481_v26  ;;  %v14560_v26 = vld [vmem:[%s21773_s1 + $0x600] ss:$8 sps:$4 sm:$0xff]  }
 0x150   :  { %11058 = vmatpush1.bf16.msra.mxu0 %v14484_v28  ;;  %10116 = vmatprep.subr.bf16.mxu1 %v14489_v29  ;;  %v14563_v28 = vld [vmem:[%s21773_s1 + $0x1d00] ss:$8 sps:$4 sm:$0xff]   ;;  %v14568_v29 = vld [vmem:[%s21773_s1 + $0x614] ss:$8 sps:$4 sm:$0xff]  }
 0x151   :  { %11059 = vmatprep.subr.bf16.mxu0 %v14492_v30  ;;  %v638_v30 = vpack.c.bf16 %v329_v23, %v329_v23  ;;  %v14646_v23 = vld [vmem:[%s21773_s1 + $0x6e4] ss:$8 sps:$4 sm:$0xff]  }
 0x153   :  { %10117 = vmatpush1.bf16.msra.mxu1 %v14487_v31  ;;  %v14566_v31 = vld [vmem:[%s21773_s1 + $0x610] ss:$8 sps:$4 sm:$0xff]  }
 0x154   :  { %11060 = vmatpush1.bf16.msra.mxu0 %v14490_v32  ;;  %10118 = vmatprep.subr.bf16.mxu1 %v14495_v33  ;;  %v14569_v32 = vld [vmem:[%s21773_s1 + $0x1d10] ss:$8 sps:$4 sm:$0xff]   ;;  %v14574_v33 = vld [vmem:[%s21773_s1 + $0x624] ss:$8 sps:$4 sm:$0xff]  }
 0x155   :  { %11061 = vmatprep.subr.bf16.mxu0 %v14498_v34  ;;  %v14577_v34 = vld [vmem:[%s21773_s1 + $0x1d24] ss:$8 sps:$4 sm:$0xff]  }
 0x157   :  { %10119 = vmatpush1.bf16.msra.mxu1 %v14493_v35  ;;  %v14572_v35 = vld [vmem:[%s21773_s1 + $0x620] ss:$8 sps:$4 sm:$0xff]  }
 0x158   :  { %11062 = vmatpush1.bf16.msra.mxu0 %v14496_v36  ;;  %10120 = vmatprep.subr.bf16.mxu1 %v14501_v38  ;;  %v14575_v36 = vld [vmem:[%s21773_s1 + $0x1d20] ss:$8 sps:$4 sm:$0xff]   ;;  %v14580_v38 = vld [vmem:[%s21773_s1 + $0x634] ss:$8 sps:$4 sm:$0xff]  }
 0x159   :  { %11063 = vmatprep.subr.bf16.mxu0 %v14504_v40  ;;  %v14583_v40 = vld [vmem:[%s21773_s1 + $0x1d34] ss:$8 sps:$4 sm:$0xff]  }
 0x15b   :  { %10121 = vmatpush1.bf16.msra.mxu1 %v14499_v39  ;;  %v14578_v39 = vld [vmem:[%s21773_s1 + $0x630] ss:$8 sps:$4 sm:$0xff]  }
 0x15c   :  { %11064 = vmatpush1.bf16.msra.mxu0 %v14502_v44  ;;  %10122 = vmatprep.subr.bf16.mxu1 %v14507_v45  ;;  %v14581_v44 = vld [vmem:[%s21773_s1 + $0x1d30] ss:$8 sps:$4 sm:$0xff]   ;;  %v14586_v45 = vld [vmem:[%s21773_s1 + $0x644] ss:$8 sps:$4 sm:$0xff]  }
 0x15d   :  { %11065 = vmatprep.subr.bf16.mxu0 %v14510_v46  ;;  %v14589_v46 = vld [vmem:[%s21773_s1 + $0x1d44] ss:$8 sps:$4 sm:$0xff]  }
 0x15f   :  { %10123 = vmatpush1.bf16.msra.mxu1 %v14505_v47  ;;  %v14584_v47 = vld [vmem:[%s21773_s1 + $0x640] ss:$8 sps:$4 sm:$0xff]  }
 0x160   :  { %11066 = vmatpush1.bf16.msra.mxu0 %v14508_v48  ;;  %10124 = vmatprep.subr.bf16.mxu1 %v14513_v50  ;;  %v14587_v48 = vld [vmem:[%s21773_s1 + $0x1d40] ss:$8 sps:$4 sm:$0xff]   ;;  %v14592_v50 = vld [vmem:[%s21773_s1 + $0x654] ss:$8 sps:$4 sm:$0xff]  }
 0x161   :  { %11067 = vmatprep.subr.bf16.mxu0 %v14516_v51  ;;  %v14595_v51 = vld [vmem:[%s21773_s1 + $0x1d54] ss:$8 sps:$4 sm:$0xff]  }
 0x163   :  { %10125 = vmatpush1.bf16.msra.mxu1 %v14511_v52  ;;  %v14590_v52 = vld [vmem:[%s21773_s1 + $0x650] ss:$8 sps:$4 sm:$0xff]  }
 0x164   :  { %11068 = vmatpush1.bf16.msra.mxu0 %v14514_v54  ;;  %10126 = vmatprep.subr.bf16.mxu1 %v14519_v55  ;;  %v14593_v54 = vld [vmem:[%s21773_s1 + $0x1d50] ss:$8 sps:$4 sm:$0xff]   ;;  %v14598_v55 = vld [vmem:[%s21773_s1 + $0x664] ss:$8 sps:$4 sm:$0xff]  }
 0x165   :  { %11069 = vmatprep.subr.bf16.mxu0 %v14522_v37  ;;  %v14601_v37 = vld [vmem:[%s21773_s1 + $0x1d64] ss:$8 sps:$4 sm:$0xff]  }
 0x167   :  { %10127 = vmatpush1.bf16.msra.mxu1 %v14517_v56  ;;  %v14596_v56 = vld [vmem:[%s21773_s1 + $0x660] ss:$8 sps:$4 sm:$0xff]  }
 0x168   :  { %11070 = vmatpush1.bf16.msra.mxu0 %v14520_v27  ;;  %10128 = vmatprep.subr.bf16.mxu1 %v14525_v58  ;;  %v14599_v27 = vld [vmem:[%s21773_s1 + $0x1d60] ss:$8 sps:$4 sm:$0xff]   ;;  %v14604_v58 = vld [vmem:[%s21773_s1 + $0x674] ss:$8 sps:$4 sm:$0xff]  }
 0x169   :  { %11071 = vmatprep.subr.bf16.mxu0 %v14528_v59  ;;  %v14607_v59 = vld [vmem:[%s21773_s1 + $0x1d74] ss:$8 sps:$4 sm:$0xff]  }
 0x16b   :  { %10129 = vmatpush1.bf16.msra.mxu1 %v14523_v60  ;;  %v14602_v60 = vld [vmem:[%s21773_s1 + $0x670] ss:$8 sps:$4 sm:$0xff]  }
 0x16c   :  { %11072 = vmatpush1.bf16.msra.mxu0 %v14526_v61  ;;  %10130 = vmatprep.subr.bf16.mxu1 %v14531_v62  ;;  %v14605_v61 = vld [vmem:[%s21773_s1 + $0x1d70] ss:$8 sps:$4 sm:$0xff]   ;;  %v14610_v62 = vld [vmem:[%s21773_s1 + $0x684] ss:$8 sps:$4 sm:$0xff]  }
 0x16d   :  { %11073 = vmatprep.subr.bf16.mxu0 %v14534_v63  ;;  %v14613_v63 = vld [vmem:[%s21773_s1 + $0x1d84] ss:$8 sps:$4 sm:$0xff]  }
 0x16f   :  { %10131 = vmatpush1.bf16.msra.mxu1 %v14529_v1  ;;  %v14608_v1 = vld [vmem:[%s21773_s1 + $0x680] ss:$8 sps:$4 sm:$0xff]  }
 0x170   :  { %11074 = vmatpush1.bf16.msra.mxu0 %v14532_v2  ;;  %10132 = vmatprep.subr.bf16.mxu1 %v14537_v3  ;;  %v14611_v2 = vld [vmem:[%s21773_s1 + $0x1d80] ss:$8 sps:$4 sm:$0xff]   ;;  %v14616_v3 = vld [vmem:[%s21773_s1 + $0x694] ss:$8 sps:$4 sm:$0xff]  }
 0x171   :  { %11075 = vmatprep.subr.bf16.mxu0 %v14540_v41  ;;  %v14619_v41 = vld [vmem:[%s21773_s1 + $0x1d94] ss:$8 sps:$4 sm:$0xff]  }
 0x173   :  { %10133 = vmatpush1.bf16.msra.mxu1 %v14535_v53  ;;  %v14614_v53 = vld [vmem:[%s21773_s1 + $0x690] ss:$8 sps:$4 sm:$0xff]  }
 0x174   :  { %11076 = vmatpush1.bf16.msra.mxu0 %v14538_v5  ;;  %10134 = vmatprep.subr.bf16.mxu1 %v14543_v6  ;;  %v14617_v5 = vld [vmem:[%s21773_s1 + $0x1d90] ss:$8 sps:$4 sm:$0xff]   ;;  %v14622_v6 = vld [vmem:[%s21773_s1 + $0x6a4] ss:$8 sps:$4 sm:$0xff]  }
 0x175   :  { %11077 = vmatprep.subr.bf16.mxu0 %v14546_v7  ;;  %v14625_v7 = vld [vmem:[%s21773_s1 + $0x1da4] ss:$8 sps:$4 sm:$0xff]  }
 0x177   :  { %10135 = vmatpush1.bf16.msra.mxu1 %v14541_v8  ;;  %v14620_v8 = vld [vmem:[%s21773_s1 + $0x6a0] ss:$8 sps:$4 sm:$0xff]  }
 0x178   :  { %11078 = vmatpush1.bf16.msra.mxu0 %v14544_v9  ;;  %10136 = vmatprep.subr.bf16.mxu1 %v14549_v10  ;;  %v14623_v9 = vld [vmem:[%s21773_s1 + $0x1da0] ss:$8 sps:$4 sm:$0xff]   ;;  %v14628_v10 = vld [vmem:[%s21773_s1 + $0x6b4] ss:$8 sps:$4 sm:$0xff]  }
 0x179   :  { %11079 = vmatprep.subr.bf16.mxu0 %v14552_v11  ;;  %v14631_v11 = vld [vmem:[%s21773_s1 + $0x1db4] ss:$8 sps:$4 sm:$0xff]  }
 0x17b   :  { %10137 = vmatpush1.bf16.msra.mxu1 %v14547_v15  ;;  %v14629_v15 = vld [vmem:[%s21773_s1 + $0x1db0] ss:$8 sps:$4 sm:$0xff]  }
 0x17c   :  { %11080 = vmatpush1.bf16.msra.mxu0 %v14550_v16  ;;  %10138 = vmatprep.subr.bf16.mxu1 %v14555_v14  ;;  %v14634_v16 = vld [vmem:[%s21773_s1 + $0x6c4] ss:$8 sps:$4 sm:$0xff]  }
 0x17d   :  { %11081 = vmatprep.subr.bf16.mxu0 %v14558_v0  ;;  %v14637_v14 = vld [vmem:[%s21773_s1 + $0x1dc4] ss:$8 sps:$4 sm:$0xff]   ;;  %v14632_v0 = vld [vmem:[%s21773_s1 + $0x6c0] ss:$8 sps:$4 sm:$0xff]  }
 0x17f   :  { %10139 = vmatpush1.bf16.msra.mxu1 %v14553_v18  ;;  %v14635_v18 = vld [vmem:[%s21773_s1 + $0x1dc0] ss:$8 sps:$4 sm:$0xff]  }
 0x180   :  { %11082 = vmatpush1.bf16.msra.mxu0 %v14556_v19  ;;  %10149 = vmatprep.subr.bf16.mxu1 %v14562_v20  ;;  %v14640_v19 = vld [vmem:[%s21773_s1 + $0x6d4] ss:$8 sps:$4 sm:$0xff]  }
 0x181   :  { %11092 = vmatprep.subr.bf16.mxu0 %v14565_v21  ;;  %v14643_v20 = vld [vmem:[%s21773_s1 + $0x1dd4] ss:$8 sps:$4 sm:$0xff]   ;;  %v14638_v21 = vld [vmem:[%s21773_s1 + $0x6d0] ss:$8 sps:$4 sm:$0xff]  }
 0x182   :  { %10141 = vmatmul.mubr.bf16.vlgmr.msra.gmra.mrb[0].mxu1 %v589_v24  ;;  %v14649_v24 = vld [vmem:[%s21773_s1 + $0x1de4] ss:$8 sps:$4 sm:$0xff]  }
 0x183   :  { %11084 = vmatmul.mubr.bf16.vlgmr.msra.gmra.mrb[0].mxu0 %v635_v25  ;;  %10150 = vmatpush1.bf16.msra.mxu1 %v14560_v26  ;;  %v17848_v25 = vld [vmem:[%s21772_s0 + $0x78] sm:$0xff]  ;;  %v126_v26 = vcombine.high %v17634_v12, %v17634_v12 }
 0x184   :  { %11093 = vmatpush1.bf16.msra.mxu0 %v14563_v28  ;;  %10151 = vmatprep.subr.bf16.mxu1 %v14568_v29  ;;  %v14644_v28 = vld [vmem:[%s21773_s1 + $0x6e0] ss:$8 sps:$4 sm:$0xff]   ;;  %v14655_v12 = vld [vmem:[%s21773_s1 + $0x1df4] ss:$8 sps:$4 sm:$0xff]  }
 0x185   :  { %11094 = vmatprep.subr.bf16.mxu0 %v14571_v42  ;;  %10181 = vmatprep.mubr.bf16.mxu1 %v592_v4  ;;  %v14647_v29 = vld [vmem:[%s21773_s1 + $0x1de0] ss:$8 sps:$4 sm:$0xff]   ;;  %v14652_v42 = vld [vmem:[%s21773_s1 + $0x6f4] ss:$8 sps:$4 sm:$0xff]   ;;  %v17865_v4 = vrot.slane %v126_v26, %v16509_v49  ;;  %v14723_v26 = vld [vmem:[%s21773_s1 + $0x7b0] ss:$8 sps:$4 sm:$0xff]  }
 0x186   :  { %11124 = vmatprep.mubr.bf16.mxu0 %v638_v30  ;;  %v17869_v30 = vrot.slane %v17848_v25, %v16509_v49 }
 0x187   :  { %10152 = vmatpush1.bf16.msra.mxu1 %v14566_v31  ;;  %v14650_v31 = vld [vmem:[%s21773_s1 + $0x6f0] ss:$8 sps:$4 sm:$0xff]  }
 0x188   :  { %11095 = vmatpush1.bf16.msra.mxu0 %v14569_v32  ;;  %10153 = vmatprep.subr.bf16.mxu1 %v14574_v33  ;;  %v14653_v32 = vld [vmem:[%s21773_s1 + $0x1df0] ss:$8 sps:$4 sm:$0xff]   ;;  %v14658_v33 = vld [vmem:[%s21773_s1 + $0x704] ss:$8 sps:$4 sm:$0xff]  }
 0x189   :  { %11096 = vmatprep.subr.bf16.mxu0 %v14577_v34  ;;  %v14662_v34 = vld [vmem:[%s21773_s1 + $0x1e04] ss:$8 sps:$4 sm:$0xff]  }
 0x18b   :  { %10154 = vmatpush1.bf16.msra.mxu1 %v14572_v35  ;;  %v142_v35 = vcombine.high %v17865_v4, %v17865_v4 }
 0x18c   :  { %11097 = vmatpush1.bf16.msra.mxu0 %v14575_v36  ;;  %10155 = vmatprep.subr.bf16.mxu1 %v14580_v38  ;;  %v345_v36 = vcombine.high %v17869_v30, %v17869_v30  ;;  %v591_v38 = vpack.c.bf16 %v17652_v57, %v17652_v57  ;;  %v14668_v57 = vld [vmem:[%s21773_s1 + $0x1e14] ss:$8 sps:$4 sm:$0xff]  }
 0x18d   :  { %11098 = vmatprep.subr.bf16.mxu0 %v14583_v40  ;;  %v637_v40 = vpack.c.bf16 %v17655_v17, %v17655_v17  ;;  %v594_v17 = vpack.c.bf16 %v142_v35, %v142_v35  ;;  %v14738_v35 = vld [vmem:[%s21773_s1 + $0x1ed0] ss:$8 sps:$4 sm:$0xff]  }
 0x18f   :  { %10156 = vmatpush1.bf16.msra.mxu1 %v14578_v39  ;;  %v14656_v39 = vld [vmem:[%s21773_s1 + $0x700] ss:$8 sps:$4 sm:$0xff]  }
 0x190   :  { %11099 = vmatpush1.bf16.msra.mxu0 %v14581_v44  ;;  %10157 = vmatprep.subr.bf16.mxu1 %v14586_v45  ;;  %v14660_v44 = vld [vmem:[%s21773_s1 + $0x1e00] ss:$8 sps:$4 sm:$0xff]   ;;  %v14665_v45 = vld [vmem:[%s21773_s1 + $0x714] ss:$8 sps:$4 sm:$0xff]  }
 0x191   :  { %11100 = vmatprep.subr.bf16.mxu0 %v14589_v46  ;;  %v640_v46 = vpack.c.bf16 %v345_v36, %v345_v36  ;;  %v14743_v36 = vld [vmem:[%s21773_s1 + $0x7e4] ss:$8 sps:$4 sm:$0xff]  }
 0x193   :  { %10158 = vmatpush1.bf16.msra.mxu1 %v14584_v47  ;;  %v14663_v47 = vld [vmem:[%s21773_s1 + $0x710] ss:$8 sps:$4 sm:$0xff]  }
 0x194   :  { %11101 = vmatpush1.bf16.msra.mxu0 %v14587_v48  ;;  %10159 = vmatprep.subr.bf16.mxu1 %v14592_v50  ;;  %v14666_v48 = vld [vmem:[%s21773_s1 + $0x1e10] ss:$8 sps:$4 sm:$0xff]   ;;  %v14671_v50 = vld [vmem:[%s21773_s1 + $0x724] ss:$8 sps:$4 sm:$0xff]  }
 0x195   :  { %11102 = vmatprep.subr.bf16.mxu0 %v14595_v51  ;;  %v14674_v51 = vld [vmem:[%s21773_s1 + $0x1e24] ss:$8 sps:$4 sm:$0xff]  }
 0x197   :  { %10160 = vmatpush1.bf16.msra.mxu1 %v14590_v52  ;;  %v14669_v52 = vld [vmem:[%s21773_s1 + $0x720] ss:$8 sps:$4 sm:$0xff]  }
 0x198   :  { %11103 = vmatpush1.bf16.msra.mxu0 %v14593_v54  ;;  %10161 = vmatprep.subr.bf16.mxu1 %v14598_v55  ;;  %v14672_v54 = vld [vmem:[%s21773_s1 + $0x1e20] ss:$8 sps:$4 sm:$0xff]   ;;  %v14677_v55 = vld [vmem:[%s21773_s1 + $0x734] ss:$8 sps:$4 sm:$0xff]  }
 0x199   :  { %11104 = vmatprep.subr.bf16.mxu0 %v14601_v37  ;;  %v14680_v37 = vld [vmem:[%s21773_s1 + $0x1e34] ss:$8 sps:$4 sm:$0xff]  }
 0x19b   :  { %10162 = vmatpush1.bf16.msra.mxu1 %v14596_v56  ;;  %v14675_v56 = vld [vmem:[%s21773_s1 + $0x730] ss:$8 sps:$4 sm:$0xff]  }
 0x19c   :  { %11105 = vmatpush1.bf16.msra.mxu0 %v14599_v27  ;;  %10163 = vmatprep.subr.bf16.mxu1 %v14604_v58  ;;  %v14678_v27 = vld [vmem:[%s21773_s1 + $0x1e30] ss:$8 sps:$4 sm:$0xff]   ;;  %v14683_v58 = vld [vmem:[%s21773_s1 + $0x744] ss:$8 sps:$4 sm:$0xff]  }
 0x19d   :  { %11106 = vmatprep.subr.bf16.mxu0 %v14607_v59  ;;  %v14686_v59 = vld [vmem:[%s21773_s1 + $0x1e44] ss:$8 sps:$4 sm:$0xff]  }
 0x19f   :  { %10164 = vmatpush1.bf16.msra.mxu1 %v14602_v60  ;;  %v14681_v60 = vld [vmem:[%s21773_s1 + $0x740] ss:$8 sps:$4 sm:$0xff]  }
 0x1a0   :  { %11107 = vmatpush1.bf16.msra.mxu0 %v14605_v61  ;;  %10165 = vmatprep.subr.bf16.mxu1 %v14610_v62  ;;  %v14684_v61 = vld [vmem:[%s21773_s1 + $0x1e40] ss:$8 sps:$4 sm:$0xff]   ;;  %v14689_v62 = vld [vmem:[%s21773_s1 + $0x754] ss:$8 sps:$4 sm:$0xff]  }
 0x1a1   :  { %11108 = vmatprep.subr.bf16.mxu0 %v14613_v63  ;;  %v14692_v63 = vld [vmem:[%s21773_s1 + $0x1e54] ss:$8 sps:$4 sm:$0xff]  }
 0x1a3   :  { %10166 = vmatpush1.bf16.msra.mxu1 %v14608_v1  ;;  %v14687_v1 = vld [vmem:[%s21773_s1 + $0x750] ss:$8 sps:$4 sm:$0xff]  }
 0x1a4   :  { %11109 = vmatpush1.bf16.msra.mxu0 %v14611_v2  ;;  %10167 = vmatprep.subr.bf16.mxu1 %v14616_v3  ;;  %v14690_v2 = vld [vmem:[%s21773_s1 + $0x1e50] ss:$8 sps:$4 sm:$0xff]   ;;  %v14695_v3 = vld [vmem:[%s21773_s1 + $0x764] ss:$8 sps:$4 sm:$0xff]  }
 0x1a5   :  { %11110 = vmatprep.subr.bf16.mxu0 %v14619_v41  ;;  %v14698_v41 = vld [vmem:[%s21773_s1 + $0x1e64] ss:$8 sps:$4 sm:$0xff]  }
 0x1a7   :  { %10168 = vmatpush1.bf16.msra.mxu1 %v14614_v53  ;;  %v14693_v53 = vld [vmem:[%s21773_s1 + $0x760] ss:$8 sps:$4 sm:$0xff]  }
 0x1a8   :  { %11111 = vmatpush1.bf16.msra.mxu0 %v14617_v5  ;;  %10169 = vmatprep.subr.bf16.mxu1 %v14622_v6  ;;  %v14696_v5 = vld [vmem:[%s21773_s1 + $0x1e60] ss:$8 sps:$4 sm:$0xff]   ;;  %v14701_v6 = vld [vmem:[%s21773_s1 + $0x774] ss:$8 sps:$4 sm:$0xff]  }
 0x1a9   :  { %11112 = vmatprep.subr.bf16.mxu0 %v14625_v7  ;;  %v14704_v7 = vld [vmem:[%s21773_s1 + $0x1e74] ss:$8 sps:$4 sm:$0xff]  }
 0x1ab   :  { %10170 = vmatpush1.bf16.msra.mxu1 %v14620_v8  ;;  %v14699_v8 = vld [vmem:[%s21773_s1 + $0x770] ss:$8 sps:$4 sm:$0xff]  }
 0x1ac   :  { %11113 = vmatpush1.bf16.msra.mxu0 %v14623_v9  ;;  %10171 = vmatprep.subr.bf16.mxu1 %v14628_v10  ;;  %v14702_v9 = vld [vmem:[%s21773_s1 + $0x1e70] ss:$8 sps:$4 sm:$0xff]   ;;  %v14707_v10 = vld [vmem:[%s21773_s1 + $0x784] ss:$8 sps:$4 sm:$0xff]  }
 0x1ad   :  { %11114 = vmatprep.subr.bf16.mxu0 %v14631_v11  ;;  %v14710_v11 = vld [vmem:[%s21773_s1 + $0x1e84] ss:$8 sps:$4 sm:$0xff]  }
 0x1af   :  { %10172 = vmatpush1.bf16.msra.mxu1 %v14626_v13  ;;  %v14705_v13 = vld [vmem:[%s21773_s1 + $0x780] ss:$8 sps:$4 sm:$0xff]  }
 0x1b0   :  { %11115 = vmatpush1.bf16.msra.mxu0 %v14629_v15  ;;  %10173 = vmatprep.subr.bf16.mxu1 %v14634_v16  ;;  %v14708_v15 = vld [vmem:[%s21773_s1 + $0x1e80] ss:$8 sps:$4 sm:$0xff]   ;;  %v14713_v16 = vld [vmem:[%s21773_s1 + $0x794] ss:$8 sps:$4 sm:$0xff]  }
 0x1b1   :  { %11116 = vmatprep.subr.bf16.mxu0 %v14637_v14  ;;  %v14716_v14 = vld [vmem:[%s21773_s1 + $0x1e94] ss:$8 sps:$4 sm:$0xff]  }
 0x1b3   :  { %10174 = vmatpush1.bf16.msra.mxu1 %v14632_v0  ;;  %v14711_v0 = vld [vmem:[%s21773_s1 + $0x790] ss:$8 sps:$4 sm:$0xff]  }
 0x1b4   :  { %11117 = vmatpush1.bf16.msra.mxu0 %v14635_v18  ;;  %10175 = vmatprep.subr.bf16.mxu1 %v14640_v19  ;;  %v14714_v18 = vld [vmem:[%s21773_s1 + $0x1e90] ss:$8 sps:$4 sm:$0xff]   ;;  %v14719_v19 = vld [vmem:[%s21773_s1 + $0x7a4] ss:$8 sps:$4 sm:$0xff]  }
 0x1b5   :  { %11118 = vmatprep.subr.bf16.mxu0 %v14643_v20  ;;  %v14722_v20 = vld [vmem:[%s21773_s1 + $0x1ea4] ss:$8 sps:$4 sm:$0xff]  }
 0x1b7   :  { %10176 = vmatpush1.bf16.msra.mxu1 %v14638_v21  ;;  %v14717_v21 = vld [vmem:[%s21773_s1 + $0x7a0] ss:$8 sps:$4 sm:$0xff]  }
 0x1b8   :  { %11119 = vmatpush1.bf16.msra.mxu0 %v14641_v22  ;;  %10177 = vmatprep.subr.bf16.mxu1 %v14646_v23  ;;  %v14720_v22 = vld [vmem:[%s21773_s1 + $0x1ea0] ss:$8 sps:$4 sm:$0xff]   ;;  %v14725_v23 = vld [vmem:[%s21773_s1 + $0x7b4] ss:$8 sps:$4 sm:$0xff]  }
 0x1b9   :  { %11120 = vmatprep.subr.bf16.mxu0 %v14649_v24  ;;  %v14728_v24 = vld [vmem:[%s21773_s1 + $0x1eb4] ss:$8 sps:$4 sm:$0xff]  }
 0x1bb   :  { %10178 = vmatpush1.bf16.msra.mxu1 %v14644_v28  ;;  %v14726_v28 = vld [vmem:[%s21773_s1 + $0x1eb0] ss:$8 sps:$4 sm:$0xff]  }
 0x1bc   :  { %11121 = vmatpush1.bf16.msra.mxu0 %v14647_v29  ;;  %10179 = vmatprep.subr.bf16.mxu1 %v14652_v42  ;;  %v14731_v29 = vld [vmem:[%s21773_s1 + $0x7c4] ss:$8 sps:$4 sm:$0xff]  }
 0x1bd   :  { %11122 = vmatprep.subr.bf16.mxu0 %v14655_v12  ;;  %v14734_v42 = vld [vmem:[%s21773_s1 + $0x1ec4] ss:$8 sps:$4 sm:$0xff]   ;;  %v14729_v12 = vld [vmem:[%s21773_s1 + $0x7c0] ss:$8 sps:$4 sm:$0xff]  }
 0x1bf   :  { %10180 = vmatpush1.bf16.msra.mxu1 %v14650_v31  ;;  %v14732_v31 = vld [vmem:[%s21773_s1 + $0x1ec0] ss:$8 sps:$4 sm:$0xff]  }
 0x1c0   :  { %11123 = vmatpush1.bf16.msra.mxu0 %v14653_v32  ;;  %10190 = vmatprep.subr.bf16.mxu1 %v14658_v33  ;;  %v14737_v32 = vld [vmem:[%s21773_s1 + $0x7d4] ss:$8 sps:$4 sm:$0xff]  }
 0x1c1   :  { %11133 = vmatprep.subr.bf16.mxu0 %v14662_v34  ;;  %v14740_v33 = vld [vmem:[%s21773_s1 + $0x1ed4] ss:$8 sps:$4 sm:$0xff]   ;;  %v14735_v34 = vld [vmem:[%s21773_s1 + $0x7d0] ss:$8 sps:$4 sm:$0xff]  }
 0x1c2   :  { %10182 = vmatmul.mubr.bf16.vlgmr.msra.gmra.mrb[0].mxu1 %v591_v38  ;;  %v14746_v38 = vld [vmem:[%s21773_s1 + $0x1ee4] ss:$8 sps:$4 sm:$0xff]  }
 0x1c3   :  { %11125 = vmatmul.mubr.bf16.vlgmr.msra.gmra.mrb[0].mxu0 %v637_v40  ;;  %10191 = vmatpush1.bf16.msra.mxu1 %v14656_v39  ;;  %v18062_v40 = vld [vmem:[%s21772_s0 + $0x20] sm:$0xff]  ;;  %v330_v39 = vcombine.high %v17848_v25, %v17848_v25  ;;  %v14752_v25 = vld [vmem:[%s21773_s1 + $0x1ef4] ss:$8 sps:$4 sm:$0xff]  }
 0x1c4   :  { %11134 = vmatpush1.bf16.msra.mxu0 %v14660_v44  ;;  %10192 = vmatprep.subr.bf16.mxu1 %v14665_v45  ;;  %v14741_v44 = vld [vmem:[%s21773_s1 + $0x7e0] ss:$8 sps:$4 sm:$0xff]  }
 0x1c5   :  { %11135 = vmatprep.subr.bf16.mxu0 %v14668_v57  ;;  %10222 = vmatprep.mubr.bf16.mxu1 %v594_v17  ;;  %v14744_v45 = vld [vmem:[%s21773_s1 + $0x1ee0] ss:$8 sps:$4 sm:$0xff]   ;;  %v14749_v57 = vld [vmem:[%s21773_s1 + $0x7f4] ss:$8 sps:$4 sm:$0xff]   ;;  %v18080_v17 = vrot.slane %v18062_v40, %v16509_v49 }
 0x1c6   :  { %11165 = vmatprep.mubr.bf16.mxu0 %v640_v46  ;;  %v18083_v46 = vrot.slane %v330_v39, %v16509_v49  ;;  %v14820_v39 = vld [vmem:[%s21773_s1 + $0x8b0] ss:$8 sps:$4 sm:$0xff]  }
 0x1c7   :  { %10193 = vmatpush1.bf16.msra.mxu1 %v14663_v47  ;;  %v14747_v47 = vld [vmem:[%s21773_s1 + $0x7f0] ss:$8 sps:$4 sm:$0xff]  }
 0x1c8   :  { %11136 = vmatpush1.bf16.msra.mxu0 %v14666_v48  ;;  %10194 = vmatprep.subr.bf16.mxu1 %v14671_v50  ;;  %v14750_v48 = vld [vmem:[%s21773_s1 + $0x1ef0] ss:$8 sps:$4 sm:$0xff]   ;;  %v14756_v50 = vld [vmem:[%s21773_s1 + $0x804] ss:$8 sps:$4 sm:$0xff]  }
 0x1c9   :  { %11137 = vmatprep.subr.bf16.mxu0 %v14674_v51  ;;  %v14759_v51 = vld [vmem:[%s21773_s1 + $0x1f04] ss:$8 sps:$4 sm:$0xff]  }
 0x1cb   :  { %10195 = vmatpush1.bf16.msra.mxu1 %v14669_v52  ;;  %v158_v52 = vcombine.high %v18080_v17, %v18080_v17 }
 0x1cc   :  { %11138 = vmatpush1.bf16.msra.mxu0 %v14672_v54  ;;  %10196 = vmatprep.subr.bf16.mxu1 %v14677_v55  ;;  %v346_v54 = vcombine.high %v18083_v46, %v18083_v46  ;;  %v593_v55 = vpack.c.bf16 %v17865_v4, %v17865_v4  ;;  %v14765_v4 = vld [vmem:[%s21773_s1 + $0x1f14] ss:$8 sps:$4 sm:$0xff]  }
 0x1cd   :  { %11139 = vmatprep.subr.bf16.mxu0 %v14680_v37  ;;  %v639_v37 = vpack.c.bf16 %v17869_v30, %v17869_v30  ;;  %v596_v30 = vpack.c.bf16 %v158_v52, %v158_v52  ;;  %v14835_v52 = vld [vmem:[%s21773_s1 + $0x1fd0] ss:$8 sps:$4 sm:$0xff]  }
 0x1cf   :  { %10197 = vmatpush1.bf16.msra.mxu1 %v14675_v56  ;;  %v14754_v56 = vld [vmem:[%s21773_s1 + $0x800] ss:$8 sps:$4 sm:$0xff]  }
 0x1d0   :  { %11140 = vmatpush1.bf16.msra.mxu0 %v14678_v27  ;;  %10198 = vmatprep.subr.bf16.mxu1 %v14683_v58  ;;  %v14757_v27 = vld [vmem:[%s21773_s1 + $0x1f00] ss:$8 sps:$4 sm:$0xff]   ;;  %v14762_v58 = vld [vmem:[%s21773_s1 + $0x814] ss:$8 sps:$4 sm:$0xff]  }
 0x1d1   :  { %11141 = vmatprep.subr.bf16.mxu0 %v14686_v59  ;;  %v642_v59 = vpack.c.bf16 %v346_v54, %v346_v54  ;;  %v14840_v54 = vld [vmem:[%s21773_s1 + $0x8e4] ss:$8 sps:$4 sm:$0xff]  }
 0x1d3   :  { %10199 = vmatpush1.bf16.msra.mxu1 %v14681_v60  ;;  %v14760_v60 = vld [vmem:[%s21773_s1 + $0x810] ss:$8 sps:$4 sm:$0xff]  }
 0x1d4   :  { %11142 = vmatpush1.bf16.msra.mxu0 %v14684_v61  ;;  %10200 = vmatprep.subr.bf16.mxu1 %v14689_v62  ;;  %v14763_v61 = vld [vmem:[%s21773_s1 + $0x1f10] ss:$8 sps:$4 sm:$0xff]   ;;  %v14768_v62 = vld [vmem:[%s21773_s1 + $0x824] ss:$8 sps:$4 sm:$0xff]  }
 0x1d5   :  { %11143 = vmatprep.subr.bf16.mxu0 %v14692_v63  ;;  %v14771_v63 = vld [vmem:[%s21773_s1 + $0x1f24] ss:$8 sps:$4 sm:$0xff]  }
 0x1d7   :  { %10201 = vmatpush1.bf16.msra.mxu1 %v14687_v1  ;;  %v14766_v1 = vld [vmem:[%s21773_s1 + $0x820] ss:$8 sps:$4 sm:$0xff]  }
 0x1d8   :  { %11144 = vmatpush1.bf16.msra.mxu0 %v14690_v2  ;;  %10202 = vmatprep.subr.bf16.mxu1 %v14695_v3  ;;  %v14769_v2 = vld [vmem:[%s21773_s1 + $0x1f20] ss:$8 sps:$4 sm:$0xff]   ;;  %v14774_v3 = vld [vmem:[%s21773_s1 + $0x834] ss:$8 sps:$4 sm:$0xff]  }
 0x1d9   :  { %11145 = vmatprep.subr.bf16.mxu0 %v14698_v41  ;;  %v14777_v41 = vld [vmem:[%s21773_s1 + $0x1f34] ss:$8 sps:$4 sm:$0xff]  }
 0x1db   :  { %10203 = vmatpush1.bf16.msra.mxu1 %v14693_v53  ;;  %v14772_v53 = vld [vmem:[%s21773_s1 + $0x830] ss:$8 sps:$4 sm:$0xff]  }
 0x1dc   :  { %11146 = vmatpush1.bf16.msra.mxu0 %v14696_v5  ;;  %10204 = vmatprep.subr.bf16.mxu1 %v14701_v6  ;;  %v14775_v5 = vld [vmem:[%s21773_s1 + $0x1f30] ss:$8 sps:$4 sm:$0xff]   ;;  %v14780_v6 = vld [vmem:[%s21773_s1 + $0x844] ss:$8 sps:$4 sm:$0xff]  }
 0x1dd   :  { %11147 = vmatprep.subr.bf16.mxu0 %v14704_v7  ;;  %v14783_v7 = vld [vmem:[%s21773_s1 + $0x1f44] ss:$8 sps:$4 sm:$0xff]  }
 0x1df   :  { %10205 = vmatpush1.bf16.msra.mxu1 %v14699_v8  ;;  %v14778_v8 = vld [vmem:[%s21773_s1 + $0x840] ss:$8 sps:$4 sm:$0xff]  }
 0x1e0   :  { %11148 = vmatpush1.bf16.msra.mxu0 %v14702_v9  ;;  %10206 = vmatprep.subr.bf16.mxu1 %v14707_v10  ;;  %v14781_v9 = vld [vmem:[%s21773_s1 + $0x1f40] ss:$8 sps:$4 sm:$0xff]   ;;  %v14786_v10 = vld [vmem:[%s21773_s1 + $0x854] ss:$8 sps:$4 sm:$0xff]  }
 0x1e1   :  { %11149 = vmatprep.subr.bf16.mxu0 %v14710_v11  ;;  %v14789_v11 = vld [vmem:[%s21773_s1 + $0x1f54] ss:$8 sps:$4 sm:$0xff]  }
 0x1e3   :  { %10207 = vmatpush1.bf16.msra.mxu1 %v14705_v13  ;;  %v14784_v13 = vld [vmem:[%s21773_s1 + $0x850] ss:$8 sps:$4 sm:$0xff]  }
 0x1e4   :  { %11150 = vmatpush1.bf16.msra.mxu0 %v14708_v15  ;;  %10208 = vmatprep.subr.bf16.mxu1 %v14713_v16  ;;  %v14787_v15 = vld [vmem:[%s21773_s1 + $0x1f50] ss:$8 sps:$4 sm:$0xff]   ;;  %v14792_v16 = vld [vmem:[%s21773_s1 + $0x864] ss:$8 sps:$4 sm:$0xff]  }
 0x1e5   :  { %11151 = vmatprep.subr.bf16.mxu0 %v14716_v14  ;;  %v14795_v14 = vld [vmem:[%s21773_s1 + $0x1f64] ss:$8 sps:$4 sm:$0xff]  }
 0x1e7   :  { %10209 = vmatpush1.bf16.msra.mxu1 %v14711_v0  ;;  %v14790_v0 = vld [vmem:[%s21773_s1 + $0x860] ss:$8 sps:$4 sm:$0xff]  }
 0x1e8   :  { %11152 = vmatpush1.bf16.msra.mxu0 %v14714_v18  ;;  %10210 = vmatprep.subr.bf16.mxu1 %v14719_v19  ;;  %v14793_v18 = vld [vmem:[%s21773_s1 + $0x1f60] ss:$8 sps:$4 sm:$0xff]   ;;  %v14798_v19 = vld [vmem:[%s21773_s1 + $0x874] ss:$8 sps:$4 sm:$0xff]  }
 0x1e9   :  { %11153 = vmatprep.subr.bf16.mxu0 %v14722_v20  ;;  %v14801_v20 = vld [vmem:[%s21773_s1 + $0x1f74] ss:$8 sps:$4 sm:$0xff]  }
 0x1eb   :  { %10211 = vmatpush1.bf16.msra.mxu1 %v14717_v21  ;;  %v14796_v21 = vld [vmem:[%s21773_s1 + $0x870] ss:$8 sps:$4 sm:$0xff]  }
 0x1ec   :  { %11154 = vmatpush1.bf16.msra.mxu0 %v14720_v22  ;;  %10212 = vmatprep.subr.bf16.mxu1 %v14725_v23  ;;  %v14799_v22 = vld [vmem:[%s21773_s1 + $0x1f70] ss:$8 sps:$4 sm:$0xff]   ;;  %v14804_v23 = vld [vmem:[%s21773_s1 + $0x884] ss:$8 sps:$4 sm:$0xff]  }
 0x1ed   :  { %11155 = vmatprep.subr.bf16.mxu0 %v14728_v24  ;;  %v14807_v24 = vld [vmem:[%s21773_s1 + $0x1f84] ss:$8 sps:$4 sm:$0xff]  }
 0x1ef   :  { %10213 = vmatpush1.bf16.msra.mxu1 %v14723_v26  ;;  %v14802_v26 = vld [vmem:[%s21773_s1 + $0x880] ss:$8 sps:$4 sm:$0xff]  }
 0x1f0   :  { %11156 = vmatpush1.bf16.msra.mxu0 %v14726_v28  ;;  %10214 = vmatprep.subr.bf16.mxu1 %v14731_v29  ;;  %v14805_v28 = vld [vmem:[%s21773_s1 + $0x1f80] ss:$8 sps:$4 sm:$0xff]   ;;  %v14810_v29 = vld [vmem:[%s21773_s1 + $0x894] ss:$8 sps:$4 sm:$0xff]  }
 0x1f1   :  { %11157 = vmatprep.subr.bf16.mxu0 %v14734_v42  ;;  %v14813_v42 = vld [vmem:[%s21773_s1 + $0x1f94] ss:$8 sps:$4 sm:$0xff]  }
 0x1f3   :  { %10215 = vmatpush1.bf16.msra.mxu1 %v14729_v12  ;;  %v14808_v12 = vld [vmem:[%s21773_s1 + $0x890] ss:$8 sps:$4 sm:$0xff]  }
 0x1f4   :  { %11158 = vmatpush1.bf16.msra.mxu0 %v14732_v31  ;;  %10216 = vmatprep.subr.bf16.mxu1 %v14737_v32  ;;  %v14811_v31 = vld [vmem:[%s21773_s1 + $0x1f90] ss:$8 sps:$4 sm:$0xff]   ;;  %v14816_v32 = vld [vmem:[%s21773_s1 + $0x8a4] ss:$8 sps:$4 sm:$0xff]  }
 0x1f5   :  { %11159 = vmatprep.subr.bf16.mxu0 %v14740_v33  ;;  %v14819_v33 = vld [vmem:[%s21773_s1 + $0x1fa4] ss:$8 sps:$4 sm:$0xff]  }
 0x1f7   :  { %10217 = vmatpush1.bf16.msra.mxu1 %v14735_v34  ;;  %v14814_v34 = vld [vmem:[%s21773_s1 + $0x8a0] ss:$8 sps:$4 sm:$0xff]  }
 0x1f8   :  { %11160 = vmatpush1.bf16.msra.mxu0 %v14738_v35  ;;  %10218 = vmatprep.subr.bf16.mxu1 %v14743_v36  ;;  %v14817_v35 = vld [vmem:[%s21773_s1 + $0x1fa0] ss:$8 sps:$4 sm:$0xff]   ;;  %v14822_v36 = vld [vmem:[%s21773_s1 + $0x8b4] ss:$8 sps:$4 sm:$0xff]  }
 0x1f9   :  { %11161 = vmatprep.subr.bf16.mxu0 %v14746_v38  ;;  %v14825_v38 = vld [vmem:[%s21773_s1 + $0x1fb4] ss:$8 sps:$4 sm:$0xff]  }
 0x1fb   :  { %10219 = vmatpush1.bf16.msra.mxu1 %v14741_v44  ;;  %v14823_v44 = vld [vmem:[%s21773_s1 + $0x1fb0] ss:$8 sps:$4 sm:$0xff]  }
 0x1fc   :  { %11162 = vmatpush1.bf16.msra.mxu0 %v14744_v45  ;;  %10220 = vmatprep.subr.bf16.mxu1 %v14749_v57  ;;  %v14828_v45 = vld [vmem:[%s21773_s1 + $0x8c4] ss:$8 sps:$4 sm:$0xff]  }
 0x1fd   :  { %11163 = vmatprep.subr.bf16.mxu0 %v14752_v25  ;;  %v14831_v57 = vld [vmem:[%s21773_s1 + $0x1fc4] ss:$8 sps:$4 sm:$0xff]   ;;  %v14826_v25 = vld [vmem:[%s21773_s1 + $0x8c0] ss:$8 sps:$4 sm:$0xff]  }
 0x1ff   :  { %10221 = vmatpush1.bf16.msra.mxu1 %v14747_v47  ;;  %v14829_v47 = vld [vmem:[%s21773_s1 + $0x1fc0] ss:$8 sps:$4 sm:$0xff]  }
 0x200   :  { %11164 = vmatpush1.bf16.msra.mxu0 %v14750_v48  ;;  %10231 = vmatprep.subr.bf16.mxu1 %v14756_v50  ;;  %v14834_v48 = vld [vmem:[%s21773_s1 + $0x8d4] ss:$8 sps:$4 sm:$0xff]  }
 0x201   :  { %11174 = vmatprep.subr.bf16.mxu0 %v14759_v51  ;;  %v14837_v50 = vld [vmem:[%s21773_s1 + $0x1fd4] ss:$8 sps:$4 sm:$0xff]   ;;  %v14832_v51 = vld [vmem:[%s21773_s1 + $0x8d0] ss:$8 sps:$4 sm:$0xff]  }
 0x202   :  { %10223 = vmatmul.mubr.bf16.vlgmr.msra.gmra.mrb[0].mxu1 %v593_v55  ;;  %v14843_v55 = vld [vmem:[%s21773_s1 + $0x1fe4] ss:$8 sps:$4 sm:$0xff]  }
 0x203   :  { %11166 = vmatmul.mubr.bf16.vlgmr.msra.gmra.mrb[0].mxu0 %v639_v37  ;;  %10232 = vmatpush1.bf16.msra.mxu1 %v14754_v56  ;;  %v18276_v37 = vld [vmem:[%s21772_s0 + $0x80] sm:$0xff]  ;;  %v143_v56 = vcombine.high %v18062_v40, %v18062_v40  ;;  %v14849_v40 = vld [vmem:[%s21773_s1 + $0x1ff4] ss:$8 sps:$4 sm:$0xff]  }
 0x204   :  { %11175 = vmatpush1.bf16.msra.mxu0 %v14757_v27  ;;  %10233 = vmatprep.subr.bf16.mxu1 %v14762_v58  ;;  %v14838_v27 = vld [vmem:[%s21773_s1 + $0x8e0] ss:$8 sps:$4 sm:$0xff]  }
 0x205   :  { %11176 = vmatprep.subr.bf16.mxu0 %v14765_v4  ;;  %10263 = vmatprep.mubr.bf16.mxu1 %v596_v30  ;;  %v14841_v58 = vld [vmem:[%s21773_s1 + $0x1fe0] ss:$8 sps:$4 sm:$0xff]   ;;  %v14846_v4 = vld [vmem:[%s21773_s1 + $0x8f4] ss:$8 sps:$4 sm:$0xff]   ;;  %v18293_v30 = vrot.slane %v143_v56, %v16509_v49  ;;  %v14917_v56 = vld [vmem:[%s21773_s1 + $0x9b0] ss:$8 sps:$4 sm:$0xff]  }
 0x206   :  { %11206 = vmatprep.mubr.bf16.mxu0 %v642_v59  ;;  %v18297_v59 = vrot.slane %v18276_v37, %v16509_v49 }
 0x207   :  { %10234 = vmatpush1.bf16.msra.mxu1 %v14760_v60  ;;  %v14844_v60 = vld [vmem:[%s21773_s1 + $0x8f0] ss:$8 sps:$4 sm:$0xff]  }
 0x208   :  { %11177 = vmatpush1.bf16.msra.mxu0 %v14763_v61  ;;  %10235 = vmatprep.subr.bf16.mxu1 %v14768_v62  ;;  %v14847_v61 = vld [vmem:[%s21773_s1 + $0x1ff0] ss:$8 sps:$4 sm:$0xff]   ;;  %v14852_v62 = vld [vmem:[%s21773_s1 + $0x904] ss:$8 sps:$4 sm:$0xff]  }
 0x209   :  { %11178 = vmatprep.subr.bf16.mxu0 %v14771_v63  ;;  %v14856_v63 = vld [vmem:[%s21773_s1 + $0x2004] ss:$8 sps:$4 sm:$0xff]  }
 0x20b   :  { %10236 = vmatpush1.bf16.msra.mxu1 %v14766_v1  ;;  %v159_v1 = vcombine.high %v18293_v30, %v18293_v30 }
 0x20c   :  { %11179 = vmatpush1.bf16.msra.mxu0 %v14769_v2  ;;  %10237 = vmatprep.subr.bf16.mxu1 %v14774_v3  ;;  %v362_v2 = vcombine.high %v18297_v59, %v18297_v59  ;;  %v595_v3 = vpack.c.bf16 %v18080_v17, %v18080_v17  ;;  %v14862_v17 = vld [vmem:[%s21773_s1 + $0x2014] ss:$8 sps:$4 sm:$0xff]  }
 0x20d   :  { %11180 = vmatprep.subr.bf16.mxu0 %v14777_v41  ;;  %v641_v41 = vpack.c.bf16 %v18083_v46, %v18083_v46  ;;  %v598_v46 = vpack.c.bf16 %v159_v1, %v159_v1  ;;  %v14932_v1 = vld [vmem:[%s21773_s1 + $0x20d0] ss:$8 sps:$4 sm:$0xff]  }
 0x20f   :  { %10238 = vmatpush1.bf16.msra.mxu1 %v14772_v53  ;;  %v14850_v53 = vld [vmem:[%s21773_s1 + $0x900] ss:$8 sps:$4 sm:$0xff]  }
 0x210   :  { %11181 = vmatpush1.bf16.msra.mxu0 %v14775_v5  ;;  %10239 = vmatprep.subr.bf16.mxu1 %v14780_v6  ;;  %v14854_v5 = vld [vmem:[%s21773_s1 + $0x2000] ss:$8 sps:$4 sm:$0xff]   ;;  %v14859_v6 = vld [vmem:[%s21773_s1 + $0x914] ss:$8 sps:$4 sm:$0xff]  }
 0x211   :  { %11182 = vmatprep.subr.bf16.mxu0 %v14783_v7  ;;  %v644_v7 = vpack.c.bf16 %v362_v2, %v362_v2  ;;  %v14937_v2 = vld [vmem:[%s21773_s1 + $0x9e4] ss:$8 sps:$4 sm:$0xff]  }
 0x213   :  { %10240 = vmatpush1.bf16.msra.mxu1 %v14778_v8  ;;  %v14857_v8 = vld [vmem:[%s21773_s1 + $0x910] ss:$8 sps:$4 sm:$0xff]  }
 0x214   :  { %11183 = vmatpush1.bf16.msra.mxu0 %v14781_v9  ;;  %10241 = vmatprep.subr.bf16.mxu1 %v14786_v10  ;;  %v14860_v9 = vld [vmem:[%s21773_s1 + $0x2010] ss:$8 sps:$4 sm:$0xff]   ;;  %v14865_v10 = vld [vmem:[%s21773_s1 + $0x924] ss:$8 sps:$4 sm:$0xff]  }
 0x215   :  { %11184 = vmatprep.subr.bf16.mxu0 %v14789_v11  ;;  %v14868_v11 = vld [vmem:[%s21773_s1 + $0x2024] ss:$8 sps:$4 sm:$0xff]  }
 0x217   :  { %10242 = vmatpush1.bf16.msra.mxu1 %v14784_v13  ;;  %v14863_v13 = vld [vmem:[%s21773_s1 + $0x920] ss:$8 sps:$4 sm:$0xff]  }
 0x218   :  { %11185 = vmatpush1.bf16.msra.mxu0 %v14787_v15  ;;  %10243 = vmatprep.subr.bf16.mxu1 %v14792_v16  ;;  %v14866_v15 = vld [vmem:[%s21773_s1 + $0x2020] ss:$8 sps:$4 sm:$0xff]   ;;  %v14871_v16 = vld [vmem:[%s21773_s1 + $0x934] ss:$8 sps:$4 sm:$0xff]  }
 0x219   :  { %11186 = vmatprep.subr.bf16.mxu0 %v14795_v14  ;;  %v14874_v14 = vld [vmem:[%s21773_s1 + $0x2034] ss:$8 sps:$4 sm:$0xff]  }
 0x21b   :  { %10244 = vmatpush1.bf16.msra.mxu1 %v14790_v0  ;;  %v14869_v0 = vld [vmem:[%s21773_s1 + $0x930] ss:$8 sps:$4 sm:$0xff]  }
 0x21c   :  { %11187 = vmatpush1.bf16.msra.mxu0 %v14793_v18  ;;  %10245 = vmatprep.subr.bf16.mxu1 %v14798_v19  ;;  %v14872_v18 = vld [vmem:[%s21773_s1 + $0x2030] ss:$8 sps:$4 sm:$0xff]   ;;  %v14877_v19 = vld [vmem:[%s21773_s1 + $0x944] ss:$8 sps:$4 sm:$0xff]  }
 0x21d   :  { %11188 = vmatprep.subr.bf16.mxu0 %v14801_v20  ;;  %v14880_v20 = vld [vmem:[%s21773_s1 + $0x2044] ss:$8 sps:$4 sm:$0xff]  }
 0x21f   :  { %10246 = vmatpush1.bf16.msra.mxu1 %v14796_v21  ;;  %v14875_v21 = vld [vmem:[%s21773_s1 + $0x940] ss:$8 sps:$4 sm:$0xff]  }
 0x220   :  { %11189 = vmatpush1.bf16.msra.mxu0 %v14799_v22  ;;  %10247 = vmatprep.subr.bf16.mxu1 %v14804_v23  ;;  %v14878_v22 = vld [vmem:[%s21773_s1 + $0x2040] ss:$8 sps:$4 sm:$0xff]   ;;  %v14883_v23 = vld [vmem:[%s21773_s1 + $0x954] ss:$8 sps:$4 sm:$0xff]  }
 0x221   :  { %11190 = vmatprep.subr.bf16.mxu0 %v14807_v24  ;;  %v14886_v24 = vld [vmem:[%s21773_s1 + $0x2054] ss:$8 sps:$4 sm:$0xff]  }
 0x223   :  { %10248 = vmatpush1.bf16.msra.mxu1 %v14802_v26  ;;  %v14881_v26 = vld [vmem:[%s21773_s1 + $0x950] ss:$8 sps:$4 sm:$0xff]  }
 0x224   :  { %11191 = vmatpush1.bf16.msra.mxu0 %v14805_v28  ;;  %10249 = vmatprep.subr.bf16.mxu1 %v14810_v29  ;;  %v14884_v28 = vld [vmem:[%s21773_s1 + $0x2050] ss:$8 sps:$4 sm:$0xff]   ;;  %v14889_v29 = vld [vmem:[%s21773_s1 + $0x964] ss:$8 sps:$4 sm:$0xff]  }
 0x225   :  { %11192 = vmatprep.subr.bf16.mxu0 %v14813_v42  ;;  %v14892_v42 = vld [vmem:[%s21773_s1 + $0x2064] ss:$8 sps:$4 sm:$0xff]  }
 0x227   :  { %10250 = vmatpush1.bf16.msra.mxu1 %v14808_v12  ;;  %v14887_v12 = vld [vmem:[%s21773_s1 + $0x960] ss:$8 sps:$4 sm:$0xff]  }
 0x228   :  { %11193 = vmatpush1.bf16.msra.mxu0 %v14811_v31  ;;  %10251 = vmatprep.subr.bf16.mxu1 %v14816_v32  ;;  %v14890_v31 = vld [vmem:[%s21773_s1 + $0x2060] ss:$8 sps:$4 sm:$0xff]   ;;  %v14895_v32 = vld [vmem:[%s21773_s1 + $0x974] ss:$8 sps:$4 sm:$0xff]  }
 0x229   :  { %11194 = vmatprep.subr.bf16.mxu0 %v14819_v33  ;;  %v14898_v33 = vld [vmem:[%s21773_s1 + $0x2074] ss:$8 sps:$4 sm:$0xff]  }
 0x22b   :  { %10252 = vmatpush1.bf16.msra.mxu1 %v14814_v34  ;;  %v14893_v34 = vld [vmem:[%s21773_s1 + $0x970] ss:$8 sps:$4 sm:$0xff]  }
 0x22c   :  { %11195 = vmatpush1.bf16.msra.mxu0 %v14817_v35  ;;  %10253 = vmatprep.subr.bf16.mxu1 %v14822_v36  ;;  %v14896_v35 = vld [vmem:[%s21773_s1 + $0x2070] ss:$8 sps:$4 sm:$0xff]   ;;  %v14901_v36 = vld [vmem:[%s21773_s1 + $0x984] ss:$8 sps:$4 sm:$0xff]  }
 0x22d   :  { %11196 = vmatprep.subr.bf16.mxu0 %v14825_v38  ;;  %v14904_v38 = vld [vmem:[%s21773_s1 + $0x2084] ss:$8 sps:$4 sm:$0xff]  }
 0x22f   :  { %10254 = vmatpush1.bf16.msra.mxu1 %v14820_v39  ;;  %v14899_v39 = vld [vmem:[%s21773_s1 + $0x980] ss:$8 sps:$4 sm:$0xff]  }
 0x230   :  { %11197 = vmatpush1.bf16.msra.mxu0 %v14823_v44  ;;  %10255 = vmatprep.subr.bf16.mxu1 %v14828_v45  ;;  %v14902_v44 = vld [vmem:[%s21773_s1 + $0x2080] ss:$8 sps:$4 sm:$0xff]   ;;  %v14907_v45 = vld [vmem:[%s21773_s1 + $0x994] ss:$8 sps:$4 sm:$0xff]  }
 0x231   :  { %11198 = vmatprep.subr.bf16.mxu0 %v14831_v57  ;;  %v14910_v57 = vld [vmem:[%s21773_s1 + $0x2094] ss:$8 sps:$4 sm:$0xff]  }
 0x233   :  { %10256 = vmatpush1.bf16.msra.mxu1 %v14826_v25  ;;  %v14905_v25 = vld [vmem:[%s21773_s1 + $0x990] ss:$8 sps:$4 sm:$0xff]  }
 0x234   :  { %11199 = vmatpush1.bf16.msra.mxu0 %v14829_v47  ;;  %10257 = vmatprep.subr.bf16.mxu1 %v14834_v48  ;;  %v14908_v47 = vld [vmem:[%s21773_s1 + $0x2090] ss:$8 sps:$4 sm:$0xff]   ;;  %v14913_v48 = vld [vmem:[%s21773_s1 + $0x9a4] ss:$8 sps:$4 sm:$0xff]  }
 0x235   :  { %11200 = vmatprep.subr.bf16.mxu0 %v14837_v50  ;;  %v14916_v50 = vld [vmem:[%s21773_s1 + $0x20a4] ss:$8 sps:$4 sm:$0xff]  }
 0x237   :  { %10258 = vmatpush1.bf16.msra.mxu1 %v14832_v51  ;;  %v14911_v51 = vld [vmem:[%s21773_s1 + $0x9a0] ss:$8 sps:$4 sm:$0xff]  }
 0x238   :  { %11201 = vmatpush1.bf16.msra.mxu0 %v14835_v52  ;;  %10259 = vmatprep.subr.bf16.mxu1 %v14840_v54  ;;  %v14914_v52 = vld [vmem:[%s21773_s1 + $0x20a0] ss:$8 sps:$4 sm:$0xff]   ;;  %v14919_v54 = vld [vmem:[%s21773_s1 + $0x9b4] ss:$8 sps:$4 sm:$0xff]  }
 0x239   :  { %11202 = vmatprep.subr.bf16.mxu0 %v14843_v55  ;;  %v14922_v55 = vld [vmem:[%s21773_s1 + $0x20b4] ss:$8 sps:$4 sm:$0xff]  }
 0x23b   :  { %10260 = vmatpush1.bf16.msra.mxu1 %v14838_v27  ;;  %v14920_v27 = vld [vmem:[%s21773_s1 + $0x20b0] ss:$8 sps:$4 sm:$0xff]  }
 0x23c   :  { %11203 = vmatpush1.bf16.msra.mxu0 %v14841_v58  ;;  %10261 = vmatprep.subr.bf16.mxu1 %v14846_v4  ;;  %v14925_v58 = vld [vmem:[%s21773_s1 + $0x9c4] ss:$8 sps:$4 sm:$0xff]  }
 0x23d   :  { %11204 = vmatprep.subr.bf16.mxu0 %v14849_v40  ;;  %v14928_v4 = vld [vmem:[%s21773_s1 + $0x20c4] ss:$8 sps:$4 sm:$0xff]   ;;  %v14923_v40 = vld [vmem:[%s21773_s1 + $0x9c0] ss:$8 sps:$4 sm:$0xff]  }
 0x23f   :  { %10262 = vmatpush1.bf16.msra.mxu1 %v14844_v60  ;;  %v14926_v60 = vld [vmem:[%s21773_s1 + $0x20c0] ss:$8 sps:$4 sm:$0xff]  }
 0x240   :  { %11205 = vmatpush1.bf16.msra.mxu0 %v14847_v61  ;;  %10272 = vmatprep.subr.bf16.mxu1 %v14852_v62  ;;  %v14931_v61 = vld [vmem:[%s21773_s1 + $0x9d4] ss:$8 sps:$4 sm:$0xff]  }
 0x241   :  { %11215 = vmatprep.subr.bf16.mxu0 %v14856_v63  ;;  %v14934_v62 = vld [vmem:[%s21773_s1 + $0x20d4] ss:$8 sps:$4 sm:$0xff]   ;;  %v14929_v63 = vld [vmem:[%s21773_s1 + $0x9d0] ss:$8 sps:$4 sm:$0xff]  }
 0x242   :  { %10264 = vmatmul.mubr.bf16.vlgmr.msra.gmra.mrb[0].mxu1 %v595_v3  ;;  %v14940_v3 = vld [vmem:[%s21773_s1 + $0x20e4] ss:$8 sps:$4 sm:$0xff]  }
 0x243   :  { %11207 = vmatmul.mubr.bf16.vlgmr.msra.gmra.mrb[0].mxu0 %v641_v41  ;;  %10273 = vmatpush1.bf16.msra.mxu1 %v14850_v53  ;;  %v18490_v41 = vld [vmem:[%s21772_s0 + $0x28] sm:$0xff]  ;;  %v347_v53 = vcombine.high %v18276_v37, %v18276_v37  ;;  %v14946_v37 = vld [vmem:[%s21773_s1 + $0x20f4] ss:$8 sps:$4 sm:$0xff]  }
 0x244   :  { %11216 = vmatpush1.bf16.msra.mxu0 %v14854_v5  ;;  %10274 = vmatprep.subr.bf16.mxu1 %v14859_v6  ;;  %v14935_v5 = vld [vmem:[%s21773_s1 + $0x9e0] ss:$8 sps:$4 sm:$0xff]  }
 0x245   :  { %11217 = vmatprep.subr.bf16.mxu0 %v14862_v17  ;;  %10304 = vmatprep.mubr.bf16.mxu1 %v598_v46  ;;  %v14938_v6 = vld [vmem:[%s21773_s1 + $0x20e0] ss:$8 sps:$4 sm:$0xff]   ;;  %v14943_v17 = vld [vmem:[%s21773_s1 + $0x9f4] ss:$8 sps:$4 sm:$0xff]   ;;  %v18508_v46 = vrot.slane %v18490_v41, %v16509_v49 }
 0x246   :  { %11247 = vmatprep.mubr.bf16.mxu0 %v644_v7  ;;  %v18511_v7 = vrot.slane %v347_v53, %v16509_v49  ;;  %v15014_v53 = vld [vmem:[%s21773_s1 + $0xab0] ss:$8 sps:$4 sm:$0xff]  }
 0x247   :  { %10275 = vmatpush1.bf16.msra.mxu1 %v14857_v8  ;;  %v14941_v8 = vld [vmem:[%s21773_s1 + $0x9f0] ss:$8 sps:$4 sm:$0xff]  }
 0x248   :  { %11218 = vmatpush1.bf16.msra.mxu0 %v14860_v9  ;;  %10276 = vmatprep.subr.bf16.mxu1 %v14865_v10  ;;  %v14944_v9 = vld [vmem:[%s21773_s1 + $0x20f0] ss:$8 sps:$4 sm:$0xff]   ;;  %v14950_v10 = vld [vmem:[%s21773_s1 + $0xa04] ss:$8 sps:$4 sm:$0xff]  }
 0x249   :  { %11219 = vmatprep.subr.bf16.mxu0 %v14868_v11  ;;  %v14953_v11 = vld [vmem:[%s21773_s1 + $0x2104] ss:$8 sps:$4 sm:$0xff]  }
 0x24b   :  { %10277 = vmatpush1.bf16.msra.mxu1 %v14863_v13  ;;  %v175_v13 = vcombine.high %v18508_v46, %v18508_v46 }
 0x24c   :  { %11220 = vmatpush1.bf16.msra.mxu0 %v14866_v15  ;;  %10278 = vmatprep.subr.bf16.mxu1 %v14871_v16  ;;  %v363_v15 = vcombine.high %v18511_v7, %v18511_v7  ;;  %v597_v16 = vpack.c.bf16 %v18293_v30, %v18293_v30  ;;  %v14959_v30 = vld [vmem:[%s21773_s1 + $0x2114] ss:$8 sps:$4 sm:$0xff]  }
 0x24d   :  { %11221 = vmatprep.subr.bf16.mxu0 %v14874_v14  ;;  %v643_v14 = vpack.c.bf16 %v18297_v59, %v18297_v59  ;;  %v600_v59 = vpack.c.bf16 %v175_v13, %v175_v13  ;;  %v15029_v13 = vld [vmem:[%s21773_s1 + $0x21d0] ss:$8 sps:$4 sm:$0xff]  }
 0x24f   :  { %10279 = vmatpush1.bf16.msra.mxu1 %v14869_v0  ;;  %v14948_v0 = vld [vmem:[%s21773_s1 + $0xa00] ss:$8 sps:$4 sm:$0xff]  }
 0x250   :  { %11222 = vmatpush1.bf16.msra.mxu0 %v14872_v18  ;;  %10280 = vmatprep.subr.bf16.mxu1 %v14877_v19  ;;  %v14951_v18 = vld [vmem:[%s21773_s1 + $0x2100] ss:$8 sps:$4 sm:$0xff]   ;;  %v14956_v19 = vld [vmem:[%s21773_s1 + $0xa14] ss:$8 sps:$4 sm:$0xff]  }
 0x251   :  { %11223 = vmatprep.subr.bf16.mxu0 %v14880_v20  ;;  %v646_v20 = vpack.c.bf16 %v363_v15, %v363_v15  ;;  %v15034_v15 = vld [vmem:[%s21773_s1 + $0xae4] ss:$8 sps:$4 sm:$0xff]  }
 0x253   :  { %10281 = vmatpush1.bf16.msra.mxu1 %v14875_v21  ;;  %v14954_v21 = vld [vmem:[%s21773_s1 + $0xa10] ss:$8 sps:$4 sm:$0xff]  }
 0x254   :  { %11224 = vmatpush1.bf16.msra.mxu0 %v14878_v22  ;;  %10282 = vmatprep.subr.bf16.mxu1 %v14883_v23  ;;  %v14957_v22 = vld [vmem:[%s21773_s1 + $0x2110] ss:$8 sps:$4 sm:$0xff]   ;;  %v14962_v23 = vld [vmem:[%s21773_s1 + $0xa24] ss:$8 sps:$4 sm:$0xff]  }
 0x255   :  { %11225 = vmatprep.subr.bf16.mxu0 %v14886_v24  ;;  %v14965_v24 = vld [vmem:[%s21773_s1 + $0x2124] ss:$8 sps:$4 sm:$0xff]  }
 0x257   :  { %10283 = vmatpush1.bf16.msra.mxu1 %v14881_v26  ;;  %v14960_v26 = vld [vmem:[%s21773_s1 + $0xa20] ss:$8 sps:$4 sm:$0xff]  }
 0x258   :  { %11226 = vmatpush1.bf16.msra.mxu0 %v14884_v28  ;;  %10284 = vmatprep.subr.bf16.mxu1 %v14889_v29  ;;  %v14963_v28 = vld [vmem:[%s21773_s1 + $0x2120] ss:$8 sps:$4 sm:$0xff]   ;;  %v14968_v29 = vld [vmem:[%s21773_s1 + $0xa34] ss:$8 sps:$4 sm:$0xff]  }
 0x259   :  { %11227 = vmatprep.subr.bf16.mxu0 %v14892_v42  ;;  %v14971_v42 = vld [vmem:[%s21773_s1 + $0x2134] ss:$8 sps:$4 sm:$0xff]  }
 0x25b   :  { %10285 = vmatpush1.bf16.msra.mxu1 %v14887_v12  ;;  %v14966_v12 = vld [vmem:[%s21773_s1 + $0xa30] ss:$8 sps:$4 sm:$0xff]  }
 0x25c   :  { %11228 = vmatpush1.bf16.msra.mxu0 %v14890_v31  ;;  %10286 = vmatprep.subr.bf16.mxu1 %v14895_v32  ;;  %v14969_v31 = vld [vmem:[%s21773_s1 + $0x2130] ss:$8 sps:$4 sm:$0xff]   ;;  %v14974_v32 = vld [vmem:[%s21773_s1 + $0xa44] ss:$8 sps:$4 sm:$0xff]  }
 0x25d   :  { %11229 = vmatprep.subr.bf16.mxu0 %v14898_v33  ;;  %v14977_v33 = vld [vmem:[%s21773_s1 + $0x2144] ss:$8 sps:$4 sm:$0xff]  }
 0x25f   :  { %10287 = vmatpush1.bf16.msra.mxu1 %v14893_v34  ;;  %v14972_v34 = vld [vmem:[%s21773_s1 + $0xa40] ss:$8 sps:$4 sm:$0xff]  }
 0x260   :  { %11230 = vmatpush1.bf16.msra.mxu0 %v14896_v35  ;;  %10288 = vmatprep.subr.bf16.mxu1 %v14901_v36  ;;  %v14975_v35 = vld [vmem:[%s21773_s1 + $0x2140] ss:$8 sps:$4 sm:$0xff]   ;;  %v14980_v36 = vld [vmem:[%s21773_s1 + $0xa54] ss:$8 sps:$4 sm:$0xff]  }
 0x261   :  { %11231 = vmatprep.subr.bf16.mxu0 %v14904_v38  ;;  %v14983_v38 = vld [vmem:[%s21773_s1 + $0x2154] ss:$8 sps:$4 sm:$0xff]  }
 0x263   :  { %10289 = vmatpush1.bf16.msra.mxu1 %v14899_v39  ;;  %v14978_v39 = vld [vmem:[%s21773_s1 + $0xa50] ss:$8 sps:$4 sm:$0xff]  }
 0x264   :  { %11232 = vmatpush1.bf16.msra.mxu0 %v14902_v44  ;;  %10290 = vmatprep.subr.bf16.mxu1 %v14907_v45  ;;  %v14981_v44 = vld [vmem:[%s21773_s1 + $0x2150] ss:$8 sps:$4 sm:$0xff]   ;;  %v14986_v45 = vld [vmem:[%s21773_s1 + $0xa64] ss:$8 sps:$4 sm:$0xff]  }
 0x265   :  { %11233 = vmatprep.subr.bf16.mxu0 %v14910_v57  ;;  %v14989_v57 = vld [vmem:[%s21773_s1 + $0x2164] ss:$8 sps:$4 sm:$0xff]  }
 0x267   :  { %10291 = vmatpush1.bf16.msra.mxu1 %v14905_v25  ;;  %v14984_v25 = vld [vmem:[%s21773_s1 + $0xa60] ss:$8 sps:$4 sm:$0xff]  }
 0x268   :  { %11234 = vmatpush1.bf16.msra.mxu0 %v14908_v47  ;;  %10292 = vmatprep.subr.bf16.mxu1 %v14913_v48  ;;  %v14987_v47 = vld [vmem:[%s21773_s1 + $0x2160] ss:$8 sps:$4 sm:$0xff]   ;;  %v14992_v48 = vld [vmem:[%s21773_s1 + $0xa74] ss:$8 sps:$4 sm:$0xff]  }
 0x269   :  { %11235 = vmatprep.subr.bf16.mxu0 %v14916_v50  ;;  %v14995_v50 = vld [vmem:[%s21773_s1 + $0x2174] ss:$8 sps:$4 sm:$0xff]  }
 0x26b   :  { %10293 = vmatpush1.bf16.msra.mxu1 %v14911_v51  ;;  %v14990_v51 = vld [vmem:[%s21773_s1 + $0xa70] ss:$8 sps:$4 sm:$0xff]  }
 0x26c   :  { %11236 = vmatpush1.bf16.msra.mxu0 %v14914_v52  ;;  %10294 = vmatprep.subr.bf16.mxu1 %v14919_v54  ;;  %v14993_v52 = vld [vmem:[%s21773_s1 + $0x2170] ss:$8 sps:$4 sm:$0xff]   ;;  %v14998_v54 = vld [vmem:[%s21773_s1 + $0xa84] ss:$8 sps:$4 sm:$0xff]  }
 0x26d   :  { %11237 = vmatprep.subr.bf16.mxu0 %v14922_v55  ;;  %v15001_v55 = vld [vmem:[%s21773_s1 + $0x2184] ss:$8 sps:$4 sm:$0xff]  }
 0x26f   :  { %10295 = vmatpush1.bf16.msra.mxu1 %v14917_v56  ;;  %v14996_v56 = vld [vmem:[%s21773_s1 + $0xa80] ss:$8 sps:$4 sm:$0xff]  }
 0x270   :  { %11238 = vmatpush1.bf16.msra.mxu0 %v14920_v27  ;;  %10296 = vmatprep.subr.bf16.mxu1 %v14925_v58  ;;  %v14999_v27 = vld [vmem:[%s21773_s1 + $0x2180] ss:$8 sps:$4 sm:$0xff]   ;;  %v15004_v58 = vld [vmem:[%s21773_s1 + $0xa94] ss:$8 sps:$4 sm:$0xff]  }
 0x271   :  { %11239 = vmatprep.subr.bf16.mxu0 %v14928_v4  ;;  %v15007_v4 = vld [vmem:[%s21773_s1 + $0x2194] ss:$8 sps:$4 sm:$0xff]  }
 0x273   :  { %10297 = vmatpush1.bf16.msra.mxu1 %v14923_v40  ;;  %v15002_v40 = vld [vmem:[%s21773_s1 + $0xa90] ss:$8 sps:$4 sm:$0xff]  }
 0x274   :  { %11240 = vmatpush1.bf16.msra.mxu0 %v14926_v60  ;;  %10298 = vmatprep.subr.bf16.mxu1 %v14931_v61  ;;  %v15005_v60 = vld [vmem:[%s21773_s1 + $0x2190] ss:$8 sps:$4 sm:$0xff]   ;;  %v15010_v61 = vld [vmem:[%s21773_s1 + $0xaa4] ss:$8 sps:$4 sm:$0xff]  }
 0x275   :  { %11241 = vmatprep.subr.bf16.mxu0 %v14934_v62  ;;  %v15013_v62 = vld [vmem:[%s21773_s1 + $0x21a4] ss:$8 sps:$4 sm:$0xff]  }
 0x277   :  { %10299 = vmatpush1.bf16.msra.mxu1 %v14929_v63  ;;  %v15008_v63 = vld [vmem:[%s21773_s1 + $0xaa0] ss:$8 sps:$4 sm:$0xff]  }
 0x278   :  { %11242 = vmatpush1.bf16.msra.mxu0 %v14932_v1  ;;  %10300 = vmatprep.subr.bf16.mxu1 %v14937_v2  ;;  %v15011_v1 = vld [vmem:[%s21773_s1 + $0x21a0] ss:$8 sps:$4 sm:$0xff]   ;;  %v15016_v2 = vld [vmem:[%s21773_s1 + $0xab4] ss:$8 sps:$4 sm:$0xff]  }
 0x279   :  { %11243 = vmatprep.subr.bf16.mxu0 %v14940_v3  ;;  %v15019_v3 = vld [vmem:[%s21773_s1 + $0x21b4] ss:$8 sps:$4 sm:$0xff]  }
 0x27b   :  { %10301 = vmatpush1.bf16.msra.mxu1 %v14935_v5  ;;  %v15017_v5 = vld [vmem:[%s21773_s1 + $0x21b0] ss:$8 sps:$4 sm:$0xff]  }
 0x27c   :  { %11244 = vmatpush1.bf16.msra.mxu0 %v14938_v6  ;;  %10302 = vmatprep.subr.bf16.mxu1 %v14943_v17  ;;  %v15022_v6 = vld [vmem:[%s21773_s1 + $0xac4] ss:$8 sps:$4 sm:$0xff]  }
 0x27d   :  { %11245 = vmatprep.subr.bf16.mxu0 %v14946_v37  ;;  %v15025_v17 = vld [vmem:[%s21773_s1 + $0x21c4] ss:$8 sps:$4 sm:$0xff]   ;;  %v15020_v37 = vld [vmem:[%s21773_s1 + $0xac0] ss:$8 sps:$4 sm:$0xff]  }
 0x27f   :  { %10303 = vmatpush1.bf16.msra.mxu1 %v14941_v8  ;;  %v15023_v8 = vld [vmem:[%s21773_s1 + $0x21c0] ss:$8 sps:$4 sm:$0xff]  }
 0x280   :  { %11246 = vmatpush1.bf16.msra.mxu0 %v14944_v9  ;;  %10313 = vmatprep.subr.bf16.mxu1 %v14950_v10  ;;  %v15028_v9 = vld [vmem:[%s21773_s1 + $0xad4] ss:$8 sps:$4 sm:$0xff]  }
 0x281   :  { %11256 = vmatprep.subr.bf16.mxu0 %v14953_v11  ;;  %v15031_v10 = vld [vmem:[%s21773_s1 + $0x21d4] ss:$8 sps:$4 sm:$0xff]   ;;  %v15026_v11 = vld [vmem:[%s21773_s1 + $0xad0] ss:$8 sps:$4 sm:$0xff]  }
 0x282   :  { %10305 = vmatmul.mubr.bf16.vlgmr.msra.gmra.mrb[0].mxu1 %v597_v16  ;;  %v15037_v16 = vld [vmem:[%s21773_s1 + $0x21e4] ss:$8 sps:$4 sm:$0xff]  }
 0x283   :  { %11248 = vmatmul.mubr.bf16.vlgmr.msra.gmra.mrb[0].mxu0 %v643_v14  ;;  %10314 = vmatpush1.bf16.msra.mxu1 %v14948_v0  ;;  %v18704_v14 = vld [vmem:[%s21772_s0 + $0x88] sm:$0xff]  ;;  %v160_v0 = vcombine.high %v18490_v41, %v18490_v41  ;;  %v15043_v41 = vld [vmem:[%s21773_s1 + $0x21f4] ss:$8 sps:$4 sm:$0xff]  }
 0x284   :  { %11257 = vmatpush1.bf16.msra.mxu0 %v14951_v18  ;;  %10315 = vmatprep.subr.bf16.mxu1 %v14956_v19  ;;  %v15032_v18 = vld [vmem:[%s21773_s1 + $0xae0] ss:$8 sps:$4 sm:$0xff]  }
 0x285   :  { %11258 = vmatprep.subr.bf16.mxu0 %v14959_v30  ;;  %10345 = vmatprep.mubr.bf16.mxu1 %v600_v59  ;;  %v15035_v19 = vld [vmem:[%s21773_s1 + $0x21e0] ss:$8 sps:$4 sm:$0xff]   ;;  %v15040_v30 = vld [vmem:[%s21773_s1 + $0xaf4] ss:$8 sps:$4 sm:$0xff]   ;;  %v18721_v59 = vrot.slane %v160_v0, %v16509_v49  ;;  %v15111_v0 = vld [vmem:[%s21773_s1 + $0xbb0] ss:$8 sps:$4 sm:$0xff]  }
 0x286   :  { %11288 = vmatprep.mubr.bf16.mxu0 %v646_v20  ;;  %v18725_v20 = vrot.slane %v18704_v14, %v16509_v49 }
 0x287   :  { %10316 = vmatpush1.bf16.msra.mxu1 %v14954_v21  ;;  %v15038_v21 = vld [vmem:[%s21773_s1 + $0xaf0] ss:$8 sps:$4 sm:$0xff]  }
 0x288   :  { %11259 = vmatpush1.bf16.msra.mxu0 %v14957_v22  ;;  %10317 = vmatprep.subr.bf16.mxu1 %v14962_v23  ;;  %v15041_v22 = vld [vmem:[%s21773_s1 + $0x21f0] ss:$8 sps:$4 sm:$0xff]   ;;  %v15046_v23 = vld [vmem:[%s21773_s1 + $0xb04] ss:$8 sps:$4 sm:$0xff]  }
 0x289   :  { %11260 = vmatprep.subr.bf16.mxu0 %v14965_v24  ;;  %v15050_v24 = vld [vmem:[%s21773_s1 + $0x2204] ss:$8 sps:$4 sm:$0xff]  }
 0x28b   :  { %10318 = vmatpush1.bf16.msra.mxu1 %v14960_v26  ;;  %v176_v26 = vcombine.high %v18721_v59, %v18721_v59 }
 0x28c   :  { %11261 = vmatpush1.bf16.msra.mxu0 %v14963_v28  ;;  %10319 = vmatprep.subr.bf16.mxu1 %v14968_v29  ;;  %v379_v28 = vcombine.high %v18725_v20, %v18725_v20  ;;  %v599_v29 = vpack.c.bf16 %v18508_v46, %v18508_v46  ;;  %v15056_v46 = vld [vmem:[%s21773_s1 + $0x2214] ss:$8 sps:$4 sm:$0xff]  }
 0x28d   :  { %11262 = vmatprep.subr.bf16.mxu0 %v14971_v42  ;;  %v645_v42 = vpack.c.bf16 %v18511_v7, %v18511_v7  ;;  %v602_v7 = vpack.c.bf16 %v176_v26, %v176_v26  ;;  %v15126_v26 = vld [vmem:[%s21773_s1 + $0x22d0] ss:$8 sps:$4 sm:$0xff]  }
 0x28f   :  { %10320 = vmatpush1.bf16.msra.mxu1 %v14966_v12  ;;  %v15044_v12 = vld [vmem:[%s21773_s1 + $0xb00] ss:$8 sps:$4 sm:$0xff]  }
 0x290   :  { %11263 = vmatpush1.bf16.msra.mxu0 %v14969_v31  ;;  %10321 = vmatprep.subr.bf16.mxu1 %v14974_v32  ;;  %v15048_v31 = vld [vmem:[%s21773_s1 + $0x2200] ss:$8 sps:$4 sm:$0xff]   ;;  %v15053_v32 = vld [vmem:[%s21773_s1 + $0xb14] ss:$8 sps:$4 sm:$0xff]  }
 0x291   :  { %11264 = vmatprep.subr.bf16.mxu0 %v14977_v33  ;;  %v648_v33 = vpack.c.bf16 %v379_v28, %v379_v28  ;;  %v15131_v28 = vld [vmem:[%s21773_s1 + $0xbe4] ss:$8 sps:$4 sm:$0xff]  }
 0x293   :  { %10322 = vmatpush1.bf16.msra.mxu1 %v14972_v34  ;;  %v15051_v34 = vld [vmem:[%s21773_s1 + $0xb10] ss:$8 sps:$4 sm:$0xff]  }
 0x294   :  { %11265 = vmatpush1.bf16.msra.mxu0 %v14975_v35  ;;  %10323 = vmatprep.subr.bf16.mxu1 %v14980_v36  ;;  %v15054_v35 = vld [vmem:[%s21773_s1 + $0x2210] ss:$8 sps:$4 sm:$0xff]   ;;  %v15059_v36 = vld [vmem:[%s21773_s1 + $0xb24] ss:$8 sps:$4 sm:$0xff]  }
 0x295   :  { %11266 = vmatprep.subr.bf16.mxu0 %v14983_v38  ;;  %v15062_v38 = vld [vmem:[%s21773_s1 + $0x2224] ss:$8 sps:$4 sm:$0xff]  }
 0x297   :  { %10324 = vmatpush1.bf16.msra.mxu1 %v14978_v39  ;;  %v15057_v39 = vld [vmem:[%s21773_s1 + $0xb20] ss:$8 sps:$4 sm:$0xff]  }
 0x298   :  { %11267 = vmatpush1.bf16.msra.mxu0 %v14981_v44  ;;  %10325 = vmatprep.subr.bf16.mxu1 %v14986_v45  ;;  %v15060_v44 = vld [vmem:[%s21773_s1 + $0x2220] ss:$8 sps:$4 sm:$0xff]   ;;  %v15065_v45 = vld [vmem:[%s21773_s1 + $0xb34] ss:$8 sps:$4 sm:$0xff]  }
 0x299   :  { %11268 = vmatprep.subr.bf16.mxu0 %v14989_v57  ;;  %v15068_v57 = vld [vmem:[%s21773_s1 + $0x2234] ss:$8 sps:$4 sm:$0xff]  }
 0x29b   :  { %10326 = vmatpush1.bf16.msra.mxu1 %v14984_v25  ;;  %v15063_v25 = vld [vmem:[%s21773_s1 + $0xb30] ss:$8 sps:$4 sm:$0xff]  }
 0x29c   :  { %11269 = vmatpush1.bf16.msra.mxu0 %v14987_v47  ;;  %10327 = vmatprep.subr.bf16.mxu1 %v14992_v48  ;;  %v15066_v47 = vld [vmem:[%s21773_s1 + $0x2230] ss:$8 sps:$4 sm:$0xff]   ;;  %v15071_v48 = vld [vmem:[%s21773_s1 + $0xb44] ss:$8 sps:$4 sm:$0xff]  }
 0x29d   :  { %11270 = vmatprep.subr.bf16.mxu0 %v14995_v50  ;;  %v15074_v50 = vld [vmem:[%s21773_s1 + $0x2244] ss:$8 sps:$4 sm:$0xff]  }
 0x29f   :  { %10328 = vmatpush1.bf16.msra.mxu1 %v14990_v51  ;;  %v15069_v51 = vld [vmem:[%s21773_s1 + $0xb40] ss:$8 sps:$4 sm:$0xff]  }
 0x2a0   :  { %11271 = vmatpush1.bf16.msra.mxu0 %v14993_v52  ;;  %10329 = vmatprep.subr.bf16.mxu1 %v14998_v54  ;;  %v15072_v52 = vld [vmem:[%s21773_s1 + $0x2240] ss:$8 sps:$4 sm:$0xff]   ;;  %v15077_v54 = vld [vmem:[%s21773_s1 + $0xb54] ss:$8 sps:$4 sm:$0xff]  }
 0x2a1   :  { %11272 = vmatprep.subr.bf16.mxu0 %v15001_v55  ;;  %v15080_v55 = vld [vmem:[%s21773_s1 + $0x2254] ss:$8 sps:$4 sm:$0xff]  }
 0x2a3   :  { %10330 = vmatpush1.bf16.msra.mxu1 %v14996_v56  ;;  %v15075_v56 = vld [vmem:[%s21773_s1 + $0xb50] ss:$8 sps:$4 sm:$0xff]  }
 0x2a4   :  { %11273 = vmatpush1.bf16.msra.mxu0 %v14999_v27  ;;  %10331 = vmatprep.subr.bf16.mxu1 %v15004_v58  ;;  %v15078_v27 = vld [vmem:[%s21773_s1 + $0x2250] ss:$8 sps:$4 sm:$0xff]   ;;  %v15083_v58 = vld [vmem:[%s21773_s1 + $0xb64] ss:$8 sps:$4 sm:$0xff]  }
 0x2a5   :  { %11274 = vmatprep.subr.bf16.mxu0 %v15007_v4  ;;  %v15086_v4 = vld [vmem:[%s21773_s1 + $0x2264] ss:$8 sps:$4 sm:$0xff]  }
 0x2a7   :  { %10332 = vmatpush1.bf16.msra.mxu1 %v15002_v40  ;;  %v15081_v40 = vld [vmem:[%s21773_s1 + $0xb60] ss:$8 sps:$4 sm:$0xff]  }
 0x2a8   :  { %11275 = vmatpush1.bf16.msra.mxu0 %v15005_v60  ;;  %10333 = vmatprep.subr.bf16.mxu1 %v15010_v61  ;;  %v15084_v60 = vld [vmem:[%s21773_s1 + $0x2260] ss:$8 sps:$4 sm:$0xff]   ;;  %v15089_v61 = vld [vmem:[%s21773_s1 + $0xb74] ss:$8 sps:$4 sm:$0xff]  }
 0x2a9   :  { %11276 = vmatprep.subr.bf16.mxu0 %v15013_v62  ;;  %v15092_v62 = vld [vmem:[%s21773_s1 + $0x2274] ss:$8 sps:$4 sm:$0xff]  }
 0x2ab   :  { %10334 = vmatpush1.bf16.msra.mxu1 %v15008_v63  ;;  %v15087_v63 = vld [vmem:[%s21773_s1 + $0xb70] ss:$8 sps:$4 sm:$0xff]  }
 0x2ac   :  { %11277 = vmatpush1.bf16.msra.mxu0 %v15011_v1  ;;  %10335 = vmatprep.subr.bf16.mxu1 %v15016_v2  ;;  %v15090_v1 = vld [vmem:[%s21773_s1 + $0x2270] ss:$8 sps:$4 sm:$0xff]   ;;  %v15095_v2 = vld [vmem:[%s21773_s1 + $0xb84] ss:$8 sps:$4 sm:$0xff]  }
 0x2ad   :  { %11278 = vmatprep.subr.bf16.mxu0 %v15019_v3  ;;  %v15098_v3 = vld [vmem:[%s21773_s1 + $0x2284] ss:$8 sps:$4 sm:$0xff]  }
 0x2af   :  { %10336 = vmatpush1.bf16.msra.mxu1 %v15014_v53  ;;  %v15093_v53 = vld [vmem:[%s21773_s1 + $0xb80] ss:$8 sps:$4 sm:$0xff]  }
 0x2b0   :  { %11279 = vmatpush1.bf16.msra.mxu0 %v15017_v5  ;;  %10337 = vmatprep.subr.bf16.mxu1 %v15022_v6  ;;  %v15096_v5 = vld [vmem:[%s21773_s1 + $0x2280] ss:$8 sps:$4 sm:$0xff]   ;;  %v15101_v6 = vld [vmem:[%s21773_s1 + $0xb94] ss:$8 sps:$4 sm:$0xff]  }
 0x2b1   :  { %11280 = vmatprep.subr.bf16.mxu0 %v15025_v17  ;;  %v15104_v17 = vld [vmem:[%s21773_s1 + $0x2294] ss:$8 sps:$4 sm:$0xff]  }
 0x2b3   :  { %10338 = vmatpush1.bf16.msra.mxu1 %v15020_v37  ;;  %v15099_v37 = vld [vmem:[%s21773_s1 + $0xb90] ss:$8 sps:$4 sm:$0xff]  }
 0x2b4   :  { %11281 = vmatpush1.bf16.msra.mxu0 %v15023_v8  ;;  %10339 = vmatprep.subr.bf16.mxu1 %v15028_v9  ;;  %v15102_v8 = vld [vmem:[%s21773_s1 + $0x2290] ss:$8 sps:$4 sm:$0xff]   ;;  %v15107_v9 = vld [vmem:[%s21773_s1 + $0xba4] ss:$8 sps:$4 sm:$0xff]  }
 0x2b5   :  { %11282 = vmatprep.subr.bf16.mxu0 %v15031_v10  ;;  %v15110_v10 = vld [vmem:[%s21773_s1 + $0x22a4] ss:$8 sps:$4 sm:$0xff]  }
 0x2b7   :  { %10340 = vmatpush1.bf16.msra.mxu1 %v15026_v11  ;;  %v15105_v11 = vld [vmem:[%s21773_s1 + $0xba0] ss:$8 sps:$4 sm:$0xff]  }
 0x2b8   :  { %11283 = vmatpush1.bf16.msra.mxu0 %v15029_v13  ;;  %10341 = vmatprep.subr.bf16.mxu1 %v15034_v15  ;;  %v15108_v13 = vld [vmem:[%s21773_s1 + $0x22a0] ss:$8 sps:$4 sm:$0xff]   ;;  %v15113_v15 = vld [vmem:[%s21773_s1 + $0xbb4] ss:$8 sps:$4 sm:$0xff]  }
 0x2b9   :  { %11284 = vmatprep.subr.bf16.mxu0 %v15037_v16  ;;  %v15116_v16 = vld [vmem:[%s21773_s1 + $0x22b4] ss:$8 sps:$4 sm:$0xff]  }
 0x2bb   :  { %10342 = vmatpush1.bf16.msra.mxu1 %v15032_v18  ;;  %v15114_v18 = vld [vmem:[%s21773_s1 + $0x22b0] ss:$8 sps:$4 sm:$0xff]  }
 0x2bc   :  { %11285 = vmatpush1.bf16.msra.mxu0 %v15035_v19  ;;  %10343 = vmatprep.subr.bf16.mxu1 %v15040_v30  ;;  %v15119_v19 = vld [vmem:[%s21773_s1 + $0xbc4] ss:$8 sps:$4 sm:$0xff]  }
 0x2bd   :  { %11286 = vmatprep.subr.bf16.mxu0 %v15043_v41  ;;  %v15122_v30 = vld [vmem:[%s21773_s1 + $0x22c4] ss:$8 sps:$4 sm:$0xff]   ;;  %v15117_v41 = vld [vmem:[%s21773_s1 + $0xbc0] ss:$8 sps:$4 sm:$0xff]  }
 0x2bf   :  { %10344 = vmatpush1.bf16.msra.mxu1 %v15038_v21  ;;  %v15120_v21 = vld [vmem:[%s21773_s1 + $0x22c0] ss:$8 sps:$4 sm:$0xff]  }
 0x2c0   :  { %11287 = vmatpush1.bf16.msra.mxu0 %v15041_v22  ;;  %10354 = vmatprep.subr.bf16.mxu1 %v15046_v23  ;;  %v15125_v22 = vld [vmem:[%s21773_s1 + $0xbd4] ss:$8 sps:$4 sm:$0xff]  }
 0x2c1   :  { %11297 = vmatprep.subr.bf16.mxu0 %v15050_v24  ;;  %v15128_v23 = vld [vmem:[%s21773_s1 + $0x22d4] ss:$8 sps:$4 sm:$0xff]   ;;  %v15123_v24 = vld [vmem:[%s21773_s1 + $0xbd0] ss:$8 sps:$4 sm:$0xff]  }
 0x2c2   :  { %10346 = vmatmul.mubr.bf16.vlgmr.msra.gmra.mrb[0].mxu1 %v599_v29  ;;  %v15134_v29 = vld [vmem:[%s21773_s1 + $0x22e4] ss:$8 sps:$4 sm:$0xff]  }
 0x2c3   :  { %11289 = vmatmul.mubr.bf16.vlgmr.msra.gmra.mrb[0].mxu0 %v645_v42  ;;  %10355 = vmatpush1.bf16.msra.mxu1 %v15044_v12  ;;  %v18918_v42 = vld [vmem:[%s21772_s0 + $0x30] sm:$0xff]  ;;  %v364_v12 = vcombine.high %v18704_v14, %v18704_v14 }
 0x2c4   :  { %11298 = vmatpush1.bf16.msra.mxu0 %v15048_v31  ;;  %10356 = vmatprep.subr.bf16.mxu1 %v15053_v32  ;;  %v15129_v31 = vld [vmem:[%s21773_s1 + $0xbe0] ss:$8 sps:$4 sm:$0xff]   ;;  %v15140_v14 = vld [vmem:[%s21773_s1 + $0x22f4] ss:$8 sps:$4 sm:$0xff]  }
 0x2c5   :  { %11299 = vmatprep.subr.bf16.mxu0 %v15056_v46  ;;  %10386 = vmatprep.mubr.bf16.mxu1 %v602_v7  ;;  %v15132_v32 = vld [vmem:[%s21773_s1 + $0x22e0] ss:$8 sps:$4 sm:$0xff]   ;;  %v15137_v46 = vld [vmem:[%s21773_s1 + $0xbf4] ss:$8 sps:$4 sm:$0xff]   ;;  %v18936_v7 = vrot.slane %v18918_v42, %v16509_v49 }
 0x2c6   :  { %11329 = vmatprep.mubr.bf16.mxu0 %v648_v33  ;;  %v18939_v33 = vrot.slane %v364_v12, %v16509_v49  ;;  %v15208_v12 = vld [vmem:[%s21773_s1 + $0xcb0] ss:$8 sps:$4 sm:$0xff]  }
 0x2c7   :  { %10357 = vmatpush1.bf16.msra.mxu1 %v15051_v34  ;;  %v15135_v34 = vld [vmem:[%s21773_s1 + $0xbf0] ss:$8 sps:$4 sm:$0xff]  }
 0x2c8   :  { %11300 = vmatpush1.bf16.msra.mxu0 %v15054_v35  ;;  %10358 = vmatprep.subr.bf16.mxu1 %v15059_v36  ;;  %v15138_v35 = vld [vmem:[%s21773_s1 + $0x22f0] ss:$8 sps:$4 sm:$0xff]   ;;  %v15144_v36 = vld [vmem:[%s21773_s1 + $0xc04] ss:$8 sps:$4 sm:$0xff]  }
 0x2c9   :  { %11301 = vmatprep.subr.bf16.mxu0 %v15062_v38  ;;  %v15147_v38 = vld [vmem:[%s21773_s1 + $0x2304] ss:$8 sps:$4 sm:$0xff]  }
 0x2cb   :  { %10359 = vmatpush1.bf16.msra.mxu1 %v15057_v39  ;;  %v192_v39 = vcombine.high %v18936_v7, %v18936_v7 }
 0x2cc   :  { %11302 = vmatpush1.bf16.msra.mxu0 %v15060_v44  ;;  %10360 = vmatprep.subr.bf16.mxu1 %v15065_v45  ;;  %v380_v44 = vcombine.high %v18939_v33, %v18939_v33  ;;  %v601_v45 = vpack.c.bf16 %v18721_v59, %v18721_v59  ;;  %v15153_v59 = vld [vmem:[%s21773_s1 + $0x2314] ss:$8 sps:$4 sm:$0xff]  }
 0x2cd   :  { %11303 = vmatprep.subr.bf16.mxu0 %v15068_v57  ;;  %v647_v57 = vpack.c.bf16 %v18725_v20, %v18725_v20  ;;  %v604_v20 = vpack.c.bf16 %v192_v39, %v192_v39  ;;  %v15223_v39 = vld [vmem:[%s21773_s1 + $0x23d0] ss:$8 sps:$4 sm:$0xff]  }
 0x2cf   :  { %10361 = vmatpush1.bf16.msra.mxu1 %v15063_v25  ;;  %v15142_v25 = vld [vmem:[%s21773_s1 + $0xc00] ss:$8 sps:$4 sm:$0xff]  }
 0x2d0   :  { %11304 = vmatpush1.bf16.msra.mxu0 %v15066_v47  ;;  %10362 = vmatprep.subr.bf16.mxu1 %v15071_v48  ;;  %v15145_v47 = vld [vmem:[%s21773_s1 + $0x2300] ss:$8 sps:$4 sm:$0xff]   ;;  %v15150_v48 = vld [vmem:[%s21773_s1 + $0xc14] ss:$8 sps:$4 sm:$0xff]  }
 0x2d1   :  { %11305 = vmatprep.subr.bf16.mxu0 %v15074_v50  ;;  %v650_v50 = vpack.c.bf16 %v380_v44, %v380_v44  ;;  %v15228_v44 = vld [vmem:[%s21773_s1 + $0xce4] ss:$8 sps:$4 sm:$0xff]  }
 0x2d3   :  { %10363 = vmatpush1.bf16.msra.mxu1 %v15069_v51  ;;  %v15148_v51 = vld [vmem:[%s21773_s1 + $0xc10] ss:$8 sps:$4 sm:$0xff]  }
 0x2d4   :  { %11306 = vmatpush1.bf16.msra.mxu0 %v15072_v52  ;;  %10364 = vmatprep.subr.bf16.mxu1 %v15077_v54  ;;  %v15151_v52 = vld [vmem:[%s21773_s1 + $0x2310] ss:$8 sps:$4 sm:$0xff]   ;;  %v15156_v54 = vld [vmem:[%s21773_s1 + $0xc24] ss:$8 sps:$4 sm:$0xff]  }
 0x2d5   :  { %11307 = vmatprep.subr.bf16.mxu0 %v15080_v55  ;;  %v15159_v55 = vld [vmem:[%s21773_s1 + $0x2324] ss:$8 sps:$4 sm:$0xff]  }
 0x2d7   :  { %10365 = vmatpush1.bf16.msra.mxu1 %v15075_v56  ;;  %v15154_v56 = vld [vmem:[%s21773_s1 + $0xc20] ss:$8 sps:$4 sm:$0xff]  }
 0x2d8   :  { %11308 = vmatpush1.bf16.msra.mxu0 %v15078_v27  ;;  %10366 = vmatprep.subr.bf16.mxu1 %v15083_v58  ;;  %v15157_v27 = vld [vmem:[%s21773_s1 + $0x2320] ss:$8 sps:$4 sm:$0xff]   ;;  %v15162_v58 = vld [vmem:[%s21773_s1 + $0xc34] ss:$8 sps:$4 sm:$0xff]  }
 0x2d9   :  { %11309 = vmatprep.subr.bf16.mxu0 %v15086_v4  ;;  %v15165_v4 = vld [vmem:[%s21773_s1 + $0x2334] ss:$8 sps:$4 sm:$0xff]  }
 0x2db   :  { %10367 = vmatpush1.bf16.msra.mxu1 %v15081_v40  ;;  %v15160_v40 = vld [vmem:[%s21773_s1 + $0xc30] ss:$8 sps:$4 sm:$0xff]  }
 0x2dc   :  { %11310 = vmatpush1.bf16.msra.mxu0 %v15084_v60  ;;  %10368 = vmatprep.subr.bf16.mxu1 %v15089_v61  ;;  %v15163_v60 = vld [vmem:[%s21773_s1 + $0x2330] ss:$8 sps:$4 sm:$0xff]   ;;  %v15168_v61 = vld [vmem:[%s21773_s1 + $0xc44] ss:$8 sps:$4 sm:$0xff]  }
 0x2dd   :  { %11311 = vmatprep.subr.bf16.mxu0 %v15092_v62  ;;  %v15171_v62 = vld [vmem:[%s21773_s1 + $0x2344] ss:$8 sps:$4 sm:$0xff]  }
 0x2df   :  { %10369 = vmatpush1.bf16.msra.mxu1 %v15087_v63  ;;  %v15166_v63 = vld [vmem:[%s21773_s1 + $0xc40] ss:$8 sps:$4 sm:$0xff]  }
 0x2e0   :  { %11312 = vmatpush1.bf16.msra.mxu0 %v15090_v1  ;;  %10370 = vmatprep.subr.bf16.mxu1 %v15095_v2  ;;  %v15169_v1 = vld [vmem:[%s21773_s1 + $0x2340] ss:$8 sps:$4 sm:$0xff]   ;;  %v15174_v2 = vld [vmem:[%s21773_s1 + $0xc54] ss:$8 sps:$4 sm:$0xff]  }
 0x2e1   :  { %11313 = vmatprep.subr.bf16.mxu0 %v15098_v3  ;;  %v15177_v3 = vld [vmem:[%s21773_s1 + $0x2354] ss:$8 sps:$4 sm:$0xff]  }
 0x2e3   :  { %10371 = vmatpush1.bf16.msra.mxu1 %v15093_v53  ;;  %v15172_v53 = vld [vmem:[%s21773_s1 + $0xc50] ss:$8 sps:$4 sm:$0xff]  }
 0x2e4   :  { %11314 = vmatpush1.bf16.msra.mxu0 %v15096_v5  ;;  %10372 = vmatprep.subr.bf16.mxu1 %v15101_v6  ;;  %v15175_v5 = vld [vmem:[%s21773_s1 + $0x2350] ss:$8 sps:$4 sm:$0xff]   ;;  %v15180_v6 = vld [vmem:[%s21773_s1 + $0xc64] ss:$8 sps:$4 sm:$0xff]  }
 0x2e5   :  { %11315 = vmatprep.subr.bf16.mxu0 %v15104_v17  ;;  %v15183_v17 = vld [vmem:[%s21773_s1 + $0x2364] ss:$8 sps:$4 sm:$0xff]  }
 0x2e7   :  { %10373 = vmatpush1.bf16.msra.mxu1 %v15099_v37  ;;  %v15178_v37 = vld [vmem:[%s21773_s1 + $0xc60] ss:$8 sps:$4 sm:$0xff]  }
 0x2e8   :  { %11316 = vmatpush1.bf16.msra.mxu0 %v15102_v8  ;;  %10374 = vmatprep.subr.bf16.mxu1 %v15107_v9  ;;  %v15181_v8 = vld [vmem:[%s21773_s1 + $0x2360] ss:$8 sps:$4 sm:$0xff]   ;;  %v15186_v9 = vld [vmem:[%s21773_s1 + $0xc74] ss:$8 sps:$4 sm:$0xff]  }
 0x2e9   :  { %11317 = vmatprep.subr.bf16.mxu0 %v15110_v10  ;;  %v15189_v10 = vld [vmem:[%s21773_s1 + $0x2374] ss:$8 sps:$4 sm:$0xff]  }
 0x2eb   :  { %10375 = vmatpush1.bf16.msra.mxu1 %v15105_v11  ;;  %v15184_v11 = vld [vmem:[%s21773_s1 + $0xc70] ss:$8 sps:$4 sm:$0xff]  }
 0x2ec   :  { %11318 = vmatpush1.bf16.msra.mxu0 %v15108_v13  ;;  %10376 = vmatprep.subr.bf16.mxu1 %v15113_v15  ;;  %v15187_v13 = vld [vmem:[%s21773_s1 + $0x2370] ss:$8 sps:$4 sm:$0xff]   ;;  %v15192_v15 = vld [vmem:[%s21773_s1 + $0xc84] ss:$8 sps:$4 sm:$0xff]  }
 0x2ed   :  { %11319 = vmatprep.subr.bf16.mxu0 %v15116_v16  ;;  %v15195_v16 = vld [vmem:[%s21773_s1 + $0x2384] ss:$8 sps:$4 sm:$0xff]  }
 0x2ef   :  { %10377 = vmatpush1.bf16.msra.mxu1 %v15111_v0  ;;  %v15190_v0 = vld [vmem:[%s21773_s1 + $0xc80] ss:$8 sps:$4 sm:$0xff]  }
 0x2f0   :  { %11320 = vmatpush1.bf16.msra.mxu0 %v15114_v18  ;;  %10378 = vmatprep.subr.bf16.mxu1 %v15119_v19  ;;  %v15193_v18 = vld [vmem:[%s21773_s1 + $0x2380] ss:$8 sps:$4 sm:$0xff]   ;;  %v15198_v19 = vld [vmem:[%s21773_s1 + $0xc94] ss:$8 sps:$4 sm:$0xff]  }
 0x2f1   :  { %11321 = vmatprep.subr.bf16.mxu0 %v15122_v30  ;;  %v15201_v30 = vld [vmem:[%s21773_s1 + $0x2394] ss:$8 sps:$4 sm:$0xff]  }
 0x2f3   :  { %10379 = vmatpush1.bf16.msra.mxu1 %v15117_v41  ;;  %v15196_v41 = vld [vmem:[%s21773_s1 + $0xc90] ss:$8 sps:$4 sm:$0xff]  }
 0x2f4   :  { %11322 = vmatpush1.bf16.msra.mxu0 %v15120_v21  ;;  %10380 = vmatprep.subr.bf16.mxu1 %v15125_v22  ;;  %v15199_v21 = vld [vmem:[%s21773_s1 + $0x2390] ss:$8 sps:$4 sm:$0xff]   ;;  %v15204_v22 = vld [vmem:[%s21773_s1 + $0xca4] ss:$8 sps:$4 sm:$0xff]  }
 0x2f5   :  { %11323 = vmatprep.subr.bf16.mxu0 %v15128_v23  ;;  %v15207_v23 = vld [vmem:[%s21773_s1 + $0x23a4] ss:$8 sps:$4 sm:$0xff]  }
 0x2f7   :  { %10381 = vmatpush1.bf16.msra.mxu1 %v15123_v24  ;;  %v15202_v24 = vld [vmem:[%s21773_s1 + $0xca0] ss:$8 sps:$4 sm:$0xff]  }
 0x2f8   :  { %11324 = vmatpush1.bf16.msra.mxu0 %v15126_v26  ;;  %10382 = vmatprep.subr.bf16.mxu1 %v15131_v28  ;;  %v15205_v26 = vld [vmem:[%s21773_s1 + $0x23a0] ss:$8 sps:$4 sm:$0xff]   ;;  %v15210_v28 = vld [vmem:[%s21773_s1 + $0xcb4] ss:$8 sps:$4 sm:$0xff]  }
 0x2f9   :  { %11325 = vmatprep.subr.bf16.mxu0 %v15134_v29  ;;  %v15213_v29 = vld [vmem:[%s21773_s1 + $0x23b4] ss:$8 sps:$4 sm:$0xff]  }
 0x2fb   :  { %10383 = vmatpush1.bf16.msra.mxu1 %v15129_v31  ;;  %v15211_v31 = vld [vmem:[%s21773_s1 + $0x23b0] ss:$8 sps:$4 sm:$0xff]  }
 0x2fc   :  { %11326 = vmatpush1.bf16.msra.mxu0 %v15132_v32  ;;  %10384 = vmatprep.subr.bf16.mxu1 %v15137_v46  ;;  %v15216_v32 = vld [vmem:[%s21773_s1 + $0xcc4] ss:$8 sps:$4 sm:$0xff]  }
 0x2fd   :  { %11327 = vmatprep.subr.bf16.mxu0 %v15140_v14  ;;  %v15219_v46 = vld [vmem:[%s21773_s1 + $0x23c4] ss:$8 sps:$4 sm:$0xff]   ;;  %v15214_v14 = vld [vmem:[%s21773_s1 + $0xcc0] ss:$8 sps:$4 sm:$0xff]  }
 0x2ff   :  { %10385 = vmatpush1.bf16.msra.mxu1 %v15135_v34  ;;  %v15217_v34 = vld [vmem:[%s21773_s1 + $0x23c0] ss:$8 sps:$4 sm:$0xff]  }
 0x300   :  { %11328 = vmatpush1.bf16.msra.mxu0 %v15138_v35  ;;  %10395 = vmatprep.subr.bf16.mxu1 %v15144_v36  ;;  %v15222_v35 = vld [vmem:[%s21773_s1 + $0xcd4] ss:$8 sps:$4 sm:$0xff]  }
 0x301   :  { %11338 = vmatprep.subr.bf16.mxu0 %v15147_v38  ;;  %v15225_v36 = vld [vmem:[%s21773_s1 + $0x23d4] ss:$8 sps:$4 sm:$0xff]   ;;  %v15220_v38 = vld [vmem:[%s21773_s1 + $0xcd0] ss:$8 sps:$4 sm:$0xff]  }
 0x302   :  { %10387 = vmatmul.mubr.bf16.vlgmr.msra.gmra.mrb[0].mxu1 %v601_v45  ;;  %v15231_v45 = vld [vmem:[%s21773_s1 + $0x23e4] ss:$8 sps:$4 sm:$0xff]  }
 0x303   :  { %11330 = vmatmul.mubr.bf16.vlgmr.msra.gmra.mrb[0].mxu0 %v647_v57  ;;  %10396 = vmatpush1.bf16.msra.mxu1 %v15142_v25  ;;  %v19132_v57 = vld [vmem:[%s21772_s0 + $0x90] sm:$0xff]  ;;  %v177_v25 = vcombine.high %v18918_v42, %v18918_v42 }
 0x304   :  { %11339 = vmatpush1.bf16.msra.mxu0 %v15145_v47  ;;  %10397 = vmatprep.subr.bf16.mxu1 %v15150_v48  ;;  %v15226_v47 = vld [vmem:[%s21773_s1 + $0xce0] ss:$8 sps:$4 sm:$0xff]   ;;  %v15237_v42 = vld [vmem:[%s21773_s1 + $0x23f4] ss:$8 sps:$4 sm:$0xff]  }
 0x305   :  { %11340 = vmatprep.subr.bf16.mxu0 %v15153_v59  ;;  %10427 = vmatprep.mubr.bf16.mxu1 %v604_v20  ;;  %v15229_v48 = vld [vmem:[%s21773_s1 + $0x23e0] ss:$8 sps:$4 sm:$0xff]   ;;  %v15234_v59 = vld [vmem:[%s21773_s1 + $0xcf4] ss:$8 sps:$4 sm:$0xff]   ;;  %v19149_v20 = vrot.slane %v177_v25, %v16509_v49 }
 0x306   :  { %11370 = vmatprep.mubr.bf16.mxu0 %v650_v50  ;;  %v19153_v50 = vrot.slane %v19132_v57, %v16509_v49 }
 0x307   :  { %10398 = vmatpush1.bf16.msra.mxu1 %v15148_v51  ;;  %v15232_v51 = vld [vmem:[%s21773_s1 + $0xcf0] ss:$8 sps:$4 sm:$0xff]  }
 0x308   :  { %11341 = vmatpush1.bf16.msra.mxu0 %v15151_v52  ;;  %10399 = vmatprep.subr.bf16.mxu1 %v15156_v54  ;;  %v15235_v52 = vld [vmem:[%s21773_s1 + $0x23f0] ss:$8 sps:$4 sm:$0xff]   ;;  %v15240_v54 = vld [vmem:[%s21773_s1 + $0xd04] ss:$8 sps:$4 sm:$0xff]  }
 0x309   :  { %11342 = vmatprep.subr.bf16.mxu0 %v15159_v55  ;;  %v15244_v55 = vld [vmem:[%s21773_s1 + $0x2404] ss:$8 sps:$4 sm:$0xff]  }
 0x30b   :  { %10400 = vmatpush1.bf16.msra.mxu1 %v15154_v56  ;;  %v193_v56 = vcombine.high %v19149_v20, %v19149_v20 }
 0x30c   :  { %11343 = vmatpush1.bf16.msra.mxu0 %v15157_v27  ;;  %10401 = vmatprep.subr.bf16.mxu1 %v15162_v58  ;;  %v396_v27 = vcombine.high %v19153_v50, %v19153_v50  ;;  %v603_v58 = vpack.c.bf16 %v18936_v7, %v18936_v7  ;;  %v15250_v7 = vld [vmem:[%s21773_s1 + $0x2414] ss:$8 sps:$4 sm:$0xff]  }
 0x30d   :  { %11344 = vmatprep.subr.bf16.mxu0 %v15165_v4  ;;  %v649_v4 = vpack.c.bf16 %v18939_v33, %v18939_v33  ;;  %v606_v33 = vpack.c.bf16 %v193_v56, %v193_v56 }
 0x30f   :  { %10402 = vmatpush1.bf16.msra.mxu1 %v15160_v40  ;;  %v15238_v40 = vld [vmem:[%s21773_s1 + $0xd00] ss:$8 sps:$4 sm:$0xff]  }
 0x310   :  { %11345 = vmatpush1.bf16.msra.mxu0 %v15163_v60  ;;  %10403 = vmatprep.subr.bf16.mxu1 %v15168_v61  ;;  %v15242_v60 = vld [vmem:[%s21773_s1 + $0x2400] ss:$8 sps:$4 sm:$0xff]   ;;  %v15247_v61 = vld [vmem:[%s21773_s1 + $0xd14] ss:$8 sps:$4 sm:$0xff]  }
 0x311   :  { %11346 = vmatprep.subr.bf16.mxu0 %v15171_v62  ;;  %v652_v62 = vpack.c.bf16 %v396_v27, %v396_v27 }
 0x313   :  { %10404 = vmatpush1.bf16.msra.mxu1 %v15166_v63  ;;  %v15245_v63 = vld [vmem:[%s21773_s1 + $0xd10] ss:$8 sps:$4 sm:$0xff]  }
 0x314   :  { %11347 = vmatpush1.bf16.msra.mxu0 %v15169_v1  ;;  %10405 = vmatprep.subr.bf16.mxu1 %v15174_v2  ;;  %v15248_v1 = vld [vmem:[%s21773_s1 + $0x2410] ss:$8 sps:$4 sm:$0xff]   ;;  %v15253_v2 = vld [vmem:[%s21773_s1 + $0xd24] ss:$8 sps:$4 sm:$0xff]  }
 0x315   :  { %11348 = vmatprep.subr.bf16.mxu0 %v15177_v3  ;;  %v15256_v3 = vld [vmem:[%s21773_s1 + $0x2424] ss:$8 sps:$4 sm:$0xff]  }
 0x317   :  { %10406 = vmatpush1.bf16.msra.mxu1 %v15172_v53  ;;  %v15251_v53 = vld [vmem:[%s21773_s1 + $0xd20] ss:$8 sps:$4 sm:$0xff]  }
 0x318   :  { %11349 = vmatpush1.bf16.msra.mxu0 %v15175_v5  ;;  %10407 = vmatprep.subr.bf16.mxu1 %v15180_v6  ;;  %v15254_v5 = vld [vmem:[%s21773_s1 + $0x2420] ss:$8 sps:$4 sm:$0xff]  }
 0x319   :  { %11350 = vmatprep.subr.bf16.mxu0 %v15183_v17 }
 0x31b   :  { %10408 = vmatpush1.bf16.msra.mxu1 %v15178_v37 }
 0x31c   :  { %11351 = vmatpush1.bf16.msra.mxu0 %v15181_v8  ;;  %10409 = vmatprep.subr.bf16.mxu1 %v15186_v9 }
 0x31d   :  { %11352 = vmatprep.subr.bf16.mxu0 %v15189_v10 }
 0x31f   :  { %10410 = vmatpush1.bf16.msra.mxu1 %v15184_v11 }
 0x320   :  { %11353 = vmatpush1.bf16.msra.mxu0 %v15187_v13  ;;  %10411 = vmatprep.subr.bf16.mxu1 %v15192_v15 }
 0x321   :  { %11354 = vmatprep.subr.bf16.mxu0 %v15195_v16 }
 0x323   :  { %10412 = vmatpush1.bf16.msra.mxu1 %v15190_v0 }
 0x324   :  { %11355 = vmatpush1.bf16.msra.mxu0 %v15193_v18  ;;  %10413 = vmatprep.subr.bf16.mxu1 %v15198_v19 }
 0x325   :  { %11356 = vmatprep.subr.bf16.mxu0 %v15201_v30 }
 0x327   :  { %10414 = vmatpush1.bf16.msra.mxu1 %v15196_v41 }
 0x328   :  { %11357 = vmatpush1.bf16.msra.mxu0 %v15199_v21  ;;  %10415 = vmatprep.subr.bf16.mxu1 %v15204_v22 }
 0x329   :  { %11358 = vmatprep.subr.bf16.mxu0 %v15207_v23 }
 0x32b   :  { %10416 = vmatpush1.bf16.msra.mxu1 %v15202_v24 }
 0x32c   :  { %11359 = vmatpush1.bf16.msra.mxu0 %v15205_v26  ;;  %10417 = vmatprep.subr.bf16.mxu1 %v15210_v28 }
 0x32d   :  { %11360 = vmatprep.subr.bf16.mxu0 %v15213_v29 }
 0x32f   :  { %10418 = vmatpush1.bf16.msra.mxu1 %v15208_v12 }
 0x330   :  { %11361 = vmatpush1.bf16.msra.mxu0 %v15211_v31  ;;  %10419 = vmatprep.subr.bf16.mxu1 %v15216_v32 }
 0x331   :  { %11362 = vmatprep.subr.bf16.mxu0 %v15219_v46 }
 0x333   :  { %10420 = vmatpush1.bf16.msra.mxu1 %v15214_v14 }
 0x334   :  { %11363 = vmatpush1.bf16.msra.mxu0 %v15217_v34  ;;  %10421 = vmatprep.subr.bf16.mxu1 %v15222_v35 }
 0x335   :  { %11364 = vmatprep.subr.bf16.mxu0 %v15225_v36 }
 0x337   :  { %10422 = vmatpush1.bf16.msra.mxu1 %v15220_v38 }
 0x338   :  { %11365 = vmatpush1.bf16.msra.mxu0 %v15223_v39  ;;  %10423 = vmatprep.subr.bf16.mxu1 %v15228_v44 }
 0x339   :  { %11366 = vmatprep.subr.bf16.mxu0 %v15231_v45 }
 0x33b   :  { %10424 = vmatpush1.bf16.msra.mxu1 %v15226_v47 }
 0x33c   :  { %11367 = vmatpush1.bf16.msra.mxu0 %v15229_v48  ;;  %10425 = vmatprep.subr.bf16.mxu1 %v15234_v59 }
 0x33d   :  { %11368 = vmatprep.subr.bf16.mxu0 %v15237_v42 }
 0x33f   :  { %10426 = vmatpush1.bf16.msra.mxu1 %v15232_v51 }
 0x340   :  { %11369 = vmatpush1.bf16.msra.mxu0 %v15235_v52  ;;  %10436 = vmatprep.subr.bf16.mxu1 %v15240_v54 }
 0x341   :  { %11379 = vmatprep.subr.bf16.mxu0 %v15244_v55 }
 0x342   :  { %10428 = vmatmul.mubr.bf16.vlgmr.msra.gmra.mrb[0].mxu1 %v603_v58 }
 0x343   :  { %11371 = vmatmul.mubr.bf16.vlgmr.msra.gmra.mrb[0].mxu0 %v649_v4  ;;  %10437 = vmatpush1.bf16.msra.mxu1 %v15238_v40 }
 0x344   :  { %11380 = vmatpush1.bf16.msra.mxu0 %v15242_v60  ;;  %10438 = vmatprep.subr.bf16.mxu1 %v15247_v61 }
 0x345   :  { %11381 = vmatprep.subr.bf16.mxu0 %v15250_v7  ;;  %10468 = vmatprep.mubr.bf16.mxu1 %v606_v33 }
 0x346   :  { %11411 = vmatprep.mubr.bf16.mxu0 %v652_v62 }
 0x347   :  { %10439 = vmatpush1.bf16.msra.mxu1 %v15245_v63 }
 0x348   :  { %11382 = vmatpush1.bf16.msra.mxu0 %v15248_v1 }
 0x349   :  { %12 = vsyncpa [#allocation3], 0  ;;  %10440 = vmatprep.subr.bf16.mxu1 %v15253_v2  ;;  %11383 = vmatprep.subr.bf16.mxu0 %v15256_v3  ;;  %v15259_v6 = vld [vmem:[%s21773_s1 + $0xd34] ss:$8 sps:$4 sm:$0xff]   ;;  %v15257_v37 = vld [vmem:[%s21773_s1 + $0xd30] ss:$8 sps:$4 sm:$0xff]   ;;  %v381_v4 = vcombine.high %v19132_v57, %v19132_v57 }
 0x34a   :  { %v15262_v17 = vld [vmem:[%s21773_s1 + $0x2434] ss:$8 sps:$4 sm:$0xff]   ;;  %v15260_v8 = vld [vmem:[%s21773_s1 + $0x2430] ss:$8 sps:$4 sm:$0xff]   ;;  %v15265_v9 = vld [vmem:[%s21773_s1 + $0xd44] ss:$8 sps:$4 sm:$0xff]  }
 0x34b   :  { %10441 = vmatpush1.bf16.msra.mxu1 %v15251_v53  ;;  %v15268_v10 = vld [vmem:[%s21773_s1 + $0x2444] ss:$8 sps:$4 sm:$0xff]   ;;  %v15263_v11 = vld [vmem:[%s21773_s1 + $0xd40] ss:$8 sps:$4 sm:$0xff]   ;;  %v15271_v15 = vld [vmem:[%s21773_s1 + $0xd54] ss:$8 sps:$4 sm:$0xff]   ;;  %v19367_v62 = vrot.slane %v381_v4, %v16509_v49 }
 0x34c   :  { %11384 = vmatpush1.bf16.msra.mxu0 %v15254_v5  ;;  %10442 = vmatprep.subr.bf16.mxu1 %v15259_v6  ;;  %v15266_v13 = vld [vmem:[%s21773_s1 + $0x2440] ss:$8 sps:$4 sm:$0xff]   ;;  %v15274_v16 = vld [vmem:[%s21773_s1 + $0x2454] ss:$8 sps:$4 sm:$0xff]   ;;  %v15269_v0 = vld [vmem:[%s21773_s1 + $0xd50] ss:$8 sps:$4 sm:$0xff]   ;;  %v605_v6 = vpack.c.bf16 %v19149_v20, %v19149_v20 }
 0x34d   :  { %11385 = vmatprep.subr.bf16.mxu0 %v15262_v17  ;;  %v15272_v18 = vld [vmem:[%s21773_s1 + $0x2450] ss:$8 sps:$4 sm:$0xff]   ;;  %v15277_v19 = vld [vmem:[%s21773_s1 + $0xd64] ss:$8 sps:$4 sm:$0xff]   ;;  %v15275_v41 = vld [vmem:[%s21773_s1 + $0xd60] ss:$8 sps:$4 sm:$0xff]   ;;  %v397_v5 = vcombine.high %v19367_v62, %v19367_v62  ;;  %v651_v17 = vpack.c.bf16 %v19153_v50, %v19153_v50 }
 0x34e   :  { %v15280_v30 = vld [vmem:[%s21773_s1 + $0x2464] ss:$8 sps:$4 sm:$0xff]   ;;  %v15278_v21 = vld [vmem:[%s21773_s1 + $0x2460] ss:$8 sps:$4 sm:$0xff]   ;;  %v15283_v22 = vld [vmem:[%s21773_s1 + $0xd74] ss:$8 sps:$4 sm:$0xff]  }
 0x34f   :  { %10443 = vmatpush1.bf16.msra.mxu1 %v15257_v37  ;;  %v15286_v23 = vld [vmem:[%s21773_s1 + $0x2474] ss:$8 sps:$4 sm:$0xff]   ;;  %v15281_v24 = vld [vmem:[%s21773_s1 + $0xd70] ss:$8 sps:$4 sm:$0xff]   ;;  %v15289_v28 = vld [vmem:[%s21773_s1 + $0xd84] ss:$8 sps:$4 sm:$0xff]  }
 0x350   :  { %11386 = vmatpush1.bf16.msra.mxu0 %v15260_v8  ;;  %10444 = vmatprep.subr.bf16.mxu1 %v15265_v9  ;;  %v15284_v26 = vld [vmem:[%s21773_s1 + $0x2470] ss:$8 sps:$4 sm:$0xff]   ;;  %v15292_v29 = vld [vmem:[%s21773_s1 + $0x2484] ss:$8 sps:$4 sm:$0xff]   ;;  %v15287_v12 = vld [vmem:[%s21773_s1 + $0xd80] ss:$8 sps:$4 sm:$0xff]  }
 0x351   :  { %11387 = vmatprep.subr.bf16.mxu0 %v15268_v10  ;;  %v15290_v31 = vld [vmem:[%s21773_s1 + $0x2480] ss:$8 sps:$4 sm:$0xff]   ;;  %v15295_v32 = vld [vmem:[%s21773_s1 + $0xd94] ss:$8 sps:$4 sm:$0xff]   ;;  %v15293_v14 = vld [vmem:[%s21773_s1 + $0xd90] ss:$8 sps:$4 sm:$0xff]   ;;  %v654_v10 = vpack.c.bf16 %v397_v5, %v397_v5 }
 0x352   :  { %v15298_v46 = vld [vmem:[%s21773_s1 + $0x2494] ss:$8 sps:$4 sm:$0xff]   ;;  %v15296_v34 = vld [vmem:[%s21773_s1 + $0x2490] ss:$8 sps:$4 sm:$0xff]   ;;  %v15301_v35 = vld [vmem:[%s21773_s1 + $0xda4] ss:$8 sps:$4 sm:$0xff]  }
 0x353   :  { %10445 = vmatpush1.bf16.msra.mxu1 %v15263_v11  ;;  %v15304_v36 = vld [vmem:[%s21773_s1 + $0x24a4] ss:$8 sps:$4 sm:$0xff]   ;;  %v15299_v38 = vld [vmem:[%s21773_s1 + $0xda0] ss:$8 sps:$4 sm:$0xff]   ;;  %v15307_v44 = vld [vmem:[%s21773_s1 + $0xdb4] ss:$8 sps:$4 sm:$0xff]  }
 0x354   :  { %11388 = vmatpush1.bf16.msra.mxu0 %v15266_v13  ;;  %10446 = vmatprep.subr.bf16.mxu1 %v15271_v15  ;;  %v15302_v39 = vld [vmem:[%s21773_s1 + $0x24a0] ss:$8 sps:$4 sm:$0xff]   ;;  %v15310_v45 = vld [vmem:[%s21773_s1 + $0x24b4] ss:$8 sps:$4 sm:$0xff]   ;;  %v15305_v25 = vld [vmem:[%s21773_s1 + $0xdb0] ss:$8 sps:$4 sm:$0xff]  }
 0x355   :  { %11389 = vmatprep.subr.bf16.mxu0 %v15274_v16  ;;  %v15308_v47 = vld [vmem:[%s21773_s1 + $0x24b0] ss:$8 sps:$4 sm:$0xff]   ;;  %v15313_v48 = vld [vmem:[%s21773_s1 + $0xdc4] ss:$8 sps:$4 sm:$0xff]   ;;  %v15311_v42 = vld [vmem:[%s21773_s1 + $0xdc0] ss:$8 sps:$4 sm:$0xff]  }
 0x356   :  { %v15316_v59 = vld [vmem:[%s21773_s1 + $0x24c4] ss:$8 sps:$4 sm:$0xff]   ;;  %v15314_v51 = vld [vmem:[%s21773_s1 + $0x24c0] ss:$8 sps:$4 sm:$0xff]   ;;  %v15319_v52 = vld [vmem:[%s21773_s1 + $0xdd4] ss:$8 sps:$4 sm:$0xff]  }
 0x357   :  { %10447 = vmatpush1.bf16.msra.mxu1 %v15269_v0  ;;  %v15322_v54 = vld [vmem:[%s21773_s1 + $0x24d4] ss:$8 sps:$4 sm:$0xff]   ;;  %v15317_v55 = vld [vmem:[%s21773_s1 + $0xdd0] ss:$8 sps:$4 sm:$0xff]   ;;  %v15325_v27 = vld [vmem:[%s21773_s1 + $0xde4] ss:$8 sps:$4 sm:$0xff]  }
 0x358   :  { %11390 = vmatpush1.bf16.msra.mxu0 %v15272_v18  ;;  %10448 = vmatprep.subr.bf16.mxu1 %v15277_v19  ;;  %v15320_v56 = vld [vmem:[%s21773_s1 + $0x24d0] ss:$8 sps:$4 sm:$0xff]   ;;  %v15328_v58 = vld [vmem:[%s21773_s1 + $0x24e4] ss:$8 sps:$4 sm:$0xff]   ;;  %v15323_v60 = vld [vmem:[%s21773_s1 + $0xde0] ss:$8 sps:$4 sm:$0xff]  }
 0x359   :  { %11391 = vmatprep.subr.bf16.mxu0 %v15280_v30  ;;  %v19348_v40 = vld [vmem:[%s21772_s0 + $0x38] sm:$0xff]  ;;  %v15326_v61 = vld [vmem:[%s21773_s1 + $0x24e0] ss:$8 sps:$4 sm:$0xff]   ;;  %v15338_v2 = vld [vmem:[%s21773_s1 + $0xe04] ss:$8 sps:$4 sm:$0xff]   ;;  %vm11933_vm0 = vcmask 523264  }
 0x35a   :  { %v15331_v57 = vld [vmem:[%s21773_s1 + $0xdf4] ss:$8 sps:$4 sm:$0xff]   ;;  %v19364_v33 = vrot.slane %v19348_v40, %v16509_v49  ;;  %v15329_v63 = vld [vmem:[%s21773_s1 + $0xdf0] ss:$8 sps:$4 sm:$0xff]   ;;  %v15341_v3 = vld [vmem:[%s21773_s1 + $0x2504] ss:$8 sps:$4 sm:$0xff]  }
 0x35b   :  { %10449 = vmatpush1.bf16.msra.mxu1 %v15275_v41  ;;  %v15334_v7 = vld [vmem:[%s21773_s1 + $0x24f4] ss:$8 sps:$4 sm:$0xff]   ;;  %v15332_v1 = vld [vmem:[%s21773_s1 + $0x24f0] ss:$8 sps:$4 sm:$0xff]   ;;  %v15336_v37 = vld [vmem:[%s21773_s1 + $0xe00] ss:$8 sps:$4 sm:$0xff]  }
 0x35c   :  { %11392 = vmatpush1.bf16.msra.mxu0 %v15278_v21  ;;  %10450 = vmatprep.subr.bf16.mxu1 %v15283_v22  ;;  %v209_v53 = vcombine.high %v19364_v33, %v19364_v33  ;;  %v15339_v8 = vld [vmem:[%s21773_s1 + $0x2500] ss:$8 sps:$4 sm:$0xff]   ;;  %v15344_v9 = vld [vmem:[%s21773_s1 + $0xe14] ss:$8 sps:$4 sm:$0xff]   ;;  %v15342_v11 = vld [vmem:[%s21773_s1 + $0xe10] ss:$8 sps:$4 sm:$0xff]  }
 0x35d   :  { %11393 = vmatprep.subr.bf16.mxu0 %v15286_v23  ;;  %v15347_v20 = vld [vmem:[%s21773_s1 + $0x2514] ss:$8 sps:$4 sm:$0xff]   ;;  %v15345_v13 = vld [vmem:[%s21773_s1 + $0x2510] ss:$8 sps:$4 sm:$0xff]   ;;  %v15350_v15 = vld [vmem:[%s21773_s1 + $0xe24] ss:$8 sps:$4 sm:$0xff]  }
 0x35e   :  { %v608_v50 = vpack.c.bf16 %v209_v53, %v209_v53  ;;  %v15353_v16 = vld [vmem:[%s21773_s1 + $0x2524] ss:$8 sps:$4 sm:$0xff]   ;;  %v15348_v0 = vld [vmem:[%s21773_s1 + $0xe20] ss:$8 sps:$4 sm:$0xff]   ;;  %v15356_v19 = vld [vmem:[%s21773_s1 + $0xe34] ss:$8 sps:$4 sm:$0xff]  }
 0x35f   :  { %10451 = vmatpush1.bf16.msra.mxu1 %v15281_v24  ;;  %v15351_v18 = vld [vmem:[%s21773_s1 + $0x2520] ss:$8 sps:$4 sm:$0xff]   ;;  %v15359_v30 = vld [vmem:[%s21773_s1 + $0x2534] ss:$8 sps:$4 sm:$0xff]   ;;  %v15354_v41 = vld [vmem:[%s21773_s1 + $0xe30] ss:$8 sps:$4 sm:$0xff]  }
 0x360   :  { %11394 = vmatpush1.bf16.msra.mxu0 %v15284_v26  ;;  %10452 = vmatprep.subr.bf16.mxu1 %v15289_v28  ;;  %v15357_v21 = vld [vmem:[%s21773_s1 + $0x2530] ss:$8 sps:$4 sm:$0xff]   ;;  %v15362_v22 = vld [vmem:[%s21773_s1 + $0xe44] ss:$8 sps:$4 sm:$0xff]   ;;  %v15360_v24 = vld [vmem:[%s21773_s1 + $0xe40] ss:$8 sps:$4 sm:$0xff]  }
 0x361   :  { %11395 = vmatprep.subr.bf16.mxu0 %v15292_v29  ;;  %v15365_v23 = vld [vmem:[%s21773_s1 + $0x2544] ss:$8 sps:$4 sm:$0xff]   ;;  %v15363_v26 = vld [vmem:[%s21773_s1 + $0x2540] ss:$8 sps:$4 sm:$0xff]   ;;  %v15368_v28 = vld [vmem:[%s21773_s1 + $0xe54] ss:$8 sps:$4 sm:$0xff]  }
 0x362   :  { %v15371_v29 = vld [vmem:[%s21773_s1 + $0x2554] ss:$8 sps:$4 sm:$0xff]   ;;  %v15402_v4 = vld [vmem:[%s21773_s1 + $0xeb0] ss:$8 sps:$4 sm:$0xff]   ;;  %v15422_v5 = vld [vmem:[%s21773_s1 + $0xee4] ss:$8 sps:$4 sm:$0xff]  }
 0x363   :  { %10453 = vmatpush1.bf16.msra.mxu1 %v15287_v12  ;;  %v15366_v12 = vld [vmem:[%s21773_s1 + $0xe50] ss:$8 sps:$4 sm:$0xff]   ;;  %vm12119_vm1 = vcmask 115712  }
 0x364   :  { %11396 = vmatpush1.bf16.msra.mxu0 %v15290_v31  ;;  %10454 = vmatprep.subr.bf16.mxu1 %v15295_v32  ;;  %v15369_v31 = vld [vmem:[%s21773_s1 + $0x2550] ss:$8 sps:$4 sm:$0xff]   ;;  %v15374_v32 = vld [vmem:[%s21773_s1 + $0xe64] ss:$8 sps:$4 sm:$0xff]  }
 0x365   :  { %11397 = vmatprep.subr.bf16.mxu0 %v15298_v46  ;;  %v15377_v46 = vld [vmem:[%s21773_s1 + $0x2564] ss:$8 sps:$4 sm:$0xff]   ;;  %v15417_v53 = vld [vmem:[%s21773_s1 + $0x25d0] ss:$8 sps:$4 sm:$0xff]  }
 0x367   :  { %10455 = vmatpush1.bf16.msra.mxu1 %v15293_v14  ;;  %v15372_v14 = vld [vmem:[%s21773_s1 + $0xe60] ss:$8 sps:$4 sm:$0xff]  }
 0x368   :  { %11398 = vmatpush1.bf16.msra.mxu0 %v15296_v34  ;;  %10456 = vmatprep.subr.bf16.mxu1 %v15301_v35  ;;  %v15375_v34 = vld [vmem:[%s21773_s1 + $0x2560] ss:$8 sps:$4 sm:$0xff]   ;;  %v15380_v35 = vld [vmem:[%s21773_s1 + $0xe74] ss:$8 sps:$4 sm:$0xff]  }
 0x369   :  { %11399 = vmatprep.subr.bf16.mxu0 %v15304_v36  ;;  %v15383_v36 = vld [vmem:[%s21773_s1 + $0x2574] ss:$8 sps:$4 sm:$0xff]  }
 0x36b   :  { %10457 = vmatpush1.bf16.msra.mxu1 %v15299_v38  ;;  %v15378_v38 = vld [vmem:[%s21773_s1 + $0xe70] ss:$8 sps:$4 sm:$0xff]  }
 0x36c   :  { %11400 = vmatpush1.bf16.msra.mxu0 %v15302_v39  ;;  %10458 = vmatprep.subr.bf16.mxu1 %v15307_v44  ;;  %v15381_v39 = vld [vmem:[%s21773_s1 + $0x2570] ss:$8 sps:$4 sm:$0xff]   ;;  %v15386_v44 = vld [vmem:[%s21773_s1 + $0xe84] ss:$8 sps:$4 sm:$0xff]  }
 0x36d   :  { %11401 = vmatprep.subr.bf16.mxu0 %v15310_v45  ;;  %v15389_v45 = vld [vmem:[%s21773_s1 + $0x2584] ss:$8 sps:$4 sm:$0xff]  }
 0x36f   :  { %10459 = vmatpush1.bf16.msra.mxu1 %v15305_v25  ;;  %v15384_v25 = vld [vmem:[%s21773_s1 + $0xe80] ss:$8 sps:$4 sm:$0xff]  }
 0x370   :  { %11402 = vmatpush1.bf16.msra.mxu0 %v15308_v47  ;;  %10460 = vmatprep.subr.bf16.mxu1 %v15313_v48  ;;  %v15387_v47 = vld [vmem:[%s21773_s1 + $0x2580] ss:$8 sps:$4 sm:$0xff]   ;;  %v15392_v48 = vld [vmem:[%s21773_s1 + $0xe94] ss:$8 sps:$4 sm:$0xff]  }
 0x371   :  { %11403 = vmatprep.subr.bf16.mxu0 %v15316_v59  ;;  %v15395_v59 = vld [vmem:[%s21773_s1 + $0x2594] ss:$8 sps:$4 sm:$0xff]  }
 0x373   :  { %10461 = vmatpush1.bf16.msra.mxu1 %v15311_v42  ;;  %v15390_v42 = vld [vmem:[%s21773_s1 + $0xe90] ss:$8 sps:$4 sm:$0xff]  }
 0x374   :  { %11404 = vmatpush1.bf16.msra.mxu0 %v15314_v51  ;;  %10462 = vmatprep.subr.bf16.mxu1 %v15319_v52  ;;  %v15393_v51 = vld [vmem:[%s21773_s1 + $0x2590] ss:$8 sps:$4 sm:$0xff]   ;;  %v15398_v52 = vld [vmem:[%s21773_s1 + $0xea4] ss:$8 sps:$4 sm:$0xff]  }
 0x375   :  { %11405 = vmatprep.subr.bf16.mxu0 %v15322_v54  ;;  %v15401_v54 = vld [vmem:[%s21773_s1 + $0x25a4] ss:$8 sps:$4 sm:$0xff]  }
 0x377   :  { %10463 = vmatpush1.bf16.msra.mxu1 %v15317_v55  ;;  %v15396_v55 = vld [vmem:[%s21773_s1 + $0xea0] ss:$8 sps:$4 sm:$0xff]  }
 0x378   :  { %11406 = vmatpush1.bf16.msra.mxu0 %v15320_v56  ;;  %10464 = vmatprep.subr.bf16.mxu1 %v15325_v27  ;;  %v15399_v56 = vld [vmem:[%s21773_s1 + $0x25a0] ss:$8 sps:$4 sm:$0xff]   ;;  %v15404_v27 = vld [vmem:[%s21773_s1 + $0xeb4] ss:$8 sps:$4 sm:$0xff]  }
 0x379   :  { %11407 = vmatprep.subr.bf16.mxu0 %v15328_v58  ;;  %v15407_v58 = vld [vmem:[%s21773_s1 + $0x25b4] ss:$8 sps:$4 sm:$0xff]  }
 0x37b   :  { %10465 = vmatpush1.bf16.msra.mxu1 %v15323_v60  ;;  %v15405_v60 = vld [vmem:[%s21773_s1 + $0x25b0] ss:$8 sps:$4 sm:$0xff]  }
 0x37c   :  { %11408 = vmatpush1.bf16.msra.mxu0 %v15326_v61  ;;  %10466 = vmatprep.subr.bf16.mxu1 %v15331_v57  ;;  %v15410_v61 = vld [vmem:[%s21773_s1 + $0xec4] ss:$8 sps:$4 sm:$0xff]  }
 0x37d   :  { %11409 = vmatprep.subr.bf16.mxu0 %v15334_v7  ;;  %v15413_v57 = vld [vmem:[%s21773_s1 + $0x25c4] ss:$8 sps:$4 sm:$0xff]   ;;  %v15408_v7 = vld [vmem:[%s21773_s1 + $0xec0] ss:$8 sps:$4 sm:$0xff]  }
 0x37f   :  { %10467 = vmatpush1.bf16.msra.mxu1 %v15329_v63  ;;  %v15411_v63 = vld [vmem:[%s21773_s1 + $0x25c0] ss:$8 sps:$4 sm:$0xff]  }
 0x380   :  { %11410 = vmatpush1.bf16.msra.mxu0 %v15332_v1  ;;  %10477 = vmatprep.subr.bf16.mxu1 %v15338_v2  ;;  %v15416_v1 = vld [vmem:[%s21773_s1 + $0xed4] ss:$8 sps:$4 sm:$0xff]  }
 0x381   :  { %11420 = vmatprep.subr.bf16.mxu0 %v15341_v3  ;;  %v15419_v2 = vld [vmem:[%s21773_s1 + $0x25d4] ss:$8 sps:$4 sm:$0xff]   ;;  %v15414_v3 = vld [vmem:[%s21773_s1 + $0xed0] ss:$8 sps:$4 sm:$0xff]  }
 0x382   :  { %10469 = vmatmul.mubr.bf16.vlgmr.msra.gmra.mrb[0].mxu1 %v605_v6  ;;  %v15425_v6 = vld [vmem:[%s21773_s1 + $0x25e4] ss:$8 sps:$4 sm:$0xff]  }
 0x383   :  { %11412 = vmatmul.mubr.bf16.vlgmr.msra.gmra.mrb[0].mxu0 %v651_v17  ;;  %10478 = vmatpush1.bf16.msra.mxu1 %v15336_v37  ;;  %v194_v17 = vcombine.high %v19348_v40, %v19348_v40  ;;  %v19562_v37 = vld [vmem:[%s21772_s0 + $0x98] sm:$0xff] }
 0x384   :  { %11421 = vmatpush1.bf16.msra.mxu0 %v15339_v8  ;;  %10479 = vmatprep.subr.bf16.mxu1 %v15344_v9  ;;  %v15420_v8 = vld [vmem:[%s21773_s1 + $0xee0] ss:$8 sps:$4 sm:$0xff]   ;;  %v15428_v40 = vld [vmem:[%s21773_s1 + $0xef4] ss:$8 sps:$4 sm:$0xff]  }
 0x385   :  { %11422 = vmatprep.subr.bf16.mxu0 %v15347_v20  ;;  %10509 = vmatprep.mubr.bf16.mxu1 %v608_v50  ;;  %v15423_v9 = vld [vmem:[%s21773_s1 + $0x25e0] ss:$8 sps:$4 sm:$0xff]   ;;  %v15431_v20 = vld [vmem:[%s21773_s1 + $0x25f4] ss:$8 sps:$4 sm:$0xff]   ;;  %v19577_v50 = vrot.slane %v194_v17, %v16509_v49  ;;  %v15499_v17 = vld [vmem:[%s21773_s1 + $0xfb0] ss:$8 sps:$4 sm:$0xff]  }
 0x386   :  { %11452 = vmatprep.mubr.bf16.mxu0 %v654_v10  ;;  %v19581_v10 = vrot.slane %v19562_v37, %v16509_v49 }
 0x387   :  { %10480 = vmatpush1.bf16.msra.mxu1 %v15342_v11  ;;  %v15426_v11 = vld [vmem:[%s21773_s1 + $0xef0] ss:$8 sps:$4 sm:$0xff]  }
 0x388   :  { %11423 = vmatpush1.bf16.msra.mxu0 %v15345_v13  ;;  %10481 = vmatprep.subr.bf16.mxu1 %v15350_v15  ;;  %v15429_v13 = vld [vmem:[%s21773_s1 + $0x25f0] ss:$8 sps:$4 sm:$0xff]   ;;  %v15434_v15 = vld [vmem:[%s21773_s1 + $0xf04] ss:$8 sps:$4 sm:$0xff]  }
 0x389   :  { %11424 = vmatprep.subr.bf16.mxu0 %v15353_v16  ;;  %v15438_v16 = vld [vmem:[%s21773_s1 + $0x2604] ss:$8 sps:$4 sm:$0xff]  }
 0x38b   :  { %10482 = vmatpush1.bf16.msra.mxu1 %v15348_v0  ;;  %v210_v0 = vcombine.high %v19577_v50, %v19577_v50 }
 0x38c   :  { %11425 = vmatpush1.bf16.msra.mxu0 %v15351_v18  ;;  %10483 = vmatprep.subr.bf16.mxu1 %v15356_v19  ;;  %v413_v18 = vcombine.high %v19581_v10, %v19581_v10  ;;  %v607_v19 = vpack.c.bf16 %v19364_v33, %v19364_v33  ;;  %v15444_v33 = vld [vmem:[%s21773_s1 + $0x2614] ss:$8 sps:$4 sm:$0xff]  }
 0x38d   :  { %11426 = vmatprep.subr.bf16.mxu0 %v15359_v30  ;;  %v653_v30 = vpack.c.bf16 %v19367_v62, %v19367_v62  ;;  %v610_v62 = vpack.c.bf16 %v210_v0, %v210_v0  ;;  %v15514_v0 = vld [vmem:[%s21773_s1 + $0x26d0] ss:$8 sps:$4 sm:$0xff]  }
 0x38f   :  { %10484 = vmatpush1.bf16.msra.mxu1 %v15354_v41  ;;  %v15432_v41 = vld [vmem:[%s21773_s1 + $0xf00] ss:$8 sps:$4 sm:$0xff]  }
 0x390   :  { %11427 = vmatpush1.bf16.msra.mxu0 %v15357_v21  ;;  %10485 = vmatprep.subr.bf16.mxu1 %v15362_v22  ;;  %v15436_v21 = vld [vmem:[%s21773_s1 + $0x2600] ss:$8 sps:$4 sm:$0xff]   ;;  %v15441_v22 = vld [vmem:[%s21773_s1 + $0xf14] ss:$8 sps:$4 sm:$0xff]  }
 0x391   :  { %11428 = vmatprep.subr.bf16.mxu0 %v15365_v23  ;;  %v656_v23 = vpack.c.bf16 %v413_v18, %v413_v18  ;;  %v15519_v18 = vld [vmem:[%s21773_s1 + $0xfe4] ss:$8 sps:$4 sm:$0xff]  }
 0x393   :  { %10486 = vmatpush1.bf16.msra.mxu1 %v15360_v24  ;;  %v15439_v24 = vld [vmem:[%s21773_s1 + $0xf10] ss:$8 sps:$4 sm:$0xff]  }
 0x394   :  { %11429 = vmatpush1.bf16.msra.mxu0 %v15363_v26  ;;  %10487 = vmatprep.subr.bf16.mxu1 %v15368_v28  ;;  %v15442_v26 = vld [vmem:[%s21773_s1 + $0x2610] ss:$8 sps:$4 sm:$0xff]   ;;  %v15447_v28 = vld [vmem:[%s21773_s1 + $0xf24] ss:$8 sps:$4 sm:$0xff]  }
 0x395   :  { %11430 = vmatprep.subr.bf16.mxu0 %v15371_v29  ;;  %v15450_v29 = vld [vmem:[%s21773_s1 + $0x2624] ss:$8 sps:$4 sm:$0xff]  }
 0x397   :  { %10488 = vmatpush1.bf16.msra.mxu1 %v15366_v12  ;;  %v15445_v12 = vld [vmem:[%s21773_s1 + $0xf20] ss:$8 sps:$4 sm:$0xff]  }
 0x398   :  { %11431 = vmatpush1.bf16.msra.mxu0 %v15369_v31  ;;  %10489 = vmatprep.subr.bf16.mxu1 %v15374_v32  ;;  %v15448_v31 = vld [vmem:[%s21773_s1 + $0x2620] ss:$8 sps:$4 sm:$0xff]   ;;  %v15453_v32 = vld [vmem:[%s21773_s1 + $0xf34] ss:$8 sps:$4 sm:$0xff]  }
 0x399   :  { %11432 = vmatprep.subr.bf16.mxu0 %v15377_v46  ;;  %v15456_v46 = vld [vmem:[%s21773_s1 + $0x2634] ss:$8 sps:$4 sm:$0xff]  }
 0x39b   :  { %10490 = vmatpush1.bf16.msra.mxu1 %v15372_v14  ;;  %v15451_v14 = vld [vmem:[%s21773_s1 + $0xf30] ss:$8 sps:$4 sm:$0xff]  }
 0x39c   :  { %11433 = vmatpush1.bf16.msra.mxu0 %v15375_v34  ;;  %10491 = vmatprep.subr.bf16.mxu1 %v15380_v35  ;;  %v15454_v34 = vld [vmem:[%s21773_s1 + $0x2630] ss:$8 sps:$4 sm:$0xff]   ;;  %v15459_v35 = vld [vmem:[%s21773_s1 + $0xf44] ss:$8 sps:$4 sm:$0xff]  }
 0x39d   :  { %11434 = vmatprep.subr.bf16.mxu0 %v15383_v36  ;;  %v15462_v36 = vld [vmem:[%s21773_s1 + $0x2644] ss:$8 sps:$4 sm:$0xff]  }
 0x39f   :  { %10492 = vmatpush1.bf16.msra.mxu1 %v15378_v38  ;;  %v15457_v38 = vld [vmem:[%s21773_s1 + $0xf40] ss:$8 sps:$4 sm:$0xff]  }
 0x3a0   :  { %11435 = vmatpush1.bf16.msra.mxu0 %v15381_v39  ;;  %10493 = vmatprep.subr.bf16.mxu1 %v15386_v44  ;;  %v15460_v39 = vld [vmem:[%s21773_s1 + $0x2640] ss:$8 sps:$4 sm:$0xff]   ;;  %v15465_v44 = vld [vmem:[%s21773_s1 + $0xf54] ss:$8 sps:$4 sm:$0xff]  }
 0x3a1   :  { %11436 = vmatprep.subr.bf16.mxu0 %v15389_v45  ;;  %v15468_v45 = vld [vmem:[%s21773_s1 + $0x2654] ss:$8 sps:$4 sm:$0xff]  }
 0x3a3   :  { %10494 = vmatpush1.bf16.msra.mxu1 %v15384_v25  ;;  %v15463_v25 = vld [vmem:[%s21773_s1 + $0xf50] ss:$8 sps:$4 sm:$0xff]  }
 0x3a4   :  { %11437 = vmatpush1.bf16.msra.mxu0 %v15387_v47  ;;  %10495 = vmatprep.subr.bf16.mxu1 %v15392_v48  ;;  %v15466_v47 = vld [vmem:[%s21773_s1 + $0x2650] ss:$8 sps:$4 sm:$0xff]   ;;  %v15471_v48 = vld [vmem:[%s21773_s1 + $0xf64] ss:$8 sps:$4 sm:$0xff]  }
 0x3a5   :  { %11438 = vmatprep.subr.bf16.mxu0 %v15395_v59  ;;  %v15474_v59 = vld [vmem:[%s21773_s1 + $0x2664] ss:$8 sps:$4 sm:$0xff]  }
 0x3a7   :  { %10496 = vmatpush1.bf16.msra.mxu1 %v15390_v42  ;;  %v15469_v42 = vld [vmem:[%s21773_s1 + $0xf60] ss:$8 sps:$4 sm:$0xff]  }
 0x3a8   :  { %11439 = vmatpush1.bf16.msra.mxu0 %v15393_v51  ;;  %10497 = vmatprep.subr.bf16.mxu1 %v15398_v52  ;;  %v15472_v51 = vld [vmem:[%s21773_s1 + $0x2660] ss:$8 sps:$4 sm:$0xff]   ;;  %v15477_v52 = vld [vmem:[%s21773_s1 + $0xf74] ss:$8 sps:$4 sm:$0xff]  }
 0x3a9   :  { %11440 = vmatprep.subr.bf16.mxu0 %v15401_v54  ;;  %v15480_v54 = vld [vmem:[%s21773_s1 + $0x2674] ss:$8 sps:$4 sm:$0xff]  }
 0x3ab   :  { %10498 = vmatpush1.bf16.msra.mxu1 %v15396_v55  ;;  %v15475_v55 = vld [vmem:[%s21773_s1 + $0xf70] ss:$8 sps:$4 sm:$0xff]  }
 0x3ac   :  { %11441 = vmatpush1.bf16.msra.mxu0 %v15399_v56  ;;  %10499 = vmatprep.subr.bf16.mxu1 %v15404_v27  ;;  %v15478_v56 = vld [vmem:[%s21773_s1 + $0x2670] ss:$8 sps:$4 sm:$0xff]   ;;  %v15483_v27 = vld [vmem:[%s21773_s1 + $0xf84] ss:$8 sps:$4 sm:$0xff]  }
 0x3ad   :  { %11442 = vmatprep.subr.bf16.mxu0 %v15407_v58  ;;  %v15486_v58 = vld [vmem:[%s21773_s1 + $0x2684] ss:$8 sps:$4 sm:$0xff]  }
 0x3af   :  { %10500 = vmatpush1.bf16.msra.mxu1 %v15402_v4  ;;  %v15481_v4 = vld [vmem:[%s21773_s1 + $0xf80] ss:$8 sps:$4 sm:$0xff]  }
 0x3b0   :  { %11443 = vmatpush1.bf16.msra.mxu0 %v15405_v60  ;;  %10501 = vmatprep.subr.bf16.mxu1 %v15410_v61  ;;  %v15484_v60 = vld [vmem:[%s21773_s1 + $0x2680] ss:$8 sps:$4 sm:$0xff]   ;;  %v15489_v61 = vld [vmem:[%s21773_s1 + $0xf94] ss:$8 sps:$4 sm:$0xff]  }
 0x3b1   :  { %11444 = vmatprep.subr.bf16.mxu0 %v15413_v57  ;;  %v15492_v57 = vld [vmem:[%s21773_s1 + $0x2694] ss:$8 sps:$4 sm:$0xff]  }
 0x3b3   :  { %10502 = vmatpush1.bf16.msra.mxu1 %v15408_v7  ;;  %v15487_v7 = vld [vmem:[%s21773_s1 + $0xf90] ss:$8 sps:$4 sm:$0xff]  }
 0x3b4   :  { %11445 = vmatpush1.bf16.msra.mxu0 %v15411_v63  ;;  %10503 = vmatprep.subr.bf16.mxu1 %v15416_v1  ;;  %v15490_v63 = vld [vmem:[%s21773_s1 + $0x2690] ss:$8 sps:$4 sm:$0xff]   ;;  %v15495_v1 = vld [vmem:[%s21773_s1 + $0xfa4] ss:$8 sps:$4 sm:$0xff]  }
 0x3b5   :  { %11446 = vmatprep.subr.bf16.mxu0 %v15419_v2  ;;  %v15498_v2 = vld [vmem:[%s21773_s1 + $0x26a4] ss:$8 sps:$4 sm:$0xff]  }
 0x3b7   :  { %10504 = vmatpush1.bf16.msra.mxu1 %v15414_v3  ;;  %v15493_v3 = vld [vmem:[%s21773_s1 + $0xfa0] ss:$8 sps:$4 sm:$0xff]  }
 0x3b8   :  { %11447 = vmatpush1.bf16.msra.mxu0 %v15417_v53  ;;  %10505 = vmatprep.subr.bf16.mxu1 %v15422_v5  ;;  %v15496_v53 = vld [vmem:[%s21773_s1 + $0x26a0] ss:$8 sps:$4 sm:$0xff]   ;;  %v15501_v5 = vld [vmem:[%s21773_s1 + $0xfb4] ss:$8 sps:$4 sm:$0xff]  }
 0x3b9   :  { %11448 = vmatprep.subr.bf16.mxu0 %v15425_v6  ;;  %v15504_v6 = vld [vmem:[%s21773_s1 + $0x26b4] ss:$8 sps:$4 sm:$0xff]  }
 0x3bb   :  { %10506 = vmatpush1.bf16.msra.mxu1 %v15420_v8  ;;  %v15502_v8 = vld [vmem:[%s21773_s1 + $0x26b0] ss:$8 sps:$4 sm:$0xff]  }
 0x3bc   :  { %11449 = vmatpush1.bf16.msra.mxu0 %v15423_v9  ;;  %10507 = vmatprep.subr.bf16.mxu1 %v15428_v40  ;;  %v15507_v9 = vld [vmem:[%s21773_s1 + $0xfc4] ss:$8 sps:$4 sm:$0xff]  }
 0x3bd   :  { %11450 = vmatprep.subr.bf16.mxu0 %v15431_v20  ;;  %v15510_v40 = vld [vmem:[%s21773_s1 + $0x26c4] ss:$8 sps:$4 sm:$0xff]   ;;  %v15505_v20 = vld [vmem:[%s21773_s1 + $0xfc0] ss:$8 sps:$4 sm:$0xff]  }
 0x3bf   :  { %10508 = vmatpush1.bf16.msra.mxu1 %v15426_v11  ;;  %v15508_v11 = vld [vmem:[%s21773_s1 + $0x26c0] ss:$8 sps:$4 sm:$0xff]  }
 0x3c0   :  { %11451 = vmatpush1.bf16.msra.mxu0 %v15429_v13  ;;  %10518 = vmatprep.subr.bf16.mxu1 %v15434_v15  ;;  %v15513_v13 = vld [vmem:[%s21773_s1 + $0xfd4] ss:$8 sps:$4 sm:$0xff]  }
 0x3c1   :  { %11461 = vmatprep.subr.bf16.mxu0 %v15438_v16  ;;  %v15516_v15 = vld [vmem:[%s21773_s1 + $0x26d4] ss:$8 sps:$4 sm:$0xff]   ;;  %v15511_v16 = vld [vmem:[%s21773_s1 + $0xfd0] ss:$8 sps:$4 sm:$0xff]  }
 0x3c2   :  { %10510 = vmatmul.mubr.bf16.vlgmr.msra.gmra.mrb[0].mxu1 %v607_v19  ;;  %v15522_v19 = vld [vmem:[%s21773_s1 + $0x26e4] ss:$8 sps:$4 sm:$0xff]  }
 0x3c3   :  { %11453 = vmatmul.mubr.bf16.vlgmr.msra.gmra.mrb[0].mxu0 %v653_v30  ;;  %10519 = vmatpush1.bf16.msra.mxu1 %v15432_v41  ;;  %v398_v30 = vcombine.high %v19562_v37, %v19562_v37  ;;  %v19776_v41 = vld [vmem:[%s21772_s0 + $0x40] sm:$0xff]  ;;  %v15525_v37 = vld [vmem:[%s21773_s1 + $0xff4] ss:$8 sps:$4 sm:$0xff]  }
 0x3c4   :  { %11462 = vmatpush1.bf16.msra.mxu0 %v15436_v21  ;;  %10520 = vmatprep.subr.bf16.mxu1 %v15441_v22  ;;  %v15517_v21 = vld [vmem:[%s21773_s1 + $0xfe0] ss:$8 sps:$4 sm:$0xff]  }
 0x3c5   :  { %11463 = vmatprep.subr.bf16.mxu0 %v15444_v33  ;;  %10550 = vmatprep.mubr.bf16.mxu1 %v610_v62  ;;  %v15520_v22 = vld [vmem:[%s21773_s1 + $0x26e0] ss:$8 sps:$4 sm:$0xff]   ;;  %v15528_v33 = vld [vmem:[%s21773_s1 + $0x26f4] ss:$8 sps:$4 sm:$0xff]   ;;  %v19792_v62 = vrot.slane %v19776_v41, %v16509_v49 }
 0x3c6   :  { %11493 = vmatprep.mubr.bf16.mxu0 %v656_v23  ;;  %v19795_v23 = vrot.slane %v398_v30, %v16509_v49  ;;  %v15596_v30 = vld [vmem:[%s21773_s1 + $0x10b0] ss:$8 sps:$4 sm:$0xff]  }
 0x3c7   :  { %10521 = vmatpush1.bf16.msra.mxu1 %v15439_v24  ;;  %v15523_v24 = vld [vmem:[%s21773_s1 + $0xff0] ss:$8 sps:$4 sm:$0xff]  }
 0x3c8   :  { %11464 = vmatpush1.bf16.msra.mxu0 %v15442_v26  ;;  %10522 = vmatprep.subr.bf16.mxu1 %v15447_v28  ;;  %v15526_v26 = vld [vmem:[%s21773_s1 + $0x26f0] ss:$8 sps:$4 sm:$0xff]   ;;  %v15532_v28 = vld [vmem:[%s21773_s1 + $0x1004] ss:$8 sps:$4 sm:$0xff]  }
 0x3c9   :  { %11465 = vmatprep.subr.bf16.mxu0 %v15450_v29  ;;  %v15535_v29 = vld [vmem:[%s21773_s1 + $0x2704] ss:$8 sps:$4 sm:$0xff]  }
 0x3cb   :  { %10523 = vmatpush1.bf16.msra.mxu1 %v15445_v12  ;;  %v226_v12 = vcombine.high %v19792_v62, %v19792_v62 }
 0x3cc   :  { %11466 = vmatpush1.bf16.msra.mxu0 %v15448_v31  ;;  %10524 = vmatprep.subr.bf16.mxu1 %v15453_v32  ;;  %v414_v31 = vcombine.high %v19795_v23, %v19795_v23  ;;  %v609_v32 = vpack.c.bf16 %v19577_v50, %v19577_v50  ;;  %v15541_v50 = vld [vmem:[%s21773_s1 + $0x2714] ss:$8 sps:$4 sm:$0xff]  }
 0x3cd   :  { %11467 = vmatprep.subr.bf16.mxu0 %v15456_v46  ;;  %v655_v46 = vpack.c.bf16 %v19581_v10, %v19581_v10  ;;  %v612_v10 = vpack.c.bf16 %v226_v12, %v226_v12  ;;  %v15611_v12 = vld [vmem:[%s21773_s1 + $0x27d0] ss:$8 sps:$4 sm:$0xff]  }
 0x3cf   :  { %10525 = vmatpush1.bf16.msra.mxu1 %v15451_v14  ;;  %v15530_v14 = vld [vmem:[%s21773_s1 + $0x1000] ss:$8 sps:$4 sm:$0xff]  }
 0x3d0   :  { %11468 = vmatpush1.bf16.msra.mxu0 %v15454_v34  ;;  %10526 = vmatprep.subr.bf16.mxu1 %v15459_v35  ;;  %v15533_v34 = vld [vmem:[%s21773_s1 + $0x2700] ss:$8 sps:$4 sm:$0xff]   ;;  %v15538_v35 = vld [vmem:[%s21773_s1 + $0x1014] ss:$8 sps:$4 sm:$0xff]  }
 0x3d1   :  { %11469 = vmatprep.subr.bf16.mxu0 %v15462_v36  ;;  %v658_v36 = vpack.c.bf16 %v414_v31, %v414_v31  ;;  %v15616_v31 = vld [vmem:[%s21773_s1 + $0x10e4] ss:$8 sps:$4 sm:$0xff]  }
 0x3d3   :  { %10527 = vmatpush1.bf16.msra.mxu1 %v15457_v38  ;;  %v15536_v38 = vld [vmem:[%s21773_s1 + $0x1010] ss:$8 sps:$4 sm:$0xff]  }
 0x3d4   :  { %11470 = vmatpush1.bf16.msra.mxu0 %v15460_v39  ;;  %10528 = vmatprep.subr.bf16.mxu1 %v15465_v44  ;;  %v15539_v39 = vld [vmem:[%s21773_s1 + $0x2710] ss:$8 sps:$4 sm:$0xff]   ;;  %v15544_v44 = vld [vmem:[%s21773_s1 + $0x1024] ss:$8 sps:$4 sm:$0xff]  }
 0x3d5   :  { %11471 = vmatprep.subr.bf16.mxu0 %v15468_v45  ;;  %v15547_v45 = vld [vmem:[%s21773_s1 + $0x2724] ss:$8 sps:$4 sm:$0xff]  }
 0x3d7   :  { %10529 = vmatpush1.bf16.msra.mxu1 %v15463_v25  ;;  %v15542_v25 = vld [vmem:[%s21773_s1 + $0x1020] ss:$8 sps:$4 sm:$0xff]  }
 0x3d8   :  { %11472 = vmatpush1.bf16.msra.mxu0 %v15466_v47  ;;  %10530 = vmatprep.subr.bf16.mxu1 %v15471_v48  ;;  %v15545_v47 = vld [vmem:[%s21773_s1 + $0x2720] ss:$8 sps:$4 sm:$0xff]   ;;  %v15550_v48 = vld [vmem:[%s21773_s1 + $0x1034] ss:$8 sps:$4 sm:$0xff]  }
 0x3d9   :  { %11473 = vmatprep.subr.bf16.mxu0 %v15474_v59  ;;  %v15553_v59 = vld [vmem:[%s21773_s1 + $0x2734] ss:$8 sps:$4 sm:$0xff]  }
 0x3db   :  { %10531 = vmatpush1.bf16.msra.mxu1 %v15469_v42  ;;  %v15548_v42 = vld [vmem:[%s21773_s1 + $0x1030] ss:$8 sps:$4 sm:$0xff]  }
 0x3dc   :  { %11474 = vmatpush1.bf16.msra.mxu0 %v15472_v51  ;;  %10532 = vmatprep.subr.bf16.mxu1 %v15477_v52  ;;  %v15551_v51 = vld [vmem:[%s21773_s1 + $0x2730] ss:$8 sps:$4 sm:$0xff]   ;;  %v15556_v52 = vld [vmem:[%s21773_s1 + $0x1044] ss:$8 sps:$4 sm:$0xff]  }
 0x3dd   :  { %11475 = vmatprep.subr.bf16.mxu0 %v15480_v54  ;;  %v15559_v54 = vld [vmem:[%s21773_s1 + $0x2744] ss:$8 sps:$4 sm:$0xff]  }
 0x3df   :  { %10533 = vmatpush1.bf16.msra.mxu1 %v15475_v55  ;;  %v15554_v55 = vld [vmem:[%s21773_s1 + $0x1040] ss:$8 sps:$4 sm:$0xff]  }
 0x3e0   :  { %11476 = vmatpush1.bf16.msra.mxu0 %v15478_v56  ;;  %10534 = vmatprep.subr.bf16.mxu1 %v15483_v27  ;;  %v15557_v56 = vld [vmem:[%s21773_s1 + $0x2740] ss:$8 sps:$4 sm:$0xff]   ;;  %v15562_v27 = vld [vmem:[%s21773_s1 + $0x1054] ss:$8 sps:$4 sm:$0xff]  }
 0x3e1   :  { %11477 = vmatprep.subr.bf16.mxu0 %v15486_v58  ;;  %v15565_v58 = vld [vmem:[%s21773_s1 + $0x2754] ss:$8 sps:$4 sm:$0xff]  }
 0x3e3   :  { %10535 = vmatpush1.bf16.msra.mxu1 %v15481_v4  ;;  %v15560_v4 = vld [vmem:[%s21773_s1 + $0x1050] ss:$8 sps:$4 sm:$0xff]  }
 0x3e4   :  { %11478 = vmatpush1.bf16.msra.mxu0 %v15484_v60  ;;  %10536 = vmatprep.subr.bf16.mxu1 %v15489_v61  ;;  %v15563_v60 = vld [vmem:[%s21773_s1 + $0x2750] ss:$8 sps:$4 sm:$0xff]   ;;  %v15568_v61 = vld [vmem:[%s21773_s1 + $0x1064] ss:$8 sps:$4 sm:$0xff]  }
 0x3e5   :  { %11479 = vmatprep.subr.bf16.mxu0 %v15492_v57  ;;  %v15571_v57 = vld [vmem:[%s21773_s1 + $0x2764] ss:$8 sps:$4 sm:$0xff]  }
 0x3e7   :  { %10537 = vmatpush1.bf16.msra.mxu1 %v15487_v7  ;;  %v15566_v7 = vld [vmem:[%s21773_s1 + $0x1060] ss:$8 sps:$4 sm:$0xff]  }
 0x3e8   :  { %11480 = vmatpush1.bf16.msra.mxu0 %v15490_v63  ;;  %10538 = vmatprep.subr.bf16.mxu1 %v15495_v1  ;;  %v15569_v63 = vld [vmem:[%s21773_s1 + $0x2760] ss:$8 sps:$4 sm:$0xff]   ;;  %v15574_v1 = vld [vmem:[%s21773_s1 + $0x1074] ss:$8 sps:$4 sm:$0xff]  }
 0x3e9   :  { %11481 = vmatprep.subr.bf16.mxu0 %v15498_v2  ;;  %v15577_v2 = vld [vmem:[%s21773_s1 + $0x2774] ss:$8 sps:$4 sm:$0xff]  }
 0x3eb   :  { %10539 = vmatpush1.bf16.msra.mxu1 %v15493_v3  ;;  %v15572_v3 = vld [vmem:[%s21773_s1 + $0x1070] ss:$8 sps:$4 sm:$0xff]  }
 0x3ec   :  { %11482 = vmatpush1.bf16.msra.mxu0 %v15496_v53  ;;  %10540 = vmatprep.subr.bf16.mxu1 %v15501_v5  ;;  %v15575_v53 = vld [vmem:[%s21773_s1 + $0x2770] ss:$8 sps:$4 sm:$0xff]   ;;  %v15580_v5 = vld [vmem:[%s21773_s1 + $0x1084] ss:$8 sps:$4 sm:$0xff]  }
 0x3ed   :  { %11483 = vmatprep.subr.bf16.mxu0 %v15504_v6  ;;  %v15583_v6 = vld [vmem:[%s21773_s1 + $0x2784] ss:$8 sps:$4 sm:$0xff]  }
 0x3ef   :  { %10541 = vmatpush1.bf16.msra.mxu1 %v15499_v17  ;;  %v15578_v17 = vld [vmem:[%s21773_s1 + $0x1080] ss:$8 sps:$4 sm:$0xff]  }
 0x3f0   :  { %11484 = vmatpush1.bf16.msra.mxu0 %v15502_v8  ;;  %10542 = vmatprep.subr.bf16.mxu1 %v15507_v9  ;;  %v15581_v8 = vld [vmem:[%s21773_s1 + $0x2780] ss:$8 sps:$4 sm:$0xff]   ;;  %v15586_v9 = vld [vmem:[%s21773_s1 + $0x1094] ss:$8 sps:$4 sm:$0xff]  }
 0x3f1   :  { %11485 = vmatprep.subr.bf16.mxu0 %v15510_v40  ;;  %v15589_v40 = vld [vmem:[%s21773_s1 + $0x2794] ss:$8 sps:$4 sm:$0xff]  }
 0x3f3   :  { %10543 = vmatpush1.bf16.msra.mxu1 %v15505_v20  ;;  %v15584_v20 = vld [vmem:[%s21773_s1 + $0x1090] ss:$8 sps:$4 sm:$0xff]  }
 0x3f4   :  { %11486 = vmatpush1.bf16.msra.mxu0 %v15508_v11  ;;  %10544 = vmatprep.subr.bf16.mxu1 %v15513_v13  ;;  %v15587_v11 = vld [vmem:[%s21773_s1 + $0x2790] ss:$8 sps:$4 sm:$0xff]   ;;  %v15592_v13 = vld [vmem:[%s21773_s1 + $0x10a4] ss:$8 sps:$4 sm:$0xff]  }
 0x3f5   :  { %11487 = vmatprep.subr.bf16.mxu0 %v15516_v15  ;;  %v15595_v15 = vld [vmem:[%s21773_s1 + $0x27a4] ss:$8 sps:$4 sm:$0xff]  }
 0x3f7   :  { %10545 = vmatpush1.bf16.msra.mxu1 %v15511_v16  ;;  %v15590_v16 = vld [vmem:[%s21773_s1 + $0x10a0] ss:$8 sps:$4 sm:$0xff]  }
 0x3f8   :  { %11488 = vmatpush1.bf16.msra.mxu0 %v15514_v0  ;;  %10546 = vmatprep.subr.bf16.mxu1 %v15519_v18  ;;  %v15593_v0 = vld [vmem:[%s21773_s1 + $0x27a0] ss:$8 sps:$4 sm:$0xff]   ;;  %v15598_v18 = vld [vmem:[%s21773_s1 + $0x10b4] ss:$8 sps:$4 sm:$0xff]  }
 0x3f9   :  { %11489 = vmatprep.subr.bf16.mxu0 %v15522_v19  ;;  %v15601_v19 = vld [vmem:[%s21773_s1 + $0x27b4] ss:$8 sps:$4 sm:$0xff]  }
 0x3fb   :  { %10547 = vmatpush1.bf16.msra.mxu1 %v15517_v21  ;;  %v15599_v21 = vld [vmem:[%s21773_s1 + $0x27b0] ss:$8 sps:$4 sm:$0xff]  }
 0x3fc   :  { %11490 = vmatpush1.bf16.msra.mxu0 %v15520_v22  ;;  %10548 = vmatprep.subr.bf16.mxu1 %v15525_v37  ;;  %v15604_v22 = vld [vmem:[%s21773_s1 + $0x10c4] ss:$8 sps:$4 sm:$0xff]  }
 0x3fd   :  { %11491 = vmatprep.subr.bf16.mxu0 %v15528_v33  ;;  %v15607_v37 = vld [vmem:[%s21773_s1 + $0x27c4] ss:$8 sps:$4 sm:$0xff]   ;;  %v15602_v33 = vld [vmem:[%s21773_s1 + $0x10c0] ss:$8 sps:$4 sm:$0xff]  }
 0x3ff   :  { %10549 = vmatpush1.bf16.msra.mxu1 %v15523_v24  ;;  %v15605_v24 = vld [vmem:[%s21773_s1 + $0x27c0] ss:$8 sps:$4 sm:$0xff]  }
 0x400   :  { %11492 = vmatpush1.bf16.msra.mxu0 %v15526_v26  ;;  %10559 = vmatprep.subr.bf16.mxu1 %v15532_v28  ;;  %v15610_v26 = vld [vmem:[%s21773_s1 + $0x10d4] ss:$8 sps:$4 sm:$0xff]  }
 0x401   :  { %11502 = vmatprep.subr.bf16.mxu0 %v15535_v29  ;;  %v15613_v28 = vld [vmem:[%s21773_s1 + $0x27d4] ss:$8 sps:$4 sm:$0xff]   ;;  %v15608_v29 = vld [vmem:[%s21773_s1 + $0x10d0] ss:$8 sps:$4 sm:$0xff]  }
 0x402   :  { %10551 = vmatmul.mubr.bf16.vlgmr.msra.gmra.mrb[0].mxu1 %v609_v32  ;;  %v15619_v32 = vld [vmem:[%s21773_s1 + $0x27e4] ss:$8 sps:$4 sm:$0xff]  }
 0x403   :  { %11494 = vmatmul.mubr.bf16.vlgmr.msra.gmra.mrb[0].mxu0 %v655_v46  ;;  %10560 = vmatpush1.bf16.msra.mxu1 %v15530_v14  ;;  %v211_v46 = vcombine.high %v19776_v41, %v19776_v41  ;;  %v19990_v14 = vld [vmem:[%s21772_s0 + $0xa0] sm:$0xff]  ;;  %v15622_v41 = vld [vmem:[%s21773_s1 + $0x10f4] ss:$8 sps:$4 sm:$0xff]  }
 0x404   :  { %11503 = vmatpush1.bf16.msra.mxu0 %v15533_v34  ;;  %10561 = vmatprep.subr.bf16.mxu1 %v15538_v35  ;;  %v15614_v34 = vld [vmem:[%s21773_s1 + $0x10e0] ss:$8 sps:$4 sm:$0xff]  }
 0x405   :  { %11504 = vmatprep.subr.bf16.mxu0 %v15541_v50  ;;  %10591 = vmatprep.mubr.bf16.mxu1 %v612_v10  ;;  %v15617_v35 = vld [vmem:[%s21773_s1 + $0x27e0] ss:$8 sps:$4 sm:$0xff]   ;;  %v15625_v50 = vld [vmem:[%s21773_s1 + $0x27f4] ss:$8 sps:$4 sm:$0xff]   ;;  %v20005_v10 = vrot.slane %v211_v46, %v16509_v49  ;;  %v15693_v46 = vld [vmem:[%s21773_s1 + $0x11b0] ss:$8 sps:$4 sm:$0xff]  }
 0x406   :  { %11534 = vmatprep.mubr.bf16.mxu0 %v658_v36  ;;  %v20009_v36 = vrot.slane %v19990_v14, %v16509_v49 }
 0x407   :  { %10562 = vmatpush1.bf16.msra.mxu1 %v15536_v38  ;;  %v15620_v38 = vld [vmem:[%s21773_s1 + $0x10f0] ss:$8 sps:$4 sm:$0xff]  }
 0x408   :  { %11505 = vmatpush1.bf16.msra.mxu0 %v15539_v39  ;;  %10563 = vmatprep.subr.bf16.mxu1 %v15544_v44  ;;  %v15623_v39 = vld [vmem:[%s21773_s1 + $0x27f0] ss:$8 sps:$4 sm:$0xff]   ;;  %v15628_v44 = vld [vmem:[%s21773_s1 + $0x1104] ss:$8 sps:$4 sm:$0xff]  }
 0x409   :  { %11506 = vmatprep.subr.bf16.mxu0 %v15547_v45  ;;  %v15632_v45 = vld [vmem:[%s21773_s1 + $0x2804] ss:$8 sps:$4 sm:$0xff]  }
 0x40b   :  { %10564 = vmatpush1.bf16.msra.mxu1 %v15542_v25  ;;  %v227_v25 = vcombine.high %v20005_v10, %v20005_v10 }
 0x40c   :  { %11507 = vmatpush1.bf16.msra.mxu0 %v15545_v47  ;;  %10565 = vmatprep.subr.bf16.mxu1 %v15550_v48  ;;  %v430_v47 = vcombine.high %v20009_v36, %v20009_v36  ;;  %v611_v48 = vpack.c.bf16 %v19792_v62, %v19792_v62  ;;  %v15638_v62 = vld [vmem:[%s21773_s1 + $0x2814] ss:$8 sps:$4 sm:$0xff]  }
 0x40d   :  { %11508 = vmatprep.subr.bf16.mxu0 %v15553_v59  ;;  %v657_v59 = vpack.c.bf16 %v19795_v23, %v19795_v23  ;;  %v614_v23 = vpack.c.bf16 %v227_v25, %v227_v25  ;;  %v15708_v25 = vld [vmem:[%s21773_s1 + $0x28d0] ss:$8 sps:$4 sm:$0xff]  }
 0x40f   :  { %10566 = vmatpush1.bf16.msra.mxu1 %v15548_v42  ;;  %v15626_v42 = vld [vmem:[%s21773_s1 + $0x1100] ss:$8 sps:$4 sm:$0xff]  }
 0x410   :  { %11509 = vmatpush1.bf16.msra.mxu0 %v15551_v51  ;;  %10567 = vmatprep.subr.bf16.mxu1 %v15556_v52  ;;  %v15630_v51 = vld [vmem:[%s21773_s1 + $0x2800] ss:$8 sps:$4 sm:$0xff]   ;;  %v15635_v52 = vld [vmem:[%s21773_s1 + $0x1114] ss:$8 sps:$4 sm:$0xff]  }
 0x411   :  { %11510 = vmatprep.subr.bf16.mxu0 %v15559_v54  ;;  %v660_v54 = vpack.c.bf16 %v430_v47, %v430_v47  ;;  %v15713_v47 = vld [vmem:[%s21773_s1 + $0x11e4] ss:$8 sps:$4 sm:$0xff]  }
 0x413   :  { %10568 = vmatpush1.bf16.msra.mxu1 %v15554_v55  ;;  %v15633_v55 = vld [vmem:[%s21773_s1 + $0x1110] ss:$8 sps:$4 sm:$0xff]  }
 0x414   :  { %11511 = vmatpush1.bf16.msra.mxu0 %v15557_v56  ;;  %10569 = vmatprep.subr.bf16.mxu1 %v15562_v27  ;;  %v15636_v56 = vld [vmem:[%s21773_s1 + $0x2810] ss:$8 sps:$4 sm:$0xff]   ;;  %v15641_v27 = vld [vmem:[%s21773_s1 + $0x1124] ss:$8 sps:$4 sm:$0xff]  }
 0x415   :  { %11512 = vmatprep.subr.bf16.mxu0 %v15565_v58  ;;  %v15644_v58 = vld [vmem:[%s21773_s1 + $0x2824] ss:$8 sps:$4 sm:$0xff]  }
 0x417   :  { %10570 = vmatpush1.bf16.msra.mxu1 %v15560_v4  ;;  %v15639_v4 = vld [vmem:[%s21773_s1 + $0x1120] ss:$8 sps:$4 sm:$0xff]  }
 0x418   :  { %11513 = vmatpush1.bf16.msra.mxu0 %v15563_v60  ;;  %10571 = vmatprep.subr.bf16.mxu1 %v15568_v61  ;;  %v15642_v60 = vld [vmem:[%s21773_s1 + $0x2820] ss:$8 sps:$4 sm:$0xff]   ;;  %v15647_v61 = vld [vmem:[%s21773_s1 + $0x1134] ss:$8 sps:$4 sm:$0xff]  }
 0x419   :  { %11514 = vmatprep.subr.bf16.mxu0 %v15571_v57  ;;  %v15650_v57 = vld [vmem:[%s21773_s1 + $0x2834] ss:$8 sps:$4 sm:$0xff]  }
 0x41b   :  { %10572 = vmatpush1.bf16.msra.mxu1 %v15566_v7  ;;  %v15645_v7 = vld [vmem:[%s21773_s1 + $0x1130] ss:$8 sps:$4 sm:$0xff]  }
 0x41c   :  { %11515 = vmatpush1.bf16.msra.mxu0 %v15569_v63  ;;  %10573 = vmatprep.subr.bf16.mxu1 %v15574_v1  ;;  %v15648_v63 = vld [vmem:[%s21773_s1 + $0x2830] ss:$8 sps:$4 sm:$0xff]   ;;  %v15653_v1 = vld [vmem:[%s21773_s1 + $0x1144] ss:$8 sps:$4 sm:$0xff]  }
 0x41d   :  { %11516 = vmatprep.subr.bf16.mxu0 %v15577_v2  ;;  %v15656_v2 = vld [vmem:[%s21773_s1 + $0x2844] ss:$8 sps:$4 sm:$0xff]  }
 0x41f   :  { %10574 = vmatpush1.bf16.msra.mxu1 %v15572_v3  ;;  %v15651_v3 = vld [vmem:[%s21773_s1 + $0x1140] ss:$8 sps:$4 sm:$0xff]  }
 0x420   :  { %11517 = vmatpush1.bf16.msra.mxu0 %v15575_v53  ;;  %10575 = vmatprep.subr.bf16.mxu1 %v15580_v5  ;;  %v15654_v53 = vld [vmem:[%s21773_s1 + $0x2840] ss:$8 sps:$4 sm:$0xff]   ;;  %v15659_v5 = vld [vmem:[%s21773_s1 + $0x1154] ss:$8 sps:$4 sm:$0xff]  }
 0x421   :  { %11518 = vmatprep.subr.bf16.mxu0 %v15583_v6  ;;  %v15662_v6 = vld [vmem:[%s21773_s1 + $0x2854] ss:$8 sps:$4 sm:$0xff]  }
 0x423   :  { %10576 = vmatpush1.bf16.msra.mxu1 %v15578_v17  ;;  %v15657_v17 = vld [vmem:[%s21773_s1 + $0x1150] ss:$8 sps:$4 sm:$0xff]  }
 0x424   :  { %11519 = vmatpush1.bf16.msra.mxu0 %v15581_v8  ;;  %10577 = vmatprep.subr.bf16.mxu1 %v15586_v9  ;;  %v15660_v8 = vld [vmem:[%s21773_s1 + $0x2850] ss:$8 sps:$4 sm:$0xff]   ;;  %v15665_v9 = vld [vmem:[%s21773_s1 + $0x1164] ss:$8 sps:$4 sm:$0xff]  }
 0x425   :  { %11520 = vmatprep.subr.bf16.mxu0 %v15589_v40  ;;  %v15668_v40 = vld [vmem:[%s21773_s1 + $0x2864] ss:$8 sps:$4 sm:$0xff]  }
 0x427   :  { %10578 = vmatpush1.bf16.msra.mxu1 %v15584_v20  ;;  %v15663_v20 = vld [vmem:[%s21773_s1 + $0x1160] ss:$8 sps:$4 sm:$0xff]  }
 0x428   :  { %11521 = vmatpush1.bf16.msra.mxu0 %v15587_v11  ;;  %10579 = vmatprep.subr.bf16.mxu1 %v15592_v13  ;;  %v15666_v11 = vld [vmem:[%s21773_s1 + $0x2860] ss:$8 sps:$4 sm:$0xff]   ;;  %v15671_v13 = vld [vmem:[%s21773_s1 + $0x1174] ss:$8 sps:$4 sm:$0xff]  }
 0x429   :  { %11522 = vmatprep.subr.bf16.mxu0 %v15595_v15  ;;  %v15674_v15 = vld [vmem:[%s21773_s1 + $0x2874] ss:$8 sps:$4 sm:$0xff]  }
 0x42b   :  { %10580 = vmatpush1.bf16.msra.mxu1 %v15590_v16  ;;  %v15669_v16 = vld [vmem:[%s21773_s1 + $0x1170] ss:$8 sps:$4 sm:$0xff]  }
 0x42c   :  { %11523 = vmatpush1.bf16.msra.mxu0 %v15593_v0  ;;  %10581 = vmatprep.subr.bf16.mxu1 %v15598_v18  ;;  %v15672_v0 = vld [vmem:[%s21773_s1 + $0x2870] ss:$8 sps:$4 sm:$0xff]   ;;  %v15677_v18 = vld [vmem:[%s21773_s1 + $0x1184] ss:$8 sps:$4 sm:$0xff]  }
 0x42d   :  { %11524 = vmatprep.subr.bf16.mxu0 %v15601_v19  ;;  %v15680_v19 = vld [vmem:[%s21773_s1 + $0x2884] ss:$8 sps:$4 sm:$0xff]  }
 0x42f   :  { %10582 = vmatpush1.bf16.msra.mxu1 %v15596_v30  ;;  %v15675_v30 = vld [vmem:[%s21773_s1 + $0x1180] ss:$8 sps:$4 sm:$0xff]  }
 0x430   :  { %11525 = vmatpush1.bf16.msra.mxu0 %v15599_v21  ;;  %10583 = vmatprep.subr.bf16.mxu1 %v15604_v22  ;;  %v15678_v21 = vld [vmem:[%s21773_s1 + $0x2880] ss:$8 sps:$4 sm:$0xff]   ;;  %v15683_v22 = vld [vmem:[%s21773_s1 + $0x1194] ss:$8 sps:$4 sm:$0xff]  }
 0x431   :  { %11526 = vmatprep.subr.bf16.mxu0 %v15607_v37  ;;  %v15686_v37 = vld [vmem:[%s21773_s1 + $0x2894] ss:$8 sps:$4 sm:$0xff]  }
 0x433   :  { %10584 = vmatpush1.bf16.msra.mxu1 %v15602_v33  ;;  %v15681_v33 = vld [vmem:[%s21773_s1 + $0x1190] ss:$8 sps:$4 sm:$0xff]  }
 0x434   :  { %11527 = vmatpush1.bf16.msra.mxu0 %v15605_v24  ;;  %10585 = vmatprep.subr.bf16.mxu1 %v15610_v26  ;;  %v15684_v24 = vld [vmem:[%s21773_s1 + $0x2890] ss:$8 sps:$4 sm:$0xff]   ;;  %v15689_v26 = vld [vmem:[%s21773_s1 + $0x11a4] ss:$8 sps:$4 sm:$0xff]  }
 0x435   :  { %11528 = vmatprep.subr.bf16.mxu0 %v15613_v28  ;;  %v15692_v28 = vld [vmem:[%s21773_s1 + $0x28a4] ss:$8 sps:$4 sm:$0xff]  }
 0x437   :  { %10586 = vmatpush1.bf16.msra.mxu1 %v15608_v29  ;;  %v15687_v29 = vld [vmem:[%s21773_s1 + $0x11a0] ss:$8 sps:$4 sm:$0xff]  }
 0x438   :  { %11529 = vmatpush1.bf16.msra.mxu0 %v15611_v12  ;;  %10587 = vmatprep.subr.bf16.mxu1 %v15616_v31  ;;  %v15690_v12 = vld [vmem:[%s21773_s1 + $0x28a0] ss:$8 sps:$4 sm:$0xff]   ;;  %v15695_v31 = vld [vmem:[%s21773_s1 + $0x11b4] ss:$8 sps:$4 sm:$0xff]  }
 0x439   :  { %11530 = vmatprep.subr.bf16.mxu0 %v15619_v32  ;;  %v15698_v32 = vld [vmem:[%s21773_s1 + $0x28b4] ss:$8 sps:$4 sm:$0xff]  }
 0x43b   :  { %10588 = vmatpush1.bf16.msra.mxu1 %v15614_v34  ;;  %v15696_v34 = vld [vmem:[%s21773_s1 + $0x28b0] ss:$8 sps:$4 sm:$0xff]  }
 0x43c   :  { %11531 = vmatpush1.bf16.msra.mxu0 %v15617_v35  ;;  %10589 = vmatprep.subr.bf16.mxu1 %v15622_v41  ;;  %v15701_v35 = vld [vmem:[%s21773_s1 + $0x11c4] ss:$8 sps:$4 sm:$0xff]  }
 0x43d   :  { %11532 = vmatprep.subr.bf16.mxu0 %v15625_v50  ;;  %v15704_v41 = vld [vmem:[%s21773_s1 + $0x28c4] ss:$8 sps:$4 sm:$0xff]   ;;  %v15699_v50 = vld [vmem:[%s21773_s1 + $0x11c0] ss:$8 sps:$4 sm:$0xff]  }
 0x43f   :  { %10590 = vmatpush1.bf16.msra.mxu1 %v15620_v38  ;;  %v15702_v38 = vld [vmem:[%s21773_s1 + $0x28c0] ss:$8 sps:$4 sm:$0xff]  }
 0x440   :  { %11533 = vmatpush1.bf16.msra.mxu0 %v15623_v39  ;;  %10600 = vmatprep.subr.bf16.mxu1 %v15628_v44  ;;  %v15707_v39 = vld [vmem:[%s21773_s1 + $0x11d4] ss:$8 sps:$4 sm:$0xff]  }
 0x441   :  { %11543 = vmatprep.subr.bf16.mxu0 %v15632_v45  ;;  %v15710_v44 = vld [vmem:[%s21773_s1 + $0x28d4] ss:$8 sps:$4 sm:$0xff]   ;;  %v15705_v45 = vld [vmem:[%s21773_s1 + $0x11d0] ss:$8 sps:$4 sm:$0xff]  }
 0x442   :  { %10592 = vmatmul.mubr.bf16.vlgmr.msra.gmra.mrb[0].mxu1 %v611_v48  ;;  %v15716_v48 = vld [vmem:[%s21773_s1 + $0x28e4] ss:$8 sps:$4 sm:$0xff]  }
 0x443   :  { %11535 = vmatmul.mubr.bf16.vlgmr.msra.gmra.mrb[0].mxu0 %v657_v59  ;;  %10601 = vmatpush1.bf16.msra.mxu1 %v15626_v42  ;;  %v415_v59 = vcombine.high %v19990_v14, %v19990_v14  ;;  %v20204_v42 = vld [vmem:[%s21772_s0 + $0x48] sm:$0xff]  ;;  %v15719_v14 = vld [vmem:[%s21773_s1 + $0x11f4] ss:$8 sps:$4 sm:$0xff]  }
 0x444   :  { %11544 = vmatpush1.bf16.msra.mxu0 %v15630_v51  ;;  %10602 = vmatprep.subr.bf16.mxu1 %v15635_v52  ;;  %v15711_v51 = vld [vmem:[%s21773_s1 + $0x11e0] ss:$8 sps:$4 sm:$0xff]  }
 0x445   :  { %11545 = vmatprep.subr.bf16.mxu0 %v15638_v62  ;;  %10632 = vmatprep.mubr.bf16.mxu1 %v614_v23  ;;  %v15714_v52 = vld [vmem:[%s21773_s1 + $0x28e0] ss:$8 sps:$4 sm:$0xff]   ;;  %v15722_v62 = vld [vmem:[%s21773_s1 + $0x28f4] ss:$8 sps:$4 sm:$0xff]   ;;  %v20220_v23 = vrot.slane %v20204_v42, %v16509_v49 }
 0x446   :  { %11575 = vmatprep.mubr.bf16.mxu0 %v660_v54  ;;  %v20223_v54 = vrot.slane %v415_v59, %v16509_v49  ;;  %v15790_v59 = vld [vmem:[%s21773_s1 + $0x12b0] ss:$8 sps:$4 sm:$0xff]  }
 0x447   :  { %10603 = vmatpush1.bf16.msra.mxu1 %v15633_v55  ;;  %v15717_v55 = vld [vmem:[%s21773_s1 + $0x11f0] ss:$8 sps:$4 sm:$0xff]  }
 0x448   :  { %11546 = vmatpush1.bf16.msra.mxu0 %v15636_v56  ;;  %10604 = vmatprep.subr.bf16.mxu1 %v15641_v27  ;;  %v15720_v56 = vld [vmem:[%s21773_s1 + $0x28f0] ss:$8 sps:$4 sm:$0xff]   ;;  %v15726_v27 = vld [vmem:[%s21773_s1 + $0x1204] ss:$8 sps:$4 sm:$0xff]  }
 0x449   :  { %11547 = vmatprep.subr.bf16.mxu0 %v15644_v58  ;;  %v15729_v58 = vld [vmem:[%s21773_s1 + $0x2904] ss:$8 sps:$4 sm:$0xff]  }
 0x44b   :  { %10605 = vmatpush1.bf16.msra.mxu1 %v15639_v4  ;;  %v243_v4 = vcombine.high %v20220_v23, %v20220_v23 }
 0x44c   :  { %11548 = vmatpush1.bf16.msra.mxu0 %v15642_v60  ;;  %10606 = vmatprep.subr.bf16.mxu1 %v15647_v61  ;;  %v431_v60 = vcombine.high %v20223_v54, %v20223_v54  ;;  %v613_v61 = vpack.c.bf16 %v20005_v10, %v20005_v10  ;;  %v15735_v10 = vld [vmem:[%s21773_s1 + $0x2914] ss:$8 sps:$4 sm:$0xff]  }
 0x44d   :  { %11549 = vmatprep.subr.bf16.mxu0 %v15650_v57  ;;  %v659_v57 = vpack.c.bf16 %v20009_v36, %v20009_v36  ;;  %v616_v36 = vpack.c.bf16 %v243_v4, %v243_v4  ;;  %v15805_v4 = vld [vmem:[%s21773_s1 + $0x29d0] ss:$8 sps:$4 sm:$0xff]  }
 0x44f   :  { %10607 = vmatpush1.bf16.msra.mxu1 %v15645_v7  ;;  %v15724_v7 = vld [vmem:[%s21773_s1 + $0x1200] ss:$8 sps:$4 sm:$0xff]  }
 0x450   :  { %11550 = vmatpush1.bf16.msra.mxu0 %v15648_v63  ;;  %10608 = vmatprep.subr.bf16.mxu1 %v15653_v1  ;;  %v15727_v63 = vld [vmem:[%s21773_s1 + $0x2900] ss:$8 sps:$4 sm:$0xff]   ;;  %v15732_v1 = vld [vmem:[%s21773_s1 + $0x1214] ss:$8 sps:$4 sm:$0xff]  }
 0x451   :  { %11551 = vmatprep.subr.bf16.mxu0 %v15656_v2  ;;  %v662_v2 = vpack.c.bf16 %v431_v60, %v431_v60  ;;  %v15810_v60 = vld [vmem:[%s21773_s1 + $0x12e4] ss:$8 sps:$4 sm:$0xff]  }
 0x453   :  { %10609 = vmatpush1.bf16.msra.mxu1 %v15651_v3  ;;  %v15730_v3 = vld [vmem:[%s21773_s1 + $0x1210] ss:$8 sps:$4 sm:$0xff]  }
 0x454   :  { %11552 = vmatpush1.bf16.msra.mxu0 %v15654_v53  ;;  %10610 = vmatprep.subr.bf16.mxu1 %v15659_v5  ;;  %v15733_v53 = vld [vmem:[%s21773_s1 + $0x2910] ss:$8 sps:$4 sm:$0xff]   ;;  %v15738_v5 = vld [vmem:[%s21773_s1 + $0x1224] ss:$8 sps:$4 sm:$0xff]  }
 0x455   :  { %11553 = vmatprep.subr.bf16.mxu0 %v15662_v6  ;;  %v15741_v6 = vld [vmem:[%s21773_s1 + $0x2924] ss:$8 sps:$4 sm:$0xff]  }
 0x457   :  { %10611 = vmatpush1.bf16.msra.mxu1 %v15657_v17  ;;  %v15736_v17 = vld [vmem:[%s21773_s1 + $0x1220] ss:$8 sps:$4 sm:$0xff]  }
 0x458   :  { %11554 = vmatpush1.bf16.msra.mxu0 %v15660_v8  ;;  %10612 = vmatprep.subr.bf16.mxu1 %v15665_v9  ;;  %v15739_v8 = vld [vmem:[%s21773_s1 + $0x2920] ss:$8 sps:$4 sm:$0xff]   ;;  %v15744_v9 = vld [vmem:[%s21773_s1 + $0x1234] ss:$8 sps:$4 sm:$0xff]  }
 0x459   :  { %11555 = vmatprep.subr.bf16.mxu0 %v15668_v40  ;;  %v15747_v40 = vld [vmem:[%s21773_s1 + $0x2934] ss:$8 sps:$4 sm:$0xff]  }
 0x45b   :  { %10613 = vmatpush1.bf16.msra.mxu1 %v15663_v20  ;;  %v15742_v20 = vld [vmem:[%s21773_s1 + $0x1230] ss:$8 sps:$4 sm:$0xff]  }
 0x45c   :  { %11556 = vmatpush1.bf16.msra.mxu0 %v15666_v11  ;;  %10614 = vmatprep.subr.bf16.mxu1 %v15671_v13  ;;  %v15745_v11 = vld [vmem:[%s21773_s1 + $0x2930] ss:$8 sps:$4 sm:$0xff]   ;;  %v15750_v13 = vld [vmem:[%s21773_s1 + $0x1244] ss:$8 sps:$4 sm:$0xff]  }
 0x45d   :  { %11557 = vmatprep.subr.bf16.mxu0 %v15674_v15  ;;  %v15753_v15 = vld [vmem:[%s21773_s1 + $0x2944] ss:$8 sps:$4 sm:$0xff]  }
 0x45f   :  { %10615 = vmatpush1.bf16.msra.mxu1 %v15669_v16  ;;  %v15748_v16 = vld [vmem:[%s21773_s1 + $0x1240] ss:$8 sps:$4 sm:$0xff]  }
 0x460   :  { %11558 = vmatpush1.bf16.msra.mxu0 %v15672_v0  ;;  %10616 = vmatprep.subr.bf16.mxu1 %v15677_v18  ;;  %v15751_v0 = vld [vmem:[%s21773_s1 + $0x2940] ss:$8 sps:$4 sm:$0xff]   ;;  %v15756_v18 = vld [vmem:[%s21773_s1 + $0x1254] ss:$8 sps:$4 sm:$0xff]  }
 0x461   :  { %11559 = vmatprep.subr.bf16.mxu0 %v15680_v19  ;;  %v15759_v19 = vld [vmem:[%s21773_s1 + $0x2954] ss:$8 sps:$4 sm:$0xff]  }
 0x463   :  { %10617 = vmatpush1.bf16.msra.mxu1 %v15675_v30  ;;  %v15754_v30 = vld [vmem:[%s21773_s1 + $0x1250] ss:$8 sps:$4 sm:$0xff]  }
 0x464   :  { %11560 = vmatpush1.bf16.msra.mxu0 %v15678_v21  ;;  %10618 = vmatprep.subr.bf16.mxu1 %v15683_v22  ;;  %v15757_v21 = vld [vmem:[%s21773_s1 + $0x2950] ss:$8 sps:$4 sm:$0xff]   ;;  %v15762_v22 = vld [vmem:[%s21773_s1 + $0x1264] ss:$8 sps:$4 sm:$0xff]  }
 0x465   :  { %11561 = vmatprep.subr.bf16.mxu0 %v15686_v37  ;;  %v15765_v37 = vld [vmem:[%s21773_s1 + $0x2964] ss:$8 sps:$4 sm:$0xff]  }
 0x467   :  { %10619 = vmatpush1.bf16.msra.mxu1 %v15681_v33  ;;  %v15760_v33 = vld [vmem:[%s21773_s1 + $0x1260] ss:$8 sps:$4 sm:$0xff]  }
 0x468   :  { %11562 = vmatpush1.bf16.msra.mxu0 %v15684_v24  ;;  %10620 = vmatprep.subr.bf16.mxu1 %v15689_v26  ;;  %v15763_v24 = vld [vmem:[%s21773_s1 + $0x2960] ss:$8 sps:$4 sm:$0xff]   ;;  %v15768_v26 = vld [vmem:[%s21773_s1 + $0x1274] ss:$8 sps:$4 sm:$0xff]  }
 0x469   :  { %11563 = vmatprep.subr.bf16.mxu0 %v15692_v28  ;;  %v15771_v28 = vld [vmem:[%s21773_s1 + $0x2974] ss:$8 sps:$4 sm:$0xff]  }
 0x46b   :  { %10621 = vmatpush1.bf16.msra.mxu1 %v15687_v29  ;;  %v15766_v29 = vld [vmem:[%s21773_s1 + $0x1270] ss:$8 sps:$4 sm:$0xff]  }
 0x46c   :  { %11564 = vmatpush1.bf16.msra.mxu0 %v15690_v12  ;;  %10622 = vmatprep.subr.bf16.mxu1 %v15695_v31  ;;  %v15769_v12 = vld [vmem:[%s21773_s1 + $0x2970] ss:$8 sps:$4 sm:$0xff]   ;;  %v15774_v31 = vld [vmem:[%s21773_s1 + $0x1284] ss:$8 sps:$4 sm:$0xff]  }
 0x46d   :  { %11565 = vmatprep.subr.bf16.mxu0 %v15698_v32  ;;  %v15777_v32 = vld [vmem:[%s21773_s1 + $0x2984] ss:$8 sps:$4 sm:$0xff]  }
 0x46f   :  { %10623 = vmatpush1.bf16.msra.mxu1 %v15693_v46  ;;  %v15772_v46 = vld [vmem:[%s21773_s1 + $0x1280] ss:$8 sps:$4 sm:$0xff]  }
 0x470   :  { %11566 = vmatpush1.bf16.msra.mxu0 %v15696_v34  ;;  %10624 = vmatprep.subr.bf16.mxu1 %v15701_v35  ;;  %v15775_v34 = vld [vmem:[%s21773_s1 + $0x2980] ss:$8 sps:$4 sm:$0xff]   ;;  %v15780_v35 = vld [vmem:[%s21773_s1 + $0x1294] ss:$8 sps:$4 sm:$0xff]  }
 0x471   :  { %11567 = vmatprep.subr.bf16.mxu0 %v15704_v41  ;;  %v15783_v41 = vld [vmem:[%s21773_s1 + $0x2994] ss:$8 sps:$4 sm:$0xff]  }
 0x473   :  { %10625 = vmatpush1.bf16.msra.mxu1 %v15699_v50  ;;  %v15778_v50 = vld [vmem:[%s21773_s1 + $0x1290] ss:$8 sps:$4 sm:$0xff]  }
 0x474   :  { %11568 = vmatpush1.bf16.msra.mxu0 %v15702_v38  ;;  %10626 = vmatprep.subr.bf16.mxu1 %v15707_v39  ;;  %v15781_v38 = vld [vmem:[%s21773_s1 + $0x2990] ss:$8 sps:$4 sm:$0xff]   ;;  %v15786_v39 = vld [vmem:[%s21773_s1 + $0x12a4] ss:$8 sps:$4 sm:$0xff]  }
 0x475   :  { %11569 = vmatprep.subr.bf16.mxu0 %v15710_v44  ;;  %v15789_v44 = vld [vmem:[%s21773_s1 + $0x29a4] ss:$8 sps:$4 sm:$0xff]  }
 0x477   :  { %10627 = vmatpush1.bf16.msra.mxu1 %v15705_v45  ;;  %v15784_v45 = vld [vmem:[%s21773_s1 + $0x12a0] ss:$8 sps:$4 sm:$0xff]  }
 0x478   :  { %11570 = vmatpush1.bf16.msra.mxu0 %v15708_v25  ;;  %10628 = vmatprep.subr.bf16.mxu1 %v15713_v47  ;;  %v15787_v25 = vld [vmem:[%s21773_s1 + $0x29a0] ss:$8 sps:$4 sm:$0xff]   ;;  %v15792_v47 = vld [vmem:[%s21773_s1 + $0x12b4] ss:$8 sps:$4 sm:$0xff]  }
 0x479   :  { %11571 = vmatprep.subr.bf16.mxu0 %v15716_v48  ;;  %v15795_v48 = vld [vmem:[%s21773_s1 + $0x29b4] ss:$8 sps:$4 sm:$0xff]  }
 0x47b   :  { %10629 = vmatpush1.bf16.msra.mxu1 %v15711_v51  ;;  %v15793_v51 = vld [vmem:[%s21773_s1 + $0x29b0] ss:$8 sps:$4 sm:$0xff]  }
 0x47c   :  { %11572 = vmatpush1.bf16.msra.mxu0 %v15714_v52  ;;  %10630 = vmatprep.subr.bf16.mxu1 %v15719_v14  ;;  %v15798_v52 = vld [vmem:[%s21773_s1 + $0x12c4] ss:$8 sps:$4 sm:$0xff]  }
 0x47d   :  { %11573 = vmatprep.subr.bf16.mxu0 %v15722_v62  ;;  %v15801_v14 = vld [vmem:[%s21773_s1 + $0x29c4] ss:$8 sps:$4 sm:$0xff]   ;;  %v15796_v62 = vld [vmem:[%s21773_s1 + $0x12c0] ss:$8 sps:$4 sm:$0xff]  }
 0x47f   :  { %10631 = vmatpush1.bf16.msra.mxu1 %v15717_v55  ;;  %v15799_v55 = vld [vmem:[%s21773_s1 + $0x29c0] ss:$8 sps:$4 sm:$0xff]  }
 0x480   :  { %11574 = vmatpush1.bf16.msra.mxu0 %v15720_v56  ;;  %10641 = vmatprep.subr.bf16.mxu1 %v15726_v27  ;;  %v15804_v56 = vld [vmem:[%s21773_s1 + $0x12d4] ss:$8 sps:$4 sm:$0xff]  }
 0x481   :  { %11584 = vmatprep.subr.bf16.mxu0 %v15729_v58  ;;  %v15807_v27 = vld [vmem:[%s21773_s1 + $0x29d4] ss:$8 sps:$4 sm:$0xff]   ;;  %v15802_v58 = vld [vmem:[%s21773_s1 + $0x12d0] ss:$8 sps:$4 sm:$0xff]  }
 0x482   :  { %10633 = vmatmul.mubr.bf16.vlgmr.msra.gmra.mrb[0].mxu1 %v613_v61  ;;  %v15813_v61 = vld [vmem:[%s21773_s1 + $0x29e4] ss:$8 sps:$4 sm:$0xff]  }
 0x483   :  { %11576 = vmatmul.mubr.bf16.vlgmr.msra.gmra.mrb[0].mxu0 %v659_v57  ;;  %10642 = vmatpush1.bf16.msra.mxu1 %v15724_v7  ;;  %v228_v57 = vcombine.high %v20204_v42, %v20204_v42  ;;  %v20418_v7 = vld [vmem:[%s21772_s0 + $0xa8] sm:$0xff]  ;;  %v15816_v42 = vld [vmem:[%s21773_s1 + $0x12f4] ss:$8 sps:$4 sm:$0xff]  }
 0x484   :  { %11585 = vmatpush1.bf16.msra.mxu0 %v15727_v63  ;;  %10643 = vmatprep.subr.bf16.mxu1 %v15732_v1  ;;  %v15808_v63 = vld [vmem:[%s21773_s1 + $0x12e0] ss:$8 sps:$4 sm:$0xff]  }
 0x485   :  { %11586 = vmatprep.subr.bf16.mxu0 %v15735_v10  ;;  %10673 = vmatprep.mubr.bf16.mxu1 %v616_v36  ;;  %v15811_v1 = vld [vmem:[%s21773_s1 + $0x29e0] ss:$8 sps:$4 sm:$0xff]   ;;  %v15819_v10 = vld [vmem:[%s21773_s1 + $0x29f4] ss:$8 sps:$4 sm:$0xff]   ;;  %v20433_v36 = vrot.slane %v228_v57, %v16509_v49  ;;  %v15887_v57 = vld [vmem:[%s21773_s1 + $0x13b0] ss:$8 sps:$4 sm:$0xff]  }
 0x486   :  { %11616 = vmatprep.mubr.bf16.mxu0 %v662_v2  ;;  %v20437_v2 = vrot.slane %v20418_v7, %v16509_v49 }
 0x487   :  { %10644 = vmatpush1.bf16.msra.mxu1 %v15730_v3  ;;  %v15814_v3 = vld [vmem:[%s21773_s1 + $0x12f0] ss:$8 sps:$4 sm:$0xff]  }
 0x488   :  { %11587 = vmatpush1.bf16.msra.mxu0 %v15733_v53  ;;  %10645 = vmatprep.subr.bf16.mxu1 %v15738_v5  ;;  %v15817_v53 = vld [vmem:[%s21773_s1 + $0x29f0] ss:$8 sps:$4 sm:$0xff]   ;;  %v15822_v5 = vld [vmem:[%s21773_s1 + $0x1304] ss:$8 sps:$4 sm:$0xff]  }
 0x489   :  { %11588 = vmatprep.subr.bf16.mxu0 %v15741_v6  ;;  %v15826_v6 = vld [vmem:[%s21773_s1 + $0x2a04] ss:$8 sps:$4 sm:$0xff]  }
 0x48b   :  { %10646 = vmatpush1.bf16.msra.mxu1 %v15736_v17  ;;  %v244_v17 = vcombine.high %v20433_v36, %v20433_v36 }
 0x48c   :  { %11589 = vmatpush1.bf16.msra.mxu0 %v15739_v8  ;;  %10647 = vmatprep.subr.bf16.mxu1 %v15744_v9  ;;  %v447_v8 = vcombine.high %v20437_v2, %v20437_v2  ;;  %v615_v9 = vpack.c.bf16 %v20220_v23, %v20220_v23  ;;  %v15832_v23 = vld [vmem:[%s21773_s1 + $0x2a14] ss:$8 sps:$4 sm:$0xff]  }
 0x48d   :  { %11590 = vmatprep.subr.bf16.mxu0 %v15747_v40  ;;  %v661_v40 = vpack.c.bf16 %v20223_v54, %v20223_v54  ;;  %v618_v54 = vpack.c.bf16 %v244_v17, %v244_v17  ;;  %v15902_v17 = vld [vmem:[%s21773_s1 + $0x2ad0] ss:$8 sps:$4 sm:$0xff]  }
 0x48f   :  { %10648 = vmatpush1.bf16.msra.mxu1 %v15742_v20  ;;  %v15820_v20 = vld [vmem:[%s21773_s1 + $0x1300] ss:$8 sps:$4 sm:$0xff]  }
 0x490   :  { %11591 = vmatpush1.bf16.msra.mxu0 %v15745_v11  ;;  %10649 = vmatprep.subr.bf16.mxu1 %v15750_v13  ;;  %v15824_v11 = vld [vmem:[%s21773_s1 + $0x2a00] ss:$8 sps:$4 sm:$0xff]   ;;  %v15829_v13 = vld [vmem:[%s21773_s1 + $0x1314] ss:$8 sps:$4 sm:$0xff]  }
 0x491   :  { %11592 = vmatprep.subr.bf16.mxu0 %v15753_v15  ;;  %v664_v15 = vpack.c.bf16 %v447_v8, %v447_v8  ;;  %v15907_v8 = vld [vmem:[%s21773_s1 + $0x13e4] ss:$8 sps:$4 sm:$0xff]  }
 0x493   :  { %10650 = vmatpush1.bf16.msra.mxu1 %v15748_v16  ;;  %v15827_v16 = vld [vmem:[%s21773_s1 + $0x1310] ss:$8 sps:$4 sm:$0xff]  }
 0x494   :  { %11593 = vmatpush1.bf16.msra.mxu0 %v15751_v0  ;;  %10651 = vmatprep.subr.bf16.mxu1 %v15756_v18  ;;  %v15830_v0 = vld [vmem:[%s21773_s1 + $0x2a10] ss:$8 sps:$4 sm:$0xff]   ;;  %v15835_v18 = vld [vmem:[%s21773_s1 + $0x1324] ss:$8 sps:$4 sm:$0xff]  }
 0x495   :  { %11594 = vmatprep.subr.bf16.mxu0 %v15759_v19  ;;  %v15838_v19 = vld [vmem:[%s21773_s1 + $0x2a24] ss:$8 sps:$4 sm:$0xff]  }
 0x497   :  { %10652 = vmatpush1.bf16.msra.mxu1 %v15754_v30  ;;  %v15833_v30 = vld [vmem:[%s21773_s1 + $0x1320] ss:$8 sps:$4 sm:$0xff]  }
 0x498   :  { %11595 = vmatpush1.bf16.msra.mxu0 %v15757_v21  ;;  %10653 = vmatprep.subr.bf16.mxu1 %v15762_v22  ;;  %v15836_v21 = vld [vmem:[%s21773_s1 + $0x2a20] ss:$8 sps:$4 sm:$0xff]   ;;  %v15841_v22 = vld [vmem:[%s21773_s1 + $0x1334] ss:$8 sps:$4 sm:$0xff]  }
 0x499   :  { %11596 = vmatprep.subr.bf16.mxu0 %v15765_v37  ;;  %v15844_v37 = vld [vmem:[%s21773_s1 + $0x2a34] ss:$8 sps:$4 sm:$0xff]  }
 0x49b   :  { %10654 = vmatpush1.bf16.msra.mxu1 %v15760_v33  ;;  %v15839_v33 = vld [vmem:[%s21773_s1 + $0x1330] ss:$8 sps:$4 sm:$0xff]  }
 0x49c   :  { %11597 = vmatpush1.bf16.msra.mxu0 %v15763_v24  ;;  %10655 = vmatprep.subr.bf16.mxu1 %v15768_v26  ;;  %v15842_v24 = vld [vmem:[%s21773_s1 + $0x2a30] ss:$8 sps:$4 sm:$0xff]   ;;  %v15847_v26 = vld [vmem:[%s21773_s1 + $0x1344] ss:$8 sps:$4 sm:$0xff]  }
 0x49d   :  { %11598 = vmatprep.subr.bf16.mxu0 %v15771_v28  ;;  %v15850_v28 = vld [vmem:[%s21773_s1 + $0x2a44] ss:$8 sps:$4 sm:$0xff]  }
 0x49f   :  { %10656 = vmatpush1.bf16.msra.mxu1 %v15766_v29  ;;  %v15845_v29 = vld [vmem:[%s21773_s1 + $0x1340] ss:$8 sps:$4 sm:$0xff]  }
 0x4a0   :  { %11599 = vmatpush1.bf16.msra.mxu0 %v15769_v12  ;;  %10657 = vmatprep.subr.bf16.mxu1 %v15774_v31  ;;  %v15848_v12 = vld [vmem:[%s21773_s1 + $0x2a40] ss:$8 sps:$4 sm:$0xff]   ;;  %v15853_v31 = vld [vmem:[%s21773_s1 + $0x1354] ss:$8 sps:$4 sm:$0xff]  }
 0x4a1   :  { %11600 = vmatprep.subr.bf16.mxu0 %v15777_v32  ;;  %v15856_v32 = vld [vmem:[%s21773_s1 + $0x2a54] ss:$8 sps:$4 sm:$0xff]  }
 0x4a3   :  { %10658 = vmatpush1.bf16.msra.mxu1 %v15772_v46  ;;  %v15851_v46 = vld [vmem:[%s21773_s1 + $0x1350] ss:$8 sps:$4 sm:$0xff]  }
 0x4a4   :  { %11601 = vmatpush1.bf16.msra.mxu0 %v15775_v34  ;;  %10659 = vmatprep.subr.bf16.mxu1 %v15780_v35  ;;  %v15854_v34 = vld [vmem:[%s21773_s1 + $0x2a50] ss:$8 sps:$4 sm:$0xff]   ;;  %v15859_v35 = vld [vmem:[%s21773_s1 + $0x1364] ss:$8 sps:$4 sm:$0xff]  }
 0x4a5   :  { %11602 = vmatprep.subr.bf16.mxu0 %v15783_v41  ;;  %v15862_v41 = vld [vmem:[%s21773_s1 + $0x2a64] ss:$8 sps:$4 sm:$0xff]  }
 0x4a7   :  { %10660 = vmatpush1.bf16.msra.mxu1 %v15778_v50  ;;  %v15857_v50 = vld [vmem:[%s21773_s1 + $0x1360] ss:$8 sps:$4 sm:$0xff]  }
 0x4a8   :  { %11603 = vmatpush1.bf16.msra.mxu0 %v15781_v38  ;;  %10661 = vmatprep.subr.bf16.mxu1 %v15786_v39  ;;  %v15860_v38 = vld [vmem:[%s21773_s1 + $0x2a60] ss:$8 sps:$4 sm:$0xff]   ;;  %v15865_v39 = vld [vmem:[%s21773_s1 + $0x1374] ss:$8 sps:$4 sm:$0xff]  }
 0x4a9   :  { %11604 = vmatprep.subr.bf16.mxu0 %v15789_v44  ;;  %v15868_v44 = vld [vmem:[%s21773_s1 + $0x2a74] ss:$8 sps:$4 sm:$0xff]  }
 0x4ab   :  { %10662 = vmatpush1.bf16.msra.mxu1 %v15784_v45  ;;  %v15863_v45 = vld [vmem:[%s21773_s1 + $0x1370] ss:$8 sps:$4 sm:$0xff]  }
 0x4ac   :  { %11605 = vmatpush1.bf16.msra.mxu0 %v15787_v25  ;;  %10663 = vmatprep.subr.bf16.mxu1 %v15792_v47  ;;  %v15866_v25 = vld [vmem:[%s21773_s1 + $0x2a70] ss:$8 sps:$4 sm:$0xff]   ;;  %v15871_v47 = vld [vmem:[%s21773_s1 + $0x1384] ss:$8 sps:$4 sm:$0xff]  }
 0x4ad   :  { %11606 = vmatprep.subr.bf16.mxu0 %v15795_v48  ;;  %v15874_v48 = vld [vmem:[%s21773_s1 + $0x2a84] ss:$8 sps:$4 sm:$0xff]  }
 0x4af   :  { %10664 = vmatpush1.bf16.msra.mxu1 %v15790_v59  ;;  %v15869_v59 = vld [vmem:[%s21773_s1 + $0x1380] ss:$8 sps:$4 sm:$0xff]  }
 0x4b0   :  { %11607 = vmatpush1.bf16.msra.mxu0 %v15793_v51  ;;  %10665 = vmatprep.subr.bf16.mxu1 %v15798_v52  ;;  %v15872_v51 = vld [vmem:[%s21773_s1 + $0x2a80] ss:$8 sps:$4 sm:$0xff]   ;;  %v15877_v52 = vld [vmem:[%s21773_s1 + $0x1394] ss:$8 sps:$4 sm:$0xff]  }
 0x4b1   :  { %11608 = vmatprep.subr.bf16.mxu0 %v15801_v14  ;;  %v15880_v14 = vld [vmem:[%s21773_s1 + $0x2a94] ss:$8 sps:$4 sm:$0xff]  }
 0x4b3   :  { %10666 = vmatpush1.bf16.msra.mxu1 %v15796_v62  ;;  %v15875_v62 = vld [vmem:[%s21773_s1 + $0x1390] ss:$8 sps:$4 sm:$0xff]  }
 0x4b4   :  { %11609 = vmatpush1.bf16.msra.mxu0 %v15799_v55  ;;  %10667 = vmatprep.subr.bf16.mxu1 %v15804_v56  ;;  %v15878_v55 = vld [vmem:[%s21773_s1 + $0x2a90] ss:$8 sps:$4 sm:$0xff]   ;;  %v15883_v56 = vld [vmem:[%s21773_s1 + $0x13a4] ss:$8 sps:$4 sm:$0xff]  }
 0x4b5   :  { %11610 = vmatprep.subr.bf16.mxu0 %v15807_v27  ;;  %v15886_v27 = vld [vmem:[%s21773_s1 + $0x2aa4] ss:$8 sps:$4 sm:$0xff]  }
 0x4b7   :  { %10668 = vmatpush1.bf16.msra.mxu1 %v15802_v58  ;;  %v15881_v58 = vld [vmem:[%s21773_s1 + $0x13a0] ss:$8 sps:$4 sm:$0xff]  }
 0x4b8   :  { %11611 = vmatpush1.bf16.msra.mxu0 %v15805_v4  ;;  %10669 = vmatprep.subr.bf16.mxu1 %v15810_v60  ;;  %v15884_v4 = vld [vmem:[%s21773_s1 + $0x2aa0] ss:$8 sps:$4 sm:$0xff]   ;;  %v15889_v60 = vld [vmem:[%s21773_s1 + $0x13b4] ss:$8 sps:$4 sm:$0xff]  }
 0x4b9   :  { %11612 = vmatprep.subr.bf16.mxu0 %v15813_v61  ;;  %v15892_v61 = vld [vmem:[%s21773_s1 + $0x2ab4] ss:$8 sps:$4 sm:$0xff]  }
 0x4bb   :  { %10670 = vmatpush1.bf16.msra.mxu1 %v15808_v63  ;;  %v15890_v63 = vld [vmem:[%s21773_s1 + $0x2ab0] ss:$8 sps:$4 sm:$0xff]  }
 0x4bc   :  { %11613 = vmatpush1.bf16.msra.mxu0 %v15811_v1  ;;  %10671 = vmatprep.subr.bf16.mxu1 %v15816_v42  ;;  %v15895_v1 = vld [vmem:[%s21773_s1 + $0x13c4] ss:$8 sps:$4 sm:$0xff]  }
 0x4bd   :  { %11614 = vmatprep.subr.bf16.mxu0 %v15819_v10  ;;  %v15898_v42 = vld [vmem:[%s21773_s1 + $0x2ac4] ss:$8 sps:$4 sm:$0xff]   ;;  %v15893_v10 = vld [vmem:[%s21773_s1 + $0x13c0] ss:$8 sps:$4 sm:$0xff]  }
 0x4bf   :  { %10672 = vmatpush1.bf16.msra.mxu1 %v15814_v3  ;;  %v15896_v3 = vld [vmem:[%s21773_s1 + $0x2ac0] ss:$8 sps:$4 sm:$0xff]  }
 0x4c0   :  { %11615 = vmatpush1.bf16.msra.mxu0 %v15817_v53  ;;  %10682 = vmatprep.subr.bf16.mxu1 %v15822_v5  ;;  %v15901_v53 = vld [vmem:[%s21773_s1 + $0x13d4] ss:$8 sps:$4 sm:$0xff]  }
 0x4c1   :  { %11625 = vmatprep.subr.bf16.mxu0 %v15826_v6  ;;  %v15904_v5 = vld [vmem:[%s21773_s1 + $0x2ad4] ss:$8 sps:$4 sm:$0xff]   ;;  %v15899_v6 = vld [vmem:[%s21773_s1 + $0x13d0] ss:$8 sps:$4 sm:$0xff]  }
 0x4c2   :  { %10674 = vmatmul.mubr.bf16.vlgmr.msra.gmra.mrb[0].mxu1 %v615_v9  ;;  %v15910_v9 = vld [vmem:[%s21773_s1 + $0x2ae4] ss:$8 sps:$4 sm:$0xff]  }
 0x4c3   :  { %11617 = vmatmul.mubr.bf16.vlgmr.msra.gmra.mrb[0].mxu0 %v661_v40  ;;  %10683 = vmatpush1.bf16.msra.mxu1 %v15820_v20  ;;  %v432_v40 = vcombine.high %v20418_v7, %v20418_v7  ;;  %v20632_v20 = vld [vmem:[%s21772_s0 + $0x50] sm:$0xff] }
 0x4c4   :  { %11626 = vmatpush1.bf16.msra.mxu0 %v15824_v11  ;;  %10684 = vmatprep.subr.bf16.mxu1 %v15829_v13  ;;  %v15905_v11 = vld [vmem:[%s21773_s1 + $0x13e0] ss:$8 sps:$4 sm:$0xff]   ;;  %v15913_v7 = vld [vmem:[%s21773_s1 + $0x13f4] ss:$8 sps:$4 sm:$0xff]  }
 0x4c5   :  { %11627 = vmatprep.subr.bf16.mxu0 %v15832_v23  ;;  %10714 = vmatprep.mubr.bf16.mxu1 %v618_v54  ;;  %v15908_v13 = vld [vmem:[%s21773_s1 + $0x2ae0] ss:$8 sps:$4 sm:$0xff]   ;;  %v15916_v23 = vld [vmem:[%s21773_s1 + $0x2af4] ss:$8 sps:$4 sm:$0xff]   ;;  %v20648_v54 = vrot.slane %v20632_v20, %v16509_v49 }
 0x4c6   :  { %11657 = vmatprep.mubr.bf16.mxu0 %v664_v15  ;;  %v20651_v15 = vrot.slane %v432_v40, %v16509_v49  ;;  %v15984_v40 = vld [vmem:[%s21773_s1 + $0x14b0] ss:$8 sps:$4 sm:$0xff]  }
 0x4c7   :  { %10685 = vmatpush1.bf16.msra.mxu1 %v15827_v16  ;;  %v15911_v16 = vld [vmem:[%s21773_s1 + $0x13f0] ss:$8 sps:$4 sm:$0xff]  }
 0x4c8   :  { %11628 = vmatpush1.bf16.msra.mxu0 %v15830_v0  ;;  %10686 = vmatprep.subr.bf16.mxu1 %v15835_v18  ;;  %v15914_v0 = vld [vmem:[%s21773_s1 + $0x2af0] ss:$8 sps:$4 sm:$0xff]   ;;  %v15920_v18 = vld [vmem:[%s21773_s1 + $0x1404] ss:$8 sps:$4 sm:$0xff]  }
 0x4c9   :  { %11629 = vmatprep.subr.bf16.mxu0 %v15838_v19  ;;  %v15923_v19 = vld [vmem:[%s21773_s1 + $0x2b04] ss:$8 sps:$4 sm:$0xff]  }
 0x4cb   :  { %10687 = vmatpush1.bf16.msra.mxu1 %v15833_v30  ;;  %v260_v30 = vcombine.high %v20648_v54, %v20648_v54 }
 0x4cc   :  { %11630 = vmatpush1.bf16.msra.mxu0 %v15836_v21  ;;  %10688 = vmatprep.subr.bf16.mxu1 %v15841_v22  ;;  %v448_v21 = vcombine.high %v20651_v15, %v20651_v15  ;;  %v617_v22 = vpack.c.bf16 %v20433_v36, %v20433_v36  ;;  %v15929_v36 = vld [vmem:[%s21773_s1 + $0x2b14] ss:$8 sps:$4 sm:$0xff]  }
 0x4cd   :  { %11631 = vmatprep.subr.bf16.mxu0 %v15844_v37  ;;  %v663_v37 = vpack.c.bf16 %v20437_v2, %v20437_v2  ;;  %v620_v2 = vpack.c.bf16 %v260_v30, %v260_v30  ;;  %v15999_v30 = vld [vmem:[%s21773_s1 + $0x2bd0] ss:$8 sps:$4 sm:$0xff]  }
 0x4cf   :  { %10689 = vmatpush1.bf16.msra.mxu1 %v15839_v33  ;;  %v15918_v33 = vld [vmem:[%s21773_s1 + $0x1400] ss:$8 sps:$4 sm:$0xff]  }
 0x4d0   :  { %11632 = vmatpush1.bf16.msra.mxu0 %v15842_v24  ;;  %10690 = vmatprep.subr.bf16.mxu1 %v15847_v26  ;;  %v15921_v24 = vld [vmem:[%s21773_s1 + $0x2b00] ss:$8 sps:$4 sm:$0xff]   ;;  %v15926_v26 = vld [vmem:[%s21773_s1 + $0x1414] ss:$8 sps:$4 sm:$0xff]  }
 0x4d1   :  { %11633 = vmatprep.subr.bf16.mxu0 %v15850_v28  ;;  %v666_v28 = vpack.c.bf16 %v448_v21, %v448_v21  ;;  %v16004_v21 = vld [vmem:[%s21773_s1 + $0x14e4] ss:$8 sps:$4 sm:$0xff]  }
 0x4d3   :  { %10691 = vmatpush1.bf16.msra.mxu1 %v15845_v29  ;;  %v15924_v29 = vld [vmem:[%s21773_s1 + $0x1410] ss:$8 sps:$4 sm:$0xff]  }
 0x4d4   :  { %11634 = vmatpush1.bf16.msra.mxu0 %v15848_v12  ;;  %10692 = vmatprep.subr.bf16.mxu1 %v15853_v31  ;;  %v15927_v12 = vld [vmem:[%s21773_s1 + $0x2b10] ss:$8 sps:$4 sm:$0xff]   ;;  %v15932_v31 = vld [vmem:[%s21773_s1 + $0x1424] ss:$8 sps:$4 sm:$0xff]  }
 0x4d5   :  { %11635 = vmatprep.subr.bf16.mxu0 %v15856_v32  ;;  %v15935_v32 = vld [vmem:[%s21773_s1 + $0x2b24] ss:$8 sps:$4 sm:$0xff]  }
 0x4d7   :  { %10693 = vmatpush1.bf16.msra.mxu1 %v15851_v46  ;;  %v15930_v46 = vld [vmem:[%s21773_s1 + $0x1420] ss:$8 sps:$4 sm:$0xff]  }
 0x4d8   :  { %11636 = vmatpush1.bf16.msra.mxu0 %v15854_v34  ;;  %10694 = vmatprep.subr.bf16.mxu1 %v15859_v35  ;;  %v15933_v34 = vld [vmem:[%s21773_s1 + $0x2b20] ss:$8 sps:$4 sm:$0xff]   ;;  %v15938_v35 = vld [vmem:[%s21773_s1 + $0x1434] ss:$8 sps:$4 sm:$0xff]  }
 0x4d9   :  { %11637 = vmatprep.subr.bf16.mxu0 %v15862_v41  ;;  %v15941_v41 = vld [vmem:[%s21773_s1 + $0x2b34] ss:$8 sps:$4 sm:$0xff]  }
 0x4db   :  { %10695 = vmatpush1.bf16.msra.mxu1 %v15857_v50  ;;  %v15936_v50 = vld [vmem:[%s21773_s1 + $0x1430] ss:$8 sps:$4 sm:$0xff]  }
 0x4dc   :  { %11638 = vmatpush1.bf16.msra.mxu0 %v15860_v38  ;;  %10696 = vmatprep.subr.bf16.mxu1 %v15865_v39  ;;  %v15939_v38 = vld [vmem:[%s21773_s1 + $0x2b30] ss:$8 sps:$4 sm:$0xff]   ;;  %v15944_v39 = vld [vmem:[%s21773_s1 + $0x1444] ss:$8 sps:$4 sm:$0xff]  }
 0x4dd   :  { %11639 = vmatprep.subr.bf16.mxu0 %v15868_v44  ;;  %v15947_v44 = vld [vmem:[%s21773_s1 + $0x2b44] ss:$8 sps:$4 sm:$0xff]  }
 0x4df   :  { %10697 = vmatpush1.bf16.msra.mxu1 %v15863_v45  ;;  %v15942_v45 = vld [vmem:[%s21773_s1 + $0x1440] ss:$8 sps:$4 sm:$0xff]  }
 0x4e0   :  { %11640 = vmatpush1.bf16.msra.mxu0 %v15866_v25  ;;  %10698 = vmatprep.subr.bf16.mxu1 %v15871_v47  ;;  %v15945_v25 = vld [vmem:[%s21773_s1 + $0x2b40] ss:$8 sps:$4 sm:$0xff]   ;;  %v15950_v47 = vld [vmem:[%s21773_s1 + $0x1454] ss:$8 sps:$4 sm:$0xff]  }
 0x4e1   :  { %11641 = vmatprep.subr.bf16.mxu0 %v15874_v48  ;;  %v15953_v48 = vld [vmem:[%s21773_s1 + $0x2b54] ss:$8 sps:$4 sm:$0xff]  }
 0x4e3   :  { %10699 = vmatpush1.bf16.msra.mxu1 %v15869_v59  ;;  %v15948_v59 = vld [vmem:[%s21773_s1 + $0x1450] ss:$8 sps:$4 sm:$0xff]  }
 0x4e4   :  { %11642 = vmatpush1.bf16.msra.mxu0 %v15872_v51  ;;  %10700 = vmatprep.subr.bf16.mxu1 %v15877_v52  ;;  %v15951_v51 = vld [vmem:[%s21773_s1 + $0x2b50] ss:$8 sps:$4 sm:$0xff]   ;;  %v15956_v52 = vld [vmem:[%s21773_s1 + $0x1464] ss:$8 sps:$4 sm:$0xff]  }
 0x4e5   :  { %11643 = vmatprep.subr.bf16.mxu0 %v15880_v14  ;;  %v15959_v14 = vld [vmem:[%s21773_s1 + $0x2b64] ss:$8 sps:$4 sm:$0xff]  }
 0x4e7   :  { %10701 = vmatpush1.bf16.msra.mxu1 %v15875_v62  ;;  %v15954_v62 = vld [vmem:[%s21773_s1 + $0x1460] ss:$8 sps:$4 sm:$0xff]  }
 0x4e8   :  { %11644 = vmatpush1.bf16.msra.mxu0 %v15878_v55  ;;  %10702 = vmatprep.subr.bf16.mxu1 %v15883_v56  ;;  %v15957_v55 = vld [vmem:[%s21773_s1 + $0x2b60] ss:$8 sps:$4 sm:$0xff]   ;;  %v15962_v56 = vld [vmem:[%s21773_s1 + $0x1474] ss:$8 sps:$4 sm:$0xff]  }
 0x4e9   :  { %11645 = vmatprep.subr.bf16.mxu0 %v15886_v27  ;;  %v15965_v27 = vld [vmem:[%s21773_s1 + $0x2b74] ss:$8 sps:$4 sm:$0xff]  }
 0x4eb   :  { %10703 = vmatpush1.bf16.msra.mxu1 %v15881_v58  ;;  %v15960_v58 = vld [vmem:[%s21773_s1 + $0x1470] ss:$8 sps:$4 sm:$0xff]  }
 0x4ec   :  { %11646 = vmatpush1.bf16.msra.mxu0 %v15884_v4  ;;  %10704 = vmatprep.subr.bf16.mxu1 %v15889_v60  ;;  %v15963_v4 = vld [vmem:[%s21773_s1 + $0x2b70] ss:$8 sps:$4 sm:$0xff]   ;;  %v15968_v60 = vld [vmem:[%s21773_s1 + $0x1484] ss:$8 sps:$4 sm:$0xff]  }
 0x4ed   :  { %11647 = vmatprep.subr.bf16.mxu0 %v15892_v61  ;;  %v15971_v61 = vld [vmem:[%s21773_s1 + $0x2b84] ss:$8 sps:$4 sm:$0xff]  }
 0x4ef   :  { %10705 = vmatpush1.bf16.msra.mxu1 %v15887_v57  ;;  %v15966_v57 = vld [vmem:[%s21773_s1 + $0x1480] ss:$8 sps:$4 sm:$0xff]  }
 0x4f0   :  { %11648 = vmatpush1.bf16.msra.mxu0 %v15890_v63  ;;  %10706 = vmatprep.subr.bf16.mxu1 %v15895_v1  ;;  %v15969_v63 = vld [vmem:[%s21773_s1 + $0x2b80] ss:$8 sps:$4 sm:$0xff]   ;;  %v15974_v1 = vld [vmem:[%s21773_s1 + $0x1494] ss:$8 sps:$4 sm:$0xff]  }
 0x4f1   :  { %11649 = vmatprep.subr.bf16.mxu0 %v15898_v42  ;;  %v15977_v42 = vld [vmem:[%s21773_s1 + $0x2b94] ss:$8 sps:$4 sm:$0xff]  }
 0x4f3   :  { %10707 = vmatpush1.bf16.msra.mxu1 %v15893_v10  ;;  %v15972_v10 = vld [vmem:[%s21773_s1 + $0x1490] ss:$8 sps:$4 sm:$0xff]  }
 0x4f4   :  { %11650 = vmatpush1.bf16.msra.mxu0 %v15896_v3  ;;  %10708 = vmatprep.subr.bf16.mxu1 %v15901_v53  ;;  %v15975_v3 = vld [vmem:[%s21773_s1 + $0x2b90] ss:$8 sps:$4 sm:$0xff]   ;;  %v15980_v53 = vld [vmem:[%s21773_s1 + $0x14a4] ss:$8 sps:$4 sm:$0xff]  }
 0x4f5   :  { %11651 = vmatprep.subr.bf16.mxu0 %v15904_v5  ;;  %v15983_v5 = vld [vmem:[%s21773_s1 + $0x2ba4] ss:$8 sps:$4 sm:$0xff]  }
 0x4f7   :  { %10709 = vmatpush1.bf16.msra.mxu1 %v15899_v6  ;;  %v15978_v6 = vld [vmem:[%s21773_s1 + $0x14a0] ss:$8 sps:$4 sm:$0xff]  }
 0x4f8   :  { %11652 = vmatpush1.bf16.msra.mxu0 %v15902_v17  ;;  %10710 = vmatprep.subr.bf16.mxu1 %v15907_v8  ;;  %v15981_v17 = vld [vmem:[%s21773_s1 + $0x2ba0] ss:$8 sps:$4 sm:$0xff]   ;;  %v15986_v8 = vld [vmem:[%s21773_s1 + $0x14b4] ss:$8 sps:$4 sm:$0xff]  }
 0x4f9   :  { %11653 = vmatprep.subr.bf16.mxu0 %v15910_v9  ;;  %v15989_v9 = vld [vmem:[%s21773_s1 + $0x2bb4] ss:$8 sps:$4 sm:$0xff]  }
 0x4fb   :  { %10711 = vmatpush1.bf16.msra.mxu1 %v15905_v11  ;;  %v15987_v11 = vld [vmem:[%s21773_s1 + $0x2bb0] ss:$8 sps:$4 sm:$0xff]  }
 0x4fc   :  { %11654 = vmatpush1.bf16.msra.mxu0 %v15908_v13  ;;  %10712 = vmatprep.subr.bf16.mxu1 %v15913_v7  ;;  %v15992_v13 = vld [vmem:[%s21773_s1 + $0x14c4] ss:$8 sps:$4 sm:$0xff]  }
 0x4fd   :  { %11655 = vmatprep.subr.bf16.mxu0 %v15916_v23  ;;  %v15995_v7 = vld [vmem:[%s21773_s1 + $0x2bc4] ss:$8 sps:$4 sm:$0xff]   ;;  %v15990_v23 = vld [vmem:[%s21773_s1 + $0x14c0] ss:$8 sps:$4 sm:$0xff]  }
 0x4ff   :  { %10713 = vmatpush1.bf16.msra.mxu1 %v15911_v16  ;;  %v15993_v16 = vld [vmem:[%s21773_s1 + $0x2bc0] ss:$8 sps:$4 sm:$0xff]  }
 0x500   :  { %11656 = vmatpush1.bf16.msra.mxu0 %v15914_v0  ;;  %10723 = vmatprep.subr.bf16.mxu1 %v15920_v18  ;;  %v15998_v0 = vld [vmem:[%s21773_s1 + $0x14d4] ss:$8 sps:$4 sm:$0xff]  }
 0x501   :  { %11666 = vmatprep.subr.bf16.mxu0 %v15923_v19  ;;  %v16001_v18 = vld [vmem:[%s21773_s1 + $0x2bd4] ss:$8 sps:$4 sm:$0xff]   ;;  %v15996_v19 = vld [vmem:[%s21773_s1 + $0x14d0] ss:$8 sps:$4 sm:$0xff]  }
 0x502   :  { %10715 = vmatmul.mubr.bf16.vlgmr.msra.gmra.mrb[0].mxu1 %v617_v22  ;;  %v16007_v22 = vld [vmem:[%s21773_s1 + $0x2be4] ss:$8 sps:$4 sm:$0xff]  }
 0x503   :  { %11658 = vmatmul.mubr.bf16.vlgmr.msra.gmra.mrb[0].mxu0 %v663_v37  ;;  %10724 = vmatpush1.bf16.msra.mxu1 %v15918_v33  ;;  %v245_v37 = vcombine.high %v20632_v20, %v20632_v20  ;;  %v20846_v33 = vld [vmem:[%s21772_s0 + $0xb0] sm:$0xff] }
 0x504   :  { %11667 = vmatpush1.bf16.msra.mxu0 %v15921_v24  ;;  %10725 = vmatprep.subr.bf16.mxu1 %v15926_v26  ;;  %v16002_v24 = vld [vmem:[%s21773_s1 + $0x14e0] ss:$8 sps:$4 sm:$0xff]   ;;  %v16010_v20 = vld [vmem:[%s21773_s1 + $0x14f4] ss:$8 sps:$4 sm:$0xff]  }
 0x505   :  { %11668 = vmatprep.subr.bf16.mxu0 %v15929_v36  ;;  %10755 = vmatprep.mubr.bf16.mxu1 %v620_v2  ;;  %v16005_v26 = vld [vmem:[%s21773_s1 + $0x2be0] ss:$8 sps:$4 sm:$0xff]   ;;  %v16013_v36 = vld [vmem:[%s21773_s1 + $0x2bf4] ss:$8 sps:$4 sm:$0xff]   ;;  %v20861_v2 = vrot.slane %v245_v37, %v16509_v49  ;;  %v16081_v37 = vld [vmem:[%s21773_s1 + $0x15b0] ss:$8 sps:$4 sm:$0xff]  }
 0x506   :  { %11698 = vmatprep.mubr.bf16.mxu0 %v666_v28  ;;  %v20865_v28 = vrot.slane %v20846_v33, %v16509_v49 }
 0x507   :  { %10726 = vmatpush1.bf16.msra.mxu1 %v15924_v29  ;;  %v16008_v29 = vld [vmem:[%s21773_s1 + $0x14f0] ss:$8 sps:$4 sm:$0xff]  }
 0x508   :  { %11669 = vmatpush1.bf16.msra.mxu0 %v15927_v12  ;;  %10727 = vmatprep.subr.bf16.mxu1 %v15932_v31  ;;  %v16011_v12 = vld [vmem:[%s21773_s1 + $0x2bf0] ss:$8 sps:$4 sm:$0xff]   ;;  %v16016_v31 = vld [vmem:[%s21773_s1 + $0x1504] ss:$8 sps:$4 sm:$0xff]  }
 0x509   :  { %11670 = vmatprep.subr.bf16.mxu0 %v15935_v32  ;;  %v16020_v32 = vld [vmem:[%s21773_s1 + $0x2c04] ss:$8 sps:$4 sm:$0xff]  }
 0x50b   :  { %10728 = vmatpush1.bf16.msra.mxu1 %v15930_v46  ;;  %v261_v46 = vcombine.high %v20861_v2, %v20861_v2 }
 0x50c   :  { %11671 = vmatpush1.bf16.msra.mxu0 %v15933_v34  ;;  %10729 = vmatprep.subr.bf16.mxu1 %v15938_v35  ;;  %v464_v34 = vcombine.high %v20865_v28, %v20865_v28  ;;  %v619_v35 = vpack.c.bf16 %v20648_v54, %v20648_v54  ;;  %v16026_v54 = vld [vmem:[%s21773_s1 + $0x2c14] ss:$8 sps:$4 sm:$0xff]  }
 0x50d   :  { %11672 = vmatprep.subr.bf16.mxu0 %v15941_v41  ;;  %v665_v41 = vpack.c.bf16 %v20651_v15, %v20651_v15  ;;  %v622_v15 = vpack.c.bf16 %v261_v46, %v261_v46  ;;  %v16096_v46 = vld [vmem:[%s21773_s1 + $0x2cd0] ss:$8 sps:$4 sm:$0xff]  }
 0x50f   :  { %10730 = vmatpush1.bf16.msra.mxu1 %v15936_v50  ;;  %v16014_v50 = vld [vmem:[%s21773_s1 + $0x1500] ss:$8 sps:$4 sm:$0xff]  }
 0x510   :  { %11673 = vmatpush1.bf16.msra.mxu0 %v15939_v38  ;;  %10731 = vmatprep.subr.bf16.mxu1 %v15944_v39  ;;  %v16018_v38 = vld [vmem:[%s21773_s1 + $0x2c00] ss:$8 sps:$4 sm:$0xff]   ;;  %v16023_v39 = vld [vmem:[%s21773_s1 + $0x1514] ss:$8 sps:$4 sm:$0xff]  }
 0x511   :  { %11674 = vmatprep.subr.bf16.mxu0 %v15947_v44  ;;  %v668_v44 = vpack.c.bf16 %v464_v34, %v464_v34  ;;  %v16101_v34 = vld [vmem:[%s21773_s1 + $0x15e4] ss:$8 sps:$4 sm:$0xff]  }
 0x513   :  { %10732 = vmatpush1.bf16.msra.mxu1 %v15942_v45  ;;  %v16021_v45 = vld [vmem:[%s21773_s1 + $0x1510] ss:$8 sps:$4 sm:$0xff]  }
 0x514   :  { %11675 = vmatpush1.bf16.msra.mxu0 %v15945_v25  ;;  %10733 = vmatprep.subr.bf16.mxu1 %v15950_v47  ;;  %v16024_v25 = vld [vmem:[%s21773_s1 + $0x2c10] ss:$8 sps:$4 sm:$0xff]   ;;  %v16029_v47 = vld [vmem:[%s21773_s1 + $0x1524] ss:$8 sps:$4 sm:$0xff]  }
 0x515   :  { %11676 = vmatprep.subr.bf16.mxu0 %v15953_v48  ;;  %v16032_v48 = vld [vmem:[%s21773_s1 + $0x2c24] ss:$8 sps:$4 sm:$0xff]  }
 0x517   :  { %10734 = vmatpush1.bf16.msra.mxu1 %v15948_v59  ;;  %v16027_v59 = vld [vmem:[%s21773_s1 + $0x1520] ss:$8 sps:$4 sm:$0xff]  }
 0x518   :  { %11677 = vmatpush1.bf16.msra.mxu0 %v15951_v51  ;;  %10735 = vmatprep.subr.bf16.mxu1 %v15956_v52  ;;  %v16030_v51 = vld [vmem:[%s21773_s1 + $0x2c20] ss:$8 sps:$4 sm:$0xff]   ;;  %v16035_v52 = vld [vmem:[%s21773_s1 + $0x1534] ss:$8 sps:$4 sm:$0xff]  }
 0x519   :  { %11678 = vmatprep.subr.bf16.mxu0 %v15959_v14  ;;  %v16038_v14 = vld [vmem:[%s21773_s1 + $0x2c34] ss:$8 sps:$4 sm:$0xff]  }
 0x51b   :  { %10736 = vmatpush1.bf16.msra.mxu1 %v15954_v62  ;;  %v16033_v62 = vld [vmem:[%s21773_s1 + $0x1530] ss:$8 sps:$4 sm:$0xff]  }
 0x51c   :  { %11679 = vmatpush1.bf16.msra.mxu0 %v15957_v55  ;;  %10737 = vmatprep.subr.bf16.mxu1 %v15962_v56  ;;  %v16036_v55 = vld [vmem:[%s21773_s1 + $0x2c30] ss:$8 sps:$4 sm:$0xff]   ;;  %v16041_v56 = vld [vmem:[%s21773_s1 + $0x1544] ss:$8 sps:$4 sm:$0xff]  }
 0x51d   :  { %11680 = vmatprep.subr.bf16.mxu0 %v15965_v27  ;;  %v16044_v27 = vld [vmem:[%s21773_s1 + $0x2c44] ss:$8 sps:$4 sm:$0xff]  }
 0x51f   :  { %10738 = vmatpush1.bf16.msra.mxu1 %v15960_v58  ;;  %v16039_v58 = vld [vmem:[%s21773_s1 + $0x1540] ss:$8 sps:$4 sm:$0xff]  }
 0x520   :  { %11681 = vmatpush1.bf16.msra.mxu0 %v15963_v4  ;;  %10739 = vmatprep.subr.bf16.mxu1 %v15968_v60  ;;  %v16042_v4 = vld [vmem:[%s21773_s1 + $0x2c40] ss:$8 sps:$4 sm:$0xff]   ;;  %v16047_v60 = vld [vmem:[%s21773_s1 + $0x1554] ss:$8 sps:$4 sm:$0xff]  }
 0x521   :  { %11682 = vmatprep.subr.bf16.mxu0 %v15971_v61  ;;  %v16050_v61 = vld [vmem:[%s21773_s1 + $0x2c54] ss:$8 sps:$4 sm:$0xff]  }
 0x523   :  { %10740 = vmatpush1.bf16.msra.mxu1 %v15966_v57  ;;  %v16045_v57 = vld [vmem:[%s21773_s1 + $0x1550] ss:$8 sps:$4 sm:$0xff]  }
 0x524   :  { %11683 = vmatpush1.bf16.msra.mxu0 %v15969_v63  ;;  %10741 = vmatprep.subr.bf16.mxu1 %v15974_v1  ;;  %v16048_v63 = vld [vmem:[%s21773_s1 + $0x2c50] ss:$8 sps:$4 sm:$0xff]   ;;  %v16053_v1 = vld [vmem:[%s21773_s1 + $0x1564] ss:$8 sps:$4 sm:$0xff]  }
 0x525   :  { %11684 = vmatprep.subr.bf16.mxu0 %v15977_v42  ;;  %v16056_v42 = vld [vmem:[%s21773_s1 + $0x2c64] ss:$8 sps:$4 sm:$0xff]  }
 0x527   :  { %10742 = vmatpush1.bf16.msra.mxu1 %v15972_v10  ;;  %v16051_v10 = vld [vmem:[%s21773_s1 + $0x1560] ss:$8 sps:$4 sm:$0xff]  }
 0x528   :  { %11685 = vmatpush1.bf16.msra.mxu0 %v15975_v3  ;;  %10743 = vmatprep.subr.bf16.mxu1 %v15980_v53  ;;  %v16054_v3 = vld [vmem:[%s21773_s1 + $0x2c60] ss:$8 sps:$4 sm:$0xff]   ;;  %v16059_v53 = vld [vmem:[%s21773_s1 + $0x1574] ss:$8 sps:$4 sm:$0xff]  }
 0x529   :  { %11686 = vmatprep.subr.bf16.mxu0 %v15983_v5  ;;  %v16062_v5 = vld [vmem:[%s21773_s1 + $0x2c74] ss:$8 sps:$4 sm:$0xff]  }
 0x52b   :  { %10744 = vmatpush1.bf16.msra.mxu1 %v15978_v6  ;;  %v16057_v6 = vld [vmem:[%s21773_s1 + $0x1570] ss:$8 sps:$4 sm:$0xff]  }
 0x52c   :  { %11687 = vmatpush1.bf16.msra.mxu0 %v15981_v17  ;;  %10745 = vmatprep.subr.bf16.mxu1 %v15986_v8  ;;  %v16060_v17 = vld [vmem:[%s21773_s1 + $0x2c70] ss:$8 sps:$4 sm:$0xff]   ;;  %v16065_v8 = vld [vmem:[%s21773_s1 + $0x1584] ss:$8 sps:$4 sm:$0xff]  }
 0x52d   :  { %11688 = vmatprep.subr.bf16.mxu0 %v15989_v9  ;;  %v16068_v9 = vld [vmem:[%s21773_s1 + $0x2c84] ss:$8 sps:$4 sm:$0xff]  }
 0x52f   :  { %10746 = vmatpush1.bf16.msra.mxu1 %v15984_v40  ;;  %v16063_v40 = vld [vmem:[%s21773_s1 + $0x1580] ss:$8 sps:$4 sm:$0xff]  }
 0x530   :  { %11689 = vmatpush1.bf16.msra.mxu0 %v15987_v11  ;;  %10747 = vmatprep.subr.bf16.mxu1 %v15992_v13  ;;  %v16066_v11 = vld [vmem:[%s21773_s1 + $0x2c80] ss:$8 sps:$4 sm:$0xff]   ;;  %v16071_v13 = vld [vmem:[%s21773_s1 + $0x1594] ss:$8 sps:$4 sm:$0xff]  }
 0x531   :  { %11690 = vmatprep.subr.bf16.mxu0 %v15995_v7  ;;  %v16074_v7 = vld [vmem:[%s21773_s1 + $0x2c94] ss:$8 sps:$4 sm:$0xff]  }
 0x533   :  { %10748 = vmatpush1.bf16.msra.mxu1 %v15990_v23  ;;  %v16069_v23 = vld [vmem:[%s21773_s1 + $0x1590] ss:$8 sps:$4 sm:$0xff]  }
 0x534   :  { %11691 = vmatpush1.bf16.msra.mxu0 %v15993_v16  ;;  %10749 = vmatprep.subr.bf16.mxu1 %v15998_v0  ;;  %v16072_v16 = vld [vmem:[%s21773_s1 + $0x2c90] ss:$8 sps:$4 sm:$0xff]   ;;  %v16077_v0 = vld [vmem:[%s21773_s1 + $0x15a4] ss:$8 sps:$4 sm:$0xff]  }
 0x535   :  { %11692 = vmatprep.subr.bf16.mxu0 %v16001_v18  ;;  %v16080_v18 = vld [vmem:[%s21773_s1 + $0x2ca4] ss:$8 sps:$4 sm:$0xff]  }
 0x537   :  { %10750 = vmatpush1.bf16.msra.mxu1 %v15996_v19  ;;  %v16075_v19 = vld [vmem:[%s21773_s1 + $0x15a0] ss:$8 sps:$4 sm:$0xff]  }
 0x538   :  { %11693 = vmatpush1.bf16.msra.mxu0 %v15999_v30  ;;  %10751 = vmatprep.subr.bf16.mxu1 %v16004_v21  ;;  %v16078_v30 = vld [vmem:[%s21773_s1 + $0x2ca0] ss:$8 sps:$4 sm:$0xff]   ;;  %v16083_v21 = vld [vmem:[%s21773_s1 + $0x15b4] ss:$8 sps:$4 sm:$0xff]  }
 0x539   :  { %11694 = vmatprep.subr.bf16.mxu0 %v16007_v22  ;;  %v16086_v22 = vld [vmem:[%s21773_s1 + $0x2cb4] ss:$8 sps:$4 sm:$0xff]  }
 0x53b   :  { %10752 = vmatpush1.bf16.msra.mxu1 %v16002_v24  ;;  %v16084_v24 = vld [vmem:[%s21773_s1 + $0x2cb0] ss:$8 sps:$4 sm:$0xff]  }
 0x53c   :  { %11695 = vmatpush1.bf16.msra.mxu0 %v16005_v26  ;;  %10753 = vmatprep.subr.bf16.mxu1 %v16010_v20  ;;  %v16089_v26 = vld [vmem:[%s21773_s1 + $0x15c4] ss:$8 sps:$4 sm:$0xff]  }
 0x53d   :  { %11696 = vmatprep.subr.bf16.mxu0 %v16013_v36  ;;  %v16092_v20 = vld [vmem:[%s21773_s1 + $0x2cc4] ss:$8 sps:$4 sm:$0xff]   ;;  %v16087_v36 = vld [vmem:[%s21773_s1 + $0x15c0] ss:$8 sps:$4 sm:$0xff]  }
 0x53f   :  { %10754 = vmatpush1.bf16.msra.mxu1 %v16008_v29  ;;  %v16090_v29 = vld [vmem:[%s21773_s1 + $0x2cc0] ss:$8 sps:$4 sm:$0xff]  }
 0x540   :  { %11697 = vmatpush1.bf16.msra.mxu0 %v16011_v12  ;;  %10764 = vmatprep.subr.bf16.mxu1 %v16016_v31  ;;  %v16095_v12 = vld [vmem:[%s21773_s1 + $0x15d4] ss:$8 sps:$4 sm:$0xff]  }
 0x541   :  { %11707 = vmatprep.subr.bf16.mxu0 %v16020_v32  ;;  %v16098_v31 = vld [vmem:[%s21773_s1 + $0x2cd4] ss:$8 sps:$4 sm:$0xff]   ;;  %v16093_v32 = vld [vmem:[%s21773_s1 + $0x15d0] ss:$8 sps:$4 sm:$0xff]  }
 0x542   :  { %10756 = vmatmul.mubr.bf16.vlgmr.msra.gmra.mrb[0].mxu1 %v619_v35  ;;  %v16104_v35 = vld [vmem:[%s21773_s1 + $0x2ce4] ss:$8 sps:$4 sm:$0xff]  }
 0x543   :  { %11699 = vmatmul.mubr.bf16.vlgmr.msra.gmra.mrb[0].mxu0 %v665_v41  ;;  %10765 = vmatpush1.bf16.msra.mxu1 %v16014_v50  ;;  %v449_v41 = vcombine.high %v20846_v33, %v20846_v33  ;;  %v16099_v50 = vld [vmem:[%s21773_s1 + $0x15e0] ss:$8 sps:$4 sm:$0xff]   ;;  %v16110_v33 = vld [vmem:[%s21773_s1 + $0x2cf4] ss:$8 sps:$4 sm:$0xff]  }
 0x544   :  { %11708 = vmatpush1.bf16.msra.mxu0 %v16018_v38  ;;  %10766 = vmatprep.subr.bf16.mxu1 %v16023_v39  ;;  %v16102_v38 = vld [vmem:[%s21773_s1 + $0x2ce0] ss:$8 sps:$4 sm:$0xff]   ;;  %v16107_v39 = vld [vmem:[%s21773_s1 + $0x15f4] ss:$8 sps:$4 sm:$0xff]  }
 0x545   :  { %11709 = vmatprep.subr.bf16.mxu0 %v16026_v54  ;;  %10796 = vmatprep.mubr.bf16.mxu1 %v622_v15  ;;  %v21072_v54 = vld.sshfl [vmem:[%s21772_s0 + $0x58] sm:$0xff pattern:$0x76325410]  ;;  %v21075_v15 = vrot.slane %v449_v41, %v16509_v49 }
 0x546   :  { %11739 = vmatprep.mubr.bf16.mxu0 %v668_v44  ;;  %v16105_v44 = vld [vmem:[%s21773_s1 + $0x15f0] ss:$8 sps:$4 sm:$0xff]  }
 0x547   :  { %10767 = vmatpush1.bf16.msra.mxu1 %v16021_v45  ;;  %v16108_v45 = vld [vmem:[%s21773_s1 + $0x2cf0] ss:$8 sps:$4 sm:$0xff]  }
 0x548   :  { %11710 = vmatpush1.bf16.msra.mxu0 %v16024_v25  ;;  %10768 = vmatprep.subr.bf16.mxu1 %v16029_v47  ;;  %v16114_v25 = vld [vmem:[%s21773_s1 + $0x1604] ss:$8 sps:$4 sm:$0xff]   ;;  %v16181_v41 = vld [vmem:[%s21773_s1 + $0x2db0] ss:$8 sps:$4 sm:$0xff]  }
 0x549   :  { %11711 = vmatprep.subr.bf16.mxu0 %v16032_v48  ;;  %v16117_v47 = vld [vmem:[%s21773_s1 + $0x2d04] ss:$8 sps:$4 sm:$0xff]   ;;  %v277_v48 = vcombine.high %v21072_v54, %v21072_v54 }
 0x54b   :  { %10769 = vmatpush1.bf16.msra.mxu1 %v16027_v59  ;;  %v465_v59 = vcombine.high %v21075_v15, %v21075_v15 }
 0x54c   :  { %11712 = vmatpush1.bf16.msra.mxu0 %v16030_v51  ;;  %10770 = vmatprep.subr.bf16.mxu1 %v16035_v52  ;;  %v621_v51 = vpack.c.bf16 %v20861_v2, %v20861_v2  ;;  %v667_v52 = vpack.c.bf16 %v20865_v28, %v20865_v28  ;;  %v16123_v2 = vld [vmem:[%s21773_s1 + $0x2d14] ss:$8 sps:$4 sm:$0xff]   ;;  %v624_v28 = vpack.c.bf16 %v277_v48, %v277_v48  ;;  %v16198_v48 = vld [vmem:[%s21773_s1 + $0x16e4] ss:$8 sps:$4 sm:$0xff]  }
 0x54d   :  { %11713 = vmatprep.subr.bf16.mxu0 %v16038_v14  ;;  %v16112_v14 = vld [vmem:[%s21773_s1 + $0x1600] ss:$8 sps:$4 sm:$0xff]  }
 0x54f   :  { %10771 = vmatpush1.bf16.msra.mxu1 %v16033_v62  ;;  %v16115_v62 = vld [vmem:[%s21773_s1 + $0x2d00] ss:$8 sps:$4 sm:$0xff]  }
 0x550   :  { %11714 = vmatpush1.bf16.msra.mxu0 %v16036_v55  ;;  %10772 = vmatprep.subr.bf16.mxu1 %v16041_v56  ;;  %v16120_v55 = vld [vmem:[%s21773_s1 + $0x1614] ss:$8 sps:$4 sm:$0xff]   ;;  %v670_v56 = vpack.c.bf16 %v465_v59, %v465_v59  ;;  %v16201_v59 = vld [vmem:[%s21773_s1 + $0x2de4] ss:$8 sps:$4 sm:$0xff]  }
 0x551   :  { %11715 = vmatprep.subr.bf16.mxu0 %v16044_v27  ;;  %v16118_v27 = vld [vmem:[%s21773_s1 + $0x1610] ss:$8 sps:$4 sm:$0xff]  }
 0x553   :  { %10773 = vmatpush1.bf16.msra.mxu1 %v16039_v58  ;;  %v16121_v58 = vld [vmem:[%s21773_s1 + $0x2d10] ss:$8 sps:$4 sm:$0xff]  }
 0x554   :  { %11716 = vmatpush1.bf16.msra.mxu0 %v16042_v4  ;;  %10774 = vmatprep.subr.bf16.mxu1 %v16047_v60  ;;  %v16126_v4 = vld [vmem:[%s21773_s1 + $0x1624] ss:$8 sps:$4 sm:$0xff]  }
 0x555   :  { %11717 = vmatprep.subr.bf16.mxu0 %v16050_v61  ;;  %v16129_v60 = vld [vmem:[%s21773_s1 + $0x2d24] ss:$8 sps:$4 sm:$0xff]   ;;  %v16124_v61 = vld [vmem:[%s21773_s1 + $0x1620] ss:$8 sps:$4 sm:$0xff]  }
 0x557   :  { %10775 = vmatpush1.bf16.msra.mxu1 %v16045_v57  ;;  %v16127_v57 = vld [vmem:[%s21773_s1 + $0x2d20] ss:$8 sps:$4 sm:$0xff]  }
 0x558   :  { %11718 = vmatpush1.bf16.msra.mxu0 %v16048_v63  ;;  %10776 = vmatprep.subr.bf16.mxu1 %v16053_v1  ;;  %v16132_v63 = vld [vmem:[%s21773_s1 + $0x1634] ss:$8 sps:$4 sm:$0xff]  }
 0x559   :  { %11719 = vmatprep.subr.bf16.mxu0 %v16056_v42  ;;  %v16135_v1 = vld [vmem:[%s21773_s1 + $0x2d34] ss:$8 sps:$4 sm:$0xff]   ;;  %v16130_v42 = vld [vmem:[%s21773_s1 + $0x1630] ss:$8 sps:$4 sm:$0xff]  }
 0x55b   :  { %10777 = vmatpush1.bf16.msra.mxu1 %v16051_v10  ;;  %v16133_v10 = vld [vmem:[%s21773_s1 + $0x2d30] ss:$8 sps:$4 sm:$0xff]  }
 0x55c   :  { %11720 = vmatpush1.bf16.msra.mxu0 %v16054_v3  ;;  %10778 = vmatprep.subr.bf16.mxu1 %v16059_v53  ;;  %v16138_v3 = vld [vmem:[%s21773_s1 + $0x1644] ss:$8 sps:$4 sm:$0xff]  }
 0x55d   :  { %11721 = vmatprep.subr.bf16.mxu0 %v16062_v5  ;;  %v16141_v53 = vld [vmem:[%s21773_s1 + $0x2d44] ss:$8 sps:$4 sm:$0xff]   ;;  %v16136_v5 = vld [vmem:[%s21773_s1 + $0x1640] ss:$8 sps:$4 sm:$0xff]  }
 0x55f   :  { %10779 = vmatpush1.bf16.msra.mxu1 %v16057_v6  ;;  %v16139_v6 = vld [vmem:[%s21773_s1 + $0x2d40] ss:$8 sps:$4 sm:$0xff]  }
 0x560   :  { %11722 = vmatpush1.bf16.msra.mxu0 %v16060_v17  ;;  %10780 = vmatprep.subr.bf16.mxu1 %v16065_v8  ;;  %v16144_v17 = vld [vmem:[%s21773_s1 + $0x1654] ss:$8 sps:$4 sm:$0xff]  }
 0x561   :  { %11723 = vmatprep.subr.bf16.mxu0 %v16068_v9  ;;  %v16147_v8 = vld [vmem:[%s21773_s1 + $0x2d54] ss:$8 sps:$4 sm:$0xff]   ;;  %v16142_v9 = vld [vmem:[%s21773_s1 + $0x1650] ss:$8 sps:$4 sm:$0xff]  }
 0x563   :  { %10781 = vmatpush1.bf16.msra.mxu1 %v16063_v40  ;;  %v16145_v40 = vld [vmem:[%s21773_s1 + $0x2d50] ss:$8 sps:$4 sm:$0xff]  }
 0x564   :  { %11724 = vmatpush1.bf16.msra.mxu0 %v16066_v11  ;;  %10782 = vmatprep.subr.bf16.mxu1 %v16071_v13  ;;  %v16150_v11 = vld [vmem:[%s21773_s1 + $0x1664] ss:$8 sps:$4 sm:$0xff]  }
 0x565   :  { %11725 = vmatprep.subr.bf16.mxu0 %v16074_v7  ;;  %v16153_v13 = vld [vmem:[%s21773_s1 + $0x2d64] ss:$8 sps:$4 sm:$0xff]   ;;  %v16148_v7 = vld [vmem:[%s21773_s1 + $0x1660] ss:$8 sps:$4 sm:$0xff]  }
 0x567   :  { %10783 = vmatpush1.bf16.msra.mxu1 %v16069_v23  ;;  %v16151_v23 = vld [vmem:[%s21773_s1 + $0x2d60] ss:$8 sps:$4 sm:$0xff]  }
 0x568   :  { %11726 = vmatpush1.bf16.msra.mxu0 %v16072_v16  ;;  %10784 = vmatprep.subr.bf16.mxu1 %v16077_v0  ;;  %v16156_v16 = vld [vmem:[%s21773_s1 + $0x1674] ss:$8 sps:$4 sm:$0xff]  }
 0x569   :  { %11727 = vmatprep.subr.bf16.mxu0 %v16080_v18  ;;  %v16159_v0 = vld [vmem:[%s21773_s1 + $0x2d74] ss:$8 sps:$4 sm:$0xff]   ;;  %v16154_v18 = vld [vmem:[%s21773_s1 + $0x1670] ss:$8 sps:$4 sm:$0xff]  }
 0x56b   :  { %10785 = vmatpush1.bf16.msra.mxu1 %v16075_v19  ;;  %v16157_v19 = vld [vmem:[%s21773_s1 + $0x2d70] ss:$8 sps:$4 sm:$0xff]  }
 0x56c   :  { %11728 = vmatpush1.bf16.msra.mxu0 %v16078_v30  ;;  %10786 = vmatprep.subr.bf16.mxu1 %v16083_v21  ;;  %v16162_v30 = vld [vmem:[%s21773_s1 + $0x1684] ss:$8 sps:$4 sm:$0xff]  }
 0x56d   :  { %11729 = vmatprep.subr.bf16.mxu0 %v16086_v22  ;;  %v16165_v21 = vld [vmem:[%s21773_s1 + $0x2d84] ss:$8 sps:$4 sm:$0xff]   ;;  %v16160_v22 = vld [vmem:[%s21773_s1 + $0x1680] ss:$8 sps:$4 sm:$0xff]  }
 0x56f   :  { %10787 = vmatpush1.bf16.msra.mxu1 %v16081_v37  ;;  %v16163_v37 = vld [vmem:[%s21773_s1 + $0x2d80] ss:$8 sps:$4 sm:$0xff]  }
 0x570   :  { %11730 = vmatpush1.bf16.msra.mxu0 %v16084_v24  ;;  %10788 = vmatprep.subr.bf16.mxu1 %v16089_v26  ;;  %v16168_v24 = vld [vmem:[%s21773_s1 + $0x1694] ss:$8 sps:$4 sm:$0xff]  }
 0x571   :  { %11731 = vmatprep.subr.bf16.mxu0 %v16092_v20  ;;  %v16171_v26 = vld [vmem:[%s21773_s1 + $0x2d94] ss:$8 sps:$4 sm:$0xff]   ;;  %v16166_v20 = vld [vmem:[%s21773_s1 + $0x1690] ss:$8 sps:$4 sm:$0xff]  }
 0x573   :  { %10789 = vmatpush1.bf16.msra.mxu1 %v16087_v36  ;;  %v16169_v36 = vld [vmem:[%s21773_s1 + $0x2d90] ss:$8 sps:$4 sm:$0xff]  }
 0x574   :  { %11732 = vmatpush1.bf16.msra.mxu0 %v16090_v29  ;;  %10790 = vmatprep.subr.bf16.mxu1 %v16095_v12  ;;  %v16174_v29 = vld [vmem:[%s21773_s1 + $0x16a4] ss:$8 sps:$4 sm:$0xff]  }
 0x575   :  { %11733 = vmatprep.subr.bf16.mxu0 %v16098_v31  ;;  %v16177_v12 = vld [vmem:[%s21773_s1 + $0x2da4] ss:$8 sps:$4 sm:$0xff]   ;;  %v16172_v31 = vld [vmem:[%s21773_s1 + $0x16a0] ss:$8 sps:$4 sm:$0xff]  }
 0x577   :  { %10791 = vmatpush1.bf16.msra.mxu1 %v16093_v32  ;;  %v16175_v32 = vld [vmem:[%s21773_s1 + $0x2da0] ss:$8 sps:$4 sm:$0xff]  }
 0x578   :  { %11734 = vmatpush1.bf16.msra.mxu0 %v16096_v46  ;;  %10792 = vmatprep.subr.bf16.mxu1 %v16101_v34  ;;  %v16180_v46 = vld [vmem:[%s21773_s1 + $0x16b4] ss:$8 sps:$4 sm:$0xff]  }
 0x579   :  { %11735 = vmatprep.subr.bf16.mxu0 %v16104_v35  ;;  %v16183_v34 = vld [vmem:[%s21773_s1 + $0x2db4] ss:$8 sps:$4 sm:$0xff]   ;;  %v16178_v35 = vld [vmem:[%s21773_s1 + $0x16b0] ss:$8 sps:$4 sm:$0xff]  }
 0x57b   :  { %10793 = vmatpush1.bf16.msra.mxu1 %v16099_v50  ;;  %v16186_v50 = vld [vmem:[%s21773_s1 + $0x16c4] ss:$8 sps:$4 sm:$0xff]  }
 0x57c   :  { %11736 = vmatpush1.bf16.msra.mxu0 %v16102_v38  ;;  %10794 = vmatprep.subr.bf16.mxu1 %v16107_v39  ;;  %v16189_v38 = vld [vmem:[%s21773_s1 + $0x2dc4] ss:$8 sps:$4 sm:$0xff]   ;;  %v16184_v39 = vld [vmem:[%s21773_s1 + $0x16c0] ss:$8 sps:$4 sm:$0xff]  }
 0x57d   :  { %11737 = vmatprep.subr.bf16.mxu0 %v16110_v33  ;;  %v16187_v33 = vld [vmem:[%s21773_s1 + $0x2dc0] ss:$8 sps:$4 sm:$0xff]  }
 0x57f   :  { %10795 = vmatpush1.bf16.msra.mxu1 %v16105_v44  ;;  %v16192_v44 = vld [vmem:[%s21773_s1 + $0x16d4] ss:$8 sps:$4 sm:$0xff]  }
 0x580   :  { %11738 = vmatpush1.bf16.msra.mxu0 %v16108_v45  ;;  %10805 = vmatprep.subr.bf16.mxu1 %v16114_v25  ;;  %v16195_v45 = vld [vmem:[%s21773_s1 + $0x2dd4] ss:$8 sps:$4 sm:$0xff]   ;;  %v16190_v25 = vld [vmem:[%s21773_s1 + $0x16d0] ss:$8 sps:$4 sm:$0xff]  }
 0x581   :  { %11748 = vmatprep.subr.bf16.mxu0 %v16117_v47  ;;  %v16193_v47 = vld [vmem:[%s21773_s1 + $0x2dd0] ss:$8 sps:$4 sm:$0xff]  }
 0x582   :  { %10797 = vmatmul.mubr.bf16.vlgmr.msra.gmra.mrb[0].mxu1 %v621_v51  ;;  %v21268_v51 = vld [vmem:[%s21772_s0 + $0xb8] sm:$0xff] }
 0x583   :  { %11740 = vmatmul.mubr.bf16.vlgmr.msra.gmra.mrb[0].mxu0 %v667_v52  ;;  %10806 = vmatpush1.bf16.msra.mxu1 %v16112_v14  ;;  %v16196_v52 = vld [vmem:[%s21773_s1 + $0x16e0] ss:$8 sps:$4 sm:$0xff]  }
 0x584   :  { %11749 = vmatpush1.bf16.msra.mxu0 %v16115_v62  ;;  %10807 = vmatprep.subr.bf16.mxu1 %v16120_v55  ;;  %v16199_v14 = vld [vmem:[%s21773_s1 + $0x2de0] ss:$8 sps:$4 sm:$0xff]   ;;  %v21278_v62 = vrot.slane %v21268_v51, %v16509_v49  ;;  %v16204_v55 = vld [vmem:[%s21773_s1 + $0x16f4] ss:$8 sps:$4 sm:$0xff]  }
 0x585   :  { %11750 = vmatprep.subr.bf16.mxu0 %v16123_v2  ;;  %10837 = vmatprep.mubr.bf16.mxu1 %v624_v28  ;;  %v16207_v2 = vld [vmem:[%s21773_s1 + $0x2df4] ss:$8 sps:$4 sm:$0xff]   ;;  %v16202_v28 = vld [vmem:[%s21773_s1 + $0x16f0] ss:$8 sps:$4 sm:$0xff]  }
 0x586   :  { %11780 = vmatprep.mubr.bf16.mxu0 %v670_v56  ;;  %v16205_v56 = vld [vmem:[%s21773_s1 + $0x2df0] ss:$8 sps:$4 sm:$0xff]  }
 0x587   :  { %10808 = vmatpush1.bf16.msra.mxu1 %v16118_v27  ;;  %v481_v27 = vcombine.high %v21278_v62, %v21278_v62 }
 0x588   :  { %11751 = vmatpush1.bf16.msra.mxu0 %v16121_v58  ;;  %10809 = vmatprep.subr.bf16.mxu1 %v16126_v4  ;;  %v16211_v58 = vld [vmem:[%s21773_s1 + $0x2e04] ss:$8 sps:$4 sm:$0xff]   ;;  %v623_v4 = vpack.c.bf16 %v21072_v54, %v21072_v54  ;;  %v16212_v54 = vld [vmem:[%s21773_s1 + $0x2e10] ss:$8 sps:$4 sm:$0xff]  }
 0x589   :  { %11752 = vmatprep.subr.bf16.mxu0 %v16129_v60  ;;  %v669_v60 = vpack.c.bf16 %v21075_v15, %v21075_v15  ;;  %v16217_v15 = vld [vmem:[%s21773_s1 + $0x2e24] ss:$8 sps:$4 sm:$0xff]  }
 0x58b   :  { %10810 = vmatpush1.bf16.msra.mxu1 %v16124_v61  ;;  %v16209_v61 = vld [vmem:[%s21773_s1 + $0x2e00] ss:$8 sps:$4 sm:$0xff]  }
 0x58c   :  { %11753 = vmatpush1.bf16.msra.mxu0 %v16127_v57  ;;  %10811 = vmatprep.subr.bf16.mxu1 %v16132_v63  ;;  %v672_v57 = vpack.c.bf16 %v481_v27, %v481_v27  ;;  %v16214_v63 = vld [vmem:[%s21773_s1 + $0x2e14] ss:$8 sps:$4 sm:$0xff]  }
 0x58d   :  { %11754 = vmatprep.subr.bf16.mxu0 %v16135_v1  ;;  %v16215_v1 = vld [vmem:[%s21773_s1 + $0x2e20] ss:$8 sps:$4 sm:$0xff]  }
 0x58f   :  { %10812 = vmatpush1.bf16.msra.mxu1 %v16130_v42  ;;  %v16220_v42 = vld [vmem:[%s21773_s1 + $0x2e34] ss:$8 sps:$4 sm:$0xff]  }
 0x590   :  { %11755 = vmatpush1.bf16.msra.mxu0 %v16133_v10  ;;  %10813 = vmatprep.subr.bf16.mxu1 %v16138_v3  ;;  %v16218_v10 = vld [vmem:[%s21773_s1 + $0x2e30] ss:$8 sps:$4 sm:$0xff]   ;;  %v16223_v3 = vld [vmem:[%s21773_s1 + $0x2e44] ss:$8 sps:$4 sm:$0xff]  }
 0x591   :  { %11756 = vmatprep.subr.bf16.mxu0 %v16141_v53  ;;  %v16221_v53 = vld [vmem:[%s21773_s1 + $0x2e40] ss:$8 sps:$4 sm:$0xff]  }
 0x593   :  { %10814 = vmatpush1.bf16.msra.mxu1 %v16136_v5  ;;  %v16226_v5 = vld [vmem:[%s21773_s1 + $0x2e54] ss:$8 sps:$4 sm:$0xff]  }
 0x594   :  { %11757 = vmatpush1.bf16.msra.mxu0 %v16139_v6  ;;  %10815 = vmatprep.subr.bf16.mxu1 %v16144_v17  ;;  %v16224_v6 = vld [vmem:[%s21773_s1 + $0x2e50] ss:$8 sps:$4 sm:$0xff]   ;;  %v16229_v17 = vld [vmem:[%s21773_s1 + $0x2e64] ss:$8 sps:$4 sm:$0xff]  }
 0x595   :  { %11758 = vmatprep.subr.bf16.mxu0 %v16147_v8  ;;  %v16227_v8 = vld [vmem:[%s21773_s1 + $0x2e60] ss:$8 sps:$4 sm:$0xff]  }
 0x597   :  { %10816 = vmatpush1.bf16.msra.mxu1 %v16142_v9  ;;  %v16232_v9 = vld [vmem:[%s21773_s1 + $0x2e74] ss:$8 sps:$4 sm:$0xff]  }
 0x598   :  { %11759 = vmatpush1.bf16.msra.mxu0 %v16145_v40  ;;  %10817 = vmatprep.subr.bf16.mxu1 %v16150_v11  ;;  %v16230_v40 = vld [vmem:[%s21773_s1 + $0x2e70] ss:$8 sps:$4 sm:$0xff]   ;;  %v16235_v11 = vld [vmem:[%s21773_s1 + $0x2e84] ss:$8 sps:$4 sm:$0xff]  }
 0x599   :  { %11760 = vmatprep.subr.bf16.mxu0 %v16153_v13  ;;  %v16233_v13 = vld [vmem:[%s21773_s1 + $0x2e80] ss:$8 sps:$4 sm:$0xff]  }
 0x59b   :  { %10818 = vmatpush1.bf16.msra.mxu1 %v16148_v7  ;;  %v16238_v7 = vld [vmem:[%s21773_s1 + $0x2e94] ss:$8 sps:$4 sm:$0xff]  }
 0x59c   :  { %11761 = vmatpush1.bf16.msra.mxu0 %v16151_v23  ;;  %10819 = vmatprep.subr.bf16.mxu1 %v16156_v16  ;;  %v16236_v23 = vld [vmem:[%s21773_s1 + $0x2e90] ss:$8 sps:$4 sm:$0xff]   ;;  %v16241_v16 = vld [vmem:[%s21773_s1 + $0x2ea4] ss:$8 sps:$4 sm:$0xff]  }
 0x59d   :  { %11762 = vmatprep.subr.bf16.mxu0 %v16159_v0  ;;  %v16239_v0 = vld [vmem:[%s21773_s1 + $0x2ea0] ss:$8 sps:$4 sm:$0xff]  }
 0x59f   :  { %10820 = vmatpush1.bf16.msra.mxu1 %v16154_v18  ;;  %v16244_v18 = vld [vmem:[%s21773_s1 + $0x2eb4] ss:$8 sps:$4 sm:$0xff]  }
 0x5a0   :  { %11763 = vmatpush1.bf16.msra.mxu0 %v16157_v19  ;;  %10821 = vmatprep.subr.bf16.mxu1 %v16162_v30  ;;  %v16242_v19 = vld [vmem:[%s21773_s1 + $0x2eb0] ss:$8 sps:$4 sm:$0xff]   ;;  %v16247_v30 = vld [vmem:[%s21773_s1 + $0x2ec4] ss:$8 sps:$4 sm:$0xff]  }
 0x5a1   :  { %11764 = vmatprep.subr.bf16.mxu0 %v16165_v21  ;;  %v16245_v21 = vld [vmem:[%s21773_s1 + $0x2ec0] ss:$8 sps:$4 sm:$0xff]  }
 0x5a3   :  { %10822 = vmatpush1.bf16.msra.mxu1 %v16160_v22  ;;  %v16250_v22 = vld [vmem:[%s21773_s1 + $0x2ed4] ss:$8 sps:$4 sm:$0xff]  }
 0x5a4   :  { %11765 = vmatpush1.bf16.msra.mxu0 %v16163_v37  ;;  %10823 = vmatprep.subr.bf16.mxu1 %v16168_v24  ;;  %v16248_v37 = vld [vmem:[%s21773_s1 + $0x2ed0] ss:$8 sps:$4 sm:$0xff]   ;;  %v466_v24 = vcombine.high %v21268_v51, %v21268_v51  ;;  %v16280_v51 = vld [vmem:[%s21773_s1 + $0x2f74] ss:$8 sps:$4 sm:$0xff]  }
 0x5a5   :  { %11766 = vmatprep.subr.bf16.mxu0 %v16171_v26  ;;  %v16253_v26 = vld [vmem:[%s21773_s1 + $0x2ee4] ss:$8 sps:$4 sm:$0xff]  }
 0x5a7   :  { %10824 = vmatpush1.bf16.msra.mxu1 %v16166_v20  ;;  %v16251_v20 = vld [vmem:[%s21773_s1 + $0x2ee0] ss:$8 sps:$4 sm:$0xff]  }
 0x5a8   :  { %11767 = vmatpush1.bf16.msra.mxu0 %v16169_v36  ;;  %10825 = vmatprep.subr.bf16.mxu1 %v16174_v29  ;;  %v21391_v36 = vrot.slane %v466_v24, %v16509_v49  ;;  %v16256_v29 = vld [vmem:[%s21773_s1 + $0x2ef4] ss:$8 sps:$4 sm:$0xff]   ;;  %v671_v49 = vpack.c.bf16 %v21278_v62, %v21278_v62  ;;  %v11873_v62 = vld [vmem:[%s21775_s3] sm:$0xff] }
 0x5a9   :  { %11768 = vmatprep.subr.bf16.mxu0 %v16177_v12  ;;  %v16254_v12 = vld [vmem:[%s21773_s1 + $0x2ef0] ss:$8 sps:$4 sm:$0xff]  }
 0x5ab   :  { %10826 = vmatpush1.bf16.msra.mxu1 %v16172_v31  ;;  %v482_v31 = vcombine.high %v21391_v36, %v21391_v36 }
 0x5ac   :  { %11769 = vmatpush1.bf16.msra.mxu0 %v16175_v32  ;;  %10827 = vmatprep.subr.bf16.mxu1 %v16180_v46  ;;  %v16259_v32 = vld [vmem:[%s21773_s1 + $0x2f04] ss:$8 sps:$4 sm:$0xff]   ;;  %v16257_v46 = vld [vmem:[%s21773_s1 + $0x2f00] ss:$8 sps:$4 sm:$0xff]  }
 0x5ad   :  { %11770 = vmatprep.subr.bf16.mxu0 %v16183_v34  ;;  %v674_v34 = vpack.c.bf16 %v482_v31, %v482_v31  ;;  %v11900_v31 = vld [vmem:[%s21775_s3 + $0xd8] sm:$0xff] }
 0x5af   :  { %10828 = vmatpush1.bf16.msra.mxu1 %v16178_v35  ;;  %v16262_v35 = vld [vmem:[%s21773_s1 + $0x2f14] ss:$8 sps:$4 sm:$0xff]  }
 0x5b0   :  { %11771 = vmatpush1.bf16.msra.mxu0 %v16181_v41  ;;  %10829 = vmatprep.subr.bf16.mxu1 %v16186_v50  ;;  %v16260_v41 = vld [vmem:[%s21773_s1 + $0x2f10] ss:$8 sps:$4 sm:$0xff]   ;;  %v16265_v50 = vld [vmem:[%s21773_s1 + $0x2f24] ss:$8 sps:$4 sm:$0xff]  }
 0x5b1   :  { %11772 = vmatprep.subr.bf16.mxu0 %v16189_v38  ;;  %v16263_v38 = vld [vmem:[%s21773_s1 + $0x2f20] ss:$8 sps:$4 sm:$0xff]  }
 0x5b3   :  { %10830 = vmatpush1.bf16.msra.mxu1 %v16184_v39  ;;  %v16268_v39 = vld [vmem:[%s21773_s1 + $0x2f34] ss:$8 sps:$4 sm:$0xff]  }
 0x5b4   :  { %11773 = vmatpush1.bf16.msra.mxu0 %v16187_v33  ;;  %10831 = vmatprep.subr.bf16.mxu1 %v16192_v44  ;;  %v16266_v33 = vld [vmem:[%s21773_s1 + $0x2f30] ss:$8 sps:$4 sm:$0xff]   ;;  %v16271_v44 = vld [vmem:[%s21773_s1 + $0x2f44] ss:$8 sps:$4 sm:$0xff]  }
 0x5b5   :  { %11774 = vmatprep.subr.bf16.mxu0 %v16195_v45  ;;  %v16269_v45 = vld [vmem:[%s21773_s1 + $0x2f40] ss:$8 sps:$4 sm:$0xff]  }
 0x5b7   :  { %10832 = vmatpush1.bf16.msra.mxu1 %v16190_v25  ;;  %v16274_v25 = vld [vmem:[%s21773_s1 + $0x2f54] ss:$8 sps:$4 sm:$0xff]  }
 0x5b8   :  { %11775 = vmatpush1.bf16.msra.mxu0 %v16193_v47  ;;  %10833 = vmatprep.subr.bf16.mxu1 %v16198_v48  ;;  %v16272_v47 = vld [vmem:[%s21773_s1 + $0x2f50] ss:$8 sps:$4 sm:$0xff]   ;;  %v16277_v48 = vld [vmem:[%s21773_s1 + $0x2f64] ss:$8 sps:$4 sm:$0xff]  }
 0x5b9   :  { %11776 = vmatprep.subr.bf16.mxu0 %v16201_v59  ;;  %v16275_v59 = vld [vmem:[%s21773_s1 + $0x2f60] ss:$8 sps:$4 sm:$0xff]  }
 0x5bb   :  { %10834 = vmatpush1.bf16.msra.mxu1 %v16196_v52  ;;  %v11874_v52 = vld [vmem:[%s21775_s3 + $0x8] sm:$0xff] }
 0x5bc   :  { %11777 = vmatpush1.bf16.msra.mxu0 %v16199_v14  ;;  %10835 = vmatprep.subr.bf16.mxu1 %v16204_v55  ;;  %v11876_v14 = vld [vmem:[%s21775_s3 + $0x18] sm:$0xff] }
 0x5bd   :  { %11778 = vmatprep.subr.bf16.mxu0 %v16207_v2  ;;  %v13708_v55 = vpack.c.bf16 %v11876_v14, %v11874_v52  ;;  %v11875_v2 = vld [vmem:[%s21775_s3 + $0x10] sm:$0xff]  ;;  %v16301_v52 = vld [vmem:[%s21773_s1 + $0x2fe4] ss:$8 sps:$4 sm:$0xff]  }
 0x5be   :  { %v13710_v27 = vpack.c.bf16 %v11875_v2, %v11873_v62  ;;  %v11907_v2 = vld [vmem:[%s21775_s3 + $0x110] sm:$0xff] }
 0x5bf   :  { %10836 = vmatpush1.bf16.msra.mxu1 %v16202_v28  ;;  %v11878_v28 = vld [vmem:[%s21775_s3 + $0x28] sm:$0xff] }
 0x5c0   :  { %11779 = vmatpush1.bf16.msra.mxu0 %v16205_v56  ;;  %v11880_v56 = vld [vmem:[%s21775_s3 + $0x38] sm:$0xff]  ;;  %13709 = vmatprep.subr.bf16.mxu1 %v13708_v55  ;;  %v11905_v55 = vld [vmem:[%s21775_s3 + $0x100] sm:$0xff] }
 0x5c1   :  { %11789 = vmatprep.subr.bf16.mxu0 %v16211_v58  ;;  %v13712_v58 = vpack.c.bf16 %v11880_v56, %v11878_v28  ;;  %v11910_v28 = vld [vmem:[%s21775_s3 + $0x128] sm:$0xff]  ;;  %v11912_v56 = vld [vmem:[%s21775_s3 + $0x138] sm:$0xff] }
 0x5c2   :  { %10838 = vmatmul.mubr.bf16.vlgmr.msra.gmra.mrb[0].mxu1 %v623_v4  ;;  %v11877_v4 = vld [vmem:[%s21775_s3 + $0x20] sm:$0xff] }
 0x5c3   :  { %11781 = vmatmul.mubr.bf16.vlgmr.msra.gmra.mrb[0].mxu0 %v669_v60  ;;  %v11879_v60 = vld [vmem:[%s21775_s3 + $0x30] sm:$0xff]  ;;  %13711 = vmatpush1.bf16.msra.mxu1 %v13710_v27  ;;  %v16299_v27 = vld [vmem:[%s21773_s1 + $0x2fe0] ss:$8 sps:$4 sm:$0xff]  }
 0x5c4   :  { %11790 = vmatpush1.bf16.msra.mxu0 %v16209_v61  ;;  %11821 = vmatprep.mubr.bf16.mxu0 %v672_v57  ;;  %v11882_v61 = vld [vmem:[%s21775_s3 + $0x48] sm:$0xff]  ;;  %v16278_v57 = vld [vmem:[%s21773_s1 + $0x2f70] ss:$8 sps:$4 sm:$0xff]  }
 0x5c5   :  { %11791 = vmatprep.subr.bf16.mxu0 %v16214_v63  ;;  %v11884_v63 = vld [vmem:[%s21775_s3 + $0x58] sm:$0xff]  ;;  %13713 = vmatprep.subr.bf16.mxu1 %v13712_v58 }
 0x5c6   :  { %v16304_v58 = vld [vmem:[%s21773_s1 + $0x2ff4] ss:$8 sps:$4 sm:$0xff]  }
 0x5c8   :  { %11792 = vmatpush1.bf16.msra.mxu0 %v16212_v54  ;;  %v16283_v54 = vld [vmem:[%s21773_s1 + $0x2f84] ss:$8 sps:$4 sm:$0xff]  }
 0x5c9   :  { %11793 = vmatprep.subr.bf16.mxu0 %v16217_v15  ;;  %v13714_v15 = vpack.c.bf16 %v11879_v60, %v11877_v4  ;;  %v13742_v4 = vpack.c.bf16 %v11907_v2, %v11905_v55  ;;  %v13744_v60 = vpack.c.bf16 %v11912_v56, %v11910_v28  ;;  %v12016_v28 = vld [vmem:[%s21777_s5 + $0x30] sm:$0xff]  ;;  %v12017_v56 = vld [vmem:[%s21777_s5 + $0x38] sm:$0xff] }
 0x5cb   :  { %13715 = vmatpush1.bf16.msra.mxu1 %v13714_v15  ;;  %v16302_v15 = vld [vmem:[%s21773_s1 + $0x2ff0] ss:$8 sps:$4 sm:$0xff]  }
 0x5cc   :  { %11794 = vmatpush1.bf16.msra.mxu0 %v16215_v1  ;;  %v13716_v1 = vpack.c.bf16 %v11884_v63, %v11882_v61  ;;  %v11909_v61 = vld [vmem:[%s21775_s3 + $0x120] sm:$0xff]  ;;  %v11914_v63 = vld [vmem:[%s21775_s3 + $0x148] sm:$0xff] }
 0x5cd   :  { %11795 = vmatprep.subr.bf16.mxu0 %v16220_v42  ;;  %v11881_v42 = vld [vmem:[%s21775_s3 + $0x40] sm:$0xff] }
 0x5ce   :  { %13717 = vmatprep.subr.bf16.mxu1 %v13716_v1 }
 0x5d0   :  { %11796 = vmatpush1.bf16.msra.mxu0 %v16218_v10  ;;  %v11883_v10 = vld [vmem:[%s21775_s3 + $0x50] sm:$0xff] }
 0x5d1   :  { %11797 = vmatprep.subr.bf16.mxu0 %v16223_v3  ;;  %v11886_v3 = vld [vmem:[%s21775_s3 + $0x68] sm:$0xff] }
 0x5d4   :  { %11798 = vmatpush1.bf16.msra.mxu0 %v16221_v53  ;;  %v11888_v53 = vld [vmem:[%s21775_s3 + $0x78] sm:$0xff] }
 0x5d5   :  { %11799 = vmatprep.subr.bf16.mxu0 %v16226_v5  ;;  %v16281_v5 = vld [vmem:[%s21773_s1 + $0x2f80] ss:$8 sps:$4 sm:$0xff]  }
 0x5d8   :  { %11800 = vmatpush1.bf16.msra.mxu0 %v16224_v6  ;;  %v16286_v6 = vld [vmem:[%s21773_s1 + $0x2f94] ss:$8 sps:$4 sm:$0xff]  }
 0x5d9   :  { %11801 = vmatprep.subr.bf16.mxu0 %v16229_v17  ;;  %v13718_v17 = vpack.c.bf16 %v11883_v10, %v11881_v42  ;;  %v673_v10 = vpack.c.bf16 %v21391_v36, %v21391_v36  ;;  %v11920_v36 = vld [vmem:[%s21775_s3 + $0x178] sm:$0xff] }
 0x5db   :  { %13719 = vmatpush1.bf16.msra.mxu1 %v13718_v17  ;;  %v11918_v17 = vld [vmem:[%s21775_s3 + $0x168] sm:$0xff] }
 0x5dc   :  { %11802 = vmatpush1.bf16.msra.mxu0 %v16227_v8  ;;  %v13720_v8 = vpack.c.bf16 %v11888_v53, %v11886_v3  ;;  %v11913_v3 = vld [vmem:[%s21775_s3 + $0x140] sm:$0xff]  ;;  %v11915_v53 = vld [vmem:[%s21775_s3 + $0x150] sm:$0xff] }
 0x5dd   :  { %11803 = vmatprep.subr.bf16.mxu0 %v16232_v9  ;;  %v11885_v9 = vld [vmem:[%s21775_s3 + $0x60] sm:$0xff] }
 0x5de   :  { %13721 = vmatprep.subr.bf16.mxu1 %v13720_v8 }
 0x5e0   :  { %11804 = vmatpush1.bf16.msra.mxu0 %v16230_v40  ;;  %v11887_v40 = vld [vmem:[%s21775_s3 + $0x70] sm:$0xff] }
 0x5e1   :  { %11805 = vmatprep.subr.bf16.mxu0 %v16235_v11  ;;  %v11890_v11 = vld [vmem:[%s21775_s3 + $0x88] sm:$0xff] }
 0x5e4   :  { %11806 = vmatpush1.bf16.msra.mxu0 %v16233_v13  ;;  %v11892_v13 = vld [vmem:[%s21775_s3 + $0x98] sm:$0xff] }
 0x5e5   :  { %11807 = vmatprep.subr.bf16.mxu0 %v16238_v7  ;;  %v16284_v7 = vld [vmem:[%s21773_s1 + $0x2f90] ss:$8 sps:$4 sm:$0xff]  }
 0x5e8   :  { %11808 = vmatpush1.bf16.msra.mxu0 %v16236_v23  ;;  %v16289_v23 = vld [vmem:[%s21773_s1 + $0x2fa4] ss:$8 sps:$4 sm:$0xff]  }
 0x5e9   :  { %11809 = vmatprep.subr.bf16.mxu0 %v16241_v16  ;;  %v13722_v16 = vpack.c.bf16 %v11887_v40, %v11885_v9  ;;  %v13752_v9 = vpack.c.bf16 %v11920_v36, %v11918_v17  ;;  %v11917_v40 = vld [vmem:[%s21775_s3 + $0x160] sm:$0xff]  ;;  %v12023_v36 = vld [vmem:[%s21777_s5 + $0x68] sm:$0xff] }
 0x5ea   :  { %v12022_v17 = vld [vmem:[%s21777_s5 + $0x60] sm:$0xff] }
 0x5eb   :  { %13723 = vmatpush1.bf16.msra.mxu1 %v13722_v16  ;;  %v12026_v16 = vld [vmem:[%s21777_s5 + $0x80] sm:$0xff] }
 0x5ec   :  { %11810 = vmatpush1.bf16.msra.mxu0 %v16239_v0  ;;  %v13724_v0 = vpack.c.bf16 %v11892_v13, %v11890_v11  ;;  %v11919_v11 = vld [vmem:[%s21775_s3 + $0x170] sm:$0xff] }
 0x5ed   :  { %11811 = vmatprep.subr.bf16.mxu0 %v16244_v18  ;;  %v11889_v18 = vld [vmem:[%s21775_s3 + $0x80] sm:$0xff] }
 0x5ee   :  { %13725 = vmatprep.subr.bf16.mxu1 %v13724_v0  ;;  %v12027_v0 = vld [vmem:[%s21777_s5 + $0x88] sm:$0xff] }
 0x5f0   :  { %11812 = vmatpush1.bf16.msra.mxu0 %v16242_v19  ;;  %v11891_v19 = vld [vmem:[%s21775_s3 + $0x90] sm:$0xff] }
 0x5f1   :  { %11813 = vmatprep.subr.bf16.mxu0 %v16247_v30  ;;  %v11894_v30 = vld [vmem:[%s21775_s3 + $0xa8] sm:$0xff]  ;;  %v13726_v24 = vpack.c.bf16 %v11891_v19, %v11889_v18  ;;  %v13756_v18 = vpack.c.bf16 %v12027_v0, %v12026_v16  ;;  %v2215_v19 = vsub.s32 0, %v16491_v43  ;;  %v11921_v16 = vld [vmem:[%s21776_s4] sm:$0x3]  ;;  %s16333_s4 = smov [#allocation2]  }
 0x5f2   :  { %s12127_s23 = sshll.u32 %s16333_s4, 4  ;;  %s12128_s23 = int_to_ptr.vmem [resolvable:$true] %s12127_s23 }
 0x5f3   :  { %13727 = vmatpush1.bf16.msra.mxu1 %v13726_v24  ;;  %v11926_v0 = vrot.slane %v11921_v16, %v2215_v19  ;;  %s16308_s24 = scalar_lea.vmem %s12128_s23, 32  ;;  %p16313_p1 = scmp.lt.s32.totalorder %s12128_s23, %s12128_s23 }
 0x5f4   :  { %11814 = vmatpush1.bf16.msra.mxu0 %v16245_v21  ;;  %v11896_v21 = vld [vmem:[%s21775_s3 + $0xb8] sm:$0xff]  ;;  %p16309_p0 = scmp.ne.s32.totalorder %s12128_s23, %s16308_s24  ;;  %p16314_p2 = scmp.lt.s32.totalorder %s16308_s24, %s16308_s24 }
 0x5f5   :  { %11815 = vmatprep.subr.bf16.mxu0 %v16250_v22  ;;  %v16287_v22 = vld [vmem:[%s21773_s1 + $0x2fa0] ss:$8 sps:$4 sm:$0xff]  }
 0x5f6   :  { %p16315_p3 = por %p16314_p2, %p16313_p1 }
 0x5f8   :  { %11816 = vmatpush1.bf16.msra.mxu0 %v16248_v37  ;;  %v16292_v37 = vld [vmem:[%s21773_s1 + $0x2fb4] ss:$8 sps:$4 sm:$0xff]   ;;  %p16316_p4 = pnand %p16315_p3, %p16309_p0 }
 0x5f9   :  { %11817 = vmatprep.subr.bf16.mxu0 %v16253_v26  ;;  %v13728_v26 = vpack.c.bf16 %v11896_v21, %v11894_v30  ;;  %v2211_v30 = vld [vmem:[%s21774_s2] sm:$0x3]  ;;  %v2219_v21 = vsub.s32 1, %v16491_v43 }
 0x5fb   :  { %13729 = vmatprep.subr.bf16.mxu1 %v13728_v26 }
 0x5fc   :  { %11818 = vmatpush1.bf16.msra.mxu0 %v16251_v20  ;;  %v11893_v20 = vld [vmem:[%s21775_s3 + $0xa0] sm:$0xff] }
 0x5fd   :  { %11819 = vmatprep.subr.bf16.mxu0 %v16256_v29  ;;  %v11895_v29 = vld [vmem:[%s21775_s3 + $0xb0] sm:$0xff] }
 0x600   :  { %11820 = vmatpush1.bf16.msra.mxu0 %v16254_v12  ;;  %v11898_v12 = vld [vmem:[%s21775_s3 + $0xc8] sm:$0xff] }
 0x601   :  { %11830 = vmatprep.subr.bf16.mxu0 %v16259_v32  ;;  %v16290_v32 = vld [vmem:[%s21773_s1 + $0x2fb0] ss:$8 sps:$4 sm:$0xff]  }
 0x603   :  { %11822 = vmatmul.mubr.bf16.vlgmr.msra.gmra.mrb[0].mxu0 %v671_v49  ;;  %v16295_v49 = vld [vmem:[%s21773_s1 + $0x2fc4] ss:$8 sps:$4 sm:$0xff]  }
 0x604   :  { %11831 = vmatpush1.bf16.msra.mxu0 %v16257_v46  ;;  %11862 = vmatprep.mubr.bf16.mxu0 %v674_v34  ;;  %v13730_v46 = vpack.c.bf16 %v11895_v29, %v11893_v20  ;;  %v13732_v34 = vpack.c.bf16 %v11900_v31, %v11898_v12  ;;  %v12010_v31 = vld [vmem:[%s21777_s5] sm:$0xff] }
 0x605   :  { %11832 = vmatprep.subr.bf16.mxu0 %v16262_v35  ;;  %v11897_v35 = vld [vmem:[%s21775_s3 + $0xc0] sm:$0xff] }
 0x606   :  { %13731 = vmatpush1.bf16.msra.mxu1 %v13730_v46 }
 0x607   :  { %13733 = vmatprep.subr.bf16.mxu1 %v13732_v34  ;;  %v12028_v34 = vld [vmem:[%s21777_s5 + $0x90] sm:$0xff] }
 0x608   :  { %11833 = vmatpush1.bf16.msra.mxu0 %v16260_v41  ;;  %v11899_v41 = vld [vmem:[%s21775_s3 + $0xd0] sm:$0xff] }
 0x609   :  { %11834 = vmatprep.subr.bf16.mxu0 %v16265_v50  ;;  %v11902_v50 = vld [vmem:[%s21775_s3 + $0xe8] sm:$0xff] }
 0x60c   :  { %11835 = vmatpush1.bf16.msra.mxu0 %v16263_v38  ;;  %v11904_v38 = vld [vmem:[%s21775_s3 + $0xf8] sm:$0xff] }
 0x60d   :  { %11836 = vmatprep.subr.bf16.mxu0 %v16268_v39  ;;  %v16293_v39 = vld [vmem:[%s21773_s1 + $0x2fc0] ss:$8 sps:$4 sm:$0xff]  }
 0x610   :  { %11837 = vmatpush1.bf16.msra.mxu0 %v16266_v33  ;;  %v16298_v33 = vld [vmem:[%s21773_s1 + $0x2fd4] ss:$8 sps:$4 sm:$0xff]  }
 0x611   :  { %11838 = vmatprep.subr.bf16.mxu0 %v16271_v44  ;;  %v13734_v44 = vpack.c.bf16 %v11899_v41, %v11897_v35  ;;  %v12029_v35 = vld [vmem:[%s21777_s5 + $0x98] sm:$0xff] }
 0x613   :  { %13735 = vmatpush1.bf16.msra.mxu1 %v13734_v44  ;;  %v12012_v44 = vld [vmem:[%s21777_s5 + $0x10] sm:$0xff] }
 0x614   :  { %11839 = vmatpush1.bf16.msra.mxu0 %v16269_v45  ;;  %v13736_v45 = vpack.c.bf16 %v11904_v38, %v11902_v50 }
 0x615   :  { %11840 = vmatprep.subr.bf16.mxu0 %v16274_v25  ;;  %v11901_v25 = vld [vmem:[%s21775_s3 + $0xe0] sm:$0xff] }
 0x616   :  { %13737 = vmatprep.subr.bf16.mxu1 %v13736_v45  ;;  %v12013_v45 = vld [vmem:[%s21777_s5 + $0x18] sm:$0xff] }
 0x618   :  { %11841 = vmatpush1.bf16.msra.mxu0 %v16272_v47  ;;  %v11903_v47 = vld [vmem:[%s21775_s3 + $0xf0] sm:$0xff] }
 0x619   :  { %11842 = vmatprep.subr.bf16.mxu0 %v16277_v48  ;;  %v11906_v48 = vld [vmem:[%s21775_s3 + $0x108] sm:$0xff]  ;;  %v13738_v14 = vpack.c.bf16 %v11903_v47, %v11901_v25  ;;  %v12030_v25 = vld [vmem:[%s21777_s5 + $0xa0] sm:$0xff] }
 0x61a   :  { %v12031_v47 = vld [vmem:[%s21777_s5 + $0xa8] sm:$0xff] }
 0x61b   :  { %13739 = vmatpush1.bf16.msra.mxu1 %v13738_v14  ;;  %v12032_v14 = vld [vmem:[%s21777_s5 + $0xb0] sm:$0xff] }
 0x61c   :  { %11843 = vmatpush1.bf16.msra.mxu0 %v16275_v59  ;;  %v11908_v59 = vld [vmem:[%s21775_s3 + $0x118] sm:$0xff] }
 0x61d   :  { %11844 = vmatprep.subr.bf16.mxu0 %v16280_v51  ;;  %v16296_v51 = vld [vmem:[%s21773_s1 + $0x2fd0] ss:$8 sps:$4 sm:$0xff]   ;;  %v13740_v62 = vpack.c.bf16 %v11908_v59, %v11906_v48  ;;  %v13762_v48 = vpack.c.bf16 %v12013_v45, %v12012_v44  ;;  %v13764_v59 = vpack.c.bf16 %v12031_v47, %v12030_v25 }
 0x61f   :  { %13741 = vmatprep.subr.bf16.mxu1 %v13740_v62  ;;  %v12033_v62 = vld [vmem:[%s21777_s5 + $0xb8] sm:$0xff] }
 0x620   :  { %11845 = vmatpush1.bf16.msra.mxu0 %v16278_v57  ;;  %v11911_v57 = vld [vmem:[%s21775_s3 + $0x130] sm:$0xff]  ;;  %13743 = vmatpush1.bf16.msra.mxu1 %v13742_v4  ;;  %v13768_v2 = vpack.c.bf16 %v12033_v62, %v12032_v14  ;;  %v13770_v4 = vpack.c.bf16 %v12017_v56, %v12016_v28 }
 0x621   :  { %11846 = vmatprep.subr.bf16.mxu0 %v16283_v54  ;;  %v11916_v54 = vld [vmem:[%s21775_s3 + $0x158] sm:$0xff]  ;;  %v13746_v1 = vpack.c.bf16 %v11911_v57, %v11909_v61  ;;  %13745 = vmatprep.subr.bf16.mxu1 %v13744_v60  ;;  %v12018_v61 = vld [vmem:[%s21777_s5 + $0x40] sm:$0xff]  ;;  %v12019_v57 = vld [vmem:[%s21777_s5 + $0x48] sm:$0xff] }
 0x622   :  { %v13748_v42 = vpack.c.bf16 %v11916_v54, %v11914_v63  ;;  %v12036_v63 = vld [vmem:[%s21777_s5 + $0xd0] sm:$0xff]  ;;  %v12037_v54 = vld [vmem:[%s21777_s5 + $0xd8] sm:$0xff] }
 0x624   :  { %11847 = vmatpush1.bf16.msra.mxu0 %v16281_v5  ;;  %13747 = vmatpush1.bf16.msra.mxu1 %v13746_v1  ;;  %v13750_v5 = vpack.c.bf16 %v11915_v53, %v11913_v3  ;;  %v13776_v1 = vpack.c.bf16 %v12037_v54, %v12036_v63  ;;  %v12038_v3 = vld [vmem:[%s21777_s5 + $0xe0] sm:$0xff]  ;;  %v12039_v53 = vld [vmem:[%s21777_s5 + $0xe8] sm:$0xff] }
 0x625   :  { %11848 = vmatprep.subr.bf16.mxu0 %v16286_v6  ;;  %13749 = vmatprep.subr.bf16.mxu1 %v13748_v42  ;;  %v12020_v42 = vld [vmem:[%s21777_s5 + $0x50] sm:$0xff] }
 0x628   :  { %11849 = vmatpush1.bf16.msra.mxu0 %v16284_v7  ;;  %13751 = vmatpush1.bf16.msra.mxu1 %v13750_v5  ;;  %v13754_v7 = vpack.c.bf16 %v11919_v11, %v11917_v40  ;;  %v12041_v40 = vld [vmem:[%s21777_s5 + $0xf8] sm:$0xff] }
 0x629   :  { %11850 = vmatprep.subr.bf16.mxu0 %v16289_v23  ;;  %13753 = vmatprep.subr.bf16.mxu1 %v13752_v9  ;;  %v12040_v9 = vld [vmem:[%s21777_s5 + $0xf0] sm:$0xff] }
 0x62a   :  { %v13784_v11 = vpack.c.bf16 %v12041_v40, %v12040_v9 }
 0x62c   :  { %11851 = vmatpush1.bf16.msra.mxu0 %v16287_v22  ;;  %13755 = vmatpush1.bf16.msra.mxu1 %v13754_v7  ;;  %v2216_v22 = vrot.slane %v2211_v30, %v2215_v19  ;;  %v12025_v7 = vld [vmem:[%s21777_s5 + $0x78] sm:$0xff] }
 0x62d   :  { %11852 = vmatprep.subr.bf16.mxu0 %v16292_v37  ;;  %13757 = vmatprep.subr.bf16.mxu1 %v13756_v18  ;;  %v2220_v37 = vrot.slane %v2211_v30, %v2219_v21  ;;  %v11930_v18 = vrot.slane %v11921_v16, %v2219_v21 }
 0x630   :  { %11853 = vmatpush1.bf16.msra.mxu0 %v16290_v32  ;;  %v12011_v32 = vld [vmem:[%s21777_s5 + $0x8] sm:$0xff] }
 0x631   :  { %11854 = vmatprep.subr.bf16.mxu0 %v16295_v49  ;;  %v13758_v38 = vpack.c.bf16 %v12011_v32, %v12010_v31 }
 0x634   :  { %11855 = vmatpush1.bf16.msra.mxu0 %v16293_v39 }
 0x635   :  { %11856 = vmatprep.subr.bf16.mxu0 %v16298_v33  ;;  %v13760_v33 = vpack.c.bf16 %v12029_v35, %v12028_v34 }
 0x638   :  { %11857 = vmatpush1.bf16.msra.mxu0 %v16296_v51  ;;  %v12014_v51 = vld [vmem:[%s21777_s5 + $0x20] sm:$0xff] }
 0x639   :  { %11858 = vmatprep.subr.bf16.mxu0 %v16301_v52  ;;  %v12015_v52 = vld [vmem:[%s21777_s5 + $0x28] sm:$0xff] }
 0x63a   :  { %v13766_v55 = vpack.c.bf16 %v12015_v52, %v12014_v51 }
 0x63c   :  { %11859 = vmatpush1.bf16.msra.mxu0 %v16299_v27  ;;  %v12034_v27 = vld [vmem:[%s21777_s5 + $0xc0] sm:$0xff] }
 0x63d   :  { %11860 = vmatprep.subr.bf16.mxu0 %v16304_v58  ;;  %v12035_v58 = vld [vmem:[%s21777_s5 + $0xc8] sm:$0xff] }
 0x63e   :  { %v13772_v60 = vpack.c.bf16 %v12035_v58, %v12034_v27 }
 0x640   :  { %11861 = vmatpush1.bf16.msra.mxu0 %v16302_v15  ;;  %v13774_v15 = vpack.c.bf16 %v12019_v57, %v12018_v61 }
 0x643   :  { %11863 = vmatmul.mubr.bf16.vlgmr.msra.gmra.mrb[0].mxu0 %v673_v10  ;;  %v12021_v10 = vld [vmem:[%s21777_s5 + $0x58] sm:$0xff] }
 0x644   :  { %v13778_v5 = vpack.c.bf16 %v12021_v10, %v12020_v42 }
 0x695   :  { %v10839_v6 = vpop.f32.mrb[0].mxu1 }
 0x696   :  { %v10841_v8 = vpop.f32.mrb[1].mxu1  ;;  %v13788_v24 = vadd.f32 %v10839_v6, %v2216_v22  ;;  %v13780_v6 = vpack.c.bf16 %v12039_v53, %v12038_v3 }
 0x697   :  { %v10843_v13 = vpop.f32.mrb[2].mxu1  ;;  %v13790_v26 = vadd.f32 %v10841_v8, %v2220_v37  ;;  %v13782_v8 = vpack.c.bf16 %v12023_v36, %v12022_v17 }
 0x698   :  { %v10844_v23 = vpop.f32.mrb[3].mxu1  ;;  %v12024_v13 = vld [vmem:[%s21777_s5 + $0x70] sm:$0xff] }
 0x699   :  { %v13786_v23 = vpack.c.bf16 %v12025_v7, %v12024_v13 }
 0x716   :  { %v11864_v20 = vpop.f32.mrb[0].mxu0 }
 0x717   :  { %v13789_v29 = vadd.f32 %v13788_v24, %v11864_v20  ;;  %v11866_v12 = vpop.f32.mrb[1].mxu0 }
 0x718   :  { %v13791_v49 = vadd.f32 %v13790_v26, %v11866_v12  ;;  %v11868_v46 = vpop.f32.mrb[2].mxu0  ;;  %v13672_v12 = vld [vmem:[%s21778_s6] ss:$0 sm:$0xff] }
 0x719   :  { %v11869_v41 = vpop.f32.mrb[3].mxu0  ;;  %v11871_v39 = vmax.f32 %v13789_v29, 0.0 }
 0x71a   :  { %v11872_v50 = vmax.f32 %v13791_v49, 0.0 }
 0x71c   :  { %13671 = vmatprep.mubr.msk.f32.mxu1 %vm11933_vm0, %v11872_v50 }
 0x71d   :  { %12002 = vmatmul.mubr.f32.vlgmr.msra.gmra.mrb[4].mxu1 %v11871_v39 }
 0x71e   :  { %13759 = vmatpush3.bf16.msra.mxu1 %v13758_v38 }
 0x71f   :  { %13761 = vmatprep.subr.bf16.mxu1 %v13760_v33 }
 0x722   :  { %13763 = vmatpush3.bf16.msra.mxu1 %v13762_v48 }
 0x723   :  { %13765 = vmatprep.subr.bf16.mxu1 %v13764_v59 }
 0x726   :  { %13767 = vmatpush3.bf16.msra.mxu1 %v13766_v55 }
 0x727   :  { %13769 = vmatprep.subr.bf16.mxu1 %v13768_v2 }
 0x72a   :  { %13771 = vmatpush3.bf16.msra.mxu1 %v13770_v4 }
 0x72b   :  { %13773 = vmatprep.subr.bf16.mxu1 %v13772_v60 }
 0x72e   :  { %13775 = vmatpush3.bf16.msra.mxu1 %v13774_v15 }
 0x72f   :  { %13777 = vmatprep.subr.bf16.mxu1 %v13776_v1 }
 0x732   :  { %13779 = vmatpush3.bf16.msra.mxu1 %v13778_v5 }
 0x733   :  { %13781 = vmatprep.subr.bf16.mxu1 %v13780_v6 }
 0x736   :  { %13783 = vmatpush3.bf16.msra.mxu1 %v13782_v8 }
 0x737   :  { %13785 = vmatprep.subr.bf16.mxu1 %v13784_v11 }
 0x73a   :  { %13787 = vmatpush3.bf16.msra.mxu1 %v13786_v23 }
 0x7f0   :  { %v12003_v30 = vpop.f32.mrb[4].mxu1 }
 0x7f1   :  { %v12004_v22 = vadd.f32 %v12003_v30, %v11926_v0  ;;  %v12005_v37 = vpop.f32.mrb[5].mxu1 }
 0x7f2   :  { %v12006_v24 = vadd.f32 %v12005_v37, %v11930_v18 }
 0x7f3   :  { %v12008_v20 = vmax.f32 %v12004_v22, 0.0 }
 0x7f4   :  { %v12009_v26 = vmax.f32 %v12006_v24, 0.0 }
 0x7f6   :  { %12113 = vmatprep.mubr.f32.mxu1 %v12009_v26 }
 0x7f7   :  { %12114 = vmatmul.mubr.f32.vlgmr.msra.gmra.mrb[6].mxu1 %v12008_v20 }
 0x8ca   :  { %v13705_v29 = vpop.f32.mrb[6].mxu1 }
 0x8cb   :  { %v13706_v31 = vpop.f32.mrb[7].mxu1 }
 0x8cc   :  { %v13707_v19 = vadd.f32 %v13706_v31, %v13705_v29 }
 0x8ce   :  { %v12116_v43 = vadd.f32 %v13707_v19, %v13672_v12 }
 0x8d0   :  { %12120 = vst.msk [vmem:[#allocation2] sm:$0x3] %vm12119_vm1, %v12116_v43 }
 0x8d1   :  { %16319 = shalt.err (!%p16316_p4)
}
 0x8d2   :  { %s16320_s1 = scalar_lea.hbm %s21779_s7, 32 }
 0x8d3   :  { %p16321_p5 = scmp.ne.s32.totalorder %s21779_s7, %s16320_s1  ;;  %p16324_p6 = scmp.lt.u32.totalorder %s16320_s1, %s21779_s7 }
 0x8d5   :  { %p16326_p7 = pnand %p16324_p6, %p16321_p5 }
 0x8d7   :  { %16329 = shalt.err (!%p16326_p7)
}
 0x8d8   :  { %12130 = dma.vmem_to_hbm [thread:$0]  %s12128_s23, 32, %s21779_s7, [#allocation3]  }
 0x8d9   :  { %16330 = dma.done.wait [#allocation3], 32  }
 0x8da   :  { %16331 = vsyncadd [#allocation3], 4294967264 }
 0x8db   :  { %12134 = vsyncpa [#allocation3], 1 }

</bundles_post_ra>
